<compile_context>
chip_gen: v6e
topology: v6e:2x2x1
jax: 0.10.0
libtpu: 0.0.40
codegen_flags: <defaults>
</compile_context>

<pallas_src>
import functools

import numpy as np
import jax
import jax.numpy as jnp
from jax.experimental import pallas as pl
from jax.experimental.pallas import tpu as pltpu


# ----------------------------------------------------------------------------
# In-kernel helpers
# ----------------------------------------------------------------------------
def _roll_w(x, shift):
    """jnp.roll along the last (lane/time) axis with a *static* shift.

    result[..., i] = x[..., (i - shift) mod W]  (circular).
    Implemented as a concatenation of two static lane slices.
    """
    W = x.shape[-1]
    s = shift % W
    if s == 0:
        return x
    return jnp.concatenate([x[..., W - s:], x[..., :W - s]], axis=-1)


def _circ_conv_s1(w_ref, x):
    """Stride-1 circular conv as K-tap MXU accumulation.

    w_ref: (K, Cout, Cin) bf16 ref, x: (Cin, W) bf16 value -> (Cout, W) f32.
    """
    K = w_ref.shape[0]
    pad = (K - 1) // 2
    acc = None
    for t in range(K):
        xs = _roll_w(x, -(t - pad))
        term = jnp.dot(w_ref[t], xs, preferred_element_type=jnp.float32)
        acc = term if acc is None else acc + term
    return acc


def _circ_conv_s2(w_ref, x_even, x_odd):
    """Stride-2 circular conv via even/odd phase decomposition.

    out[:, w] = sum_t w[t] @ x[:, (2w + t - pad) mod W]
    with x_even[:, j] = x[:, 2j], x_odd[:, j] = x[:, 2j+1]   (W even).
    """
    K = w_ref.shape[0]
    pad = (K - 1) // 2
    acc = None
    for t in range(K):
        m = t - pad
        if m % 2 == 0:
            src = _roll_w(x_even, -(m // 2))
        else:
            src = _roll_w(x_odd, -((m - 1) // 2))
        term = jnp.dot(w_ref[t], src, preferred_element_type=jnp.float32)
        acc = term if acc is None else acc + term
    return acc


# ----------------------------------------------------------------------------
# Pallas kernels
# ----------------------------------------------------------------------------
def _stem_kernel(xe_ref, xo_ref, w_ref, s_ref, b_ref, o_ref):
    """ResNet stem: Conv(1->16, K=15, stride 2, circular) + BN + ReLU.

    Cin == 1, so each tap is a (16,1)x(1,W) broadcast multiply on the VPU
    (no point burning MXU cycles on K=1 matmuls).
    xe/xo: (1, Wh) f32, w: (15, 16, 1) f32, s/b: (16, 1) f32, out: (16, Wh) bf16.
    """
    xe = xe_ref[...]
    xo = xo_ref[...]
    K = w_ref.shape[0]
    pad = (K - 1) // 2
    acc = jnp.zeros(o_ref.shape, jnp.float32)
    for t in range(K):
        m = t - pad
        if m % 2 == 0:
            src = _roll_w(xe, -(m // 2))
        else:
            src = _roll_w(xo, -((m - 1) // 2))
        acc = acc + w_ref[t] * src                       # (16,1)*(1,Wh) -> (16,Wh)
    acc = acc * s_ref[...] + b_ref[...]
    o_ref[...] = jnp.maximum(acc, 0.0).astype(o_ref.dtype)


def _block_kernel(*refs, stride, has_ds):
    """One full BasicBlock_2d fused into a single kernel.

    conv1(stride) -> bn1 -> relu -> conv2(stride 1) -> bn2 -> (+ residual) -> relu
    residual = bn_d(1x1 conv(stride)) if has_ds else identity.
    All matmul operands bf16; accumulation + epilogue f32; output stored bf16.
    """
    refs = list(refs)
    if stride == 2:
        xe = refs.pop(0)[...]
        xo = refs.pop(0)[...]
        x = None
    else:
        x = refs.pop(0)[...]
    c1_ref = refs.pop(0)
    c2_ref = refs.pop(0)
    dw_ref = refs.pop(0) if has_ds else None
    s1 = refs.pop(0)[...]
    b1 = refs.pop(0)[...]
    s2 = refs.pop(0)[...]
    b2 = refs.pop(0)[...]
    if has_ds:
        ds = refs.pop(0)[...]
        db = refs.pop(0)[...]
    o_ref = refs.pop(0)

    # conv1 -> bn1 -> relu
    if stride == 2:
        acc1 = _circ_conv_s2(c1_ref, xe, xo)
    else:
        acc1 = _circ_conv_s1(c1_ref, x)
    h1 = jnp.maximum(acc1 * s1 + b1, 0.0)
    h1b = h1.astype(jnp.bfloat16)

    # conv2 (stride 1) -> bn2
    out = _circ_conv_s1(c2_ref, h1b) * s2 + b2

    # residual path
    if has_ds:
        if stride == 2:
            # 1x1 conv, stride 2, pad 0  ->  res[:, w] = dw @ x[:, 2w] = dw @ x_even[:, w]
            res = jnp.dot(dw_ref[0], xe, preferred_element_type=jnp.float32)
        else:
            res = jnp.dot(dw_ref[0], x, preferred_element_type=jnp.float32)
        res = res * ds + db
    else:
        res = x.astype(jnp.float32)

    o_ref[...] = jnp.maximum(out + res, 0.0).astype(o_ref.dtype)


# ----------------------------------------------------------------------------
# Wrappers (pallas_call plumbing)
# ----------------------------------------------------------------------------
def _compiler_params():
    return pltpu.CompilerParams(dimension_semantics=("parallel",))


def stem_conv(x, w, bn_s, bn_b):
    """x: (B, 1, W) f32 -> (B, 16, W//2) bf16."""
    B, _, W = x.shape
    assert W % 2 == 0
    Wh = W // 2
    xe = x[:, :, 0::2]                                   # (B, 1, Wh)
    xo = x[:, :, 1::2]

    in_specs = [
        pl.BlockSpec((None, 1, Wh), lambda b: (b, 0, 0)),
        pl.BlockSpec((None, 1, Wh), lambda b: (b, 0, 0)),
        pl.BlockSpec(w.shape, lambda b: (0, 0, 0)),
        pl.BlockSpec(bn_s.shape, lambda b: (0, 0)),
        pl.BlockSpec(bn_b.shape, lambda b: (0, 0)),
    ]
    return pl.pallas_call(
        _stem_kernel,
        grid=(B,),
        in_specs=in_specs,
        out_specs=pl.BlockSpec((None, 16, Wh), lambda b: (b, 0, 0)),
        out_shape=jax.ShapeDtypeStruct((B, 16, Wh), jnp.bfloat16),
        compiler_params=_compiler_params(),
    )(xe, xo, w, bn_s, bn_b)


def basic_block(x, p, stride):
    """x: (B, Cin, W) bf16 -> (B, 32, W//stride) bf16.  One pallas_call."""
    B, Cin, W = x.shape
    Cout = 32
    has_ds = 'dw' in p
    Wout = W // stride

    kernel = functools.partial(_block_kernel, stride=stride, has_ds=has_ds)

    args, in_specs = [], []
    if stride == 2:
        assert W % 2 == 0
        args += [x[:, :, 0::2], x[:, :, 1::2]]
        in_specs += [pl.BlockSpec((None, Cin, Wout), lambda b: (b, 0, 0))] * 2
    else:
        args += [x]
        in_specs += [pl.BlockSpec((None, Cin, W), lambda b: (b, 0, 0))]

    args += [p['c1_w'], p['c2_w']]
    in_specs += [pl.BlockSpec(p['c1_w'].shape, lambda b: (0, 0, 0)),
                 pl.BlockSpec(p['c2_w'].shape, lambda b: (0, 0, 0))]
    if has_ds:
        args += [p['dw']]
        in_specs += [pl.BlockSpec(p['dw'].shape, lambda b: (0, 0, 0))]

    args += [p['bn1_s'], p['bn1_b'], p['bn2_s'], p['bn2_b']]
    in_specs += [pl.BlockSpec((Cout, 1), lambda b: (0, 0))] * 4
    if has_ds:
        args += [p['dbn_s'], p['dbn_b']]
        in_specs += [pl.BlockSpec((Cout, 1), lambda b: (0, 0))] * 2

    return pl.pallas_call(
        kernel,
        grid=(B,),
        in_specs=in_specs,
        out_specs=pl.BlockSpec((None, Cout, Wout), lambda b: (b, 0, 0)),
        out_shape=jax.ShapeDtypeStruct((B, Cout, Wout), jnp.bfloat16),
        compiler_params=_compiler_params(),
    )(*args)


# ----------------------------------------------------------------------------
# Model forward
# ----------------------------------------------------------------------------
def model_forward(x_enc, params):
    """x_enc: (batch, leads, mel_time) f32 -> logits (batch, num_classes) f32."""
    x = x_enc[:, 1, :]                                   # x_enc[:, 1, :]
    B, W = x.shape
    x = x.reshape(B, 1, W).astype(jnp.float32)           # (B, in_channel=1, W), H==1 squeezed

    # ResNet: conv1 -> bn1 -> relu -> layer1 -> layer2 -> layer3
    h = stem_conv(x, params['conv1_w'], params['bn1_s'], params['bn1_b'])
    for blocks, stride in zip(params['layers'], (1, 2, 2)):
        h = basic_block(h, blocks[0], stride)
        h = basic_block(h, blocks[1], 1)

    # flatten (B, 32, Wf) -> (B, 32*Wf), same element order as PyTorch (C, H=1, W)
    feat = h.reshape(B, -1).astype(jnp.float32)

    # projection Linear(d_model*seq_len, num_classes): tiny (num_classes=5) ->
    # plain XLA dot; a dedicated pallas_call would cost more than it saves.
    logits = feat @ params['proj_w'].T + params['proj_b']
    return logits


# ----------------------------------------------------------------------------
# Deterministic parameter initialization (shapes match the PyTorch module)
# ----------------------------------------------------------------------------
def init_params(key, num_classes, mel_time):
    eps = 1e-5
    bn_sc = float(1.0 / np.sqrt(1.0 + eps))              # gamma=1, running var=1
    keys = iter(jax.random.split(key, 64))

    def conv_w(o, c, kh, kw, dtype=jnp.bfloat16):
        # kaiming-normal (fan_out) like PyTorch, then collapse the H taps
        # (exact because H==1 with circular height padding), stored as
        # (KW, Cout, Cin) so each tap slice is a clean (Cout, Cin) MXU tile.
        std = float(np.sqrt(2.0 / (o * kh * kw)))
        w4 = jax.random.normal(next(keys), (o, c, kh, kw), jnp.float32) * std
        w3 = jnp.sum(w4, axis=2)                         # (O, C, KW)
        return jnp.transpose(w3, (2, 0, 1)).astype(dtype)

    def bn(c):
        return (jnp.full((c, 1), bn_sc, jnp.float32),
                jnp.zeros((c, 1), jnp.float32))

    params = {}
    # stem: Conv2d(1, 16, (3,15), stride=(1,2), pad=(1,7), circular)  -- Cin=1,
    # kept in f32 (VPU broadcast path).
    params['conv1_w'] = conv_w(16, 1, 3, 15, dtype=jnp.float32)       # (15, 16, 1)
    params['bn1_s'], params['bn1_b'] = bn(16)

    layers = []
    in_c = 16
    for _stride in (1, 2, 2):
        blocks = []
        # first block of each layer: 1x1 conv + BN downsample
        blk = {
            'c1_w': conv_w(32, in_c, 3, 7),              # (7, 32, in_c) bf16
            'c2_w': conv_w(32, 32, 3, 7),                # (7, 32, 32)   bf16
            'dw':   conv_w(32, in_c, 1, 1),              # (1, 32, in_c) bf16
        }
        blk['bn1_s'], blk['bn1_b'] = bn(32)
        blk['bn2_s'], blk['bn2_b'] = bn(32)
        blk['dbn_s'], blk['dbn_b'] = bn(32)
        blocks.append(blk)
        in_c = 32
        # second block: identity residual
        blk = {'c1_w': conv_w(32, 32, 3, 7), 'c2_w': conv_w(32, 32, 3, 7)}
        blk['bn1_s'], blk['bn1_b'] = bn(32)
        blk['bn2_s'], blk['bn2_b'] = bn(32)
        blocks.append(blk)
        layers.append(blocks)
    params['layers'] = layers

    # projection: Linear(d_model*seq_len, num_classes); flattened ResNet output
    # has 32 * (mel_time // 8) features == d_model * seq_len.
    feat = 32 * (mel_time // 8)
    bound = float(1.0 / np.sqrt(feat))
    params['proj_w'] = jax.random.uniform(next(keys), (num_classes, feat),
                                          jnp.float32, -bound, bound)
    params['proj_b'] = jax.random.uniform(next(keys), (num_classes,),
                                          jnp.float32, -bound, bound)
    return params


# ----------------------------------------------------------------------------
if __name__ == "__main__":
    key = jax.random.PRNGKey(0)
    k_x, k_p = jax.random.split(key)

    # small shapes consistent with the module:
    #   in_channel = 1  (required by x_enc.view(batch, in_channel, -1, mel_time))
    #   configs.d_model * configs.seq_len = 32 * (mel_time // 8) = 128
    B, leads, mel_time = 2, 3, 32
    num_classes = 5

    x_enc = jax.random.normal(k_x, (B, leads, mel_time), jnp.float32)
    params = init_params(k_p, num_classes=num_classes, mel_time=mel_time)

    fwd = jax.jit(model_forward)
    out = fwd(x_enc, params)
    out = jax.block_until_ready(out)
    assert out.shape == (B, num_classes), out.shape
    assert bool(jnp.all(jnp.isfinite(out)))
    print("KERNEL_OK")
</pallas_src>

<mosaic_0001>
module attributes {stable_mosaic.version = 11 : i64} {
  func.func @_stem_kernel(%arg0: i32, %arg1: memref<1x1x16xf32, #tpu.memory_space<vmem>>, %arg2: memref<1x1x16xf32, #tpu.memory_space<vmem>>, %arg3: memref<15x16x1xf32, #tpu.memory_space<vmem>>, %arg4: memref<16x1xf32, #tpu.memory_space<vmem>>, %arg5: memref<16x1xf32, #tpu.memory_space<vmem>>, %arg6: memref<1x16x16xbf16, #tpu.memory_space<vmem>>) attributes {dimension_semantics = [#tpu.dimension_semantics<parallel>], iteration_bounds = array<i64: 2>, scalar_prefetch = 0 : i64, scratch_operands = 0 : i64, tpu.core_type = #tpu.core_type<tc>, window_params = [{transform_indices = @transform_0, window_bounds = array<i64: 1, 1, 16>}, {transform_indices = @transform_1, window_bounds = array<i64: 1, 1, 16>}, {pipeline_mode = #tpu.pipeline_mode<synchronous>, transform_indices = @transform_2, window_bounds = array<i64: 15, 16, 1>}, {pipeline_mode = #tpu.pipeline_mode<synchronous>, transform_indices = @transform_3, window_bounds = array<i64: 16, 1>}, {pipeline_mode = #tpu.pipeline_mode<synchronous>, transform_indices = @transform_4, window_bounds = array<i64: 16, 1>}, {transform_indices = @transform_5, window_bounds = array<i64: 1, 16, 16>}]} {
    %c0 = arith.constant 0 : index
    %c0_0 = arith.constant 0 : index
    %c0_1 = arith.constant 0 : index
    %0 = vector.load %arg1[%c0, %c0_0, %c0_1] : memref<1x1x16xf32, #tpu.memory_space<vmem>>, vector<1x1x16xf32>
    %1 = vector.shape_cast %0 : vector<1x1x16xf32> to vector<1x16xf32>
    %c0_2 = arith.constant 0 : index
    %c0_3 = arith.constant 0 : index
    %c0_4 = arith.constant 0 : index
    %2 = vector.load %arg2[%c0_2, %c0_3, %c0_4] : memref<1x1x16xf32, #tpu.memory_space<vmem>>, vector<1x1x16xf32>
    %3 = vector.shape_cast %2 : vector<1x1x16xf32> to vector<1x16xf32>
    %cst = arith.constant 0.000000e+00 : f32
    %4 = vector.broadcast %cst : f32 to vector<16x16xf32>
    %5 = vector.extract_strided_slice %3 {offsets = [0, 12], sizes = [1, 4], strides = [1, 1]} : vector<1x16xf32> to vector<1x4xf32>
    %6 = vector.extract_strided_slice %3 {offsets = [0, 0], sizes = [1, 12], strides = [1, 1]} : vector<1x16xf32> to vector<1x12xf32>
    %7 = tpu.concatenate %5, %6 in 1 : vector<1x4xf32>, vector<1x12xf32> -> vector<1x16xf32>
    %c0_5 = arith.constant 0 : index
    %c0_6 = arith.constant 0 : index
    %c0_7 = arith.constant 0 : index
    %8 = vector.load %arg3[%c0_5, %c0_6, %c0_7] : memref<15x16x1xf32, #tpu.memory_space<vmem>>, vector<1x16x1xf32>
    %9 = vector.shape_cast %8 : vector<1x16x1xf32> to vector<16x1xf32>
    %10 = vector.broadcast %9 : vector<16x1xf32> to vector<16x16xf32>
    %11 = vector.broadcast %7 : vector<1x16xf32> to vector<16x16xf32>
    %12 = arith.mulf %10, %11 : vector<16x16xf32>
    %13 = arith.addf %4, %12 : vector<16x16xf32>
    %14 = vector.extract_strided_slice %1 {offsets = [0, 13], sizes = [1, 3], strides = [1, 1]} : vector<1x16xf32> to vector<1x3xf32>
    %15 = vector.extract_strided_slice %1 {offsets = [0, 0], sizes = [1, 13], strides = [1, 1]} : vector<1x16xf32> to vector<1x13xf32>
    %16 = tpu.concatenate %14, %15 in 1 : vector<1x3xf32>, vector<1x13xf32> -> vector<1x16xf32>
    %c1 = arith.constant 1 : index
    %c0_8 = arith.constant 0 : index
    %c0_9 = arith.constant 0 : index
    %17 = vector.load %arg3[%c1, %c0_8, %c0_9] : memref<15x16x1xf32, #tpu.memory_space<vmem>>, vector<1x16x1xf32>
    %18 = vector.shape_cast %17 : vector<1x16x1xf32> to vector<16x1xf32>
    %19 = vector.broadcast %18 : vector<16x1xf32> to vector<16x16xf32>
    %20 = vector.broadcast %16 : vector<1x16xf32> to vector<16x16xf32>
    %21 = arith.mulf %19, %20 : vector<16x16xf32>
    %22 = arith.addf %13, %21 : vector<16x16xf32>
    %23 = vector.extract_strided_slice %3 {offsets = [0, 13], sizes = [1, 3], strides = [1, 1]} : vector<1x16xf32> to vector<1x3xf32>
    %24 = vector.extract_strided_slice %3 {offsets = [0, 0], sizes = [1, 13], strides = [1, 1]} : vector<1x16xf32> to vector<1x13xf32>
    %25 = tpu.concatenate %23, %24 in 1 : vector<1x3xf32>, vector<1x13xf32> -> vector<1x16xf32>
    %c2 = arith.constant 2 : index
    %c0_10 = arith.constant 0 : index
    %c0_11 = arith.constant 0 : index
    %26 = vector.load %arg3[%c2, %c0_10, %c0_11] : memref<15x16x1xf32, #tpu.memory_space<vmem>>, vector<1x16x1xf32>
    %27 = vector.shape_cast %26 : vector<1x16x1xf32> to vector<16x1xf32>
    %28 = vector.broadcast %27 : vector<16x1xf32> to vector<16x16xf32>
    %29 = vector.broadcast %25 : vector<1x16xf32> to vector<16x16xf32>
    %30 = arith.mulf %28, %29 : vector<16x16xf32>
    %31 = arith.addf %22, %30 : vector<16x16xf32>
    %32 = vector.extract_strided_slice %1 {offsets = [0, 14], sizes = [1, 2], strides = [1, 1]} : vector<1x16xf32> to vector<1x2xf32>
    %33 = vector.extract_strided_slice %1 {offsets = [0, 0], sizes = [1, 14], strides = [1, 1]} : vector<1x16xf32> to vector<1x14xf32>
    %34 = tpu.concatenate %32, %33 in 1 : vector<1x2xf32>, vector<1x14xf32> -> vector<1x16xf32>
    %c3 = arith.constant 3 : index
    %c0_12 = arith.constant 0 : index
    %c0_13 = arith.constant 0 : index
    %35 = vector.load %arg3[%c3, %c0_12, %c0_13] : memref<15x16x1xf32, #tpu.memory_space<vmem>>, vector<1x16x1xf32>
    %36 = vector.shape_cast %35 : vector<1x16x1xf32> to vector<16x1xf32>
    %37 = vector.broadcast %36 : vector<16x1xf32> to vector<16x16xf32>
    %38 = vector.broadcast %34 : vector<1x16xf32> to vector<16x16xf32>
    %39 = arith.mulf %37, %38 : vector<16x16xf32>
    %40 = arith.addf %31, %39 : vector<16x16xf32>
    %41 = vector.extract_strided_slice %3 {offsets = [0, 14], sizes = [1, 2], strides = [1, 1]} : vector<1x16xf32> to vector<1x2xf32>
    %42 = vector.extract_strided_slice %3 {offsets = [0, 0], sizes = [1, 14], strides = [1, 1]} : vector<1x16xf32> to vector<1x14xf32>
    %43 = tpu.concatenate %41, %42 in 1 : vector<1x2xf32>, vector<1x14xf32> -> vector<1x16xf32>
    %c4 = arith.constant 4 : index
    %c0_14 = arith.constant 0 : index
    %c0_15 = arith.constant 0 : index
    %44 = vector.load %arg3[%c4, %c0_14, %c0_15] : memref<15x16x1xf32, #tpu.memory_space<vmem>>, vector<1x16x1xf32>
    %45 = vector.shape_cast %44 : vector<1x16x1xf32> to vector<16x1xf32>
    %46 = vector.broadcast %45 : vector<16x1xf32> to vector<16x16xf32>
    %47 = vector.broadcast %43 : vector<1x16xf32> to vector<16x16xf32>
    %48 = arith.mulf %46, %47 : vector<16x16xf32>
    %49 = arith.addf %40, %48 : vector<16x16xf32>
    %50 = vector.extract_strided_slice %1 {offsets = [0, 15], sizes = [1, 1], strides = [1, 1]} : vector<1x16xf32> to vector<1x1xf32>
    %51 = vector.extract_strided_slice %1 {offsets = [0, 0], sizes = [1, 15], strides = [1, 1]} : vector<1x16xf32> to vector<1x15xf32>
    %52 = tpu.concatenate %50, %51 in 1 : vector<1x1xf32>, vector<1x15xf32> -> vector<1x16xf32>
    %c5 = arith.constant 5 : index
    %c0_16 = arith.constant 0 : index
    %c0_17 = arith.constant 0 : index
    %53 = vector.load %arg3[%c5, %c0_16, %c0_17] : memref<15x16x1xf32, #tpu.memory_space<vmem>>, vector<1x16x1xf32>
    %54 = vector.shape_cast %53 : vector<1x16x1xf32> to vector<16x1xf32>
    %55 = vector.broadcast %54 : vector<16x1xf32> to vector<16x16xf32>
    %56 = vector.broadcast %52 : vector<1x16xf32> to vector<16x16xf32>
    %57 = arith.mulf %55, %56 : vector<16x16xf32>
    %58 = arith.addf %49, %57 : vector<16x16xf32>
    %59 = vector.extract_strided_slice %3 {offsets = [0, 15], sizes = [1, 1], strides = [1, 1]} : vector<1x16xf32> to vector<1x1xf32>
    %60 = vector.extract_strided_slice %3 {offsets = [0, 0], sizes = [1, 15], strides = [1, 1]} : vector<1x16xf32> to vector<1x15xf32>
    %61 = tpu.concatenate %59, %60 in 1 : vector<1x1xf32>, vector<1x15xf32> -> vector<1x16xf32>
    %c6 = arith.constant 6 : index
    %c0_18 = arith.constant 0 : index
    %c0_19 = arith.constant 0 : index
    %62 = vector.load %arg3[%c6, %c0_18, %c0_19] : memref<15x16x1xf32, #tpu.memory_space<vmem>>, vector<1x16x1xf32>
    %63 = vector.shape_cast %62 : vector<1x16x1xf32> to vector<16x1xf32>
    %64 = vector.broadcast %63 : vector<16x1xf32> to vector<16x16xf32>
    %65 = vector.broadcast %61 : vector<1x16xf32> to vector<16x16xf32>
    %66 = arith.mulf %64, %65 : vector<16x16xf32>
    %67 = arith.addf %58, %66 : vector<16x16xf32>
    %c7 = arith.constant 7 : index
    %c0_20 = arith.constant 0 : index
    %c0_21 = arith.constant 0 : index
    %68 = vector.load %arg3[%c7, %c0_20, %c0_21] : memref<15x16x1xf32, #tpu.memory_space<vmem>>, vector<1x16x1xf32>
    %69 = vector.shape_cast %68 : vector<1x16x1xf32> to vector<16x1xf32>
    %70 = vector.broadcast %69 : vector<16x1xf32> to vector<16x16xf32>
    %71 = vector.broadcast %1 : vector<1x16xf32> to vector<16x16xf32>
    %72 = arith.mulf %70, %71 : vector<16x16xf32>
    %73 = arith.addf %67, %72 : vector<16x16xf32>
    %c8 = arith.constant 8 : index
    %c0_22 = arith.constant 0 : index
    %c0_23 = arith.constant 0 : index
    %74 = vector.load %arg3[%c8, %c0_22, %c0_23] : memref<15x16x1xf32, #tpu.memory_space<vmem>>, vector<1x16x1xf32>
    %75 = vector.shape_cast %74 : vector<1x16x1xf32> to vector<16x1xf32>
    %76 = vector.broadcast %75 : vector<16x1xf32> to vector<16x16xf32>
    %77 = vector.broadcast %3 : vector<1x16xf32> to vector<16x16xf32>
    %78 = arith.mulf %76, %77 : vector<16x16xf32>
    %79 = arith.addf %73, %78 : vector<16x16xf32>
    %80 = vector.extract_strided_slice %1 {offsets = [0, 1], sizes = [1, 15], strides = [1, 1]} : vector<1x16xf32> to vector<1x15xf32>
    %81 = vector.extract_strided_slice %1 {offsets = [0, 0], sizes = [1, 1], strides = [1, 1]} : vector<1x16xf32> to vector<1x1xf32>
    %82 = tpu.concatenate %80, %81 in 1 : vector<1x15xf32>, vector<1x1xf32> -> vector<1x16xf32>
    %c9 = arith.constant 9 : index
    %c0_24 = arith.constant 0 : index
    %c0_25 = arith.constant 0 : index
    %83 = vector.load %arg3[%c9, %c0_24, %c0_25] : memref<15x16x1xf32, #tpu.memory_space<vmem>>, vector<1x16x1xf32>
    %84 = vector.shape_cast %83 : vector<1x16x1xf32> to vector<16x1xf32>
    %85 = vector.broadcast %84 : vector<16x1xf32> to vector<16x16xf32>
    %86 = vector.broadcast %82 : vector<1x16xf32> to vector<16x16xf32>
    %87 = arith.mulf %85, %86 : vector<16x16xf32>
    %88 = arith.addf %79, %87 : vector<16x16xf32>
    %89 = vector.extract_strided_slice %3 {offsets = [0, 1], sizes = [1, 15], strides = [1, 1]} : vector<1x16xf32> to vector<1x15xf32>
    %90 = vector.extract_strided_slice %3 {offsets = [0, 0], sizes = [1, 1], strides = [1, 1]} : vector<1x16xf32> to vector<1x1xf32>
    %91 = tpu.concatenate %89, %90 in 1 : vector<1x15xf32>, vector<1x1xf32> -> vector<1x16xf32>
    %c10 = arith.constant 10 : index
    %c0_26 = arith.constant 0 : index
    %c0_27 = arith.constant 0 : index
    %92 = vector.load %arg3[%c10, %c0_26, %c0_27] : memref<15x16x1xf32, #tpu.memory_space<vmem>>, vector<1x16x1xf32>
    %93 = vector.shape_cast %92 : vector<1x16x1xf32> to vector<16x1xf32>
    %94 = vector.broadcast %93 : vector<16x1xf32> to vector<16x16xf32>
    %95 = vector.broadcast %91 : vector<1x16xf32> to vector<16x16xf32>
    %96 = arith.mulf %94, %95 : vector<16x16xf32>
    %97 = arith.addf %88, %96 : vector<16x16xf32>
    %98 = vector.extract_strided_slice %1 {offsets = [0, 2], sizes = [1, 14], strides = [1, 1]} : vector<1x16xf32> to vector<1x14xf32>
    %99 = vector.extract_strided_slice %1 {offsets = [0, 0], sizes = [1, 2], strides = [1, 1]} : vector<1x16xf32> to vector<1x2xf32>
    %100 = tpu.concatenate %98, %99 in 1 : vector<1x14xf32>, vector<1x2xf32> -> vector<1x16xf32>
    %c11 = arith.constant 11 : index
    %c0_28 = arith.constant 0 : index
    %c0_29 = arith.constant 0 : index
    %101 = vector.load %arg3[%c11, %c0_28, %c0_29] : memref<15x16x1xf32, #tpu.memory_space<vmem>>, vector<1x16x1xf32>
    %102 = vector.shape_cast %101 : vector<1x16x1xf32> to vector<16x1xf32>
    %103 = vector.broadcast %102 : vector<16x1xf32> to vector<16x16xf32>
    %104 = vector.broadcast %100 : vector<1x16xf32> to vector<16x16xf32>
    %105 = arith.mulf %103, %104 : vector<16x16xf32>
    %106 = arith.addf %97, %105 : vector<16x16xf32>
    %107 = vector.extract_strided_slice %3 {offsets = [0, 2], sizes = [1, 14], strides = [1, 1]} : vector<1x16xf32> to vector<1x14xf32>
    %108 = vector.extract_strided_slice %3 {offsets = [0, 0], sizes = [1, 2], strides = [1, 1]} : vector<1x16xf32> to vector<1x2xf32>
    %109 = tpu.concatenate %107, %108 in 1 : vector<1x14xf32>, vector<1x2xf32> -> vector<1x16xf32>
    %c12 = arith.constant 12 : index
    %c0_30 = arith.constant 0 : index
    %c0_31 = arith.constant 0 : index
    %110 = vector.load %arg3[%c12, %c0_30, %c0_31] : memref<15x16x1xf32, #tpu.memory_space<vmem>>, vector<1x16x1xf32>
    %111 = vector.shape_cast %110 : vector<1x16x1xf32> to vector<16x1xf32>
    %112 = vector.broadcast %111 : vector<16x1xf32> to vector<16x16xf32>
    %113 = vector.broadcast %109 : vector<1x16xf32> to vector<16x16xf32>
    %114 = arith.mulf %112, %113 : vector<16x16xf32>
    %115 = arith.addf %106, %114 : vector<16x16xf32>
    %116 = vector.extract_strided_slice %1 {offsets = [0, 3], sizes = [1, 13], strides = [1, 1]} : vector<1x16xf32> to vector<1x13xf32>
    %117 = vector.extract_strided_slice %1 {offsets = [0, 0], sizes = [1, 3], strides = [1, 1]} : vector<1x16xf32> to vector<1x3xf32>
    %118 = tpu.concatenate %116, %117 in 1 : vector<1x13xf32>, vector<1x3xf32> -> vector<1x16xf32>
    %c13 = arith.constant 13 : index
    %c0_32 = arith.constant 0 : index
    %c0_33 = arith.constant 0 : index
    %119 = vector.load %arg3[%c13, %c0_32, %c0_33] : memref<15x16x1xf32, #tpu.memory_space<vmem>>, vector<1x16x1xf32>
    %120 = vector.shape_cast %119 : vector<1x16x1xf32> to vector<16x1xf32>
    %121 = vector.broadcast %120 : vector<16x1xf32> to vector<16x16xf32>
    %122 = vector.broadcast %118 : vector<1x16xf32> to vector<16x16xf32>
    %123 = arith.mulf %121, %122 : vector<16x16xf32>
    %124 = arith.addf %115, %123 : vector<16x16xf32>
    %125 = vector.extract_strided_slice %3 {offsets = [0, 3], sizes = [1, 13], strides = [1, 1]} : vector<1x16xf32> to vector<1x13xf32>
    %126 = vector.extract_strided_slice %3 {offsets = [0, 0], sizes = [1, 3], strides = [1, 1]} : vector<1x16xf32> to vector<1x3xf32>
    %127 = tpu.concatenate %125, %126 in 1 : vector<1x13xf32>, vector<1x3xf32> -> vector<1x16xf32>
    %c14 = arith.constant 14 : index
    %c0_34 = arith.constant 0 : index
    %c0_35 = arith.constant 0 : index
    %128 = vector.load %arg3[%c14, %c0_34, %c0_35] : memref<15x16x1xf32, #tpu.memory_space<vmem>>, vector<1x16x1xf32>
    %129 = vector.shape_cast %128 : vector<1x16x1xf32> to vector<16x1xf32>
    %130 = vector.broadcast %129 : vector<16x1xf32> to vector<16x16xf32>
    %131 = vector.broadcast %127 : vector<1x16xf32> to vector<16x16xf32>
    %132 = arith.mulf %130, %131 : vector<16x16xf32>
    %133 = arith.addf %124, %132 : vector<16x16xf32>
    %c0_36 = arith.constant 0 : index
    %c0_37 = arith.constant 0 : index
    %134 = vector.load %arg4[%c0_36, %c0_37] : memref<16x1xf32, #tpu.memory_space<vmem>>, vector<16x1xf32>
    %135 = vector.broadcast %134 : vector<16x1xf32> to vector<16x16xf32>
    %136 = arith.mulf %133, %135 : vector<16x16xf32>
    %c0_38 = arith.constant 0 : index
    %c0_39 = arith.constant 0 : index
    %137 = vector.load %arg5[%c0_38, %c0_39] : memref<16x1xf32, #tpu.memory_space<vmem>>, vector<16x1xf32>
    %138 = vector.broadcast %137 : vector<16x1xf32> to vector<16x16xf32>
    %139 = arith.addf %136, %138 : vector<16x16xf32>
    %cst_40 = arith.constant 0.000000e+00 : f32
    %140 = vector.broadcast %cst_40 : f32 to vector<16x16xf32>
    %141 = arith.maximumf %139, %140 : vector<16x16xf32>
    %142 = arith.truncf %141 : vector<16x16xf32> to vector<16x16xbf16>
    %c0_41 = arith.constant 0 : index
    %c0_42 = arith.constant 0 : index
    %c0_43 = arith.constant 0 : index
    %143 = vector.load %arg6[%c0_41, %c0_42, %c0_43] : memref<1x16x16xbf16, #tpu.memory_space<vmem>>, vector<1x16x16xbf16>
    %144 = vector.shape_cast %143 : vector<1x16x16xbf16> to vector<16x16xbf16>
    %145 = vector.shape_cast %142 : vector<16x16xbf16> to vector<1x16x16xbf16>
    tpu.vector_store %arg6[%c0_41, %c0_42, %c0_43], %145 {strides = array<i32>} : memref<1x16x16xbf16, #tpu.memory_space<vmem>>, vector<1x16x16xbf16>,
    return
  }
  func.func @transform_0(%arg0: i32) -> (i32, i32, i32) {
    %c0_i32 = arith.constant 0 : i32
    %c0_i32_0 = arith.constant 0 : i32
    %c0_i32_1 = arith.constant 0 : i32
    return %arg0, %c0_i32, %c0_i32_0 : i32, i32, i32
  }
  func.func @transform_1(%arg0: i32) -> (i32, i32, i32) {
    %c0_i32 = arith.constant 0 : i32
    %c0_i32_0 = arith.constant 0 : i32
    %c0_i32_1 = arith.constant 0 : i32
    return %arg0, %c0_i32, %c0_i32_0 : i32, i32, i32
  }
  func.func @transform_2(%arg0: i32) -> (i32, i32, i32) {
    %c0_i32 = arith.constant 0 : i32
    %c0_i32_0 = arith.constant 0 : i32
    %c0_i32_1 = arith.constant 0 : i32
    %c0_i32_2 = arith.constant 0 : i32
    return %c0_i32, %c0_i32_0, %c0_i32_1 : i32, i32, i32
  }
  func.func @transform_3(%arg0: i32) -> (i32, i32) {
    %c0_i32 = arith.constant 0 : i32
    %c0_i32_0 = arith.constant 0 : i32
    %c0_i32_1 = arith.constant 0 : i32
    return %c0_i32, %c0_i32_0 : i32, i32
  }
  func.func @transform_4(%arg0: i32) -> (i32, i32) {
    %c0_i32 = arith.constant 0 : i32
    %c0_i32_0 = arith.constant 0 : i32
    %c0_i32_1 = arith.constant 0 : i32
    return %c0_i32, %c0_i32_0 : i32, i32
  }
  func.func @transform_5(%arg0: i32) -> (i32, i32, i32) {
    %c0_i32 = arith.constant 0 : i32
    %c0_i32_0 = arith.constant 0 : i32
    %c0_i32_1 = arith.constant 0 : i32
    return %arg0, %c0_i32, %c0_i32_0 : i32, i32, i32
  }
}

module attributes {stable_mosaic.version = 11 : i64} {
  func.func @_block_kernel(%arg0: i32, %arg1: memref<1x16x16xbf16, #tpu.memory_space<vmem>>, %arg2: memref<7x32x16xbf16, #tpu.memory_space<vmem>>, %arg3: memref<7x32x32xbf16, #tpu.memory_space<vmem>>, %arg4: memref<1x32x16xbf16, #tpu.memory_space<vmem>>, %arg5: memref<32x1xf32, #tpu.memory_space<vmem>>, %arg6: memref<32x1xf32, #tpu.memory_space<vmem>>, %arg7: memref<32x1xf32, #tpu.memory_space<vmem>>, %arg8: memref<32x1xf32, #tpu.memory_space<vmem>>, %arg9: memref<32x1xf32, #tpu.memory_space<vmem>>, %arg10: memref<32x1xf32, #tpu.memory_space<vmem>>, %arg11: memref<1x32x16xbf16, #tpu.memory_space<vmem>>) attributes {dimension_semantics = [#tpu.dimension_semantics<parallel>], iteration_bounds = array<i64: 2>, scalar_prefetch = 0 : i64, scratch_operands = 0 : i64, tpu.core_type = #tpu.core_type<tc>, window_params = [{transform_indices = @transform_0, window_bounds = array<i64: 1, 16, 16>}, {pipeline_mode = #tpu.pipeline_mode<synchronous>, transform_indices = @transform_1, window_bounds = array<i64: 7, 32, 16>}, {pipeline_mode = #tpu.pipeline_mode<synchronous>, transform_indices = @transform_2, window_bounds = array<i64: 7, 32, 32>}, {pipeline_mode = #tpu.pipeline_mode<synchronous>, transform_indices = @transform_3, window_bounds = array<i64: 1, 32, 16>}, {pipeline_mode = #tpu.pipeline_mode<synchronous>, transform_indices = @transform_4, window_bounds = array<i64: 32, 1>}, {pipeline_mode = #tpu.pipeline_mode<synchronous>, transform_indices = @transform_5, window_bounds = array<i64: 32, 1>}, {pipeline_mode = #tpu.pipeline_mode<synchronous>, transform_indices = @transform_6, window_bounds = array<i64: 32, 1>}, {pipeline_mode = #tpu.pipeline_mode<synchronous>, transform_indices = @transform_7, window_bounds = array<i64: 32, 1>}, {pipeline_mode = #tpu.pipeline_mode<synchronous>, transform_indices = @transform_8, window_bounds = array<i64: 32, 1>}, {pipeline_mode = #tpu.pipeline_mode<synchronous>, transform_indices = @transform_9, window_bounds = array<i64: 32, 1>}, {transform_indices = @transform_10, window_bounds = array<i64: 1, 32, 16>}]} {
    %c0 = arith.constant 0 : index
    %c0_0 = arith.constant 0 : index
    %c0_1 = arith.constant 0 : index
    %0 = vector.load %arg1[%c0, %c0_0, %c0_1] : memref<1x16x16xbf16, #tpu.memory_space<vmem>>, vector<1x16x16xbf16>
    %1 = vector.shape_cast %0 : vector<1x16x16xbf16> to vector<16x16xbf16>
    %c0_2 = arith.constant 0 : index
    %c0_3 = arith.constant 0 : index
    %2 = vector.load %arg5[%c0_2, %c0_3] : memref<32x1xf32, #tpu.memory_space<vmem>>, vector<32x1xf32>
    %c0_4 = arith.constant 0 : index
    %c0_5 = arith.constant 0 : index
    %3 = vector.load %arg6[%c0_4, %c0_5] : memref<32x1xf32, #tpu.memory_space<vmem>>, vector<32x1xf32>
    %c0_6 = arith.constant 0 : index
    %c0_7 = arith.constant 0 : index
    %4 = vector.load %arg7[%c0_6, %c0_7] : memref<32x1xf32, #tpu.memory_space<vmem>>, vector<32x1xf32>
    %c0_8 = arith.constant 0 : index
    %c0_9 = arith.constant 0 : index
    %5 = vector.load %arg8[%c0_8, %c0_9] : memref<32x1xf32, #tpu.memory_space<vmem>>, vector<32x1xf32>
    %c0_10 = arith.constant 0 : index
    %c0_11 = arith.constant 0 : index
    %6 = vector.load %arg9[%c0_10, %c0_11] : memref<32x1xf32, #tpu.memory_space<vmem>>, vector<32x1xf32>
    %c0_12 = arith.constant 0 : index
    %c0_13 = arith.constant 0 : index
    %7 = vector.load %arg10[%c0_12, %c0_13] : memref<32x1xf32, #tpu.memory_space<vmem>>, vector<32x1xf32>
    %8 = vector.extract_strided_slice %1 {offsets = [0, 13], sizes = [16, 3], strides = [1, 1]} : vector<16x16xbf16> to vector<16x3xbf16>
    %9 = vector.extract_strided_slice %1 {offsets = [0, 0], sizes = [16, 13], strides = [1, 1]} : vector<16x16xbf16> to vector<16x13xbf16>
    %10 = tpu.concatenate %8, %9 in 1 : vector<16x3xbf16>, vector<16x13xbf16> -> vector<16x16xbf16>
    %c0_14 = arith.constant 0 : index
    %c0_15 = arith.constant 0 : index
    %c0_16 = arith.constant 0 : index
    %11 = vector.load %arg2[%c0_14, %c0_15, %c0_16] : memref<7x32x16xbf16, #tpu.memory_space<vmem>>, vector<1x32x16xbf16>
    %12 = vector.shape_cast %11 : vector<1x32x16xbf16> to vector<32x16xbf16>
    %cst = arith.constant dense<0.000000e+00> : vector<32x16xf32>
    %13 = tpu.matmul %12, %10, %cst {dimension_numbers = #tpu.dot_dimension_numbers<[1], [0], [0], [1], [0, 0, 1, 1], [], []>} : vector<32x16xbf16>, vector<16x16xbf16>, vector<32x16xf32> -> vector<32x16xf32>
    %14 = vector.extract_strided_slice %1 {offsets = [0, 14], sizes = [16, 2], strides = [1, 1]} : vector<16x16xbf16> to vector<16x2xbf16>
    %15 = vector.extract_strided_slice %1 {offsets = [0, 0], sizes = [16, 14], strides = [1, 1]} : vector<16x16xbf16> to vector<16x14xbf16>
    %16 = tpu.concatenate %14, %15 in 1 : vector<16x2xbf16>, vector<16x14xbf16> -> vector<16x16xbf16>
    %c1 = arith.constant 1 : index
    %c0_17 = arith.constant 0 : index
    %c0_18 = arith.constant 0 : index
    %17 = vector.load %arg2[%c1, %c0_17, %c0_18] : memref<7x32x16xbf16, #tpu.memory_space<vmem>>, vector<1x32x16xbf16>
    %18 = vector.shape_cast %17 : vector<1x32x16xbf16> to vector<32x16xbf16>
    %cst_19 = arith.constant dense<0.000000e+00> : vector<32x16xf32>
    %19 = tpu.matmul %18, %16, %cst_19 {dimension_numbers = #tpu.dot_dimension_numbers<[1], [0], [0], [1], [0, 0, 1, 1], [], []>} : vector<32x16xbf16>, vector<16x16xbf16>, vector<32x16xf32> -> vector<32x16xf32>
    %20 = arith.addf %13, %19 : vector<32x16xf32>
    %21 = vector.extract_strided_slice %1 {offsets = [0, 15], sizes = [16, 1], strides = [1, 1]} : vector<16x16xbf16> to vector<16x1xbf16>
    %22 = vector.extract_strided_slice %1 {offsets = [0, 0], sizes = [16, 15], strides = [1, 1]} : vector<16x16xbf16> to vector<16x15xbf16>
    %23 = tpu.concatenate %21, %22 in 1 : vector<16x1xbf16>, vector<16x15xbf16> -> vector<16x16xbf16>
    %c2 = arith.constant 2 : index
    %c0_20 = arith.constant 0 : index
    %c0_21 = arith.constant 0 : index
    %24 = vector.load %arg2[%c2, %c0_20, %c0_21] : memref<7x32x16xbf16, #tpu.memory_space<vmem>>, vector<1x32x16xbf16>
    %25 = vector.shape_cast %24 : vector<1x32x16xbf16> to vector<32x16xbf16>
    %cst_22 = arith.constant dense<0.000000e+00> : vector<32x16xf32>
    %26 = tpu.matmul %25, %23, %cst_22 {dimension_numbers = #tpu.dot_dimension_numbers<[1], [0], [0], [1], [0, 0, 1, 1], [], []>} : vector<32x16xbf16>, vector<16x16xbf16>, vector<32x16xf32> -> vector<32x16xf32>
    %27 = arith.addf %20, %26 : vector<32x16xf32>
    %c3 = arith.constant 3 : index
    %c0_23 = arith.constant 0 : index
    %c0_24 = arith.constant 0 : index
    %28 = vector.load %arg2[%c3, %c0_23, %c0_24] : memref<7x32x16xbf16, #tpu.memory_space<vmem>>, vector<1x32x16xbf16>
    %29 = vector.shape_cast %28 : vector<1x32x16xbf16> to vector<32x16xbf16>
    %cst_25 = arith.constant dense<0.000000e+00> : vector<32x16xf32>
    %30 = tpu.matmul %29, %1, %cst_25 {dimension_numbers = #tpu.dot_dimension_numbers<[1], [0], [0], [1], [0, 0, 1, 1], [], []>} : vector<32x16xbf16>, vector<16x16xbf16>, vector<32x16xf32> -> vector<32x16xf32>
    %31 = arith.addf %27, %30 : vector<32x16xf32>
    %32 = vector.extract_strided_slice %1 {offsets = [0, 1], sizes = [16, 15], strides = [1, 1]} : vector<16x16xbf16> to vector<16x15xbf16>
    %33 = vector.extract_strided_slice %1 {offsets = [0, 0], sizes = [16, 1], strides = [1, 1]} : vector<16x16xbf16> to vector<16x1xbf16>
    %34 = tpu.concatenate %32, %33 in 1 : vector<16x15xbf16>, vector<16x1xbf16> -> vector<16x16xbf16>
    %c4 = arith.constant 4 : index
    %c0_26 = arith.constant 0 : index
    %c0_27 = arith.constant 0 : index
    %35 = vector.load %arg2[%c4, %c0_26, %c0_27] : memref<7x32x16xbf16, #tpu.memory_space<vmem>>, vector<1x32x16xbf16>
    %36 = vector.shape_cast %35 : vector<1x32x16xbf16> to vector<32x16xbf16>
    %cst_28 = arith.constant dense<0.000000e+00> : vector<32x16xf32>
    %37 = tpu.matmul %36, %34, %cst_28 {dimension_numbers = #tpu.dot_dimension_numbers<[1], [0], [0], [1], [0, 0, 1, 1], [], []>} : vector<32x16xbf16>, vector<16x16xbf16>, vector<32x16xf32> -> vector<32x16xf32>
    %38 = arith.addf %31, %37 : vector<32x16xf32>
    %39 = vector.extract_strided_slice %1 {offsets = [0, 2], sizes = [16, 14], strides = [1, 1]} : vector<16x16xbf16> to vector<16x14xbf16>
    %40 = vector.extract_strided_slice %1 {offsets = [0, 0], sizes = [16, 2], strides = [1, 1]} : vector<16x16xbf16> to vector<16x2xbf16>
    %41 = tpu.concatenate %39, %40 in 1 : vector<16x14xbf16>, vector<16x2xbf16> -> vector<16x16xbf16>
    %c5 = arith.constant 5 : index
    %c0_29 = arith.constant 0 : index
    %c0_30 = arith.constant 0 : index
    %42 = vector.load %arg2[%c5, %c0_29, %c0_30] : memref<7x32x16xbf16, #tpu.memory_space<vmem>>, vector<1x32x16xbf16>
    %43 = vector.shape_cast %42 : vector<1x32x16xbf16> to vector<32x16xbf16>
    %cst_31 = arith.constant dense<0.000000e+00> : vector<32x16xf32>
    %44 = tpu.matmul %43, %41, %cst_31 {dimension_numbers = #tpu.dot_dimension_numbers<[1], [0], [0], [1], [0, 0, 1, 1], [], []>} : vector<32x16xbf16>, vector<16x16xbf16>, vector<32x16xf32> -> vector<32x16xf32>
    %45 = arith.addf %38, %44 : vector<32x16xf32>
    %46 = vector.extract_strided_slice %1 {offsets = [0, 3], sizes = [16, 13], strides = [1, 1]} : vector<16x16xbf16> to vector<16x13xbf16>
    %47 = vector.extract_strided_slice %1 {offsets = [0, 0], sizes = [16, 3], strides = [1, 1]} : vector<16x16xbf16> to vector<16x3xbf16>
    %48 = tpu.concatenate %46, %47 in 1 : vector<16x13xbf16>, vector<16x3xbf16> -> vector<16x16xbf16>
    %c6 = arith.constant 6 : index
    %c0_32 = arith.constant 0 : index
    %c0_33 = arith.constant 0 : index
    %49 = vector.load %arg2[%c6, %c0_32, %c0_33] : memref<7x32x16xbf16, #tpu.memory_space<vmem>>, vector<1x32x16xbf16>
    %50 = vector.shape_cast %49 : vector<1x32x16xbf16> to vector<32x16xbf16>
    %cst_34 = arith.constant dense<0.000000e+00> : vector<32x16xf32>
    %51 = tpu.matmul %50, %48, %cst_34 {dimension_numbers = #tpu.dot_dimension_numbers<[1], [0], [0], [1], [0, 0, 1, 1], [], []>} : vector<32x16xbf16>, vector<16x16xbf16>, vector<32x16xf32> -> vector<32x16xf32>
    %52 = arith.addf %45, %51 : vector<32x16xf32>
    %53 = vector.broadcast %2 : vector<32x1xf32> to vector<32x16xf32>
    %54 = arith.mulf %52, %53 : vector<32x16xf32>
    %55 = vector.broadcast %3 : vector<32x1xf32> to vector<32x16xf32>
    %56 = arith.addf %54, %55 : vector<32x16xf32>
    %cst_35 = arith.constant 0.000000e+00 : f32
    %57 = vector.broadcast %cst_35 : f32 to vector<32x16xf32>
    %58 = arith.maximumf %56, %57 : vector<32x16xf32>
    %59 = arith.truncf %58 : vector<32x16xf32> to vector<32x16xbf16>
    %60 = vector.extract_strided_slice %59 {offsets = [0, 13], sizes = [32, 3], strides = [1, 1]} : vector<32x16xbf16> to vector<32x3xbf16>
    %61 = vector.extract_strided_slice %59 {offsets = [0, 0], sizes = [32, 13], strides = [1, 1]} : vector<32x16xbf16> to vector<32x13xbf16>
    %62 = tpu.concatenate %60, %61 in 1 : vector<32x3xbf16>, vector<32x13xbf16> -> vector<32x16xbf16>
    %c0_36 = arith.constant 0 : index
    %c0_37 = arith.constant 0 : index
    %c0_38 = arith.constant 0 : index
    %63 = vector.load %arg3[%c0_36, %c0_37, %c0_38] : memref<7x32x32xbf16, #tpu.memory_space<vmem>>, vector<1x32x32xbf16>
    %64 = vector.shape_cast %63 : vector<1x32x32xbf16> to vector<32x32xbf16>
    %cst_39 = arith.constant dense<0.000000e+00> : vector<32x16xf32>
    %65 = tpu.matmul %64, %62, %cst_39 {dimension_numbers = #tpu.dot_dimension_numbers<[1], [0], [0], [1], [0, 0, 1, 1], [], []>} : vector<32x32xbf16>, vector<32x16xbf16>, vector<32x16xf32> -> vector<32x16xf32>
    %66 = vector.extract_strided_slice %59 {offsets = [0, 14], sizes = [32, 2], strides = [1, 1]} : vector<32x16xbf16> to vector<32x2xbf16>
    %67 = vector.extract_strided_slice %59 {offsets = [0, 0], sizes = [32, 14], strides = [1, 1]} : vector<32x16xbf16> to vector<32x14xbf16>
    %68 = tpu.concatenate %66, %67 in 1 : vector<32x2xbf16>, vector<32x14xbf16> -> vector<32x16xbf16>
    %c1_40 = arith.constant 1 : index
    %c0_41 = arith.constant 0 : index
    %c0_42 = arith.constant 0 : index
    %69 = vector.load %arg3[%c1_40, %c0_41, %c0_42] : memref<7x32x32xbf16, #tpu.memory_space<vmem>>, vector<1x32x32xbf16>
    %70 = vector.shape_cast %69 : vector<1x32x32xbf16> to vector<32x32xbf16>
    %cst_43 = arith.constant dense<0.000000e+00> : vector<32x16xf32>
    %71 = tpu.matmul %70, %68, %cst_43 {dimension_numbers = #tpu.dot_dimension_numbers<[1], [0], [0], [1], [0, 0, 1, 1], [], []>} : vector<32x32xbf16>, vector<32x16xbf16>, vector<32x16xf32> -> vector<32x16xf32>
    %72 = arith.addf %65, %71 : vector<32x16xf32>
    %73 = vector.extract_strided_slice %59 {offsets = [0, 15], sizes = [32, 1], strides = [1, 1]} : vector<32x16xbf16> to vector<32x1xbf16>
    %74 = vector.extract_strided_slice %59 {offsets = [0, 0], sizes = [32, 15], strides = [1, 1]} : vector<32x16xbf16> to vector<32x15xbf16>
    %75 = tpu.concatenate %73, %74 in 1 : vector<32x1xbf16>, vector<32x15xbf16> -> vector<32x16xbf16>
    %c2_44 = arith.constant 2 : index
    %c0_45 = arith.constant 0 : index
    %c0_46 = arith.constant 0 : index
    %76 = vector.load %arg3[%c2_44, %c0_45, %c0_46] : memref<7x32x32xbf16, #tpu.memory_space<vmem>>, vector<1x32x32xbf16>
    %77 = vector.shape_cast %76 : vector<1x32x32xbf16> to vector<32x32xbf16>
    %cst_47 = arith.constant dense<0.000000e+00> : vector<32x16xf32>
    %78 = tpu.matmul %77, %75, %cst_47 {dimension_numbers = #tpu.dot_dimension_numbers<[1], [0], [0], [1], [0, 0, 1, 1], [], []>} : vector<32x32xbf16>, vector<32x16xbf16>, vector<32x16xf32> -> vector<32x16xf32>
    %79 = arith.addf %72, %78 : vector<32x16xf32>
    %c3_48 = arith.constant 3 : index
    %c0_49 = arith.constant 0 : index
    %c0_50 = arith.constant 0 : index
    %80 = vector.load %arg3[%c3_48, %c0_49, %c0_50] : memref<7x32x32xbf16, #tpu.memory_space<vmem>>, vector<1x32x32xbf16>
    %81 = vector.shape_cast %80 : vector<1x32x32xbf16> to vector<32x32xbf16>
    %cst_51 = arith.constant dense<0.000000e+00> : vector<32x16xf32>
    %82 = tpu.matmul %81, %59, %cst_51 {dimension_numbers = #tpu.dot_dimension_numbers<[1], [0], [0], [1], [0, 0, 1, 1], [], []>} : vector<32x32xbf16>, vector<32x16xbf16>, vector<32x16xf32> -> vector<32x16xf32>
    %83 = arith.addf %79, %82 : vector<32x16xf32>
    %84 = vector.extract_strided_slice %59 {offsets = [0, 1], sizes = [32, 15], strides = [1, 1]} : vector<32x16xbf16> to vector<32x15xbf16>
    %85 = vector.extract_strided_slice %59 {offsets = [0, 0], sizes = [32, 1], strides = [1, 1]} : vector<32x16xbf16> to vector<32x1xbf16>
    %86 = tpu.concatenate %84, %85 in 1 : vector<32x15xbf16>, vector<32x1xbf16> -> vector<32x16xbf16>
    %c4_52 = arith.constant 4 : index
    %c0_53 = arith.constant 0 : index
    %c0_54 = arith.constant 0 : index
    %87 = vector.load %arg3[%c4_52, %c0_53, %c0_54] : memref<7x32x32xbf16, #tpu.memory_space<vmem>>, vector<1x32x32xbf16>
    %88 = vector.shape_cast %87 : vector<1x32x32xbf16> to vector<32x32xbf16>
    %cst_55 = arith.constant dense<0.000000e+00> : vector<32x16xf32>
    %89 = tpu.matmul %88, %86, %cst_55 {dimension_numbers = #tpu.dot_dimension_numbers<[1], [0], [0], [1], [0, 0, 1, 1], [], []>} : vector<32x32xbf16>, vector<32x16xbf16>, vector<32x16xf32> -> vector<32x16xf32>
    %90 = arith.addf %83, %89 : vector<32x16xf32>
    %91 = vector.extract_strided_slice %59 {offsets = [0, 2], sizes = [32, 14], strides = [1, 1]} : vector<32x16xbf16> to vector<32x14xbf16>
    %92 = vector.extract_strided_slice %59 {offsets = [0, 0], sizes = [32, 2], strides = [1, 1]} : vector<32x16xbf16> to vector<32x2xbf16>
    %93 = tpu.concatenate %91, %92 in 1 : vector<32x14xbf16>, vector<32x2xbf16> -> vector<32x16xbf16>
    %c5_56 = arith.constant 5 : index
    %c0_57 = arith.constant 0 : index
    %c0_58 = arith.constant 0 : index
    %94 = vector.load %arg3[%c5_56, %c0_57, %c0_58] : memref<7x32x32xbf16, #tpu.memory_space<vmem>>, vector<1x32x32xbf16>
    %95 = vector.shape_cast %94 : vector<1x32x32xbf16> to vector<32x32xbf16>
    %cst_59 = arith.constant dense<0.000000e+00> : vector<32x16xf32>
    %96 = tpu.matmul %95, %93, %cst_59 {dimension_numbers = #tpu.dot_dimension_numbers<[1], [0], [0], [1], [0, 0, 1, 1], [], []>} : vector<32x32xbf16>, vector<32x16xbf16>, vector<32x16xf32> -> vector<32x16xf32>
    %97 = arith.addf %90, %96 : vector<32x16xf32>
    %98 = vector.extract_strided_slice %59 {offsets = [0, 3], sizes = [32, 13], strides = [1, 1]} : vector<32x16xbf16> to vector<32x13xbf16>
    %99 = vector.extract_strided_slice %59 {offsets = [0, 0], sizes = [32, 3], strides = [1, 1]} : vector<32x16xbf16> to vector<32x3xbf16>
    %100 = tpu.concatenate %98, %99 in 1 : vector<32x13xbf16>, vector<32x3xbf16> -> vector<32x16xbf16>
    %c6_60 = arith.constant 6 : index
    %c0_61 = arith.constant 0 : index
    %c0_62 = arith.constant 0 : index
    %101 = vector.load %arg3[%c6_60, %c0_61, %c0_62] : memref<7x32x32xbf16, #tpu.memory_space<vmem>>, vector<1x32x32xbf16>
    %102 = vector.shape_cast %101 : vector<1x32x32xbf16> to vector<32x32xbf16>
    %cst_63 = arith.constant dense<0.000000e+00> : vector<32x16xf32>
    %103 = tpu.matmul %102, %100, %cst_63 {dimension_numbers = #tpu.dot_dimension_numbers<[1], [0], [0], [1], [0, 0, 1, 1], [], []>} : vector<32x32xbf16>, vector<32x16xbf16>, vector<32x16xf32> -> vector<32x16xf32>
    %104 = arith.addf %97, %103 : vector<32x16xf32>
    %105 = vector.broadcast %4 : vector<32x1xf32> to vector<32x16xf32>
    %106 = arith.mulf %104, %105 : vector<32x16xf32>
    %107 = vector.broadcast %5 : vector<32x1xf32> to vector<32x16xf32>
    %108 = arith.addf %106, %107 : vector<32x16xf32>
    %c0_64 = arith.constant 0 : index
    %c0_65 = arith.constant 0 : index
    %c0_66 = arith.constant 0 : index
    %109 = vector.load %arg4[%c0_64, %c0_65, %c0_66] : memref<1x32x16xbf16, #tpu.memory_space<vmem>>, vector<1x32x16xbf16>
    %110 = vector.shape_cast %109 : vector<1x32x16xbf16> to vector<32x16xbf16>
    %cst_67 = arith.constant dense<0.000000e+00> : vector<32x16xf32>
    %111 = tpu.matmul %110, %1, %cst_67 {dimension_numbers = #tpu.dot_dimension_numbers<[1], [0], [0], [1], [0, 0, 1, 1], [], []>} : vector<32x16xbf16>, vector<16x16xbf16>, vector<32x16xf32> -> vector<32x16xf32>
    %112 = vector.broadcast %6 : vector<32x1xf32> to vector<32x16xf32>
    %113 = arith.mulf %111, %112 : vector<32x16xf32>
    %114 = vector.broadcast %7 : vector<32x1xf32> to vector<32x16xf32>
    %115 = arith.addf %113, %114 : vector<32x16xf32>
    %116 = arith.addf %108, %115 : vector<32x16xf32>
    %cst_68 = arith.constant 0.000000e+00 : f32
    %117 = vector.broadcast %cst_68 : f32 to vector<32x16xf32>
    %118 = arith.maximumf %116, %117 : vector<32x16xf32>
    %119 = arith.truncf %118 : vector<32x16xf32> to vector<32x16xbf16>
    %c0_69 = arith.constant 0 : index
    %c0_70 = arith.constant 0 : index
    %c0_71 = arith.constant 0 : index
    %120 = vector.load %arg11[%c0_69, %c0_70, %c0_71] : memref<1x32x16xbf16, #tpu.memory_space<vmem>>, vector<1x32x16xbf16>
    %121 = vector.shape_cast %120 : vector<1x32x16xbf16> to vector<32x16xbf16>
    %122 = vector.shape_cast %119 : vector<32x16xbf16> to vector<1x32x16xbf16>
    tpu.vector_store %arg11[%c0_69, %c0_70, %c0_71], %122 {strides = array<i32>} : memref<1x32x16xbf16, #tpu.memory_space<vmem>>, vector<1x32x16xbf16>,
    return
  }
  func.func @transform_0(%arg0: i32) -> (i32, i32, i32) {
    %c0_i32 = arith.constant 0 : i32
    %c0_i32_0 = arith.constant 0 : i32
    %c0_i32_1 = arith.constant 0 : i32
    return %arg0, %c0_i32, %c0_i32_0 : i32, i32, i32
  }
  func.func @transform_1(%arg0: i32) -> (i32, i32, i32) {
    %c0_i32 = arith.constant 0 : i32
    %c0_i32_0 = arith.constant 0 : i32
    %c0_i32_1 = arith.constant 0 : i32
    %c0_i32_2 = arith.constant 0 : i32
    return %c0_i32, %c0_i32_0, %c0_i32_1 : i32, i32, i32
  }
  func.func @transform_2(%arg0: i32) -> (i32, i32, i32) {
    %c0_i32 = arith.constant 0 : i32
    %c0_i32_0 = arith.constant 0 : i32
    %c0_i32_1 = arith.constant 0 : i32
    %c0_i32_2 = arith.constant 0 : i32
    return %c0_i32, %c0_i32_0, %c0_i32_1 : i32, i32, i32
  }
  func.func @transform_3(%arg0: i32) -> (i32, i32, i32) {
    %c0_i32 = arith.constant 0 : i32
    %c0_i32_0 = arith.constant 0 : i32
    %c0_i32_1 = arith.constant 0 : i32
    %c0_i32_2 = arith.constant 0 : i32
    return %c0_i32, %c0_i32_0, %c0_i32_1 : i32, i32, i32
  }
  func.func @transform_4(%arg0: i32) -> (i32, i32) {
    %c0_i32 = arith.constant 0 : i32
    %c0_i32_0 = arith.constant 0 : i32
    %c0_i32_1 = arith.constant 0 : i32
    return %c0_i32, %c0_i32_0 : i32, i32
  }
  func.func @transform_5(%arg0: i32) -> (i32, i32) {
    %c0_i32 = arith.constant 0 : i32
    %c0_i32_0 = arith.constant 0 : i32
    %c0_i32_1 = arith.constant 0 : i32
    return %c0_i32, %c0_i32_0 : i32, i32
  }
  func.func @transform_6(%arg0: i32) -> (i32, i32) {
    %c0_i32 = arith.constant 0 : i32
    %c0_i32_0 = arith.constant 0 : i32
    %c0_i32_1 = arith.constant 0 : i32
    return %c0_i32, %c0_i32_0 : i32, i32
  }
  func.func @transform_7(%arg0: i32) -> (i32, i32) {
    %c0_i32 = arith.constant 0 : i32
    %c0_i32_0 = arith.constant 0 : i32
    %c0_i32_1 = arith.constant 0 : i32
    return %c0_i32, %c0_i32_0 : i32, i32
  }
  func.func @transform_8(%arg0: i32) -> (i32, i32) {
    %c0_i32 = arith.constant 0 : i32
    %c0_i32_0 = arith.constant 0 : i32
    %c0_i32_1 = arith.constant 0 : i32
    return %c0_i32, %c0_i32_0 : i32, i32
  }
  func.func @transform_9(%arg0: i32) -> (i32, i32) {
    %c0_i32 = arith.constant 0 : i32
    %c0_i32_0 = arith.constant 0 : i32
    %c0_i32_1 = arith.constant 0 : i32
    return %c0_i32, %c0_i32_0 : i32, i32
  }
  func.func @transform_10(%arg0: i32) -> (i32, i32, i32) {
    %c0_i32 = arith.constant 0 : i32
    %c0_i32_0 = arith.constant 0 : i32
    %c0_i32_1 = arith.constant 0 : i32
    return %arg0, %c0_i32, %c0_i32_0 : i32, i32, i32
  }
}

module attributes {stable_mosaic.version = 11 : i64} {
  func.func @_block_kernel(%arg0: i32, %arg1: memref<1x32x16xbf16, #tpu.memory_space<vmem>>, %arg2: memref<7x32x32xbf16, #tpu.memory_space<vmem>>, %arg3: memref<7x32x32xbf16, #tpu.memory_space<vmem>>, %arg4: memref<32x1xf32, #tpu.memory_space<vmem>>, %arg5: memref<32x1xf32, #tpu.memory_space<vmem>>, %arg6: memref<32x1xf32, #tpu.memory_space<vmem>>, %arg7: memref<32x1xf32, #tpu.memory_space<vmem>>, %arg8: memref<1x32x16xbf16, #tpu.memory_space<vmem>>) attributes {dimension_semantics = [#tpu.dimension_semantics<parallel>], iteration_bounds = array<i64: 2>, scalar_prefetch = 0 : i64, scratch_operands = 0 : i64, tpu.core_type = #tpu.core_type<tc>, window_params = [{transform_indices = @transform_0, window_bounds = array<i64: 1, 32, 16>}, {pipeline_mode = #tpu.pipeline_mode<synchronous>, transform_indices = @transform_1, window_bounds = array<i64: 7, 32, 32>}, {pipeline_mode = #tpu.pipeline_mode<synchronous>, transform_indices = @transform_2, window_bounds = array<i64: 7, 32, 32>}, {pipeline_mode = #tpu.pipeline_mode<synchronous>, transform_indices = @transform_3, window_bounds = array<i64: 32, 1>}, {pipeline_mode = #tpu.pipeline_mode<synchronous>, transform_indices = @transform_4, window_bounds = array<i64: 32, 1>}, {pipeline_mode = #tpu.pipeline_mode<synchronous>, transform_indices = @transform_5, window_bounds = array<i64: 32, 1>}, {pipeline_mode = #tpu.pipeline_mode<synchronous>, transform_indices = @transform_6, window_bounds = array<i64: 32, 1>}, {transform_indices = @transform_7, window_bounds = array<i64: 1, 32, 16>}]} {
    %c0 = arith.constant 0 : index
    %c0_0 = arith.constant 0 : index
    %c0_1 = arith.constant 0 : index
    %0 = vector.load %arg1[%c0, %c0_0, %c0_1] : memref<1x32x16xbf16, #tpu.memory_space<vmem>>, vector<1x32x16xbf16>
    %1 = vector.shape_cast %0 : vector<1x32x16xbf16> to vector<32x16xbf16>
    %c0_2 = arith.constant 0 : index
    %c0_3 = arith.constant 0 : index
    %2 = vector.load %arg4[%c0_2, %c0_3] : memref<32x1xf32, #tpu.memory_space<vmem>>, vector<32x1xf32>
    %c0_4 = arith.constant 0 : index
    %c0_5 = arith.constant 0 : index
    %3 = vector.load %arg5[%c0_4, %c0_5] : memref<32x1xf32, #tpu.memory_space<vmem>>, vector<32x1xf32>
    %c0_6 = arith.constant 0 : index
    %c0_7 = arith.constant 0 : index
    %4 = vector.load %arg6[%c0_6, %c0_7] : memref<32x1xf32, #tpu.memory_space<vmem>>, vector<32x1xf32>
    %c0_8 = arith.constant 0 : index
    %c0_9 = arith.constant 0 : index
    %5 = vector.load %arg7[%c0_8, %c0_9] : memref<32x1xf32, #tpu.memory_space<vmem>>, vector<32x1xf32>
    %6 = vector.extract_strided_slice %1 {offsets = [0, 13], sizes = [32, 3], strides = [1, 1]} : vector<32x16xbf16> to vector<32x3xbf16>
    %7 = vector.extract_strided_slice %1 {offsets = [0, 0], sizes = [32, 13], strides = [1, 1]} : vector<32x16xbf16> to vector<32x13xbf16>
    %8 = tpu.concatenate %6, %7 in 1 : vector<32x3xbf16>, vector<32x13xbf16> -> vector<32x16xbf16>
    %c0_10 = arith.constant 0 : index
    %c0_11 = arith.constant 0 : index
    %c0_12 = arith.constant 0 : index
    %9 = vector.load %arg2[%c0_10, %c0_11, %c0_12] : memref<7x32x32xbf16, #tpu.memory_space<vmem>>, vector<1x32x32xbf16>
    %10 = vector.shape_cast %9 : vector<1x32x32xbf16> to vector<32x32xbf16>
    %cst = arith.constant dense<0.000000e+00> : vector<32x16xf32>
    %11 = tpu.matmul %10, %8, %cst {dimension_numbers = #tpu.dot_dimension_numbers<[1], [0], [0], [1], [0, 0, 1, 1], [], []>} : vector<32x32xbf16>, vector<32x16xbf16>, vector<32x16xf32> -> vector<32x16xf32>
    %12 = vector.extract_strided_slice %1 {offsets = [0, 14], sizes = [32, 2], strides = [1, 1]} : vector<32x16xbf16> to vector<32x2xbf16>
    %13 = vector.extract_strided_slice %1 {offsets = [0, 0], sizes = [32, 14], strides = [1, 1]} : vector<32x16xbf16> to vector<32x14xbf16>
    %14 = tpu.concatenate %12, %13 in 1 : vector<32x2xbf16>, vector<32x14xbf16> -> vector<32x16xbf16>
    %c1 = arith.constant 1 : index
    %c0_13 = arith.constant 0 : index
    %c0_14 = arith.constant 0 : index
    %15 = vector.load %arg2[%c1, %c0_13, %c0_14] : memref<7x32x32xbf16, #tpu.memory_space<vmem>>, vector<1x32x32xbf16>
    %16 = vector.shape_cast %15 : vector<1x32x32xbf16> to vector<32x32xbf16>
    %cst_15 = arith.constant dense<0.000000e+00> : vector<32x16xf32>
    %17 = tpu.matmul %16, %14, %cst_15 {dimension_numbers = #tpu.dot_dimension_numbers<[1], [0], [0], [1], [0, 0, 1, 1], [], []>} : vector<32x32xbf16>, vector<32x16xbf16>, vector<32x16xf32> -> vector<32x16xf32>
    %18 = arith.addf %11, %17 : vector<32x16xf32>
    %19 = vector.extract_strided_slice %1 {offsets = [0, 15], sizes = [32, 1], strides = [1, 1]} : vector<32x16xbf16> to vector<32x1xbf16>
    %20 = vector.extract_strided_slice %1 {offsets = [0, 0], sizes = [32, 15], strides = [1, 1]} : vector<32x16xbf16> to vector<32x15xbf16>
    %21 = tpu.concatenate %19, %20 in 1 : vector<32x1xbf16>, vector<32x15xbf16> -> vector<32x16xbf16>
    %c2 = arith.constant 2 : index
    %c0_16 = arith.constant 0 : index
    %c0_17 = arith.constant 0 : index
    %22 = vector.load %arg2[%c2, %c0_16, %c0_17] : memref<7x32x32xbf16, #tpu.memory_space<vmem>>, vector<1x32x32xbf16>
    %23 = vector.shape_cast %22 : vector<1x32x32xbf16> to vector<32x32xbf16>
    %cst_18 = arith.constant dense<0.000000e+00> : vector<32x16xf32>
    %24 = tpu.matmul %23, %21, %cst_18 {dimension_numbers = #tpu.dot_dimension_numbers<[1], [0], [0], [1], [0, 0, 1, 1], [], []>} : vector<32x32xbf16>, vector<32x16xbf16>, vector<32x16xf32> -> vector<32x16xf32>
    %25 = arith.addf %18, %24 : vector<32x16xf32>
    %c3 = arith.constant 3 : index
    %c0_19 = arith.constant 0 : index
    %c0_20 = arith.constant 0 : index
    %26 = vector.load %arg2[%c3, %c0_19, %c0_20] : memref<7x32x32xbf16, #tpu.memory_space<vmem>>, vector<1x32x32xbf16>
    %27 = vector.shape_cast %26 : vector<1x32x32xbf16> to vector<32x32xbf16>
    %cst_21 = arith.constant dense<0.000000e+00> : vector<32x16xf32>
    %28 = tpu.matmul %27, %1, %cst_21 {dimension_numbers = #tpu.dot_dimension_numbers<[1], [0], [0], [1], [0, 0, 1, 1], [], []>} : vector<32x32xbf16>, vector<32x16xbf16>, vector<32x16xf32> -> vector<32x16xf32>
    %29 = arith.addf %25, %28 : vector<32x16xf32>
    %30 = vector.extract_strided_slice %1 {offsets = [0, 1], sizes = [32, 15], strides = [1, 1]} : vector<32x16xbf16> to vector<32x15xbf16>
    %31 = vector.extract_strided_slice %1 {offsets = [0, 0], sizes = [32, 1], strides = [1, 1]} : vector<32x16xbf16> to vector<32x1xbf16>
    %32 = tpu.concatenate %30, %31 in 1 : vector<32x15xbf16>, vector<32x1xbf16> -> vector<32x16xbf16>
    %c4 = arith.constant 4 : index
    %c0_22 = arith.constant 0 : index
    %c0_23 = arith.constant 0 : index
    %33 = vector.load %arg2[%c4, %c0_22, %c0_23] : memref<7x32x32xbf16, #tpu.memory_space<vmem>>, vector<1x32x32xbf16>
    %34 = vector.shape_cast %33 : vector<1x32x32xbf16> to vector<32x32xbf16>
    %cst_24 = arith.constant dense<0.000000e+00> : vector<32x16xf32>
    %35 = tpu.matmul %34, %32, %cst_24 {dimension_numbers = #tpu.dot_dimension_numbers<[1], [0], [0], [1], [0, 0, 1, 1], [], []>} : vector<32x32xbf16>, vector<32x16xbf16>, vector<32x16xf32> -> vector<32x16xf32>
    %36 = arith.addf %29, %35 : vector<32x16xf32>
    %37 = vector.extract_strided_slice %1 {offsets = [0, 2], sizes = [32, 14], strides = [1, 1]} : vector<32x16xbf16> to vector<32x14xbf16>
    %38 = vector.extract_strided_slice %1 {offsets = [0, 0], sizes = [32, 2], strides = [1, 1]} : vector<32x16xbf16> to vector<32x2xbf16>
    %39 = tpu.concatenate %37, %38 in 1 : vector<32x14xbf16>, vector<32x2xbf16> -> vector<32x16xbf16>
    %c5 = arith.constant 5 : index
    %c0_25 = arith.constant 0 : index
    %c0_26 = arith.constant 0 : index
    %40 = vector.load %arg2[%c5, %c0_25, %c0_26] : memref<7x32x32xbf16, #tpu.memory_space<vmem>>, vector<1x32x32xbf16>
    %41 = vector.shape_cast %40 : vector<1x32x32xbf16> to vector<32x32xbf16>
    %cst_27 = arith.constant dense<0.000000e+00> : vector<32x16xf32>
    %42 = tpu.matmul %41, %39, %cst_27 {dimension_numbers = #tpu.dot_dimension_numbers<[1], [0], [0], [1], [0, 0, 1, 1], [], []>} : vector<32x32xbf16>, vector<32x16xbf16>, vector<32x16xf32> -> vector<32x16xf32>
    %43 = arith.addf %36, %42 : vector<32x16xf32>
    %44 = vector.extract_strided_slice %1 {offsets = [0, 3], sizes = [32, 13], strides = [1, 1]} : vector<32x16xbf16> to vector<32x13xbf16>
    %45 = vector.extract_strided_slice %1 {offsets = [0, 0], sizes = [32, 3], strides = [1, 1]} : vector<32x16xbf16> to vector<32x3xbf16>
    %46 = tpu.concatenate %44, %45 in 1 : vector<32x13xbf16>, vector<32x3xbf16> -> vector<32x16xbf16>
    %c6 = arith.constant 6 : index
    %c0_28 = arith.constant 0 : index
    %c0_29 = arith.constant 0 : index
    %47 = vector.load %arg2[%c6, %c0_28, %c0_29] : memref<7x32x32xbf16, #tpu.memory_space<vmem>>, vector<1x32x32xbf16>
    %48 = vector.shape_cast %47 : vector<1x32x32xbf16> to vector<32x32xbf16>
    %cst_30 = arith.constant dense<0.000000e+00> : vector<32x16xf32>
    %49 = tpu.matmul %48, %46, %cst_30 {dimension_numbers = #tpu.dot_dimension_numbers<[1], [0], [0], [1], [0, 0, 1, 1], [], []>} : vector<32x32xbf16>, vector<32x16xbf16>, vector<32x16xf32> -> vector<32x16xf32>
    %50 = arith.addf %43, %49 : vector<32x16xf32>
    %51 = vector.broadcast %2 : vector<32x1xf32> to vector<32x16xf32>
    %52 = arith.mulf %50, %51 : vector<32x16xf32>
    %53 = vector.broadcast %3 : vector<32x1xf32> to vector<32x16xf32>
    %54 = arith.addf %52, %53 : vector<32x16xf32>
    %cst_31 = arith.constant 0.000000e+00 : f32
    %55 = vector.broadcast %cst_31 : f32 to vector<32x16xf32>
    %56 = arith.maximumf %54, %55 : vector<32x16xf32>
    %57 = arith.truncf %56 : vector<32x16xf32> to vector<32x16xbf16>
    %58 = vector.extract_strided_slice %57 {offsets = [0, 13], sizes = [32, 3], strides = [1, 1]} : vector<32x16xbf16> to vector<32x3xbf16>
    %59 = vector.extract_strided_slice %57 {offsets = [0, 0], sizes = [32, 13], strides = [1, 1]} : vector<32x16xbf16> to vector<32x13xbf16>
    %60 = tpu.concatenate %58, %59 in 1 : vector<32x3xbf16>, vector<32x13xbf16> -> vector<32x16xbf16>
    %c0_32 = arith.constant 0 : index
    %c0_33 = arith.constant 0 : index
    %c0_34 = arith.constant 0 : index
    %61 = vector.load %arg3[%c0_32, %c0_33, %c0_34] : memref<7x32x32xbf16, #tpu.memory_space<vmem>>, vector<1x32x32xbf16>
    %62 = vector.shape_cast %61 : vector<1x32x32xbf16> to vector<32x32xbf16>
    %cst_35 = arith.constant dense<0.000000e+00> : vector<32x16xf32>
    %63 = tpu.matmul %62, %60, %cst_35 {dimension_numbers = #tpu.dot_dimension_numbers<[1], [0], [0], [1], [0, 0, 1, 1], [], []>} : vector<32x32xbf16>, vector<32x16xbf16>, vector<32x16xf32> -> vector<32x16xf32>
    %64 = vector.extract_strided_slice %57 {offsets = [0, 14], sizes = [32, 2], strides = [1, 1]} : vector<32x16xbf16> to vector<32x2xbf16>
    %65 = vector.extract_strided_slice %57 {offsets = [0, 0], sizes = [32, 14], strides = [1, 1]} : vector<32x16xbf16> to vector<32x14xbf16>
    %66 = tpu.concatenate %64, %65 in 1 : vector<32x2xbf16>, vector<32x14xbf16> -> vector<32x16xbf16>
    %c1_36 = arith.constant 1 : index
    %c0_37 = arith.constant 0 : index
    %c0_38 = arith.constant 0 : index
    %67 = vector.load %arg3[%c1_36, %c0_37, %c0_38] : memref<7x32x32xbf16, #tpu.memory_space<vmem>>, vector<1x32x32xbf16>
    %68 = vector.shape_cast %67 : vector<1x32x32xbf16> to vector<32x32xbf16>
    %cst_39 = arith.constant dense<0.000000e+00> : vector<32x16xf32>
    %69 = tpu.matmul %68, %66, %cst_39 {dimension_numbers = #tpu.dot_dimension_numbers<[1], [0], [0], [1], [0, 0, 1, 1], [], []>} : vector<32x32xbf16>, vector<32x16xbf16>, vector<32x16xf32> -> vector<32x16xf32>
    %70 = arith.addf %63, %69 : vector<32x16xf32>
    %71 = vector.extract_strided_slice %57 {offsets = [0, 15], sizes = [32, 1], strides = [1, 1]} : vector<32x16xbf16> to vector<32x1xbf16>
    %72 = vector.extract_strided_slice %57 {offsets = [0, 0], sizes = [32, 15], strides = [1, 1]} : vector<32x16xbf16> to vector<32x15xbf16>
    %73 = tpu.concatenate %71, %72 in 1 : vector<32x1xbf16>, vector<32x15xbf16> -> vector<32x16xbf16>
    %c2_40 = arith.constant 2 : index
    %c0_41 = arith.constant 0 : index
    %c0_42 = arith.constant 0 : index
    %74 = vector.load %arg3[%c2_40, %c0_41, %c0_42] : memref<7x32x32xbf16, #tpu.memory_space<vmem>>, vector<1x32x32xbf16>
    %75 = vector.shape_cast %74 : vector<1x32x32xbf16> to vector<32x32xbf16>
    %cst_43 = arith.constant dense<0.000000e+00> : vector<32x16xf32>
    %76 = tpu.matmul %75, %73, %cst_43 {dimension_numbers = #tpu.dot_dimension_numbers<[1], [0], [0], [1], [0, 0, 1, 1], [], []>} : vector<32x32xbf16>, vector<32x16xbf16>, vector<32x16xf32> -> vector<32x16xf32>
    %77 = arith.addf %70, %76 : vector<32x16xf32>
    %c3_44 = arith.constant 3 : index
    %c0_45 = arith.constant 0 : index
    %c0_46 = arith.constant 0 : index
    %78 = vector.load %arg3[%c3_44, %c0_45, %c0_46] : memref<7x32x32xbf16, #tpu.memory_space<vmem>>, vector<1x32x32xbf16>
    %79 = vector.shape_cast %78 : vector<1x32x32xbf16> to vector<32x32xbf16>
    %cst_47 = arith.constant dense<0.000000e+00> : vector<32x16xf32>
    %80 = tpu.matmul %79, %57, %cst_47 {dimension_numbers = #tpu.dot_dimension_numbers<[1], [0], [0], [1], [0, 0, 1, 1], [], []>} : vector<32x32xbf16>, vector<32x16xbf16>, vector<32x16xf32> -> vector<32x16xf32>
    %81 = arith.addf %77, %80 : vector<32x16xf32>
    %82 = vector.extract_strided_slice %57 {offsets = [0, 1], sizes = [32, 15], strides = [1, 1]} : vector<32x16xbf16> to vector<32x15xbf16>
    %83 = vector.extract_strided_slice %57 {offsets = [0, 0], sizes = [32, 1], strides = [1, 1]} : vector<32x16xbf16> to vector<32x1xbf16>
    %84 = tpu.concatenate %82, %83 in 1 : vector<32x15xbf16>, vector<32x1xbf16> -> vector<32x16xbf16>
    %c4_48 = arith.constant 4 : index
    %c0_49 = arith.constant 0 : index
    %c0_50 = arith.constant 0 : index
    %85 = vector.load %arg3[%c4_48, %c0_49, %c0_50] : memref<7x32x32xbf16, #tpu.memory_space<vmem>>, vector<1x32x32xbf16>
    %86 = vector.shape_cast %85 : vector<1x32x32xbf16> to vector<32x32xbf16>
    %cst_51 = arith.constant dense<0.000000e+00> : vector<32x16xf32>
    %87 = tpu.matmul %86, %84, %cst_51 {dimension_numbers = #tpu.dot_dimension_numbers<[1], [0], [0], [1], [0, 0, 1, 1], [], []>} : vector<32x32xbf16>, vector<32x16xbf16>, vector<32x16xf32> -> vector<32x16xf32>
    %88 = arith.addf %81, %87 : vector<32x16xf32>
    %89 = vector.extract_strided_slice %57 {offsets = [0, 2], sizes = [32, 14], strides = [1, 1]} : vector<32x16xbf16> to vector<32x14xbf16>
    %90 = vector.extract_strided_slice %57 {offsets = [0, 0], sizes = [32, 2], strides = [1, 1]} : vector<32x16xbf16> to vector<32x2xbf16>
    %91 = tpu.concatenate %89, %90 in 1 : vector<32x14xbf16>, vector<32x2xbf16> -> vector<32x16xbf16>
    %c5_52 = arith.constant 5 : index
    %c0_53 = arith.constant 0 : index
    %c0_54 = arith.constant 0 : index
    %92 = vector.load %arg3[%c5_52, %c0_53, %c0_54] : memref<7x32x32xbf16, #tpu.memory_space<vmem>>, vector<1x32x32xbf16>
    %93 = vector.shape_cast %92 : vector<1x32x32xbf16> to vector<32x32xbf16>
    %cst_55 = arith.constant dense<0.000000e+00> : vector<32x16xf32>
    %94 = tpu.matmul %93, %91, %cst_55 {dimension_numbers = #tpu.dot_dimension_numbers<[1], [0], [0], [1], [0, 0, 1, 1], [], []>} : vector<32x32xbf16>, vector<32x16xbf16>, vector<32x16xf32> -> vector<32x16xf32>
    %95 = arith.addf %88, %94 : vector<32x16xf32>
    %96 = vector.extract_strided_slice %57 {offsets = [0, 3], sizes = [32, 13], strides = [1, 1]} : vector<32x16xbf16> to vector<32x13xbf16>
    %97 = vector.extract_strided_slice %57 {offsets = [0, 0], sizes = [32, 3], strides = [1, 1]} : vector<32x16xbf16> to vector<32x3xbf16>
    %98 = tpu.concatenate %96, %97 in 1 : vector<32x13xbf16>, vector<32x3xbf16> -> vector<32x16xbf16>
    %c6_56 = arith.constant 6 : index
    %c0_57 = arith.constant 0 : index
    %c0_58 = arith.constant 0 : index
    %99 = vector.load %arg3[%c6_56, %c0_57, %c0_58] : memref<7x32x32xbf16, #tpu.memory_space<vmem>>, vector<1x32x32xbf16>
    %100 = vector.shape_cast %99 : vector<1x32x32xbf16> to vector<32x32xbf16>
    %cst_59 = arith.constant dense<0.000000e+00> : vector<32x16xf32>
    %101 = tpu.matmul %100, %98, %cst_59 {dimension_numbers = #tpu.dot_dimension_numbers<[1], [0], [0], [1], [0, 0, 1, 1], [], []>} : vector<32x32xbf16>, vector<32x16xbf16>, vector<32x16xf32> -> vector<32x16xf32>
    %102 = arith.addf %95, %101 : vector<32x16xf32>
    %103 = vector.broadcast %4 : vector<32x1xf32> to vector<32x16xf32>
    %104 = arith.mulf %102, %103 : vector<32x16xf32>
    %105 = vector.broadcast %5 : vector<32x1xf32> to vector<32x16xf32>
    %106 = arith.addf %104, %105 : vector<32x16xf32>
    %107 = arith.extf %1 : vector<32x16xbf16> to vector<32x16xf32>
    %108 = arith.addf %106, %107 : vector<32x16xf32>
    %cst_60 = arith.constant 0.000000e+00 : f32
    %109 = vector.broadcast %cst_60 : f32 to vector<32x16xf32>
    %110 = arith.maximumf %108, %109 : vector<32x16xf32>
    %111 = arith.truncf %110 : vector<32x16xf32> to vector<32x16xbf16>
    %c0_61 = arith.constant 0 : index
    %c0_62 = arith.constant 0 : index
    %c0_63 = arith.constant 0 : index
    %112 = vector.load %arg8[%c0_61, %c0_62, %c0_63] : memref<1x32x16xbf16, #tpu.memory_space<vmem>>, vector<1x32x16xbf16>
    %113 = vector.shape_cast %112 : vector<1x32x16xbf16> to vector<32x16xbf16>
    %114 = vector.shape_cast %111 : vector<32x16xbf16> to vector<1x32x16xbf16>
    tpu.vector_store %arg8[%c0_61, %c0_62, %c0_63], %114 {strides = array<i32>} : memref<1x32x16xbf16, #tpu.memory_space<vmem>>, vector<1x32x16xbf16>,
    return
  }
  func.func @transform_0(%arg0: i32) -> (i32, i32, i32) {
    %c0_i32 = arith.constant 0 : i32
    %c0_i32_0 = arith.constant 0 : i32
    %c0_i32_1 = arith.constant 0 : i32
    return %arg0, %c0_i32, %c0_i32_0 : i32, i32, i32
  }
  func.func @transform_1(%arg0: i32) -> (i32, i32, i32) {
    %c0_i32 = arith.constant 0 : i32
    %c0_i32_0 = arith.constant 0 : i32
    %c0_i32_1 = arith.constant 0 : i32
    %c0_i32_2 = arith.constant 0 : i32
    return %c0_i32, %c0_i32_0, %c0_i32_1 : i32, i32, i32
  }
  func.func @transform_2(%arg0: i32) -> (i32, i32, i32) {
    %c0_i32 = arith.constant 0 : i32
    %c0_i32_0 = arith.constant 0 : i32
    %c0_i32_1 = arith.constant 0 : i32
    %c0_i32_2 = arith.constant 0 : i32
    return %c0_i32, %c0_i32_0, %c0_i32_1 : i32, i32, i32
  }
  func.func @transform_3(%arg0: i32) -> (i32, i32) {
    %c0_i32 = arith.constant 0 : i32
    %c0_i32_0 = arith.constant 0 : i32
    %c0_i32_1 = arith.constant 0 : i32
    return %c0_i32, %c0_i32_0 : i32, i32
  }
  func.func @transform_4(%arg0: i32) -> (i32, i32) {
    %c0_i32 = arith.constant 0 : i32
    %c0_i32_0 = arith.constant 0 : i32
    %c0_i32_1 = arith.constant 0 : i32
    return %c0_i32, %c0_i32_0 : i32, i32
  }
  func.func @transform_5(%arg0: i32) -> (i32, i32) {
    %c0_i32 = arith.constant 0 : i32
    %c0_i32_0 = arith.constant 0 : i32
    %c0_i32_1 = arith.constant 0 : i32
    return %c0_i32, %c0_i32_0 : i32, i32
  }
  func.func @transform_6(%arg0: i32) -> (i32, i32) {
    %c0_i32 = arith.constant 0 : i32
    %c0_i32_0 = arith.constant 0 : i32
    %c0_i32_1 = arith.constant 0 : i32
    return %c0_i32, %c0_i32_0 : i32, i32
  }
  func.func @transform_7(%arg0: i32) -> (i32, i32, i32) {
    %c0_i32 = arith.constant 0 : i32
    %c0_i32_0 = arith.constant 0 : i32
    %c0_i32_1 = arith.constant 0 : i32
    return %arg0, %c0_i32, %c0_i32_0 : i32, i32, i32
  }
}

module attributes {stable_mosaic.version = 11 : i64} {
  func.func @_block_kernel(%arg0: i32, %arg1: memref<1x32x8xbf16, #tpu.memory_space<vmem>>, %arg2: memref<1x32x8xbf16, #tpu.memory_space<vmem>>, %arg3: memref<7x32x32xbf16, #tpu.memory_space<vmem>>, %arg4: memref<7x32x32xbf16, #tpu.memory_space<vmem>>, %arg5: memref<1x32x32xbf16, #tpu.memory_space<vmem>>, %arg6: memref<32x1xf32, #tpu.memory_space<vmem>>, %arg7: memref<32x1xf32, #tpu.memory_space<vmem>>, %arg8: memref<32x1xf32, #tpu.memory_space<vmem>>, %arg9: memref<32x1xf32, #tpu.memory_space<vmem>>, %arg10: memref<32x1xf32, #tpu.memory_space<vmem>>, %arg11: memref<32x1xf32, #tpu.memory_space<vmem>>, %arg12: memref<1x32x8xbf16, #tpu.memory_space<vmem>>) attributes {dimension_semantics = [#tpu.dimension_semantics<parallel>], iteration_bounds = array<i64: 2>, scalar_prefetch = 0 : i64, scratch_operands = 0 : i64, tpu.core_type = #tpu.core_type<tc>, window_params = [{transform_indices = @transform_0, window_bounds = array<i64: 1, 32, 8>}, {transform_indices = @transform_1, window_bounds = array<i64: 1, 32, 8>}, {pipeline_mode = #tpu.pipeline_mode<synchronous>, transform_indices = @transform_2, window_bounds = array<i64: 7, 32, 32>}, {pipeline_mode = #tpu.pipeline_mode<synchronous>, transform_indices = @transform_3, window_bounds = array<i64: 7, 32, 32>}, {pipeline_mode = #tpu.pipeline_mode<synchronous>, transform_indices = @transform_4, window_bounds = array<i64: 1, 32, 32>}, {pipeline_mode = #tpu.pipeline_mode<synchronous>, transform_indices = @transform_5, window_bounds = array<i64: 32, 1>}, {pipeline_mode = #tpu.pipeline_mode<synchronous>, transform_indices = @transform_6, window_bounds = array<i64: 32, 1>}, {pipeline_mode = #tpu.pipeline_mode<synchronous>, transform_indices = @transform_7, window_bounds = array<i64: 32, 1>}, {pipeline_mode = #tpu.pipeline_mode<synchronous>, transform_indices = @transform_8, window_bounds = array<i64: 32, 1>}, {pipeline_mode = #tpu.pipeline_mode<synchronous>, transform_indices = @transform_9, window_bounds = array<i64: 32, 1>}, {pipeline_mode = #tpu.pipeline_mode<synchronous>, transform_indices = @transform_10, window_bounds = array<i64: 32, 1>}, {transform_indices = @transform_11, window_bounds = array<i64: 1, 32, 8>}]} {
    %c0 = arith.constant 0 : index
    %c0_0 = arith.constant 0 : index
    %c0_1 = arith.constant 0 : index
    %0 = vector.load %arg1[%c0, %c0_0, %c0_1] : memref<1x32x8xbf16, #tpu.memory_space<vmem>>, vector<1x32x8xbf16>
    %1 = vector.shape_cast %0 : vector<1x32x8xbf16> to vector<32x8xbf16>
    %c0_2 = arith.constant 0 : index
    %c0_3 = arith.constant 0 : index
    %c0_4 = arith.constant 0 : index
    %2 = vector.load %arg2[%c0_2, %c0_3, %c0_4] : memref<1x32x8xbf16, #tpu.memory_space<vmem>>, vector<1x32x8xbf16>
    %3 = vector.shape_cast %2 : vector<1x32x8xbf16> to vector<32x8xbf16>
    %c0_5 = arith.constant 0 : index
    %c0_6 = arith.constant 0 : index
    %4 = vector.load %arg6[%c0_5, %c0_6] : memref<32x1xf32, #tpu.memory_space<vmem>>, vector<32x1xf32>
    %c0_7 = arith.constant 0 : index
    %c0_8 = arith.constant 0 : index
    %5 = vector.load %arg7[%c0_7, %c0_8] : memref<32x1xf32, #tpu.memory_space<vmem>>, vector<32x1xf32>
    %c0_9 = arith.constant 0 : index
    %c0_10 = arith.constant 0 : index
    %6 = vector.load %arg8[%c0_9, %c0_10] : memref<32x1xf32, #tpu.memory_space<vmem>>, vector<32x1xf32>
    %c0_11 = arith.constant 0 : index
    %c0_12 = arith.constant 0 : index
    %7 = vector.load %arg9[%c0_11, %c0_12] : memref<32x1xf32, #tpu.memory_space<vmem>>, vector<32x1xf32>
    %c0_13 = arith.constant 0 : index
    %c0_14 = arith.constant 0 : index
    %8 = vector.load %arg10[%c0_13, %c0_14] : memref<32x1xf32, #tpu.memory_space<vmem>>, vector<32x1xf32>
    %c0_15 = arith.constant 0 : index
    %c0_16 = arith.constant 0 : index
    %9 = vector.load %arg11[%c0_15, %c0_16] : memref<32x1xf32, #tpu.memory_space<vmem>>, vector<32x1xf32>
    %10 = vector.extract_strided_slice %3 {offsets = [0, 6], sizes = [32, 2], strides = [1, 1]} : vector<32x8xbf16> to vector<32x2xbf16>
    %11 = vector.extract_strided_slice %3 {offsets = [0, 0], sizes = [32, 6], strides = [1, 1]} : vector<32x8xbf16> to vector<32x6xbf16>
    %12 = tpu.concatenate %10, %11 in 1 : vector<32x2xbf16>, vector<32x6xbf16> -> vector<32x8xbf16>
    %c0_17 = arith.constant 0 : index
    %c0_18 = arith.constant 0 : index
    %c0_19 = arith.constant 0 : index
    %13 = vector.load %arg3[%c0_17, %c0_18, %c0_19] : memref<7x32x32xbf16, #tpu.memory_space<vmem>>, vector<1x32x32xbf16>
    %14 = vector.shape_cast %13 : vector<1x32x32xbf16> to vector<32x32xbf16>
    %cst = arith.constant dense<0.000000e+00> : vector<32x8xf32>
    %15 = tpu.matmul %14, %12, %cst {dimension_numbers = #tpu.dot_dimension_numbers<[1], [0], [0], [1], [0, 0, 1, 1], [], []>} : vector<32x32xbf16>, vector<32x8xbf16>, vector<32x8xf32> -> vector<32x8xf32>
    %16 = vector.extract_strided_slice %1 {offsets = [0, 7], sizes = [32, 1], strides = [1, 1]} : vector<32x8xbf16> to vector<32x1xbf16>
    %17 = vector.extract_strided_slice %1 {offsets = [0, 0], sizes = [32, 7], strides = [1, 1]} : vector<32x8xbf16> to vector<32x7xbf16>
    %18 = tpu.concatenate %16, %17 in 1 : vector<32x1xbf16>, vector<32x7xbf16> -> vector<32x8xbf16>
    %c1 = arith.constant 1 : index
    %c0_20 = arith.constant 0 : index
    %c0_21 = arith.constant 0 : index
    %19 = vector.load %arg3[%c1, %c0_20, %c0_21] : memref<7x32x32xbf16, #tpu.memory_space<vmem>>, vector<1x32x32xbf16>
    %20 = vector.shape_cast %19 : vector<1x32x32xbf16> to vector<32x32xbf16>
    %cst_22 = arith.constant dense<0.000000e+00> : vector<32x8xf32>
    %21 = tpu.matmul %20, %18, %cst_22 {dimension_numbers = #tpu.dot_dimension_numbers<[1], [0], [0], [1], [0, 0, 1, 1], [], []>} : vector<32x32xbf16>, vector<32x8xbf16>, vector<32x8xf32> -> vector<32x8xf32>
    %22 = arith.addf %15, %21 : vector<32x8xf32>
    %23 = vector.extract_strided_slice %3 {offsets = [0, 7], sizes = [32, 1], strides = [1, 1]} : vector<32x8xbf16> to vector<32x1xbf16>
    %24 = vector.extract_strided_slice %3 {offsets = [0, 0], sizes = [32, 7], strides = [1, 1]} : vector<32x8xbf16> to vector<32x7xbf16>
    %25 = tpu.concatenate %23, %24 in 1 : vector<32x1xbf16>, vector<32x7xbf16> -> vector<32x8xbf16>
    %c2 = arith.constant 2 : index
    %c0_23 = arith.constant 0 : index
    %c0_24 = arith.constant 0 : index
    %26 = vector.load %arg3[%c2, %c0_23, %c0_24] : memref<7x32x32xbf16, #tpu.memory_space<vmem>>, vector<1x32x32xbf16>
    %27 = vector.shape_cast %26 : vector<1x32x32xbf16> to vector<32x32xbf16>
    %cst_25 = arith.constant dense<0.000000e+00> : vector<32x8xf32>
    %28 = tpu.matmul %27, %25, %cst_25 {dimension_numbers = #tpu.dot_dimension_numbers<[1], [0], [0], [1], [0, 0, 1, 1], [], []>} : vector<32x32xbf16>, vector<32x8xbf16>, vector<32x8xf32> -> vector<32x8xf32>
    %29 = arith.addf %22, %28 : vector<32x8xf32>
    %c3 = arith.constant 3 : index
    %c0_26 = arith.constant 0 : index
    %c0_27 = arith.constant 0 : index
    %30 = vector.load %arg3[%c3, %c0_26, %c0_27] : memref<7x32x32xbf16, #tpu.memory_space<vmem>>, vector<1x32x32xbf16>
    %31 = vector.shape_cast %30 : vector<1x32x32xbf16> to vector<32x32xbf16>
    %cst_28 = arith.constant dense<0.000000e+00> : vector<32x8xf32>
    %32 = tpu.matmul %31, %1, %cst_28 {dimension_numbers = #tpu.dot_dimension_numbers<[1], [0], [0], [1], [0, 0, 1, 1], [], []>} : vector<32x32xbf16>, vector<32x8xbf16>, vector<32x8xf32> -> vector<32x8xf32>
    %33 = arith.addf %29, %32 : vector<32x8xf32>
    %c4 = arith.constant 4 : index
    %c0_29 = arith.constant 0 : index
    %c0_30 = arith.constant 0 : index
    %34 = vector.load %arg3[%c4, %c0_29, %c0_30] : memref<7x32x32xbf16, #tpu.memory_space<vmem>>, vector<1x32x32xbf16>
    %35 = vector.shape_cast %34 : vector<1x32x32xbf16> to vector<32x32xbf16>
    %cst_31 = arith.constant dense<0.000000e+00> : vector<32x8xf32>
    %36 = tpu.matmul %35, %3, %cst_31 {dimension_numbers = #tpu.dot_dimension_numbers<[1], [0], [0], [1], [0, 0, 1, 1], [], []>} : vector<32x32xbf16>, vector<32x8xbf16>, vector<32x8xf32> -> vector<32x8xf32>
    %37 = arith.addf %33, %36 : vector<32x8xf32>
    %38 = vector.extract_strided_slice %1 {offsets = [0, 1], sizes = [32, 7], strides = [1, 1]} : vector<32x8xbf16> to vector<32x7xbf16>
    %39 = vector.extract_strided_slice %1 {offsets = [0, 0], sizes = [32, 1], strides = [1, 1]} : vector<32x8xbf16> to vector<32x1xbf16>
    %40 = tpu.concatenate %38, %39 in 1 : vector<32x7xbf16>, vector<32x1xbf16> -> vector<32x8xbf16>
    %c5 = arith.constant 5 : index
    %c0_32 = arith.constant 0 : index
    %c0_33 = arith.constant 0 : index
    %41 = vector.load %arg3[%c5, %c0_32, %c0_33] : memref<7x32x32xbf16, #tpu.memory_space<vmem>>, vector<1x32x32xbf16>
    %42 = vector.shape_cast %41 : vector<1x32x32xbf16> to vector<32x32xbf16>
    %cst_34 = arith.constant dense<0.000000e+00> : vector<32x8xf32>
    %43 = tpu.matmul %42, %40, %cst_34 {dimension_numbers = #tpu.dot_dimension_numbers<[1], [0], [0], [1], [0, 0, 1, 1], [], []>} : vector<32x32xbf16>, vector<32x8xbf16>, vector<32x8xf32> -> vector<32x8xf32>
    %44 = arith.addf %37, %43 : vector<32x8xf32>
    %45 = vector.extract_strided_slice %3 {offsets = [0, 1], sizes = [32, 7], strides = [1, 1]} : vector<32x8xbf16> to vector<32x7xbf16>
    %46 = vector.extract_strided_slice %3 {offsets = [0, 0], sizes = [32, 1], strides = [1, 1]} : vector<32x8xbf16> to vector<32x1xbf16>
    %47 = tpu.concatenate %45, %46 in 1 : vector<32x7xbf16>, vector<32x1xbf16> -> vector<32x8xbf16>
    %c6 = arith.constant 6 : index
    %c0_35 = arith.constant 0 : index
    %c0_36 = arith.constant 0 : index
    %48 = vector.load %arg3[%c6, %c0_35, %c0_36] : memref<7x32x32xbf16, #tpu.memory_space<vmem>>, vector<1x32x32xbf16>
    %49 = vector.shape_cast %48 : vector<1x32x32xbf16> to vector<32x32xbf16>
    %cst_37 = arith.constant dense<0.000000e+00> : vector<32x8xf32>
    %50 = tpu.matmul %49, %47, %cst_37 {dimension_numbers = #tpu.dot_dimension_numbers<[1], [0], [0], [1], [0, 0, 1, 1], [], []>} : vector<32x32xbf16>, vector<32x8xbf16>, vector<32x8xf32> -> vector<32x8xf32>
    %51 = arith.addf %44, %50 : vector<32x8xf32>
    %52 = vector.broadcast %4 : vector<32x1xf32> to vector<32x8xf32>
    %53 = arith.mulf %51, %52 : vector<32x8xf32>
    %54 = vector.broadcast %5 : vector<32x1xf32> to vector<32x8xf32>
    %55 = arith.addf %53, %54 : vector<32x8xf32>
    %cst_38 = arith.constant 0.000000e+00 : f32
    %56 = vector.broadcast %cst_38 : f32 to vector<32x8xf32>
    %57 = arith.maximumf %55, %56 : vector<32x8xf32>
    %58 = arith.truncf %57 : vector<32x8xf32> to vector<32x8xbf16>
    %59 = vector.extract_strided_slice %58 {offsets = [0, 5], sizes = [32, 3], strides = [1, 1]} : vector<32x8xbf16> to vector<32x3xbf16>
    %60 = vector.extract_strided_slice %58 {offsets = [0, 0], sizes = [32, 5], strides = [1, 1]} : vector<32x8xbf16> to vector<32x5xbf16>
    %61 = tpu.concatenate %59, %60 in 1 : vector<32x3xbf16>, vector<32x5xbf16> -> vector<32x8xbf16>
    %c0_39 = arith.constant 0 : index
    %c0_40 = arith.constant 0 : index
    %c0_41 = arith.constant 0 : index
    %62 = vector.load %arg4[%c0_39, %c0_40, %c0_41] : memref<7x32x32xbf16, #tpu.memory_space<vmem>>, vector<1x32x32xbf16>
    %63 = vector.shape_cast %62 : vector<1x32x32xbf16> to vector<32x32xbf16>
    %cst_42 = arith.constant dense<0.000000e+00> : vector<32x8xf32>
    %64 = tpu.matmul %63, %61, %cst_42 {dimension_numbers = #tpu.dot_dimension_numbers<[1], [0], [0], [1], [0, 0, 1, 1], [], []>} : vector<32x32xbf16>, vector<32x8xbf16>, vector<32x8xf32> -> vector<32x8xf32>
    %65 = vector.extract_strided_slice %58 {offsets = [0, 6], sizes = [32, 2], strides = [1, 1]} : vector<32x8xbf16> to vector<32x2xbf16>
    %66 = vector.extract_strided_slice %58 {offsets = [0, 0], sizes = [32, 6], strides = [1, 1]} : vector<32x8xbf16> to vector<32x6xbf16>
    %67 = tpu.concatenate %65, %66 in 1 : vector<32x2xbf16>, vector<32x6xbf16> -> vector<32x8xbf16>
    %c1_43 = arith.constant 1 : index
    %c0_44 = arith.constant 0 : index
    %c0_45 = arith.constant 0 : index
    %68 = vector.load %arg4[%c1_43, %c0_44, %c0_45] : memref<7x32x32xbf16, #tpu.memory_space<vmem>>, vector<1x32x32xbf16>
    %69 = vector.shape_cast %68 : vector<1x32x32xbf16> to vector<32x32xbf16>
    %cst_46 = arith.constant dense<0.000000e+00> : vector<32x8xf32>
    %70 = tpu.matmul %69, %67, %cst_46 {dimension_numbers = #tpu.dot_dimension_numbers<[1], [0], [0], [1], [0, 0, 1, 1], [], []>} : vector<32x32xbf16>, vector<32x8xbf16>, vector<32x8xf32> -> vector<32x8xf32>
    %71 = arith.addf %64, %70 : vector<32x8xf32>
    %72 = vector.extract_strided_slice %58 {offsets = [0, 7], sizes = [32, 1], strides = [1, 1]} : vector<32x8xbf16> to vector<32x1xbf16>
    %73 = vector.extract_strided_slice %58 {offsets = [0, 0], sizes = [32, 7], strides = [1, 1]} : vector<32x8xbf16> to vector<32x7xbf16>
    %74 = tpu.concatenate %72, %73 in 1 : vector<32x1xbf16>, vector<32x7xbf16> -> vector<32x8xbf16>
    %c2_47 = arith.constant 2 : index
    %c0_48 = arith.constant 0 : index
    %c0_49 = arith.constant 0 : index
    %75 = vector.load %arg4[%c2_47, %c0_48, %c0_49] : memref<7x32x32xbf16, #tpu.memory_space<vmem>>, vector<1x32x32xbf16>
    %76 = vector.shape_cast %75 : vector<1x32x32xbf16> to vector<32x32xbf16>
    %cst_50 = arith.constant dense<0.000000e+00> : vector<32x8xf32>
    %77 = tpu.matmul %76, %74, %cst_50 {dimension_numbers = #tpu.dot_dimension_numbers<[1], [0], [0], [1], [0, 0, 1, 1], [], []>} : vector<32x32xbf16>, vector<32x8xbf16>, vector<32x8xf32> -> vector<32x8xf32>
    %78 = arith.addf %71, %77 : vector<32x8xf32>
    %c3_51 = arith.constant 3 : index
    %c0_52 = arith.constant 0 : index
    %c0_53 = arith.constant 0 : index
    %79 = vector.load %arg4[%c3_51, %c0_52, %c0_53] : memref<7x32x32xbf16, #tpu.memory_space<vmem>>, vector<1x32x32xbf16>
    %80 = vector.shape_cast %79 : vector<1x32x32xbf16> to vector<32x32xbf16>
    %cst_54 = arith.constant dense<0.000000e+00> : vector<32x8xf32>
    %81 = tpu.matmul %80, %58, %cst_54 {dimension_numbers = #tpu.dot_dimension_numbers<[1], [0], [0], [1], [0, 0, 1, 1], [], []>} : vector<32x32xbf16>, vector<32x8xbf16>, vector<32x8xf32> -> vector<32x8xf32>
    %82 = arith.addf %78, %81 : vector<32x8xf32>
    %83 = vector.extract_strided_slice %58 {offsets = [0, 1], sizes = [32, 7], strides = [1, 1]} : vector<32x8xbf16> to vector<32x7xbf16>
    %84 = vector.extract_strided_slice %58 {offsets = [0, 0], sizes = [32, 1], strides = [1, 1]} : vector<32x8xbf16> to vector<32x1xbf16>
    %85 = tpu.concatenate %83, %84 in 1 : vector<32x7xbf16>, vector<32x1xbf16> -> vector<32x8xbf16>
    %c4_55 = arith.constant 4 : index
    %c0_56 = arith.constant 0 : index
    %c0_57 = arith.constant 0 : index
    %86 = vector.load %arg4[%c4_55, %c0_56, %c0_57] : memref<7x32x32xbf16, #tpu.memory_space<vmem>>, vector<1x32x32xbf16>
    %87 = vector.shape_cast %86 : vector<1x32x32xbf16> to vector<32x32xbf16>
    %cst_58 = arith.constant dense<0.000000e+00> : vector<32x8xf32>
    %88 = tpu.matmul %87, %85, %cst_58 {dimension_numbers = #tpu.dot_dimension_numbers<[1], [0], [0], [1], [0, 0, 1, 1], [], []>} : vector<32x32xbf16>, vector<32x8xbf16>, vector<32x8xf32> -> vector<32x8xf32>
    %89 = arith.addf %82, %88 : vector<32x8xf32>
    %90 = vector.extract_strided_slice %58 {offsets = [0, 2], sizes = [32, 6], strides = [1, 1]} : vector<32x8xbf16> to vector<32x6xbf16>
    %91 = vector.extract_strided_slice %58 {offsets = [0, 0], sizes = [32, 2], strides = [1, 1]} : vector<32x8xbf16> to vector<32x2xbf16>
    %92 = tpu.concatenate %90, %91 in 1 : vector<32x6xbf16>, vector<32x2xbf16> -> vector<32x8xbf16>
    %c5_59 = arith.constant 5 : index
    %c0_60 = arith.constant 0 : index
    %c0_61 = arith.constant 0 : index
    %93 = vector.load %arg4[%c5_59, %c0_60, %c0_61] : memref<7x32x32xbf16, #tpu.memory_space<vmem>>, vector<1x32x32xbf16>
    %94 = vector.shape_cast %93 : vector<1x32x32xbf16> to vector<32x32xbf16>
    %cst_62 = arith.constant dense<0.000000e+00> : vector<32x8xf32>
    %95 = tpu.matmul %94, %92, %cst_62 {dimension_numbers = #tpu.dot_dimension_numbers<[1], [0], [0], [1], [0, 0, 1, 1], [], []>} : vector<32x32xbf16>, vector<32x8xbf16>, vector<32x8xf32> -> vector<32x8xf32>
    %96 = arith.addf %89, %95 : vector<32x8xf32>
    %97 = vector.extract_strided_slice %58 {offsets = [0, 3], sizes = [32, 5], strides = [1, 1]} : vector<32x8xbf16> to vector<32x5xbf16>
    %98 = vector.extract_strided_slice %58 {offsets = [0, 0], sizes = [32, 3], strides = [1, 1]} : vector<32x8xbf16> to vector<32x3xbf16>
    %99 = tpu.concatenate %97, %98 in 1 : vector<32x5xbf16>, vector<32x3xbf16> -> vector<32x8xbf16>
    %c6_63 = arith.constant 6 : index
    %c0_64 = arith.constant 0 : index
    %c0_65 = arith.constant 0 : index
    %100 = vector.load %arg4[%c6_63, %c0_64, %c0_65] : memref<7x32x32xbf16, #tpu.memory_space<vmem>>, vector<1x32x32xbf16>
    %101 = vector.shape_cast %100 : vector<1x32x32xbf16> to vector<32x32xbf16>
    %cst_66 = arith.constant dense<0.000000e+00> : vector<32x8xf32>
    %102 = tpu.matmul %101, %99, %cst_66 {dimension_numbers = #tpu.dot_dimension_numbers<[1], [0], [0], [1], [0, 0, 1, 1], [], []>} : vector<32x32xbf16>, vector<32x8xbf16>, vector<32x8xf32> -> vector<32x8xf32>
    %103 = arith.addf %96, %102 : vector<32x8xf32>
    %104 = vector.broadcast %6 : vector<32x1xf32> to vector<32x8xf32>
    %105 = arith.mulf %103, %104 : vector<32x8xf32>
    %106 = vector.broadcast %7 : vector<32x1xf32> to vector<32x8xf32>
    %107 = arith.addf %105, %106 : vector<32x8xf32>
    %c0_67 = arith.constant 0 : index
    %c0_68 = arith.constant 0 : index
    %c0_69 = arith.constant 0 : index
    %108 = vector.load %arg5[%c0_67, %c0_68, %c0_69] : memref<1x32x32xbf16, #tpu.memory_space<vmem>>, vector<1x32x32xbf16>
    %109 = vector.shape_cast %108 : vector<1x32x32xbf16> to vector<32x32xbf16>
    %cst_70 = arith.constant dense<0.000000e+00> : vector<32x8xf32>
    %110 = tpu.matmul %109, %1, %cst_70 {dimension_numbers = #tpu.dot_dimension_numbers<[1], [0], [0], [1], [0, 0, 1, 1], [], []>} : vector<32x32xbf16>, vector<32x8xbf16>, vector<32x8xf32> -> vector<32x8xf32>
    %111 = vector.broadcast %8 : vector<32x1xf32> to vector<32x8xf32>
    %112 = arith.mulf %110, %111 : vector<32x8xf32>
    %113 = vector.broadcast %9 : vector<32x1xf32> to vector<32x8xf32>
    %114 = arith.addf %112, %113 : vector<32x8xf32>
    %115 = arith.addf %107, %114 : vector<32x8xf32>
    %cst_71 = arith.constant 0.000000e+00 : f32
    %116 = vector.broadcast %cst_71 : f32 to vector<32x8xf32>
    %117 = arith.maximumf %115, %116 : vector<32x8xf32>
    %118 = arith.truncf %117 : vector<32x8xf32> to vector<32x8xbf16>
    %c0_72 = arith.constant 0 : index
    %c0_73 = arith.constant 0 : index
    %c0_74 = arith.constant 0 : index
    %119 = vector.load %arg12[%c0_72, %c0_73, %c0_74] : memref<1x32x8xbf16, #tpu.memory_space<vmem>>, vector<1x32x8xbf16>
    %120 = vector.shape_cast %119 : vector<1x32x8xbf16> to vector<32x8xbf16>
    %121 = vector.shape_cast %118 : vector<32x8xbf16> to vector<1x32x8xbf16>
    tpu.vector_store %arg12[%c0_72, %c0_73, %c0_74], %121 {strides = array<i32>} : memref<1x32x8xbf16, #tpu.memory_space<vmem>>, vector<1x32x8xbf16>,
    return
  }
  func.func @transform_0(%arg0: i32) -> (i32, i32, i32) {
    %c0_i32 = arith.constant 0 : i32
    %c0_i32_0 = arith.constant 0 : i32
    %c0_i32_1 = arith.constant 0 : i32
    return %arg0, %c0_i32, %c0_i32_0 : i32, i32, i32
  }
  func.func @transform_1(%arg0: i32) -> (i32, i32, i32) {
    %c0_i32 = arith.constant 0 : i32
    %c0_i32_0 = arith.constant 0 : i32
    %c0_i32_1 = arith.constant 0 : i32
    return %arg0, %c0_i32, %c0_i32_0 : i32, i32, i32
  }
  func.func @transform_2(%arg0: i32) -> (i32, i32, i32) {
    %c0_i32 = arith.constant 0 : i32
    %c0_i32_0 = arith.constant 0 : i32
    %c0_i32_1 = arith.constant 0 : i32
    %c0_i32_2 = arith.constant 0 : i32
    return %c0_i32, %c0_i32_0, %c0_i32_1 : i32, i32, i32
  }
  func.func @transform_3(%arg0: i32) -> (i32, i32, i32) {
    %c0_i32 = arith.constant 0 : i32
    %c0_i32_0 = arith.constant 0 : i32
    %c0_i32_1 = arith.constant 0 : i32
    %c0_i32_2 = arith.constant 0 : i32
    return %c0_i32, %c0_i32_0, %c0_i32_1 : i32, i32, i32
  }
  func.func @transform_4(%arg0: i32) -> (i32, i32, i32) {
    %c0_i32 = arith.constant 0 : i32
    %c0_i32_0 = arith.constant 0 : i32
    %c0_i32_1 = arith.constant 0 : i32
    %c0_i32_2 = arith.constant 0 : i32
    return %c0_i32, %c0_i32_0, %c0_i32_1 : i32, i32, i32
  }
  func.func @transform_5(%arg0: i32) -> (i32, i32) {
    %c0_i32 = arith.constant 0 : i32
    %c0_i32_0 = arith.constant 0 : i32
    %c0_i32_1 = arith.constant 0 : i32
    return %c0_i32, %c0_i32_0 : i32, i32
  }
  func.func @transform_6(%arg0: i32) -> (i32, i32) {
    %c0_i32 = arith.constant 0 : i32
    %c0_i32_0 = arith.constant 0 : i32
    %c0_i32_1 = arith.constant 0 : i32
    return %c0_i32, %c0_i32_0 : i32, i32
  }
  func.func @transform_7(%arg0: i32) -> (i32, i32) {
    %c0_i32 = arith.constant 0 : i32
    %c0_i32_0 = arith.constant 0 : i32
    %c0_i32_1 = arith.constant 0 : i32
    return %c0_i32, %c0_i32_0 : i32, i32
  }
  func.func @transform_8(%arg0: i32) -> (i32, i32) {
    %c0_i32 = arith.constant 0 : i32
    %c0_i32_0 = arith.constant 0 : i32
    %c0_i32_1 = arith.constant 0 : i32
    return %c0_i32, %c0_i32_0 : i32, i32
  }
  func.func @transform_9(%arg0: i32) -> (i32, i32) {
    %c0_i32 = arith.constant 0 : i32
    %c0_i32_0 = arith.constant 0 : i32
    %c0_i32_1 = arith.constant 0 : i32
    return %c0_i32, %c0_i32_0 : i32, i32
  }
  func.func @transform_10(%arg0: i32) -> (i32, i32) {
    %c0_i32 = arith.constant 0 : i32
    %c0_i32_0 = arith.constant 0 : i32
    %c0_i32_1 = arith.constant 0 : i32
    return %c0_i32, %c0_i32_0 : i32, i32
  }
  func.func @transform_11(%arg0: i32) -> (i32, i32, i32) {
    %c0_i32 = arith.constant 0 : i32
    %c0_i32_0 = arith.constant 0 : i32
    %c0_i32_1 = arith.constant 0 : i32
    return %arg0, %c0_i32, %c0_i32_0 : i32, i32, i32
  }
}

module attributes {stable_mosaic.version = 11 : i64} {
  func.func @_block_kernel(%arg0: i32, %arg1: memref<1x32x8xbf16, #tpu.memory_space<vmem>>, %arg2: memref<7x32x32xbf16, #tpu.memory_space<vmem>>, %arg3: memref<7x32x32xbf16, #tpu.memory_space<vmem>>, %arg4: memref<32x1xf32, #tpu.memory_space<vmem>>, %arg5: memref<32x1xf32, #tpu.memory_space<vmem>>, %arg6: memref<32x1xf32, #tpu.memory_space<vmem>>, %arg7: memref<32x1xf32, #tpu.memory_space<vmem>>, %arg8: memref<1x32x8xbf16, #tpu.memory_space<vmem>>) attributes {dimension_semantics = [#tpu.dimension_semantics<parallel>], iteration_bounds = array<i64: 2>, scalar_prefetch = 0 : i64, scratch_operands = 0 : i64, tpu.core_type = #tpu.core_type<tc>, window_params = [{transform_indices = @transform_0, window_bounds = array<i64: 1, 32, 8>}, {pipeline_mode = #tpu.pipeline_mode<synchronous>, transform_indices = @transform_1, window_bounds = array<i64: 7, 32, 32>}, {pipeline_mode = #tpu.pipeline_mode<synchronous>, transform_indices = @transform_2, window_bounds = array<i64: 7, 32, 32>}, {pipeline_mode = #tpu.pipeline_mode<synchronous>, transform_indices = @transform_3, window_bounds = array<i64: 32, 1>}, {pipeline_mode = #tpu.pipeline_mode<synchronous>, transform_indices = @transform_4, window_bounds = array<i64: 32, 1>}, {pipeline_mode = #tpu.pipeline_mode<synchronous>, transform_indices = @transform_5, window_bounds = array<i64: 32, 1>}, {pipeline_mode = #tpu.pipeline_mode<synchronous>, transform_indices = @transform_6, window_bounds = array<i64: 32, 1>}, {transform_indices = @transform_7, window_bounds = array<i64: 1, 32, 8>}]} {
    %c0 = arith.constant 0 : index
    %c0_0 = arith.constant 0 : index
    %c0_1 = arith.constant 0 : index
    %0 = vector.load %arg1[%c0, %c0_0, %c0_1] : memref<1x32x8xbf16, #tpu.memory_space<vmem>>, vector<1x32x8xbf16>
    %1 = vector.shape_cast %0 : vector<1x32x8xbf16> to vector<32x8xbf16>
    %c0_2 = arith.constant 0 : index
    %c0_3 = arith.constant 0 : index
    %2 = vector.load %arg4[%c0_2, %c0_3] : memref<32x1xf32, #tpu.memory_space<vmem>>, vector<32x1xf32>
    %c0_4 = arith.constant 0 : index
    %c0_5 = arith.constant 0 : index
    %3 = vector.load %arg5[%c0_4, %c0_5] : memref<32x1xf32, #tpu.memory_space<vmem>>, vector<32x1xf32>
    %c0_6 = arith.constant 0 : index
    %c0_7 = arith.constant 0 : index
    %4 = vector.load %arg6[%c0_6, %c0_7] : memref<32x1xf32, #tpu.memory_space<vmem>>, vector<32x1xf32>
    %c0_8 = arith.constant 0 : index
    %c0_9 = arith.constant 0 : index
    %5 = vector.load %arg7[%c0_8, %c0_9] : memref<32x1xf32, #tpu.memory_space<vmem>>, vector<32x1xf32>
    %6 = vector.extract_strided_slice %1 {offsets = [0, 5], sizes = [32, 3], strides = [1, 1]} : vector<32x8xbf16> to vector<32x3xbf16>
    %7 = vector.extract_strided_slice %1 {offsets = [0, 0], sizes = [32, 5], strides = [1, 1]} : vector<32x8xbf16> to vector<32x5xbf16>
    %8 = tpu.concatenate %6, %7 in 1 : vector<32x3xbf16>, vector<32x5xbf16> -> vector<32x8xbf16>
    %c0_10 = arith.constant 0 : index
    %c0_11 = arith.constant 0 : index
    %c0_12 = arith.constant 0 : index
    %9 = vector.load %arg2[%c0_10, %c0_11, %c0_12] : memref<7x32x32xbf16, #tpu.memory_space<vmem>>, vector<1x32x32xbf16>
    %10 = vector.shape_cast %9 : vector<1x32x32xbf16> to vector<32x32xbf16>
    %cst = arith.constant dense<0.000000e+00> : vector<32x8xf32>
    %11 = tpu.matmul %10, %8, %cst {dimension_numbers = #tpu.dot_dimension_numbers<[1], [0], [0], [1], [0, 0, 1, 1], [], []>} : vector<32x32xbf16>, vector<32x8xbf16>, vector<32x8xf32> -> vector<32x8xf32>
    %12 = vector.extract_strided_slice %1 {offsets = [0, 6], sizes = [32, 2], strides = [1, 1]} : vector<32x8xbf16> to vector<32x2xbf16>
    %13 = vector.extract_strided_slice %1 {offsets = [0, 0], sizes = [32, 6], strides = [1, 1]} : vector<32x8xbf16> to vector<32x6xbf16>
    %14 = tpu.concatenate %12, %13 in 1 : vector<32x2xbf16>, vector<32x6xbf16> -> vector<32x8xbf16>
    %c1 = arith.constant 1 : index
    %c0_13 = arith.constant 0 : index
    %c0_14 = arith.constant 0 : index
    %15 = vector.load %arg2[%c1, %c0_13, %c0_14] : memref<7x32x32xbf16, #tpu.memory_space<vmem>>, vector<1x32x32xbf16>
    %16 = vector.shape_cast %15 : vector<1x32x32xbf16> to vector<32x32xbf16>
    %cst_15 = arith.constant dense<0.000000e+00> : vector<32x8xf32>
    %17 = tpu.matmul %16, %14, %cst_15 {dimension_numbers = #tpu.dot_dimension_numbers<[1], [0], [0], [1], [0, 0, 1, 1], [], []>} : vector<32x32xbf16>, vector<32x8xbf16>, vector<32x8xf32> -> vector<32x8xf32>
    %18 = arith.addf %11, %17 : vector<32x8xf32>
    %19 = vector.extract_strided_slice %1 {offsets = [0, 7], sizes = [32, 1], strides = [1, 1]} : vector<32x8xbf16> to vector<32x1xbf16>
    %20 = vector.extract_strided_slice %1 {offsets = [0, 0], sizes = [32, 7], strides = [1, 1]} : vector<32x8xbf16> to vector<32x7xbf16>
    %21 = tpu.concatenate %19, %20 in 1 : vector<32x1xbf16>, vector<32x7xbf16> -> vector<32x8xbf16>
    %c2 = arith.constant 2 : index
    %c0_16 = arith.constant 0 : index
    %c0_17 = arith.constant 0 : index
    %22 = vector.load %arg2[%c2, %c0_16, %c0_17] : memref<7x32x32xbf16, #tpu.memory_space<vmem>>, vector<1x32x32xbf16>
    %23 = vector.shape_cast %22 : vector<1x32x32xbf16> to vector<32x32xbf16>
    %cst_18 = arith.constant dense<0.000000e+00> : vector<32x8xf32>
    %24 = tpu.matmul %23, %21, %cst_18 {dimension_numbers = #tpu.dot_dimension_numbers<[1], [0], [0], [1], [0, 0, 1, 1], [], []>} : vector<32x32xbf16>, vector<32x8xbf16>, vector<32x8xf32> -> vector<32x8xf32>
    %25 = arith.addf %18, %24 : vector<32x8xf32>
    %c3 = arith.constant 3 : index
    %c0_19 = arith.constant 0 : index
    %c0_20 = arith.constant 0 : index
    %26 = vector.load %arg2[%c3, %c0_19, %c0_20] : memref<7x32x32xbf16, #tpu.memory_space<vmem>>, vector<1x32x32xbf16>
    %27 = vector.shape_cast %26 : vector<1x32x32xbf16> to vector<32x32xbf16>
    %cst_21 = arith.constant dense<0.000000e+00> : vector<32x8xf32>
    %28 = tpu.matmul %27, %1, %cst_21 {dimension_numbers = #tpu.dot_dimension_numbers<[1], [0], [0], [1], [0, 0, 1, 1], [], []>} : vector<32x32xbf16>, vector<32x8xbf16>, vector<32x8xf32> -> vector<32x8xf32>
    %29 = arith.addf %25, %28 : vector<32x8xf32>
    %30 = vector.extract_strided_slice %1 {offsets = [0, 1], sizes = [32, 7], strides = [1, 1]} : vector<32x8xbf16> to vector<32x7xbf16>
    %31 = vector.extract_strided_slice %1 {offsets = [0, 0], sizes = [32, 1], strides = [1, 1]} : vector<32x8xbf16> to vector<32x1xbf16>
    %32 = tpu.concatenate %30, %31 in 1 : vector<32x7xbf16>, vector<32x1xbf16> -> vector<32x8xbf16>
    %c4 = arith.constant 4 : index
    %c0_22 = arith.constant 0 : index
    %c0_23 = arith.constant 0 : index
    %33 = vector.load %arg2[%c4, %c0_22, %c0_23] : memref<7x32x32xbf16, #tpu.memory_space<vmem>>, vector<1x32x32xbf16>
    %34 = vector.shape_cast %33 : vector<1x32x32xbf16> to vector<32x32xbf16>
    %cst_24 = arith.constant dense<0.000000e+00> : vector<32x8xf32>
    %35 = tpu.matmul %34, %32, %cst_24 {dimension_numbers = #tpu.dot_dimension_numbers<[1], [0], [0], [1], [0, 0, 1, 1], [], []>} : vector<32x32xbf16>, vector<32x8xbf16>, vector<32x8xf32> -> vector<32x8xf32>
    %36 = arith.addf %29, %35 : vector<32x8xf32>
    %37 = vector.extract_strided_slice %1 {offsets = [0, 2], sizes = [32, 6], strides = [1, 1]} : vector<32x8xbf16> to vector<32x6xbf16>
    %38 = vector.extract_strided_slice %1 {offsets = [0, 0], sizes = [32, 2], strides = [1, 1]} : vector<32x8xbf16> to vector<32x2xbf16>
    %39 = tpu.concatenate %37, %38 in 1 : vector<32x6xbf16>, vector<32x2xbf16> -> vector<32x8xbf16>
    %c5 = arith.constant 5 : index
    %c0_25 = arith.constant 0 : index
    %c0_26 = arith.constant 0 : index
    %40 = vector.load %arg2[%c5, %c0_25, %c0_26] : memref<7x32x32xbf16, #tpu.memory_space<vmem>>, vector<1x32x32xbf16>
    %41 = vector.shape_cast %40 : vector<1x32x32xbf16> to vector<32x32xbf16>
    %cst_27 = arith.constant dense<0.000000e+00> : vector<32x8xf32>
    %42 = tpu.matmul %41, %39, %cst_27 {dimension_numbers = #tpu.dot_dimension_numbers<[1], [0], [0], [1], [0, 0, 1, 1], [], []>} : vector<32x32xbf16>, vector<32x8xbf16>, vector<32x8xf32> -> vector<32x8xf32>
    %43 = arith.addf %36, %42 : vector<32x8xf32>
    %44 = vector.extract_strided_slice %1 {offsets = [0, 3], sizes = [32, 5], strides = [1, 1]} : vector<32x8xbf16> to vector<32x5xbf16>
    %45 = vector.extract_strided_slice %1 {offsets = [0, 0], sizes = [32, 3], strides = [1, 1]} : vector<32x8xbf16> to vector<32x3xbf16>
    %46 = tpu.concatenate %44, %45 in 1 : vector<32x5xbf16>, vector<32x3xbf16> -> vector<32x8xbf16>
    %c6 = arith.constant 6 : index
    %c0_28 = arith.constant 0 : index
    %c0_29 = arith.constant 0 : index
    %47 = vector.load %arg2[%c6, %c0_28, %c0_29] : memref<7x32x32xbf16, #tpu.memory_space<vmem>>, vector<1x32x32xbf16>
    %48 = vector.shape_cast %47 : vector<1x32x32xbf16> to vector<32x32xbf16>
    %cst_30 = arith.constant dense<0.000000e+00> : vector<32x8xf32>
    %49 = tpu.matmul %48, %46, %cst_30 {dimension_numbers = #tpu.dot_dimension_numbers<[1], [0], [0], [1], [0, 0, 1, 1], [], []>} : vector<32x32xbf16>, vector<32x8xbf16>, vector<32x8xf32> -> vector<32x8xf32>
    %50 = arith.addf %43, %49 : vector<32x8xf32>
    %51 = vector.broadcast %2 : vector<32x1xf32> to vector<32x8xf32>
    %52 = arith.mulf %50, %51 : vector<32x8xf32>
    %53 = vector.broadcast %3 : vector<32x1xf32> to vector<32x8xf32>
    %54 = arith.addf %52, %53 : vector<32x8xf32>
    %cst_31 = arith.constant 0.000000e+00 : f32
    %55 = vector.broadcast %cst_31 : f32 to vector<32x8xf32>
    %56 = arith.maximumf %54, %55 : vector<32x8xf32>
    %57 = arith.truncf %56 : vector<32x8xf32> to vector<32x8xbf16>
    %58 = vector.extract_strided_slice %57 {offsets = [0, 5], sizes = [32, 3], strides = [1, 1]} : vector<32x8xbf16> to vector<32x3xbf16>
    %59 = vector.extract_strided_slice %57 {offsets = [0, 0], sizes = [32, 5], strides = [1, 1]} : vector<32x8xbf16> to vector<32x5xbf16>
    %60 = tpu.concatenate %58, %59 in 1 : vector<32x3xbf16>, vector<32x5xbf16> -> vector<32x8xbf16>
    %c0_32 = arith.constant 0 : index
    %c0_33 = arith.constant 0 : index
    %c0_34 = arith.constant 0 : index
    %61 = vector.load %arg3[%c0_32, %c0_33, %c0_34] : memref<7x32x32xbf16, #tpu.memory_space<vmem>>, vector<1x32x32xbf16>
    %62 = vector.shape_cast %61 : vector<1x32x32xbf16> to vector<32x32xbf16>
    %cst_35 = arith.constant dense<0.000000e+00> : vector<32x8xf32>
    %63 = tpu.matmul %62, %60, %cst_35 {dimension_numbers = #tpu.dot_dimension_numbers<[1], [0], [0], [1], [0, 0, 1, 1], [], []>} : vector<32x32xbf16>, vector<32x8xbf16>, vector<32x8xf32> -> vector<32x8xf32>
    %64 = vector.extract_strided_slice %57 {offsets = [0, 6], sizes = [32, 2], strides = [1, 1]} : vector<32x8xbf16> to vector<32x2xbf16>
    %65 = vector.extract_strided_slice %57 {offsets = [0, 0], sizes = [32, 6], strides = [1, 1]} : vector<32x8xbf16> to vector<32x6xbf16>
    %66 = tpu.concatenate %64, %65 in 1 : vector<32x2xbf16>, vector<32x6xbf16> -> vector<32x8xbf16>
    %c1_36 = arith.constant 1 : index
    %c0_37 = arith.constant 0 : index
    %c0_38 = arith.constant 0 : index
    %67 = vector.load %arg3[%c1_36, %c0_37, %c0_38] : memref<7x32x32xbf16, #tpu.memory_space<vmem>>, vector<1x32x32xbf16>
    %68 = vector.shape_cast %67 : vector<1x32x32xbf16> to vector<32x32xbf16>
    %cst_39 = arith.constant dense<0.000000e+00> : vector<32x8xf32>
    %69 = tpu.matmul %68, %66, %cst_39 {dimension_numbers = #tpu.dot_dimension_numbers<[1], [0], [0], [1], [0, 0, 1, 1], [], []>} : vector<32x32xbf16>, vector<32x8xbf16>, vector<32x8xf32> -> vector<32x8xf32>
    %70 = arith.addf %63, %69 : vector<32x8xf32>
    %71 = vector.extract_strided_slice %57 {offsets = [0, 7], sizes = [32, 1], strides = [1, 1]} : vector<32x8xbf16> to vector<32x1xbf16>
    %72 = vector.extract_strided_slice %57 {offsets = [0, 0], sizes = [32, 7], strides = [1, 1]} : vector<32x8xbf16> to vector<32x7xbf16>
    %73 = tpu.concatenate %71, %72 in 1 : vector<32x1xbf16>, vector<32x7xbf16> -> vector<32x8xbf16>
    %c2_40 = arith.constant 2 : index
    %c0_41 = arith.constant 0 : index
    %c0_42 = arith.constant 0 : index
    %74 = vector.load %arg3[%c2_40, %c0_41, %c0_42] : memref<7x32x32xbf16, #tpu.memory_space<vmem>>, vector<1x32x32xbf16>
    %75 = vector.shape_cast %74 : vector<1x32x32xbf16> to vector<32x32xbf16>
    %cst_43 = arith.constant dense<0.000000e+00> : vector<32x8xf32>
    %76 = tpu.matmul %75, %73, %cst_43 {dimension_numbers = #tpu.dot_dimension_numbers<[1], [0], [0], [1], [0, 0, 1, 1], [], []>} : vector<32x32xbf16>, vector<32x8xbf16>, vector<32x8xf32> -> vector<32x8xf32>
    %77 = arith.addf %70, %76 : vector<32x8xf32>
    %c3_44 = arith.constant 3 : index
    %c0_45 = arith.constant 0 : index
    %c0_46 = arith.constant 0 : index
    %78 = vector.load %arg3[%c3_44, %c0_45, %c0_46] : memref<7x32x32xbf16, #tpu.memory_space<vmem>>, vector<1x32x32xbf16>
    %79 = vector.shape_cast %78 : vector<1x32x32xbf16> to vector<32x32xbf16>
    %cst_47 = arith.constant dense<0.000000e+00> : vector<32x8xf32>
    %80 = tpu.matmul %79, %57, %cst_47 {dimension_numbers = #tpu.dot_dimension_numbers<[1], [0], [0], [1], [0, 0, 1, 1], [], []>} : vector<32x32xbf16>, vector<32x8xbf16>, vector<32x8xf32> -> vector<32x8xf32>
    %81 = arith.addf %77, %80 : vector<32x8xf32>
    %82 = vector.extract_strided_slice %57 {offsets = [0, 1], sizes = [32, 7], strides = [1, 1]} : vector<32x8xbf16> to vector<32x7xbf16>
    %83 = vector.extract_strided_slice %57 {offsets = [0, 0], sizes = [32, 1], strides = [1, 1]} : vector<32x8xbf16> to vector<32x1xbf16>
    %84 = tpu.concatenate %82, %83 in 1 : vector<32x7xbf16>, vector<32x1xbf16> -> vector<32x8xbf16>
    %c4_48 = arith.constant 4 : index
    %c0_49 = arith.constant 0 : index
    %c0_50 = arith.constant 0 : index
    %85 = vector.load %arg3[%c4_48, %c0_49, %c0_50] : memref<7x32x32xbf16, #tpu.memory_space<vmem>>, vector<1x32x32xbf16>
    %86 = vector.shape_cast %85 : vector<1x32x32xbf16> to vector<32x32xbf16>
    %cst_51 = arith.constant dense<0.000000e+00> : vector<32x8xf32>
    %87 = tpu.matmul %86, %84, %cst_51 {dimension_numbers = #tpu.dot_dimension_numbers<[1], [0], [0], [1], [0, 0, 1, 1], [], []>} : vector<32x32xbf16>, vector<32x8xbf16>, vector<32x8xf32> -> vector<32x8xf32>
    %88 = arith.addf %81, %87 : vector<32x8xf32>
    %89 = vector.extract_strided_slice %57 {offsets = [0, 2], sizes = [32, 6], strides = [1, 1]} : vector<32x8xbf16> to vector<32x6xbf16>
    %90 = vector.extract_strided_slice %57 {offsets = [0, 0], sizes = [32, 2], strides = [1, 1]} : vector<32x8xbf16> to vector<32x2xbf16>
    %91 = tpu.concatenate %89, %90 in 1 : vector<32x6xbf16>, vector<32x2xbf16> -> vector<32x8xbf16>
    %c5_52 = arith.constant 5 : index
    %c0_53 = arith.constant 0 : index
    %c0_54 = arith.constant 0 : index
    %92 = vector.load %arg3[%c5_52, %c0_53, %c0_54] : memref<7x32x32xbf16, #tpu.memory_space<vmem>>, vector<1x32x32xbf16>
    %93 = vector.shape_cast %92 : vector<1x32x32xbf16> to vector<32x32xbf16>
    %cst_55 = arith.constant dense<0.000000e+00> : vector<32x8xf32>
    %94 = tpu.matmul %93, %91, %cst_55 {dimension_numbers = #tpu.dot_dimension_numbers<[1], [0], [0], [1], [0, 0, 1, 1], [], []>} : vector<32x32xbf16>, vector<32x8xbf16>, vector<32x8xf32> -> vector<32x8xf32>
    %95 = arith.addf %88, %94 : vector<32x8xf32>
    %96 = vector.extract_strided_slice %57 {offsets = [0, 3], sizes = [32, 5], strides = [1, 1]} : vector<32x8xbf16> to vector<32x5xbf16>
    %97 = vector.extract_strided_slice %57 {offsets = [0, 0], sizes = [32, 3], strides = [1, 1]} : vector<32x8xbf16> to vector<32x3xbf16>
    %98 = tpu.concatenate %96, %97 in 1 : vector<32x5xbf16>, vector<32x3xbf16> -> vector<32x8xbf16>
    %c6_56 = arith.constant 6 : index
    %c0_57 = arith.constant 0 : index
    %c0_58 = arith.constant 0 : index
    %99 = vector.load %arg3[%c6_56, %c0_57, %c0_58] : memref<7x32x32xbf16, #tpu.memory_space<vmem>>, vector<1x32x32xbf16>
    %100 = vector.shape_cast %99 : vector<1x32x32xbf16> to vector<32x32xbf16>
    %cst_59 = arith.constant dense<0.000000e+00> : vector<32x8xf32>
    %101 = tpu.matmul %100, %98, %cst_59 {dimension_numbers = #tpu.dot_dimension_numbers<[1], [0], [0], [1], [0, 0, 1, 1], [], []>} : vector<32x32xbf16>, vector<32x8xbf16>, vector<32x8xf32> -> vector<32x8xf32>
    %102 = arith.addf %95, %101 : vector<32x8xf32>
    %103 = vector.broadcast %4 : vector<32x1xf32> to vector<32x8xf32>
    %104 = arith.mulf %102, %103 : vector<32x8xf32>
    %105 = vector.broadcast %5 : vector<32x1xf32> to vector<32x8xf32>
    %106 = arith.addf %104, %105 : vector<32x8xf32>
    %107 = arith.extf %1 : vector<32x8xbf16> to vector<32x8xf32>
    %108 = arith.addf %106, %107 : vector<32x8xf32>
    %cst_60 = arith.constant 0.000000e+00 : f32
    %109 = vector.broadcast %cst_60 : f32 to vector<32x8xf32>
    %110 = arith.maximumf %108, %109 : vector<32x8xf32>
    %111 = arith.truncf %110 : vector<32x8xf32> to vector<32x8xbf16>
    %c0_61 = arith.constant 0 : index
    %c0_62 = arith.constant 0 : index
    %c0_63 = arith.constant 0 : index
    %112 = vector.load %arg8[%c0_61, %c0_62, %c0_63] : memref<1x32x8xbf16, #tpu.memory_space<vmem>>, vector<1x32x8xbf16>
    %113 = vector.shape_cast %112 : vector<1x32x8xbf16> to vector<32x8xbf16>
    %114 = vector.shape_cast %111 : vector<32x8xbf16> to vector<1x32x8xbf16>
    tpu.vector_store %arg8[%c0_61, %c0_62, %c0_63], %114 {strides = array<i32>} : memref<1x32x8xbf16, #tpu.memory_space<vmem>>, vector<1x32x8xbf16>,
    return
  }
  func.func @transform_0(%arg0: i32) -> (i32, i32, i32) {
    %c0_i32 = arith.constant 0 : i32
    %c0_i32_0 = arith.constant 0 : i32
    %c0_i32_1 = arith.constant 0 : i32
    return %arg0, %c0_i32, %c0_i32_0 : i32, i32, i32
  }
  func.func @transform_1(%arg0: i32) -> (i32, i32, i32) {
    %c0_i32 = arith.constant 0 : i32
    %c0_i32_0 = arith.constant 0 : i32
    %c0_i32_1 = arith.constant 0 : i32
    %c0_i32_2 = arith.constant 0 : i32
    return %c0_i32, %c0_i32_0, %c0_i32_1 : i32, i32, i32
  }
  func.func @transform_2(%arg0: i32) -> (i32, i32, i32) {
    %c0_i32 = arith.constant 0 : i32
    %c0_i32_0 = arith.constant 0 : i32
    %c0_i32_1 = arith.constant 0 : i32
    %c0_i32_2 = arith.constant 0 : i32
    return %c0_i32, %c0_i32_0, %c0_i32_1 : i32, i32, i32
  }
  func.func @transform_3(%arg0: i32) -> (i32, i32) {
    %c0_i32 = arith.constant 0 : i32
    %c0_i32_0 = arith.constant 0 : i32
    %c0_i32_1 = arith.constant 0 : i32
    return %c0_i32, %c0_i32_0 : i32, i32
  }
  func.func @transform_4(%arg0: i32) -> (i32, i32) {
    %c0_i32 = arith.constant 0 : i32
    %c0_i32_0 = arith.constant 0 : i32
    %c0_i32_1 = arith.constant 0 : i32
    return %c0_i32, %c0_i32_0 : i32, i32
  }
  func.func @transform_5(%arg0: i32) -> (i32, i32) {
    %c0_i32 = arith.constant 0 : i32
    %c0_i32_0 = arith.constant 0 : i32
    %c0_i32_1 = arith.constant 0 : i32
    return %c0_i32, %c0_i32_0 : i32, i32
  }
  func.func @transform_6(%arg0: i32) -> (i32, i32) {
    %c0_i32 = arith.constant 0 : i32
    %c0_i32_0 = arith.constant 0 : i32
    %c0_i32_1 = arith.constant 0 : i32
    return %c0_i32, %c0_i32_0 : i32, i32
  }
  func.func @transform_7(%arg0: i32) -> (i32, i32, i32) {
    %c0_i32 = arith.constant 0 : i32
    %c0_i32_0 = arith.constant 0 : i32
    %c0_i32_1 = arith.constant 0 : i32
    return %arg0, %c0_i32, %c0_i32_0 : i32, i32, i32
  }
}

module attributes {stable_mosaic.version = 11 : i64} {
  func.func @_block_kernel(%arg0: i32, %arg1: memref<1x32x4xbf16, #tpu.memory_space<vmem>>, %arg2: memref<7x32x32xbf16, #tpu.memory_space<vmem>>, %arg3: memref<7x32x32xbf16, #tpu.memory_space<vmem>>, %arg4: memref<32x1xf32, #tpu.memory_space<vmem>>, %arg5: memref<32x1xf32, #tpu.memory_space<vmem>>, %arg6: memref<32x1xf32, #tpu.memory_space<vmem>>, %arg7: memref<32x1xf32, #tpu.memory_space<vmem>>, %arg8: memref<1x32x4xbf16, #tpu.memory_space<vmem>>) attributes {dimension_semantics = [#tpu.dimension_semantics<parallel>], iteration_bounds = array<i64: 2>, scalar_prefetch = 0 : i64, scratch_operands = 0 : i64, tpu.core_type = #tpu.core_type<tc>, window_params = [{transform_indices = @transform_0, window_bounds = array<i64: 1, 32, 4>}, {pipeline_mode = #tpu.pipeline_mode<synchronous>, transform_indices = @transform_1, window_bounds = array<i64: 7, 32, 32>}, {pipeline_mode = #tpu.pipeline_mode<synchronous>, transform_indices = @transform_2, window_bounds = array<i64: 7, 32, 32>}, {pipeline_mode = #tpu.pipeline_mode<synchronous>, transform_indices = @transform_3, window_bounds = array<i64: 32, 1>}, {pipeline_mode = #tpu.pipeline_mode<synchronous>, transform_indices = @transform_4, window_bounds = array<i64: 32, 1>}, {pipeline_mode = #tpu.pipeline_mode<synchronous>, transform_indices = @transform_5, window_bounds = array<i64: 32, 1>}, {pipeline_mode = #tpu.pipeline_mode<synchronous>, transform_indices = @transform_6, window_bounds = array<i64: 32, 1>}, {transform_indices = @transform_7, window_bounds = array<i64: 1, 32, 4>}]} {
    %c0 = arith.constant 0 : index
    %c0_0 = arith.constant 0 : index
    %c0_1 = arith.constant 0 : index
    %0 = vector.load %arg1[%c0, %c0_0, %c0_1] : memref<1x32x4xbf16, #tpu.memory_space<vmem>>, vector<1x32x4xbf16>
    %1 = vector.shape_cast %0 : vector<1x32x4xbf16> to vector<32x4xbf16>
    %c0_2 = arith.constant 0 : index
    %c0_3 = arith.constant 0 : index
    %2 = vector.load %arg4[%c0_2, %c0_3] : memref<32x1xf32, #tpu.memory_space<vmem>>, vector<32x1xf32>
    %c0_4 = arith.constant 0 : index
    %c0_5 = arith.constant 0 : index
    %3 = vector.load %arg5[%c0_4, %c0_5] : memref<32x1xf32, #tpu.memory_space<vmem>>, vector<32x1xf32>
    %c0_6 = arith.constant 0 : index
    %c0_7 = arith.constant 0 : index
    %4 = vector.load %arg6[%c0_6, %c0_7] : memref<32x1xf32, #tpu.memory_space<vmem>>, vector<32x1xf32>
    %c0_8 = arith.constant 0 : index
    %c0_9 = arith.constant 0 : index
    %5 = vector.load %arg7[%c0_8, %c0_9] : memref<32x1xf32, #tpu.memory_space<vmem>>, vector<32x1xf32>
    %6 = vector.extract_strided_slice %1 {offsets = [0, 1], sizes = [32, 3], strides = [1, 1]} : vector<32x4xbf16> to vector<32x3xbf16>
    %7 = vector.extract_strided_slice %1 {offsets = [0, 0], sizes = [32, 1], strides = [1, 1]} : vector<32x4xbf16> to vector<32x1xbf16>
    %8 = tpu.concatenate %6, %7 in 1 : vector<32x3xbf16>, vector<32x1xbf16> -> vector<32x4xbf16>
    %c0_10 = arith.constant 0 : index
    %c0_11 = arith.constant 0 : index
    %c0_12 = arith.constant 0 : index
    %9 = vector.load %arg2[%c0_10, %c0_11, %c0_12] : memref<7x32x32xbf16, #tpu.memory_space<vmem>>, vector<1x32x32xbf16>
    %10 = vector.shape_cast %9 : vector<1x32x32xbf16> to vector<32x32xbf16>
    %cst = arith.constant dense<0.000000e+00> : vector<32x4xf32>
    %11 = tpu.matmul %10, %8, %cst {dimension_numbers = #tpu.dot_dimension_numbers<[1], [0], [0], [1], [0, 0, 1, 1], [], []>} : vector<32x32xbf16>, vector<32x4xbf16>, vector<32x4xf32> -> vector<32x4xf32>
    %12 = vector.extract_strided_slice %1 {offsets = [0, 2], sizes = [32, 2], strides = [1, 1]} : vector<32x4xbf16> to vector<32x2xbf16>
    %13 = vector.extract_strided_slice %1 {offsets = [0, 0], sizes = [32, 2], strides = [1, 1]} : vector<32x4xbf16> to vector<32x2xbf16>
    %14 = tpu.concatenate %12, %13 in 1 : vector<32x2xbf16>, vector<32x2xbf16> -> vector<32x4xbf16>
    %c1 = arith.constant 1 : index
    %c0_13 = arith.constant 0 : index
    %c0_14 = arith.constant 0 : index
    %15 = vector.load %arg2[%c1, %c0_13, %c0_14] : memref<7x32x32xbf16, #tpu.memory_space<vmem>>, vector<1x32x32xbf16>
    %16 = vector.shape_cast %15 : vector<1x32x32xbf16> to vector<32x32xbf16>
    %cst_15 = arith.constant dense<0.000000e+00> : vector<32x4xf32>
    %17 = tpu.matmul %16, %14, %cst_15 {dimension_numbers = #tpu.dot_dimension_numbers<[1], [0], [0], [1], [0, 0, 1, 1], [], []>} : vector<32x32xbf16>, vector<32x4xbf16>, vector<32x4xf32> -> vector<32x4xf32>
    %18 = arith.addf %11, %17 : vector<32x4xf32>
    %19 = vector.extract_strided_slice %1 {offsets = [0, 3], sizes = [32, 1], strides = [1, 1]} : vector<32x4xbf16> to vector<32x1xbf16>
    %20 = vector.extract_strided_slice %1 {offsets = [0, 0], sizes = [32, 3], strides = [1, 1]} : vector<32x4xbf16> to vector<32x3xbf16>
    %21 = tpu.concatenate %19, %20 in 1 : vector<32x1xbf16>, vector<32x3xbf16> -> vector<32x4xbf16>
    %c2 = arith.constant 2 : index
    %c0_16 = arith.constant 0 : index
    %c0_17 = arith.constant 0 : index
    %22 = vector.load %arg2[%c2, %c0_16, %c0_17] : memref<7x32x32xbf16, #tpu.memory_space<vmem>>, vector<1x32x32xbf16>
    %23 = vector.shape_cast %22 : vector<1x32x32xbf16> to vector<32x32xbf16>
    %cst_18 = arith.constant dense<0.000000e+00> : vector<32x4xf32>
    %24 = tpu.matmul %23, %21, %cst_18 {dimension_numbers = #tpu.dot_dimension_numbers<[1], [0], [0], [1], [0, 0, 1, 1], [], []>} : vector<32x32xbf16>, vector<32x4xbf16>, vector<32x4xf32> -> vector<32x4xf32>
    %25 = arith.addf %18, %24 : vector<32x4xf32>
    %c3 = arith.constant 3 : index
    %c0_19 = arith.constant 0 : index
    %c0_20 = arith.constant 0 : index
    %26 = vector.load %arg2[%c3, %c0_19, %c0_20] : memref<7x32x32xbf16, #tpu.memory_space<vmem>>, vector<1x32x32xbf16>
    %27 = vector.shape_cast %26 : vector<1x32x32xbf16> to vector<32x32xbf16>
    %cst_21 = arith.constant dense<0.000000e+00> : vector<32x4xf32>
    %28 = tpu.matmul %27, %1, %cst_21 {dimension_numbers = #tpu.dot_dimension_numbers<[1], [0], [0], [1], [0, 0, 1, 1], [], []>} : vector<32x32xbf16>, vector<32x4xbf16>, vector<32x4xf32> -> vector<32x4xf32>
    %29 = arith.addf %25, %28 : vector<32x4xf32>
    %30 = vector.extract_strided_slice %1 {offsets = [0, 1], sizes = [32, 3], strides = [1, 1]} : vector<32x4xbf16> to vector<32x3xbf16>
    %31 = vector.extract_strided_slice %1 {offsets = [0, 0], sizes = [32, 1], strides = [1, 1]} : vector<32x4xbf16> to vector<32x1xbf16>
    %32 = tpu.concatenate %30, %31 in 1 : vector<32x3xbf16>, vector<32x1xbf16> -> vector<32x4xbf16>
    %c4 = arith.constant 4 : index
    %c0_22 = arith.constant 0 : index
    %c0_23 = arith.constant 0 : index
    %33 = vector.load %arg2[%c4, %c0_22, %c0_23] : memref<7x32x32xbf16, #tpu.memory_space<vmem>>, vector<1x32x32xbf16>
    %34 = vector.shape_cast %33 : vector<1x32x32xbf16> to vector<32x32xbf16>
    %cst_24 = arith.constant dense<0.000000e+00> : vector<32x4xf32>
    %35 = tpu.matmul %34, %32, %cst_24 {dimension_numbers = #tpu.dot_dimension_numbers<[1], [0], [0], [1], [0, 0, 1, 1], [], []>} : vector<32x32xbf16>, vector<32x4xbf16>, vector<32x4xf32> -> vector<32x4xf32>
    %36 = arith.addf %29, %35 : vector<32x4xf32>
    %37 = vector.extract_strided_slice %1 {offsets = [0, 2], sizes = [32, 2], strides = [1, 1]} : vector<32x4xbf16> to vector<32x2xbf16>
    %38 = vector.extract_strided_slice %1 {offsets = [0, 0], sizes = [32, 2], strides = [1, 1]} : vector<32x4xbf16> to vector<32x2xbf16>
    %39 = tpu.concatenate %37, %38 in 1 : vector<32x2xbf16>, vector<32x2xbf16> -> vector<32x4xbf16>
    %c5 = arith.constant 5 : index
    %c0_25 = arith.constant 0 : index
    %c0_26 = arith.constant 0 : index
    %40 = vector.load %arg2[%c5, %c0_25, %c0_26] : memref<7x32x32xbf16, #tpu.memory_space<vmem>>, vector<1x32x32xbf16>
    %41 = vector.shape_cast %40 : vector<1x32x32xbf16> to vector<32x32xbf16>
    %cst_27 = arith.constant dense<0.000000e+00> : vector<32x4xf32>
    %42 = tpu.matmul %41, %39, %cst_27 {dimension_numbers = #tpu.dot_dimension_numbers<[1], [0], [0], [1], [0, 0, 1, 1], [], []>} : vector<32x32xbf16>, vector<32x4xbf16>, vector<32x4xf32> -> vector<32x4xf32>
    %43 = arith.addf %36, %42 : vector<32x4xf32>
    %44 = vector.extract_strided_slice %1 {offsets = [0, 3], sizes = [32, 1], strides = [1, 1]} : vector<32x4xbf16> to vector<32x1xbf16>
    %45 = vector.extract_strided_slice %1 {offsets = [0, 0], sizes = [32, 3], strides = [1, 1]} : vector<32x4xbf16> to vector<32x3xbf16>
    %46 = tpu.concatenate %44, %45 in 1 : vector<32x1xbf16>, vector<32x3xbf16> -> vector<32x4xbf16>
    %c6 = arith.constant 6 : index
    %c0_28 = arith.constant 0 : index
    %c0_29 = arith.constant 0 : index
    %47 = vector.load %arg2[%c6, %c0_28, %c0_29] : memref<7x32x32xbf16, #tpu.memory_space<vmem>>, vector<1x32x32xbf16>
    %48 = vector.shape_cast %47 : vector<1x32x32xbf16> to vector<32x32xbf16>
    %cst_30 = arith.constant dense<0.000000e+00> : vector<32x4xf32>
    %49 = tpu.matmul %48, %46, %cst_30 {dimension_numbers = #tpu.dot_dimension_numbers<[1], [0], [0], [1], [0, 0, 1, 1], [], []>} : vector<32x32xbf16>, vector<32x4xbf16>, vector<32x4xf32> -> vector<32x4xf32>
    %50 = arith.addf %43, %49 : vector<32x4xf32>
    %51 = vector.broadcast %2 : vector<32x1xf32> to vector<32x4xf32>
    %52 = arith.mulf %50, %51 : vector<32x4xf32>
    %53 = vector.broadcast %3 : vector<32x1xf32> to vector<32x4xf32>
    %54 = arith.addf %52, %53 : vector<32x4xf32>
    %cst_31 = arith.constant 0.000000e+00 : f32
    %55 = vector.broadcast %cst_31 : f32 to vector<32x4xf32>
    %56 = arith.maximumf %54, %55 : vector<32x4xf32>
    %57 = arith.truncf %56 : vector<32x4xf32> to vector<32x4xbf16>
    %58 = vector.extract_strided_slice %57 {offsets = [0, 1], sizes = [32, 3], strides = [1, 1]} : vector<32x4xbf16> to vector<32x3xbf16>
    %59 = vector.extract_strided_slice %57 {offsets = [0, 0], sizes = [32, 1], strides = [1, 1]} : vector<32x4xbf16> to vector<32x1xbf16>
    %60 = tpu.concatenate %58, %59 in 1 : vector<32x3xbf16>, vector<32x1xbf16> -> vector<32x4xbf16>
    %c0_32 = arith.constant 0 : index
    %c0_33 = arith.constant 0 : index
    %c0_34 = arith.constant 0 : index
    %61 = vector.load %arg3[%c0_32, %c0_33, %c0_34] : memref<7x32x32xbf16, #tpu.memory_space<vmem>>, vector<1x32x32xbf16>
    %62 = vector.shape_cast %61 : vector<1x32x32xbf16> to vector<32x32xbf16>
    %cst_35 = arith.constant dense<0.000000e+00> : vector<32x4xf32>
    %63 = tpu.matmul %62, %60, %cst_35 {dimension_numbers = #tpu.dot_dimension_numbers<[1], [0], [0], [1], [0, 0, 1, 1], [], []>} : vector<32x32xbf16>, vector<32x4xbf16>, vector<32x4xf32> -> vector<32x4xf32>
    %64 = vector.extract_strided_slice %57 {offsets = [0, 2], sizes = [32, 2], strides = [1, 1]} : vector<32x4xbf16> to vector<32x2xbf16>
    %65 = vector.extract_strided_slice %57 {offsets = [0, 0], sizes = [32, 2], strides = [1, 1]} : vector<32x4xbf16> to vector<32x2xbf16>
    %66 = tpu.concatenate %64, %65 in 1 : vector<32x2xbf16>, vector<32x2xbf16> -> vector<32x4xbf16>
    %c1_36 = arith.constant 1 : index
    %c0_37 = arith.constant 0 : index
    %c0_38 = arith.constant 0 : index
    %67 = vector.load %arg3[%c1_36, %c0_37, %c0_38] : memref<7x32x32xbf16, #tpu.memory_space<vmem>>, vector<1x32x32xbf16>
    %68 = vector.shape_cast %67 : vector<1x32x32xbf16> to vector<32x32xbf16>
    %cst_39 = arith.constant dense<0.000000e+00> : vector<32x4xf32>
    %69 = tpu.matmul %68, %66, %cst_39 {dimension_numbers = #tpu.dot_dimension_numbers<[1], [0], [0], [1], [0, 0, 1, 1], [], []>} : vector<32x32xbf16>, vector<32x4xbf16>, vector<32x4xf32> -> vector<32x4xf32>
    %70 = arith.addf %63, %69 : vector<32x4xf32>
    %71 = vector.extract_strided_slice %57 {offsets = [0, 3], sizes = [32, 1], strides = [1, 1]} : vector<32x4xbf16> to vector<32x1xbf16>
    %72 = vector.extract_strided_slice %57 {offsets = [0, 0], sizes = [32, 3], strides = [1, 1]} : vector<32x4xbf16> to vector<32x3xbf16>
    %73 = tpu.concatenate %71, %72 in 1 : vector<32x1xbf16>, vector<32x3xbf16> -> vector<32x4xbf16>
    %c2_40 = arith.constant 2 : index
    %c0_41 = arith.constant 0 : index
    %c0_42 = arith.constant 0 : index
    %74 = vector.load %arg3[%c2_40, %c0_41, %c0_42] : memref<7x32x32xbf16, #tpu.memory_space<vmem>>, vector<1x32x32xbf16>
    %75 = vector.shape_cast %74 : vector<1x32x32xbf16> to vector<32x32xbf16>
    %cst_43 = arith.constant dense<0.000000e+00> : vector<32x4xf32>
    %76 = tpu.matmul %75, %73, %cst_43 {dimension_numbers = #tpu.dot_dimension_numbers<[1], [0], [0], [1], [0, 0, 1, 1], [], []>} : vector<32x32xbf16>, vector<32x4xbf16>, vector<32x4xf32> -> vector<32x4xf32>
    %77 = arith.addf %70, %76 : vector<32x4xf32>
    %c3_44 = arith.constant 3 : index
    %c0_45 = arith.constant 0 : index
    %c0_46 = arith.constant 0 : index
    %78 = vector.load %arg3[%c3_44, %c0_45, %c0_46] : memref<7x32x32xbf16, #tpu.memory_space<vmem>>, vector<1x32x32xbf16>
    %79 = vector.shape_cast %78 : vector<1x32x32xbf16> to vector<32x32xbf16>
    %cst_47 = arith.constant dense<0.000000e+00> : vector<32x4xf32>
    %80 = tpu.matmul %79, %57, %cst_47 {dimension_numbers = #tpu.dot_dimension_numbers<[1], [0], [0], [1], [0, 0, 1, 1], [], []>} : vector<32x32xbf16>, vector<32x4xbf16>, vector<32x4xf32> -> vector<32x4xf32>
    %81 = arith.addf %77, %80 : vector<32x4xf32>
    %82 = vector.extract_strided_slice %57 {offsets = [0, 1], sizes = [32, 3], strides = [1, 1]} : vector<32x4xbf16> to vector<32x3xbf16>
    %83 = vector.extract_strided_slice %57 {offsets = [0, 0], sizes = [32, 1], strides = [1, 1]} : vector<32x4xbf16> to vector<32x1xbf16>
    %84 = tpu.concatenate %82, %83 in 1 : vector<32x3xbf16>, vector<32x1xbf16> -> vector<32x4xbf16>
    %c4_48 = arith.constant 4 : index
    %c0_49 = arith.constant 0 : index
    %c0_50 = arith.constant 0 : index
    %85 = vector.load %arg3[%c4_48, %c0_49, %c0_50] : memref<7x32x32xbf16, #tpu.memory_space<vmem>>, vector<1x32x32xbf16>
    %86 = vector.shape_cast %85 : vector<1x32x32xbf16> to vector<32x32xbf16>
    %cst_51 = arith.constant dense<0.000000e+00> : vector<32x4xf32>
    %87 = tpu.matmul %86, %84, %cst_51 {dimension_numbers = #tpu.dot_dimension_numbers<[1], [0], [0], [1], [0, 0, 1, 1], [], []>} : vector<32x32xbf16>, vector<32x4xbf16>, vector<32x4xf32> -> vector<32x4xf32>
    %88 = arith.addf %81, %87 : vector<32x4xf32>
    %89 = vector.extract_strided_slice %57 {offsets = [0, 2], sizes = [32, 2], strides = [1, 1]} : vector<32x4xbf16> to vector<32x2xbf16>
    %90 = vector.extract_strided_slice %57 {offsets = [0, 0], sizes = [32, 2], strides = [1, 1]} : vector<32x4xbf16> to vector<32x2xbf16>
    %91 = tpu.concatenate %89, %90 in 1 : vector<32x2xbf16>, vector<32x2xbf16> -> vector<32x4xbf16>
    %c5_52 = arith.constant 5 : index
    %c0_53 = arith.constant 0 : index
    %c0_54 = arith.constant 0 : index
    %92 = vector.load %arg3[%c5_52, %c0_53, %c0_54] : memref<7x32x32xbf16, #tpu.memory_space<vmem>>, vector<1x32x32xbf16>
    %93 = vector.shape_cast %92 : vector<1x32x32xbf16> to vector<32x32xbf16>
    %cst_55 = arith.constant dense<0.000000e+00> : vector<32x4xf32>
    %94 = tpu.matmul %93, %91, %cst_55 {dimension_numbers = #tpu.dot_dimension_numbers<[1], [0], [0], [1], [0, 0, 1, 1], [], []>} : vector<32x32xbf16>, vector<32x4xbf16>, vector<32x4xf32> -> vector<32x4xf32>
    %95 = arith.addf %88, %94 : vector<32x4xf32>
    %96 = vector.extract_strided_slice %57 {offsets = [0, 3], sizes = [32, 1], strides = [1, 1]} : vector<32x4xbf16> to vector<32x1xbf16>
    %97 = vector.extract_strided_slice %57 {offsets = [0, 0], sizes = [32, 3], strides = [1, 1]} : vector<32x4xbf16> to vector<32x3xbf16>
    %98 = tpu.concatenate %96, %97 in 1 : vector<32x1xbf16>, vector<32x3xbf16> -> vector<32x4xbf16>
    %c6_56 = arith.constant 6 : index
    %c0_57 = arith.constant 0 : index
    %c0_58 = arith.constant 0 : index
    %99 = vector.load %arg3[%c6_56, %c0_57, %c0_58] : memref<7x32x32xbf16, #tpu.memory_space<vmem>>, vector<1x32x32xbf16>
    %100 = vector.shape_cast %99 : vector<1x32x32xbf16> to vector<32x32xbf16>
    %cst_59 = arith.constant dense<0.000000e+00> : vector<32x4xf32>
    %101 = tpu.matmul %100, %98, %cst_59 {dimension_numbers = #tpu.dot_dimension_numbers<[1], [0], [0], [1], [0, 0, 1, 1], [], []>} : vector<32x32xbf16>, vector<32x4xbf16>, vector<32x4xf32> -> vector<32x4xf32>
    %102 = arith.addf %95, %101 : vector<32x4xf32>
    %103 = vector.broadcast %4 : vector<32x1xf32> to vector<32x4xf32>
    %104 = arith.mulf %102, %103 : vector<32x4xf32>
    %105 = vector.broadcast %5 : vector<32x1xf32> to vector<32x4xf32>
    %106 = arith.addf %104, %105 : vector<32x4xf32>
    %107 = arith.extf %1 : vector<32x4xbf16> to vector<32x4xf32>
    %108 = arith.addf %106, %107 : vector<32x4xf32>
    %cst_60 = arith.constant 0.000000e+00 : f32
    %109 = vector.broadcast %cst_60 : f32 to vector<32x4xf32>
    %110 = arith.maximumf %108, %109 : vector<32x4xf32>
    %111 = arith.truncf %110 : vector<32x4xf32> to vector<32x4xbf16>
    %c0_61 = arith.constant 0 : index
    %c0_62 = arith.constant 0 : index
    %c0_63 = arith.constant 0 : index
    %112 = vector.load %arg8[%c0_61, %c0_62, %c0_63] : memref<1x32x4xbf16, #tpu.memory_space<vmem>>, vector<1x32x4xbf16>
    %113 = vector.shape_cast %112 : vector<1x32x4xbf16> to vector<32x4xbf16>
    %114 = vector.shape_cast %111 : vector<32x4xbf16> to vector<1x32x4xbf16>
    tpu.vector_store %arg8[%c0_61, %c0_62, %c0_63], %114 {strides = array<i32>} : memref<1x32x4xbf16, #tpu.memory_space<vmem>>, vector<1x32x4xbf16>,
    return
  }
  func.func @transform_0(%arg0: i32) -> (i32, i32, i32) {
    %c0_i32 = arith.constant 0 : i32
    %c0_i32_0 = arith.constant 0 : i32
    %c0_i32_1 = arith.constant 0 : i32
    return %arg0, %c0_i32, %c0_i32_0 : i32, i32, i32
  }
  func.func @transform_1(%arg0: i32) -> (i32, i32, i32) {
    %c0_i32 = arith.constant 0 : i32
    %c0_i32_0 = arith.constant 0 : i32
    %c0_i32_1 = arith.constant 0 : i32
    %c0_i32_2 = arith.constant 0 : i32
    return %c0_i32, %c0_i32_0, %c0_i32_1 : i32, i32, i32
  }
  func.func @transform_2(%arg0: i32) -> (i32, i32, i32) {
    %c0_i32 = arith.constant 0 : i32
    %c0_i32_0 = arith.constant 0 : i32
    %c0_i32_1 = arith.constant 0 : i32
    %c0_i32_2 = arith.constant 0 : i32
    return %c0_i32, %c0_i32_0, %c0_i32_1 : i32, i32, i32
  }
  func.func @transform_3(%arg0: i32) -> (i32, i32) {
    %c0_i32 = arith.constant 0 : i32
    %c0_i32_0 = arith.constant 0 : i32
    %c0_i32_1 = arith.constant 0 : i32
    return %c0_i32, %c0_i32_0 : i32, i32
  }
  func.func @transform_4(%arg0: i32) -> (i32, i32) {
    %c0_i32 = arith.constant 0 : i32
    %c0_i32_0 = arith.constant 0 : i32
    %c0_i32_1 = arith.constant 0 : i32
    return %c0_i32, %c0_i32_0 : i32, i32
  }
  func.func @transform_5(%arg0: i32) -> (i32, i32) {
    %c0_i32 = arith.constant 0 : i32
    %c0_i32_0 = arith.constant 0 : i32
    %c0_i32_1 = arith.constant 0 : i32
    return %c0_i32, %c0_i32_0 : i32, i32
  }
  func.func @transform_6(%arg0: i32) -> (i32, i32) {
    %c0_i32 = arith.constant 0 : i32
    %c0_i32_0 = arith.constant 0 : i32
    %c0_i32_1 = arith.constant 0 : i32
    return %c0_i32, %c0_i32_0 : i32, i32
  }
  func.func @transform_7(%arg0: i32) -> (i32, i32, i32) {
    %c0_i32 = arith.constant 0 : i32
    %c0_i32_0 = arith.constant 0 : i32
    %c0_i32_1 = arith.constant 0 : i32
    return %arg0, %c0_i32, %c0_i32_0 : i32, i32, i32
  }
}

module attributes {stable_mosaic.version = 11 : i64} {
  func.func @_block_kernel(%arg0: i32, %arg1: memref<1x32x4xbf16, #tpu.memory_space<vmem>>, %arg2: memref<1x32x4xbf16, #tpu.memory_space<vmem>>, %arg3: memref<7x32x32xbf16, #tpu.memory_space<vmem>>, %arg4: memref<7x32x32xbf16, #tpu.memory_space<vmem>>, %arg5: memref<1x32x32xbf16, #tpu.memory_space<vmem>>, %arg6: memref<32x1xf32, #tpu.memory_space<vmem>>, %arg7: memref<32x1xf32, #tpu.memory_space<vmem>>, %arg8: memref<32x1xf32, #tpu.memory_space<vmem>>, %arg9: memref<32x1xf32, #tpu.memory_space<vmem>>, %arg10: memref<32x1xf32, #tpu.memory_space<vmem>>, %arg11: memref<32x1xf32, #tpu.memory_space<vmem>>, %arg12: memref<1x32x4xbf16, #tpu.memory_space<vmem>>) attributes {dimension_semantics = [#tpu.dimension_semantics<parallel>], iteration_bounds = array<i64: 2>, scalar_prefetch = 0 : i64, scratch_operands = 0 : i64, tpu.core_type = #tpu.core_type<tc>, window_params = [{transform_indices = @transform_0, window_bounds = array<i64: 1, 32, 4>}, {transform_indices = @transform_1, window_bounds = array<i64: 1, 32, 4>}, {pipeline_mode = #tpu.pipeline_mode<synchronous>, transform_indices = @transform_2, window_bounds = array<i64: 7, 32, 32>}, {pipeline_mode = #tpu.pipeline_mode<synchronous>, transform_indices = @transform_3, window_bounds = array<i64: 7, 32, 32>}, {pipeline_mode = #tpu.pipeline_mode<synchronous>, transform_indices = @transform_4, window_bounds = array<i64: 1, 32, 32>}, {pipeline_mode = #tpu.pipeline_mode<synchronous>, transform_indices = @transform_5, window_bounds = array<i64: 32, 1>}, {pipeline_mode = #tpu.pipeline_mode<synchronous>, transform_indices = @transform_6, window_bounds = array<i64: 32, 1>}, {pipeline_mode = #tpu.pipeline_mode<synchronous>, transform_indices = @transform_7, window_bounds = array<i64: 32, 1>}, {pipeline_mode = #tpu.pipeline_mode<synchronous>, transform_indices = @transform_8, window_bounds = array<i64: 32, 1>}, {pipeline_mode = #tpu.pipeline_mode<synchronous>, transform_indices = @transform_9, window_bounds = array<i64: 32, 1>}, {pipeline_mode = #tpu.pipeline_mode<synchronous>, transform_indices = @transform_10, window_bounds = array<i64: 32, 1>}, {transform_indices = @transform_11, window_bounds = array<i64: 1, 32, 4>}]} {
    %c0 = arith.constant 0 : index
    %c0_0 = arith.constant 0 : index
    %c0_1 = arith.constant 0 : index
    %0 = vector.load %arg1[%c0, %c0_0, %c0_1] : memref<1x32x4xbf16, #tpu.memory_space<vmem>>, vector<1x32x4xbf16>
    %1 = vector.shape_cast %0 : vector<1x32x4xbf16> to vector<32x4xbf16>
    %c0_2 = arith.constant 0 : index
    %c0_3 = arith.constant 0 : index
    %c0_4 = arith.constant 0 : index
    %2 = vector.load %arg2[%c0_2, %c0_3, %c0_4] : memref<1x32x4xbf16, #tpu.memory_space<vmem>>, vector<1x32x4xbf16>
    %3 = vector.shape_cast %2 : vector<1x32x4xbf16> to vector<32x4xbf16>
    %c0_5 = arith.constant 0 : index
    %c0_6 = arith.constant 0 : index
    %4 = vector.load %arg6[%c0_5, %c0_6] : memref<32x1xf32, #tpu.memory_space<vmem>>, vector<32x1xf32>
    %c0_7 = arith.constant 0 : index
    %c0_8 = arith.constant 0 : index
    %5 = vector.load %arg7[%c0_7, %c0_8] : memref<32x1xf32, #tpu.memory_space<vmem>>, vector<32x1xf32>
    %c0_9 = arith.constant 0 : index
    %c0_10 = arith.constant 0 : index
    %6 = vector.load %arg8[%c0_9, %c0_10] : memref<32x1xf32, #tpu.memory_space<vmem>>, vector<32x1xf32>
    %c0_11 = arith.constant 0 : index
    %c0_12 = arith.constant 0 : index
    %7 = vector.load %arg9[%c0_11, %c0_12] : memref<32x1xf32, #tpu.memory_space<vmem>>, vector<32x1xf32>
    %c0_13 = arith.constant 0 : index
    %c0_14 = arith.constant 0 : index
    %8 = vector.load %arg10[%c0_13, %c0_14] : memref<32x1xf32, #tpu.memory_space<vmem>>, vector<32x1xf32>
    %c0_15 = arith.constant 0 : index
    %c0_16 = arith.constant 0 : index
    %9 = vector.load %arg11[%c0_15, %c0_16] : memref<32x1xf32, #tpu.memory_space<vmem>>, vector<32x1xf32>
    %10 = vector.extract_strided_slice %3 {offsets = [0, 2], sizes = [32, 2], strides = [1, 1]} : vector<32x4xbf16> to vector<32x2xbf16>
    %11 = vector.extract_strided_slice %3 {offsets = [0, 0], sizes = [32, 2], strides = [1, 1]} : vector<32x4xbf16> to vector<32x2xbf16>
    %12 = tpu.concatenate %10, %11 in 1 : vector<32x2xbf16>, vector<32x2xbf16> -> vector<32x4xbf16>
    %c0_17 = arith.constant 0 : index
    %c0_18 = arith.constant 0 : index
    %c0_19 = arith.constant 0 : index
    %13 = vector.load %arg3[%c0_17, %c0_18, %c0_19] : memref<7x32x32xbf16, #tpu.memory_space<vmem>>, vector<1x32x32xbf16>
    %14 = vector.shape_cast %13 : vector<1x32x32xbf16> to vector<32x32xbf16>
    %cst = arith.constant dense<0.000000e+00> : vector<32x4xf32>
    %15 = tpu.matmul %14, %12, %cst {dimension_numbers = #tpu.dot_dimension_numbers<[1], [0], [0], [1], [0, 0, 1, 1], [], []>} : vector<32x32xbf16>, vector<32x4xbf16>, vector<32x4xf32> -> vector<32x4xf32>
    %16 = vector.extract_strided_slice %1 {offsets = [0, 3], sizes = [32, 1], strides = [1, 1]} : vector<32x4xbf16> to vector<32x1xbf16>
    %17 = vector.extract_strided_slice %1 {offsets = [0, 0], sizes = [32, 3], strides = [1, 1]} : vector<32x4xbf16> to vector<32x3xbf16>
    %18 = tpu.concatenate %16, %17 in 1 : vector<32x1xbf16>, vector<32x3xbf16> -> vector<32x4xbf16>
    %c1 = arith.constant 1 : index
    %c0_20 = arith.constant 0 : index
    %c0_21 = arith.constant 0 : index
    %19 = vector.load %arg3[%c1, %c0_20, %c0_21] : memref<7x32x32xbf16, #tpu.memory_space<vmem>>, vector<1x32x32xbf16>
    %20 = vector.shape_cast %19 : vector<1x32x32xbf16> to vector<32x32xbf16>
    %cst_22 = arith.constant dense<0.000000e+00> : vector<32x4xf32>
    %21 = tpu.matmul %20, %18, %cst_22 {dimension_numbers = #tpu.dot_dimension_numbers<[1], [0], [0], [1], [0, 0, 1, 1], [], []>} : vector<32x32xbf16>, vector<32x4xbf16>, vector<32x4xf32> -> vector<32x4xf32>
    %22 = arith.addf %15, %21 : vector<32x4xf32>
    %23 = vector.extract_strided_slice %3 {offsets = [0, 3], sizes = [32, 1], strides = [1, 1]} : vector<32x4xbf16> to vector<32x1xbf16>
    %24 = vector.extract_strided_slice %3 {offsets = [0, 0], sizes = [32, 3], strides = [1, 1]} : vector<32x4xbf16> to vector<32x3xbf16>
    %25 = tpu.concatenate %23, %24 in 1 : vector<32x1xbf16>, vector<32x3xbf16> -> vector<32x4xbf16>
    %c2 = arith.constant 2 : index
    %c0_23 = arith.constant 0 : index
    %c0_24 = arith.constant 0 : index
    %26 = vector.load %arg3[%c2, %c0_23, %c0_24] : memref<7x32x32xbf16, #tpu.memory_space<vmem>>, vector<1x32x32xbf16>
    %27 = vector.shape_cast %26 : vector<1x32x32xbf16> to vector<32x32xbf16>
    %cst_25 = arith.constant dense<0.000000e+00> : vector<32x4xf32>
    %28 = tpu.matmul %27, %25, %cst_25 {dimension_numbers = #tpu.dot_dimension_numbers<[1], [0], [0], [1], [0, 0, 1, 1], [], []>} : vector<32x32xbf16>, vector<32x4xbf16>, vector<32x4xf32> -> vector<32x4xf32>
    %29 = arith.addf %22, %28 : vector<32x4xf32>
    %c3 = arith.constant 3 : index
    %c0_26 = arith.constant 0 : index
    %c0_27 = arith.constant 0 : index
    %30 = vector.load %arg3[%c3, %c0_26, %c0_27] : memref<7x32x32xbf16, #tpu.memory_space<vmem>>, vector<1x32x32xbf16>
    %31 = vector.shape_cast %30 : vector<1x32x32xbf16> to vector<32x32xbf16>
    %cst_28 = arith.constant dense<0.000000e+00> : vector<32x4xf32>
    %32 = tpu.matmul %31, %1, %cst_28 {dimension_numbers = #tpu.dot_dimension_numbers<[1], [0], [0], [1], [0, 0, 1, 1], [], []>} : vector<32x32xbf16>, vector<32x4xbf16>, vector<32x4xf32> -> vector<32x4xf32>
    %33 = arith.addf %29, %32 : vector<32x4xf32>
    %c4 = arith.constant 4 : index
    %c0_29 = arith.constant 0 : index
    %c0_30 = arith.constant 0 : index
    %34 = vector.load %arg3[%c4, %c0_29, %c0_30] : memref<7x32x32xbf16, #tpu.memory_space<vmem>>, vector<1x32x32xbf16>
    %35 = vector.shape_cast %34 : vector<1x32x32xbf16> to vector<32x32xbf16>
    %cst_31 = arith.constant dense<0.000000e+00> : vector<32x4xf32>
    %36 = tpu.matmul %35, %3, %cst_31 {dimension_numbers = #tpu.dot_dimension_numbers<[1], [0], [0], [1], [0, 0, 1, 1], [], []>} : vector<32x32xbf16>, vector<32x4xbf16>, vector<32x4xf32> -> vector<32x4xf32>
    %37 = arith.addf %33, %36 : vector<32x4xf32>
    %38 = vector.extract_strided_slice %1 {offsets = [0, 1], sizes = [32, 3], strides = [1, 1]} : vector<32x4xbf16> to vector<32x3xbf16>
    %39 = vector.extract_strided_slice %1 {offsets = [0, 0], sizes = [32, 1], strides = [1, 1]} : vector<32x4xbf16> to vector<32x1xbf16>
    %40 = tpu.concatenate %38, %39 in 1 : vector<32x3xbf16>, vector<32x1xbf16> -> vector<32x4xbf16>
    %c5 = arith.constant 5 : index
    %c0_32 = arith.constant 0 : index
    %c0_33 = arith.constant 0 : index
    %41 = vector.load %arg3[%c5, %c0_32, %c0_33] : memref<7x32x32xbf16, #tpu.memory_space<vmem>>, vector<1x32x32xbf16>
    %42 = vector.shape_cast %41 : vector<1x32x32xbf16> to vector<32x32xbf16>
    %cst_34 = arith.constant dense<0.000000e+00> : vector<32x4xf32>
    %43 = tpu.matmul %42, %40, %cst_34 {dimension_numbers = #tpu.dot_dimension_numbers<[1], [0], [0], [1], [0, 0, 1, 1], [], []>} : vector<32x32xbf16>, vector<32x4xbf16>, vector<32x4xf32> -> vector<32x4xf32>
    %44 = arith.addf %37, %43 : vector<32x4xf32>
    %45 = vector.extract_strided_slice %3 {offsets = [0, 1], sizes = [32, 3], strides = [1, 1]} : vector<32x4xbf16> to vector<32x3xbf16>
    %46 = vector.extract_strided_slice %3 {offsets = [0, 0], sizes = [32, 1], strides = [1, 1]} : vector<32x4xbf16> to vector<32x1xbf16>
    %47 = tpu.concatenate %45, %46 in 1 : vector<32x3xbf16>, vector<32x1xbf16> -> vector<32x4xbf16>
    %c6 = arith.constant 6 : index
    %c0_35 = arith.constant 0 : index
    %c0_36 = arith.constant 0 : index
    %48 = vector.load %arg3[%c6, %c0_35, %c0_36] : memref<7x32x32xbf16, #tpu.memory_space<vmem>>, vector<1x32x32xbf16>
    %49 = vector.shape_cast %48 : vector<1x32x32xbf16> to vector<32x32xbf16>
    %cst_37 = arith.constant dense<0.000000e+00> : vector<32x4xf32>
    %50 = tpu.matmul %49, %47, %cst_37 {dimension_numbers = #tpu.dot_dimension_numbers<[1], [0], [0], [1], [0, 0, 1, 1], [], []>} : vector<32x32xbf16>, vector<32x4xbf16>, vector<32x4xf32> -> vector<32x4xf32>
    %51 = arith.addf %44, %50 : vector<32x4xf32>
    %52 = vector.broadcast %4 : vector<32x1xf32> to vector<32x4xf32>
    %53 = arith.mulf %51, %52 : vector<32x4xf32>
    %54 = vector.broadcast %5 : vector<32x1xf32> to vector<32x4xf32>
    %55 = arith.addf %53, %54 : vector<32x4xf32>
    %cst_38 = arith.constant 0.000000e+00 : f32
    %56 = vector.broadcast %cst_38 : f32 to vector<32x4xf32>
    %57 = arith.maximumf %55, %56 : vector<32x4xf32>
    %58 = arith.truncf %57 : vector<32x4xf32> to vector<32x4xbf16>
    %59 = vector.extract_strided_slice %58 {offsets = [0, 1], sizes = [32, 3], strides = [1, 1]} : vector<32x4xbf16> to vector<32x3xbf16>
    %60 = vector.extract_strided_slice %58 {offsets = [0, 0], sizes = [32, 1], strides = [1, 1]} : vector<32x4xbf16> to vector<32x1xbf16>
    %61 = tpu.concatenate %59, %60 in 1 : vector<32x3xbf16>, vector<32x1xbf16> -> vector<32x4xbf16>
    %c0_39 = arith.constant 0 : index
    %c0_40 = arith.constant 0 : index
    %c0_41 = arith.constant 0 : index
    %62 = vector.load %arg4[%c0_39, %c0_40, %c0_41] : memref<7x32x32xbf16, #tpu.memory_space<vmem>>, vector<1x32x32xbf16>
    %63 = vector.shape_cast %62 : vector<1x32x32xbf16> to vector<32x32xbf16>
    %cst_42 = arith.constant dense<0.000000e+00> : vector<32x4xf32>
    %64 = tpu.matmul %63, %61, %cst_42 {dimension_numbers = #tpu.dot_dimension_numbers<[1], [0], [0], [1], [0, 0, 1, 1], [], []>} : vector<32x32xbf16>, vector<32x4xbf16>, vector<32x4xf32> -> vector<32x4xf32>
    %65 = vector.extract_strided_slice %58 {offsets = [0, 2], sizes = [32, 2], strides = [1, 1]} : vector<32x4xbf16> to vector<32x2xbf16>
    %66 = vector.extract_strided_slice %58 {offsets = [0, 0], sizes = [32, 2], strides = [1, 1]} : vector<32x4xbf16> to vector<32x2xbf16>
    %67 = tpu.concatenate %65, %66 in 1 : vector<32x2xbf16>, vector<32x2xbf16> -> vector<32x4xbf16>
    %c1_43 = arith.constant 1 : index
    %c0_44 = arith.constant 0 : index
    %c0_45 = arith.constant 0 : index
    %68 = vector.load %arg4[%c1_43, %c0_44, %c0_45] : memref<7x32x32xbf16, #tpu.memory_space<vmem>>, vector<1x32x32xbf16>
    %69 = vector.shape_cast %68 : vector<1x32x32xbf16> to vector<32x32xbf16>
    %cst_46 = arith.constant dense<0.000000e+00> : vector<32x4xf32>
    %70 = tpu.matmul %69, %67, %cst_46 {dimension_numbers = #tpu.dot_dimension_numbers<[1], [0], [0], [1], [0, 0, 1, 1], [], []>} : vector<32x32xbf16>, vector<32x4xbf16>, vector<32x4xf32> -> vector<32x4xf32>
    %71 = arith.addf %64, %70 : vector<32x4xf32>
    %72 = vector.extract_strided_slice %58 {offsets = [0, 3], sizes = [32, 1], strides = [1, 1]} : vector<32x4xbf16> to vector<32x1xbf16>
    %73 = vector.extract_strided_slice %58 {offsets = [0, 0], sizes = [32, 3], strides = [1, 1]} : vector<32x4xbf16> to vector<32x3xbf16>
    %74 = tpu.concatenate %72, %73 in 1 : vector<32x1xbf16>, vector<32x3xbf16> -> vector<32x4xbf16>
    %c2_47 = arith.constant 2 : index
    %c0_48 = arith.constant 0 : index
    %c0_49 = arith.constant 0 : index
    %75 = vector.load %arg4[%c2_47, %c0_48, %c0_49] : memref<7x32x32xbf16, #tpu.memory_space<vmem>>, vector<1x32x32xbf16>
    %76 = vector.shape_cast %75 : vector<1x32x32xbf16> to vector<32x32xbf16>
    %cst_50 = arith.constant dense<0.000000e+00> : vector<32x4xf32>
    %77 = tpu.matmul %76, %74, %cst_50 {dimension_numbers = #tpu.dot_dimension_numbers<[1], [0], [0], [1], [0, 0, 1, 1], [], []>} : vector<32x32xbf16>, vector<32x4xbf16>, vector<32x4xf32> -> vector<32x4xf32>
    %78 = arith.addf %71, %77 : vector<32x4xf32>
    %c3_51 = arith.constant 3 : index
    %c0_52 = arith.constant 0 : index
    %c0_53 = arith.constant 0 : index
    %79 = vector.load %arg4[%c3_51, %c0_52, %c0_53] : memref<7x32x32xbf16, #tpu.memory_space<vmem>>, vector<1x32x32xbf16>
    %80 = vector.shape_cast %79 : vector<1x32x32xbf16> to vector<32x32xbf16>
    %cst_54 = arith.constant dense<0.000000e+00> : vector<32x4xf32>
    %81 = tpu.matmul %80, %58, %cst_54 {dimension_numbers = #tpu.dot_dimension_numbers<[1], [0], [0], [1], [0, 0, 1, 1], [], []>} : vector<32x32xbf16>, vector<32x4xbf16>, vector<32x4xf32> -> vector<32x4xf32>
    %82 = arith.addf %78, %81 : vector<32x4xf32>
    %83 = vector.extract_strided_slice %58 {offsets = [0, 1], sizes = [32, 3], strides = [1, 1]} : vector<32x4xbf16> to vector<32x3xbf16>
    %84 = vector.extract_strided_slice %58 {offsets = [0, 0], sizes = [32, 1], strides = [1, 1]} : vector<32x4xbf16> to vector<32x1xbf16>
    %85 = tpu.concatenate %83, %84 in 1 : vector<32x3xbf16>, vector<32x1xbf16> -> vector<32x4xbf16>
    %c4_55 = arith.constant 4 : index
    %c0_56 = arith.constant 0 : index
    %c0_57 = arith.constant 0 : index
    %86 = vector.load %arg4[%c4_55, %c0_56, %c0_57] : memref<7x32x32xbf16, #tpu.memory_space<vmem>>, vector<1x32x32xbf16>
    %87 = vector.shape_cast %86 : vector<1x32x32xbf16> to vector<32x32xbf16>
    %cst_58 = arith.constant dense<0.000000e+00> : vector<32x4xf32>
    %88 = tpu.matmul %87, %85, %cst_58 {dimension_numbers = #tpu.dot_dimension_numbers<[1], [0], [0], [1], [0, 0, 1, 1], [], []>} : vector<32x32xbf16>, vector<32x4xbf16>, vector<32x4xf32> -> vector<32x4xf32>
    %89 = arith.addf %82, %88 : vector<32x4xf32>
    %90 = vector.extract_strided_slice %58 {offsets = [0, 2], sizes = [32, 2], strides = [1, 1]} : vector<32x4xbf16> to vector<32x2xbf16>
    %91 = vector.extract_strided_slice %58 {offsets = [0, 0], sizes = [32, 2], strides = [1, 1]} : vector<32x4xbf16> to vector<32x2xbf16>
    %92 = tpu.concatenate %90, %91 in 1 : vector<32x2xbf16>, vector<32x2xbf16> -> vector<32x4xbf16>
    %c5_59 = arith.constant 5 : index
    %c0_60 = arith.constant 0 : index
    %c0_61 = arith.constant 0 : index
    %93 = vector.load %arg4[%c5_59, %c0_60, %c0_61] : memref<7x32x32xbf16, #tpu.memory_space<vmem>>, vector<1x32x32xbf16>
    %94 = vector.shape_cast %93 : vector<1x32x32xbf16> to vector<32x32xbf16>
    %cst_62 = arith.constant dense<0.000000e+00> : vector<32x4xf32>
    %95 = tpu.matmul %94, %92, %cst_62 {dimension_numbers = #tpu.dot_dimension_numbers<[1], [0], [0], [1], [0, 0, 1, 1], [], []>} : vector<32x32xbf16>, vector<32x4xbf16>, vector<32x4xf32> -> vector<32x4xf32>
    %96 = arith.addf %89, %95 : vector<32x4xf32>
    %97 = vector.extract_strided_slice %58 {offsets = [0, 3], sizes = [32, 1], strides = [1, 1]} : vector<32x4xbf16> to vector<32x1xbf16>
    %98 = vector.extract_strided_slice %58 {offsets = [0, 0], sizes = [32, 3], strides = [1, 1]} : vector<32x4xbf16> to vector<32x3xbf16>
    %99 = tpu.concatenate %97, %98 in 1 : vector<32x1xbf16>, vector<32x3xbf16> -> vector<32x4xbf16>
    %c6_63 = arith.constant 6 : index
    %c0_64 = arith.constant 0 : index
    %c0_65 = arith.constant 0 : index
    %100 = vector.load %arg4[%c6_63, %c0_64, %c0_65] : memref<7x32x32xbf16, #tpu.memory_space<vmem>>, vector<1x32x32xbf16>
    %101 = vector.shape_cast %100 : vector<1x32x32xbf16> to vector<32x32xbf16>
    %cst_66 = arith.constant dense<0.000000e+00> : vector<32x4xf32>
    %102 = tpu.matmul %101, %99, %cst_66 {dimension_numbers = #tpu.dot_dimension_numbers<[1], [0], [0], [1], [0, 0, 1, 1], [], []>} : vector<32x32xbf16>, vector<32x4xbf16>, vector<32x4xf32> -> vector<32x4xf32>
    %103 = arith.addf %96, %102 : vector<32x4xf32>
    %104 = vector.broadcast %6 : vector<32x1xf32> to vector<32x4xf32>
    %105 = arith.mulf %103, %104 : vector<32x4xf32>
    %106 = vector.broadcast %7 : vector<32x1xf32> to vector<32x4xf32>
    %107 = arith.addf %105, %106 : vector<32x4xf32>
    %c0_67 = arith.constant 0 : index
    %c0_68 = arith.constant 0 : index
    %c0_69 = arith.constant 0 : index
    %108 = vector.load %arg5[%c0_67, %c0_68, %c0_69] : memref<1x32x32xbf16, #tpu.memory_space<vmem>>, vector<1x32x32xbf16>
    %109 = vector.shape_cast %108 : vector<1x32x32xbf16> to vector<32x32xbf16>
    %cst_70 = arith.constant dense<0.000000e+00> : vector<32x4xf32>
    %110 = tpu.matmul %109, %1, %cst_70 {dimension_numbers = #tpu.dot_dimension_numbers<[1], [0], [0], [1], [0, 0, 1, 1], [], []>} : vector<32x32xbf16>, vector<32x4xbf16>, vector<32x4xf32> -> vector<32x4xf32>
    %111 = vector.broadcast %8 : vector<32x1xf32> to vector<32x4xf32>
    %112 = arith.mulf %110, %111 : vector<32x4xf32>
    %113 = vector.broadcast %9 : vector<32x1xf32> to vector<32x4xf32>
    %114 = arith.addf %112, %113 : vector<32x4xf32>
    %115 = arith.addf %107, %114 : vector<32x4xf32>
    %cst_71 = arith.constant 0.000000e+00 : f32
    %116 = vector.broadcast %cst_71 : f32 to vector<32x4xf32>
    %117 = arith.maximumf %115, %116 : vector<32x4xf32>
    %118 = arith.truncf %117 : vector<32x4xf32> to vector<32x4xbf16>
    %c0_72 = arith.constant 0 : index
    %c0_73 = arith.constant 0 : index
    %c0_74 = arith.constant 0 : index
    %119 = vector.load %arg12[%c0_72, %c0_73, %c0_74] : memref<1x32x4xbf16, #tpu.memory_space<vmem>>, vector<1x32x4xbf16>
    %120 = vector.shape_cast %119 : vector<1x32x4xbf16> to vector<32x4xbf16>
    %121 = vector.shape_cast %118 : vector<32x4xbf16> to vector<1x32x4xbf16>
    tpu.vector_store %arg12[%c0_72, %c0_73, %c0_74], %121 {strides = array<i32>} : memref<1x32x4xbf16, #tpu.memory_space<vmem>>, vector<1x32x4xbf16>,
    return
  }
  func.func @transform_0(%arg0: i32) -> (i32, i32, i32) {
    %c0_i32 = arith.constant 0 : i32
    %c0_i32_0 = arith.constant 0 : i32
    %c0_i32_1 = arith.constant 0 : i32
    return %arg0, %c0_i32, %c0_i32_0 : i32, i32, i32
  }
  func.func @transform_1(%arg0: i32) -> (i32, i32, i32) {
    %c0_i32 = arith.constant 0 : i32
    %c0_i32_0 = arith.constant 0 : i32
    %c0_i32_1 = arith.constant 0 : i32
    return %arg0, %c0_i32, %c0_i32_0 : i32, i32, i32
  }
  func.func @transform_2(%arg0: i32) -> (i32, i32, i32) {
    %c0_i32 = arith.constant 0 : i32
    %c0_i32_0 = arith.constant 0 : i32
    %c0_i32_1 = arith.constant 0 : i32
    %c0_i32_2 = arith.constant 0 : i32
    return %c0_i32, %c0_i32_0, %c0_i32_1 : i32, i32, i32
  }
  func.func @transform_3(%arg0: i32) -> (i32, i32, i32) {
    %c0_i32 = arith.constant 0 : i32
    %c0_i32_0 = arith.constant 0 : i32
    %c0_i32_1 = arith.constant 0 : i32
    %c0_i32_2 = arith.constant 0 : i32
    return %c0_i32, %c0_i32_0, %c0_i32_1 : i32, i32, i32
  }
  func.func @transform_4(%arg0: i32) -> (i32, i32, i32) {
    %c0_i32 = arith.constant 0 : i32
    %c0_i32_0 = arith.constant 0 : i32
    %c0_i32_1 = arith.constant 0 : i32
    %c0_i32_2 = arith.constant 0 : i32
    return %c0_i32, %c0_i32_0, %c0_i32_1 : i32, i32, i32
  }
  func.func @transform_5(%arg0: i32) -> (i32, i32) {
    %c0_i32 = arith.constant 0 : i32
    %c0_i32_0 = arith.constant 0 : i32
    %c0_i32_1 = arith.constant 0 : i32
    return %c0_i32, %c0_i32_0 : i32, i32
  }
  func.func @transform_6(%arg0: i32) -> (i32, i32) {
    %c0_i32 = arith.constant 0 : i32
    %c0_i32_0 = arith.constant 0 : i32
    %c0_i32_1 = arith.constant 0 : i32
    return %c0_i32, %c0_i32_0 : i32, i32
  }
  func.func @transform_7(%arg0: i32) -> (i32, i32) {
    %c0_i32 = arith.constant 0 : i32
    %c0_i32_0 = arith.constant 0 : i32
    %c0_i32_1 = arith.constant 0 : i32
    return %c0_i32, %c0_i32_0 : i32, i32
  }
  func.func @transform_8(%arg0: i32) -> (i32, i32) {
    %c0_i32 = arith.constant 0 : i32
    %c0_i32_0 = arith.constant 0 : i32
    %c0_i32_1 = arith.constant 0 : i32
    return %c0_i32, %c0_i32_0 : i32, i32
  }
  func.func @transform_9(%arg0: i32) -> (i32, i32) {
    %c0_i32 = arith.constant 0 : i32
    %c0_i32_0 = arith.constant 0 : i32
    %c0_i32_1 = arith.constant 0 : i32
    return %c0_i32, %c0_i32_0 : i32, i32
  }
  func.func @transform_10(%arg0: i32) -> (i32, i32) {
    %c0_i32 = arith.constant 0 : i32
    %c0_i32_0 = arith.constant 0 : i32
    %c0_i32_1 = arith.constant 0 : i32
    return %c0_i32, %c0_i32_0 : i32, i32
  }
  func.func @transform_11(%arg0: i32) -> (i32, i32, i32) {
    %c0_i32 = arith.constant 0 : i32
    %c0_i32_0 = arith.constant 0 : i32
    %c0_i32_1 = arith.constant 0 : i32
    return %arg0, %c0_i32, %c0_i32_0 : i32, i32, i32
  }
}

</mosaic_0001>

<bundles_post_ra>
// kernel: model_forward.7
= control target key start
LH: loop header
LB: loop body
LE: loop exit
PB: predicated region body
PF: predicated region fallthrough
CT: control target
= control target key end

     0   :  { %s875_s18 = smov 0   ;;  %s1062_s0 = inlined_call_operand.vmem [shape: f32[2,1,16], index: 0, kind: input, shape index: {}]   ;;  %s1063_s1 = inlined_call_operand.vmem [shape: f32[2,1,16], index: 1, kind: input, shape index: {}]   ;;  %s1064_s2 = inlined_call_operand.vmem [shape: f32[15,16,1], index: 2, kind: input, shape index: {}]   ;;  %s1065_s3 = inlined_call_operand.vmem [shape: f32[16,1], index: 3, kind: input, shape index: {}]   ;;  %s1066_s4 = inlined_call_operand.vmem [shape: f32[16,1], index: 4, kind: input, shape index: {}]   ;;  %s1067_s5 = inlined_call_operand.vmem [shape: bf16[2,16,16], index: 5, kind: output, shape index: {}]  }
   0x1 LB: > { %s753_s19 = sadd.s32 4294967295, %s828_s18   ;;  %p757_p0 = scmp.ge.s32.totalorder %s828_s18, 1  ;;  %s828_s18 = sphi %s875_s18, %s15_s18  }
   0x2   : > { %p193_p1 = scmp.lt.s32.totalorder %s828_s18, 3 }
   0x4   : > { %p194_p2 = pnand %p757_p0, %p193_p1 }
   0x5   : > { %p222_p3 = scmp.lt.s32.totalorder (!%p194_p2), %s753_s19, 1  ;;  %s831_s30 = smov (!%p194_p2), 116  }
   0x6   : > { %197 = sbr.rel (%p194_p2) target bundleno = 262 (0x106), region = 40  ;;  %s832_s6 = smov (!%p194_p2), 4  }
   0x7   : > { %s833_s7 = smov (!%p194_p2), 3   ;;  %s834_s10 = smov (!%p194_p2), 115  }
   0x8   : > { %s835_s17 = smov (!%p194_p2), 114   ;;  %s836_s22 = smov (!%p194_p2), 2  }
   0x9   : > { %s839_s24 = smov (!%p194_p2), 127   ;;  %s840_s27 = smov (!%p194_p2), 15  }
   0xa   : > { %s841_s13 = smov (!%p194_p2), 126   ;;  %s842_s16 = smov (!%p194_p2), 14  }
   0xb   : > { %v248_v0 = vld [vmem:[%s1064_s2] sm:$0xff]  ;;  %v830_v1 = vmov 0   ;;  %s1069_s19 = smov (!%p222_p3, %s753_s19), 1  ;;  %v249_v2 = vld [vmem:[%s1064_s2 + $0x8] sm:$0xff]  ;;  %v763_v5 = vld [vmem:[%s1064_s2 + $0x18] sm:$0xff]  ;;  %s843_s25 = smov 125   ;;  %v260_v34 = vlaneseq }
   0xc   : > { %820 = vset.pattern.permute.xlu1 %v830_v1  ;;  %821 = vset.pattern.permute.xlu0 %v830_v1  ;;  %s227_s26 = scalar_lea.vmem %s1063_s1, %s1069_s19  ;;  %s224_s29 = scalar_lea.vmem %s1062_s0, %s1069_s19  ;;  %v762_v6 = vld [vmem:[%s1064_s2 + $0x10] sm:$0xff]  ;;  %v764_v7 = vld [vmem:[%s1064_s2 + $0x20] sm:$0xff]  ;;  %v765_v8 = vld [vmem:[%s1064_s2 + $0x28] sm:$0xff]  ;;  %vm246_vm0 = vcmask 31744   ;;  %vm279_vm1 = vcmask 23552   ;;  %vm336_vm2 = vcmask 15360  }
   0xd   : > { %252 = vperm.xlu1 %820, %v248_v0   ;;  %v899_v3 = vld [vmem:[%s227_s26] ss:$0 sm:$0xff]  ;;  %v766_v9 = vld [vmem:[%s1064_s2 + $0x30] sm:$0xff]  ;;  %v767_v10 = vld [vmem:[%s1064_s2 + $0x38] sm:$0xff]  ;;  %s844_s28 = smov 13   ;;  %v261_v37 = vshrl.u32 %v260_v34, 7 }
   0xe   : > { %240 = vrot.lane.b32.xlu0 %v899_v3, %s831_s30  ;;  %v902_v4 = vld [vmem:[%s224_s29] ss:$0 sm:$0xff]  ;;  %v769_v12 = vld [vmem:[%s1064_s2 + $0x48] sm:$0xff]  ;;  %s837_s29 = smov 113   ;;  %v770_v13 = vld [vmem:[%s1064_s2 + $0x50] sm:$0xff]  ;;  %vm393_vm3 = vcmask 7168  }
   0xf   : > { %v768_v11 = vld [vmem:[%s1064_s2 + $0x40] sm:$0xff]  ;;  %v771_v14 = vld [vmem:[%s1064_s2 + $0x58] sm:$0xff]  ;;  %v774_v16 = vld [vmem:[%s1064_s2 + $0x70] sm:$0xff]  ;;  %v1025_v40 = vsub.s32 0, %v261_v37  ;;  %vm486_vm4 = vcmask 121856   ;;  %vm543_vm5 = vcmask 113664  }
  0x10   : > { %v772_v15 = vld [vmem:[%s1064_s2 + $0x60] sm:$0xff]  ;;  %v773_v17 = vld [vmem:[%s1064_s2 + $0x68] sm:$0xff]  ;;  %v775_v19 = vld [vmem:[%s1064_s2 + $0x78] sm:$0xff]  ;;  %vm600_vm6 = vcmask 105472   ;;  %s794_s14 = sshll.u32 %s1069_s19, 3  ;;  %vm689_vm7 = vcmask 125952  }
  0x11   : > { %257 = vperm.xlu1 %820, %v249_v2   ;;  %v776_v18 = vld [vmem:[%s1064_s2 + $0x80] sm:$0xff]  ;;  %v777_v20 = vld [vmem:[%s1064_s2 + $0x88] sm:$0xff]  ;;  %v778_v21 = vld [vmem:[%s1064_s2 + $0x90] sm:$0xff] }
  0x12   : > { %243 = vrot.lane.b32.xlu0 %v899_v3, %s832_s6  ;;  %v780_v22 = vld [vmem:[%s1064_s2 + $0xa0] sm:$0xff]  ;;  %v779_v23 = vld [vmem:[%s1064_s2 + $0x98] sm:$0xff]  ;;  %v781_v24 = vld [vmem:[%s1064_s2 + $0xa8] sm:$0xff] }
  0x13   : > { %v782_v25 = vld [vmem:[%s1064_s2 + $0xb0] sm:$0xff]  ;;  %v783_v26 = vld [vmem:[%s1064_s2 + $0xb8] sm:$0xff]  ;;  %v784_v27 = vld [vmem:[%s1064_s2 + $0xc0] sm:$0xff] }
  0x14   : > { %v785_v28 = vld [vmem:[%s1064_s2 + $0xc8] sm:$0xff]  ;;  %v786_v29 = vld [vmem:[%s1064_s2 + $0xd0] sm:$0xff]  ;;  %v787_v30 = vld [vmem:[%s1064_s2 + $0xd8] sm:$0xff] }
  0x15   : > { %276 = vrot.lane.b32.xlu1 %v902_v4, %s833_s7  ;;  %v788_v31 = vld [vmem:[%s1064_s2 + $0xe0] sm:$0xff]  ;;  %v789_v32 = vld [vmem:[%s1064_s2 + $0xe8] sm:$0xff] }
  0x16   : > { %273 = vrot.lane.b32.xlu0 %v902_v4, %s834_s10  ;;  %v651_v33 = vld [vmem:[%s1065_s3] sm:$0xff]  ;;  %v652_v36 = vld [vmem:[%s1065_s3 + $0x8] sm:$0xff] }
  0x17   : > { %v665_v35 = vld [vmem:[%s1066_s4] sm:$0xff]  ;;  %v666_v38 = vld [vmem:[%s1066_s4 + $0x8] sm:$0xff] }
  0x19   : > { %291 = vperm.xlu1 %820, %v763_v5  }
  0x1a   : > { %286 = vperm.xlu0 %821, %v762_v6  }
  0x1d   : > { %302 = vrot.lane.b32.xlu1 %v899_v3, %s834_s10 }
  0x1e   : > { %305 = vrot.lane.b32.xlu0 %v899_v3, %s833_s7  ;;  %s838_s7 = smov 1  }
  0x21   : > { %314 = vperm.xlu1 %820, %v764_v7  }
  0x22   : > { %319 = vperm.xlu0 %821, %v765_v8  }
  0x25   : > { %330 = vrot.lane.b32.xlu1 %v902_v4, %s835_s17 }
  0x26   : > { %333 = vrot.lane.b32.xlu0 %v902_v4, %s836_s22 }
  0x29   : > { %343 = vperm.xlu1 %820, %v766_v9  }
  0x2a   : > { %348 = vperm.xlu0 %821, %v767_v10  }
  0x2d   : > { %359 = vrot.lane.b32.xlu1 %v899_v3, %s835_s17  ;;  %s232_s17 = scalar_lea.vmem %s1067_s5, %s794_s14 }
  0x2e   : > { %362 = vrot.lane.b32.xlu0 %v899_v3, %s836_s22 }
  0x31   : > { %371 = vperm.xlu1 %820, %v768_v11  }
  0x32   : > { %376 = vperm.xlu0 %821, %v769_v12  }
  0x35   : > { %387 = vrot.lane.b32.xlu1 %v902_v4, %s837_s29 }
  0x36   : > { %390 = vrot.lane.b32.xlu0 %v902_v4, %s838_s7 }
  0x39   : > { %400 = vperm.xlu1 %820, %v770_v13  }
  0x3a   : > { %405 = vperm.xlu0 %821, %v771_v14  }
  0x3d   : > { %416 = vrot.lane.b32.xlu1 %v899_v3, %s837_s29 }
  0x3e   : > { %419 = vrot.lane.b32.xlu0 %v899_v3, %s838_s7 }
  0x41   : > { %428 = vperm.xlu1 %820, %v772_v15  }
  0x42   : > { %433 = vperm.xlu0 %821, %v773_v17  }
  0x45   : > { %449 = vperm.xlu1 %820, %v774_v16  }
  0x46   : > { %454 = vperm.xlu0 %821, %v775_v19  }
  0x49   : > { %467 = vperm.xlu1 %820, %v776_v18  }
  0x4a   : > { %472 = vperm.xlu0 %821, %v777_v20  }
  0x4d   : > { %480 = vrot.lane.b32.xlu1 %v902_v4, %s839_s24 }
  0x4e   : > { %483 = vrot.lane.b32.xlu0 %v902_v4, %s840_s27 }
  0x51   : > { %493 = vperm.xlu1 %820, %v778_v21  }
  0x52   : > { %498 = vperm.xlu0 %821, %v779_v23  }
  0x55   : > { %521 = vperm.xlu1 %820, %v780_v22  }
  0x56   : > { %526 = vperm.xlu0 %821, %v781_v24  }
  0x59   : > { %509 = vrot.lane.b32.xlu1 %v899_v3, %s839_s24 }
  0x5a   : > { %512 = vrot.lane.b32.xlu0 %v899_v3, %s840_s27 }
  0x5d   : > { %550 = vperm.xlu1 %820, %v782_v25  }
  0x5e   : > { %555 = vperm.xlu0 %821, %v783_v26  }
  0x61   : > { %537 = vrot.lane.b32.xlu1 %v902_v4, %s841_s13 }
  0x62   : > { %540 = vrot.lane.b32.xlu0 %v902_v4, %s842_s16 }
  0x65   : > { %578 = vperm.xlu1 %820, %v784_v27  }
  0x66   : > { %583 = vperm.xlu0 %821, %v785_v28  }
  0x69   : > { %566 = vrot.lane.b32.xlu1 %v899_v3, %s841_s13 }
  0x6a   : > { %569 = vrot.lane.b32.xlu0 %v899_v3, %s842_s16 }
  0x6d   : > { %607 = vperm.xlu1 %820, %v786_v29  }
  0x6e   : > { %612 = vperm.xlu0 %821, %v787_v30  }
  0x71   : > { %594 = vrot.lane.b32.xlu1 %v902_v4, %s843_s25 }
  0x72   : > { %597 = vrot.lane.b32.xlu0 %v902_v4, %s844_s28 }
  0x75   : > { %635 = vperm.xlu1 %820, %v788_v31  }
  0x76   : > { %640 = vperm.xlu0 %821, %v789_v32  }
  0x79   : > { %623 = vrot.lane.b32.xlu1 %v899_v3, %s843_s25 }
  0x7a   : > { %626 = vrot.lane.b32.xlu0 %v899_v3, %s844_s28 }
  0x7d   : > { %655 = vperm.xlu1 %820, %v651_v33  }
  0x7e   : > { %660 = vperm.xlu0 %821, %v652_v36  }
  0x80   : > { %v241_v39 = vpop.permute.xlu0 %240 }
  0x81   : > { %669 = vperm.xlu1 %820, %v665_v35  }
  0x82   : > { %674 = vperm.xlu0 %821, %v666_v38  }
  0x84   : > { %v244_v41 = vpop.permute.xlu0 %243 }
  0x85   : > { %v247_v42 = vsel %vm246_vm0, %v241_v39, %v244_v41 }
  0x86   : > { %v263_v44 = vrot.slane %v247_v42, %v1025_v40 }
  0x88   : > { %v253_v43 = vpop.permute.xlu1 %252  ;;  %v274_v48 = vpop.permute.xlu0 %273 }
  0x89   : > { %v264_v45 = vmul.f32 %v263_v44, %v253_v43 }
  0x8c   : > { %v258_v46 = vpop.permute.xlu1 %257 }
  0x8d   : > { %v265_v47 = vmul.f32 %v263_v44, %v258_v46 }
  0x90   : > { %v277_v49 = vpop.permute.xlu1 %276 }
  0x91   : > { %v280_v50 = vsel %vm279_vm1, %v274_v48, %v277_v49 }
  0x92   : > { %v297_v51 = vrot.slane %v280_v50, %v1025_v40 }
  0x94   : > { %v292_v52 = vpop.permute.xlu1 %291 }
  0x95   : > { %v299_v53 = vmul.f32 %v297_v51, %v292_v52  ;;  %v287_v56 = vpop.permute.xlu0 %286 }
  0x96   : > { %v298_v57 = vmul.f32 %v297_v51, %v287_v56 }
  0x97   : > { %v301_v54 = vadd.f32 %v299_v53, %v265_v47 }
  0x98   : > { %v303_v55 = vpop.permute.xlu1 %302  ;;  %v300_v58 = vadd.f32 %v298_v57, %v264_v45 }
  0x99   : > { %v306_v60 = vpop.permute.xlu0 %305 }
  0x9a   : > { %v308_v61 = vsel %vm279_vm1, %v303_v55, %v306_v60 }
  0x9b   : > { %v325_v62 = vrot.slane %v308_v61, %v1025_v40 }
  0x9c   : > { %v315_v59 = vpop.permute.xlu1 %314 }
  0x9d   : > { %v326_v0 = vmul.f32 %v325_v62, %v315_v59  ;;  %v320_v1 = vpop.permute.xlu0 %319 }
  0x9e   : > { %v327_v2 = vmul.f32 %v325_v62, %v320_v1 }
  0x9f   : > { %v328_v5 = vadd.f32 %v326_v0, %v300_v58 }
  0xa0   : > { %v331_v63 = vpop.permute.xlu1 %330  ;;  %v329_v6 = vadd.f32 %v327_v2, %v301_v54 }
  0xa1   : > { %v334_v8 = vpop.permute.xlu0 %333 }
  0xa2   : > { %v337_v33 = vsel %vm336_vm2, %v331_v63, %v334_v8 }
  0xa3   : > { %v354_v37 = vrot.slane %v337_v33, %v1025_v40 }
  0xa4   : > { %v344_v7 = vpop.permute.xlu1 %343 }
  0xa5   : > { %v349_v10 = vpop.permute.xlu0 %348  ;;  %v355_v44 = vmul.f32 %v354_v37, %v344_v7 }
  0xa6   : > { %v356_v52 = vmul.f32 %v354_v37, %v349_v10 }
  0xa7   : > { %v357_v50 = vadd.f32 %v355_v44, %v328_v5 }
  0xa8   : > { %v360_v9 = vpop.permute.xlu1 %359  ;;  %v358_v59 = vadd.f32 %v356_v52, %v329_v6 }
  0xa9   : > { %v363_v12 = vpop.permute.xlu0 %362 }
  0xaa   : > { %v365_v36 = vsel %vm336_vm2, %v360_v9, %v363_v12 }
  0xab   : > { %v382_v42 = vrot.slane %v365_v36, %v1025_v40 }
  0xac   : > { %v372_v11 = vpop.permute.xlu1 %371 }
  0xad   : > { %v377_v14 = vpop.permute.xlu0 %376  ;;  %v383_v48 = vmul.f32 %v382_v42, %v372_v11 }
  0xae   : > { %v384_v57 = vmul.f32 %v382_v42, %v377_v14 }
  0xaf   : > { %v385_v55 = vadd.f32 %v383_v48, %v357_v50 }
  0xb0   : > { %v388_v13 = vpop.permute.xlu1 %387  ;;  %v386_v2 = vadd.f32 %v384_v57, %v358_v59 }
  0xb1   : > { %v391_v16 = vpop.permute.xlu0 %390 }
  0xb2   : > { %v394_v38 = vsel %vm393_vm3, %v388_v13, %v391_v16 }
  0xb3   : > { %v411_v45 = vrot.slane %v394_v38, %v1025_v40 }
  0xb4   : > { %v401_v15 = vpop.permute.xlu1 %400 }
  0xb5   : > { %v406_v18 = vpop.permute.xlu0 %405  ;;  %v412_v51 = vmul.f32 %v411_v45, %v401_v15 }
  0xb6   : > { %v413_v60 = vmul.f32 %v411_v45, %v406_v18 }
  0xb7   : > { %v414_v58 = vadd.f32 %v412_v51, %v385_v55 }
  0xb8   : > { %v417_v17 = vpop.permute.xlu1 %416  ;;  %v415_v9 = vadd.f32 %v413_v60, %v386_v2 }
  0xb9   : > { %v420_v20 = vpop.permute.xlu0 %419 }
  0xba   : > { %v422_v43 = vsel %vm393_vm3, %v417_v17, %v420_v20 }
  0xbb   : > { %v439_v49 = vrot.slane %v422_v43, %v1025_v40 }
  0xbc   : > { %v429_v19 = vpop.permute.xlu1 %428 }
  0xbd   : > { %v434_v22 = vpop.permute.xlu0 %433  ;;  %v440_v56 = vmul.f32 %v439_v49, %v429_v19 }
  0xbe   : > { %v441_v7 = vmul.f32 %v439_v49, %v434_v22 }
  0xbf   : > { %v442_v0 = vadd.f32 %v440_v56, %v414_v58 }
  0xc0   : > { %v450_v21 = vpop.permute.xlu1 %449  ;;  %v443_v15 = vadd.f32 %v441_v7, %v415_v9 }
  0xc1   : > { %v455_v24 = vpop.permute.xlu0 %454  ;;  %v458_v1 = vmul.f32 %v902_v4, %v450_v21 }
  0xc2   : > { %v459_v10 = vmul.f32 %v902_v4, %v455_v24 }
  0xc3   : > { %v460_v13 = vadd.f32 %v458_v1, %v442_v0 }
  0xc4   : > { %v468_v23 = vpop.permute.xlu1 %467  ;;  %v461_v20 = vadd.f32 %v459_v10, %v443_v15 }
  0xc5   : > { %v473_v26 = vpop.permute.xlu0 %472  ;;  %v476_v6 = vmul.f32 %v899_v3, %v468_v23 }
  0xc6   : > { %v477_v16 = vmul.f32 %v899_v3, %v473_v26 }
  0xc7   : > { %v478_v24 = vadd.f32 %v476_v6, %v460_v13 }
  0xc8   : > { %v481_v25 = vpop.permute.xlu1 %480 }
  0xc9   : > { %v484_v28 = vpop.permute.xlu0 %483 }
  0xca   : > { %v487_v61 = vsel %vm486_vm4, %v481_v25, %v484_v28 }
  0xcb   : > { %v504_v5 = vrot.slane %v487_v61, %v1025_v40 }
  0xcc   : > { %v494_v27 = vpop.permute.xlu1 %493 }
  0xcd   : > { %v499_v30 = vpop.permute.xlu0 %498  ;;  %v505_v18 = vmul.f32 %v504_v5, %v494_v27 }
  0xce   : > { %v506_v21 = vmul.f32 %v504_v5, %v499_v30 }
  0xcf   : > { %v507_v26 = vadd.f32 %v505_v18, %v478_v24 }
  0xd0   : > { %v1030_v29 = vpop.permute.xlu1 %521 }
  0xd1   : > { %v1032_v32 = vpop.permute.xlu0 %526 }
  0xd4   : > { %v510_v31 = vpop.permute.xlu1 %509 }
  0xd5   : > { %v513_v35 = vpop.permute.xlu0 %512 }
  0xd6   : > { %v515_v8 = vsel %vm486_vm4, %v510_v31, %v513_v35  ;;  %v479_v31 = vadd.f32 %v477_v16, %v461_v20 }
  0xd7   : > { %v532_v17 = vrot.slane %v515_v8, %v1025_v40 }
  0xd8   : > { %v1034_v34 = vpop.permute.xlu1 %550  ;;  %v508_v35 = vadd.f32 %v506_v21, %v479_v31 }
  0xd9   : > { %v556_v41 = vpop.permute.xlu0 %555  ;;  %v533_v23 = vmul.f32 %v532_v17, %v1030_v29  ;;  %v534_v33 = vmul.f32 %v532_v17, %v1032_v32 }
  0xdb   : > { %v536_v42 = vadd.f32 %v534_v33, %v508_v35 }
  0xdc   : > { %v538_v39 = vpop.permute.xlu1 %537 }
  0xdd   : > { %v541_v47 = vpop.permute.xlu0 %540 }
  0xde   : > { %v544_v14 = vsel %vm543_vm5, %v538_v39, %v541_v47  ;;  %v535_v39 = vadd.f32 %v533_v23, %v507_v26 }
  0xdf   : > { %v561_v22 = vrot.slane %v544_v14, %v1025_v40 }
  0xe0   : > { %v579_v46 = vpop.permute.xlu1 %578 }
  0xe1   : > { %v584_v54 = vpop.permute.xlu0 %583  ;;  %v562_v27 = vmul.f32 %v561_v22, %v1034_v34  ;;  %v563_v36 = vmul.f32 %v561_v22, %v556_v41 }
  0xe3   : > { %v564_v45 = vadd.f32 %v562_v27, %v535_v39  ;;  %v565_v47 = vadd.f32 %v563_v36, %v536_v42 }
  0xe4   : > { %v567_v53 = vpop.permute.xlu1 %566 }
  0xe5   : > { %v570_v63 = vpop.permute.xlu0 %569 }
  0xe6   : > { %v572_v19 = vsel %vm543_vm5, %v567_v53, %v570_v63 }
  0xe7   : > { %v589_v3 = vrot.slane %v572_v19, %v1025_v40 }
  0xe8   : > { %v608_v62 = vpop.permute.xlu1 %607 }
  0xe9   : > { %v613_v12 = vpop.permute.xlu0 %612  ;;  %v590_v43 = vmul.f32 %v589_v3, %v579_v46  ;;  %v591_v44 = vmul.f32 %v589_v3, %v584_v54 }
  0xeb   : > { %v592_v50 = vadd.f32 %v590_v43, %v564_v45  ;;  %v593_v41 = vadd.f32 %v591_v44, %v565_v47 }
  0xec   : > { %v595_v11 = vpop.permute.xlu1 %594 }
  0xed   : > { %v598_v4 = vpop.permute.xlu0 %597 }
  0xee   : > { %v601_v28 = vsel %vm600_vm6, %v595_v11, %v598_v4 }
  0xef   : > { %v618_v30 = vrot.slane %v601_v28, %v1025_v40 }
  0xf0   : > { %v636_v25 = vpop.permute.xlu1 %635 }
  0xf1   : > { %v641_v37 = vpop.permute.xlu0 %640  ;;  %v619_v29 = vmul.f32 %v618_v30, %v608_v62  ;;  %v620_v48 = vmul.f32 %v618_v30, %v613_v12 }
  0xf3   : > { %v621_v53 = vadd.f32 %v619_v29, %v592_v50  ;;  %v622_v55 = vadd.f32 %v620_v48, %v593_v41 }
  0xf4   : > { %v624_v38 = vpop.permute.xlu1 %623 }
  0xf5   : > { %v627_v32 = vpop.permute.xlu0 %626 }
  0xf6   : > { %v629_v49 = vsel %vm600_vm6, %v624_v38, %v627_v32 }
  0xf7   : > { %v646_v34 = vrot.slane %v629_v49, %v1025_v40 }
  0xf8   : > { %v656_v51 = vpop.permute.xlu1 %655 }
  0xf9   : > { %v647_v52 = vmul.f32 %v646_v34, %v636_v25  ;;  %v648_v56 = vmul.f32 %v646_v34, %v641_v37  ;;  %v661_v57 = vpop.permute.xlu0 %660 }
  0xfb   : > { %v649_v46 = vadd.f32 %v647_v52, %v621_v53  ;;  %v650_v54 = vadd.f32 %v648_v56, %v622_v55 }
  0xfc   : > { %v670_v61 = vpop.permute.xlu1 %669 }
  0xfd   : > { %v663_v58 = vmul.f32 %v656_v51, %v649_v46  ;;  %v664_v59 = vmul.f32 %v661_v57, %v650_v54  ;;  %v675_v60 = vpop.permute.xlu0 %674 }
  0xff   : > { %v677_v62 = vadd.f32 %v670_v61, %v663_v58  ;;  %v678_v63 = vadd.f32 %v675_v60, %v664_v59 }
 0x101   : > { %v679_v0 = vmax.f32 %v677_v62, 0.0  ;;  %v680_v1 = vmax.f32 %v678_v63, 0.0 }
 0x103   : > { %v795_v40 = vpack.c.bf16 %v679_v0, %v679_v0  ;;  %v796_v2 = vpack.c.bf16 %v680_v1, %v680_v1 }
 0x105   : > { %690 = vst.msk [vmem:[%s232_s17] sm:$0xf] %vm689_vm7, %v795_v40  ;;  %691 = vst.msk [vmem:[%s232_s17 + $0x4] sm:$0xf] %vm689_vm7, %v796_v2 }
 0x106 PF: > { %s15_s18 = sadd.s32 1, %s828_s18  }
 0x107   : > { %p12_p4 = scmp.ge.s32.totalorder %s15_s18, 4  }
 0x109   :  { %14 = sbr.rel (!%p12_p4) target bundleno = 1 (0x1), region = 87 }

// kernel: model_forward.9
= control target key start
LH: loop header
LB: loop body
LE: loop exit
PB: predicated region body
PF: predicated region fallthrough
CT: control target
= control target key end

     0   :  { %s2132_s24 = smov 0   ;;  %s2456_s0 = inlined_call_operand.vmem [shape: bf16[2,32,16], index: 0, kind: input, shape index: {}]   ;;  %s2457_s1 = inlined_call_operand.vmem [shape: bf16[7,32,32], index: 1, kind: input, shape index: {}]   ;;  %s2458_s2 = inlined_call_operand.vmem [shape: bf16[7,32,32], index: 2, kind: input, shape index: {}]   ;;  %s2459_s3 = inlined_call_operand.vmem [shape: f32[32,1], index: 3, kind: input, shape index: {}]   ;;  %s2460_s4 = inlined_call_operand.vmem [shape: f32[32,1], index: 4, kind: input, shape index: {}]   ;;  %s2461_s5 = inlined_call_operand.vmem [shape: f32[32,1], index: 5, kind: input, shape index: {}]   ;;  %s2462_s6 = inlined_call_operand.vmem [shape: f32[32,1], index: 6, kind: input, shape index: {}]   ;;  %s2463_s7 = inlined_call_operand.vmem [shape: bf16[2,32,16], index: 7, kind: output, shape index: {}]  }
   0x1 LB: > { %s1721_s25 = sadd.s32 4294967295, %s2077_s24   ;;  %p1725_p0 = scmp.ge.s32.totalorder %s2077_s24, 1  ;;  %s2077_s24 = sphi %s2132_s24, %s17_s24  }
   0x2   : > { %p237_p1 = scmp.lt.s32.totalorder %s2077_s24, 3 }
   0x4   : > { %p238_p2 = pnand %p1725_p0, %p237_p1 }
   0x5   : > { %p269_p3 = scmp.lt.s32.totalorder (!%p238_p2), %s1721_s25, 1  ;;  %s2079_s9 = smov (!%p238_p2), 114  }
   0x6   : > { %241 = sbr.rel (%p238_p2) target bundleno = 762 (0x2fa), region = 48  ;;  %s2080_s10 = smov (!%p238_p2), 2  }
   0x7   : > { %s2081_s13 = smov (!%p238_p2), 115   ;;  %s2082_s14 = smov (!%p238_p2), 3  }
   0x8   : > { %s2083_s15 = smov (!%p238_p2), 113   ;;  %s2084_s16 = smov (!%p238_p2), 1  }
   0x9   : > { %s2085_s17 = smov (!%p238_p2), 127   ;;  %s2086_s18 = smov (!%p238_p2), 15  }
   0xa   : > { %s2087_s19 = smov (!%p238_p2), 126   ;;  %s2088_s20 = smov (!%p238_p2), 14  }
   0xb   : > { %s2470_s25 = smov (!%p269_p3, %s1721_s25), 1  ;;  %v2041_v2 = vld [vmem:[%s2457_s1 + $0x10] sm:$0xff]   ;;  %vm363_vm0 = vcmask 261120   ;;  %v2043_v3 = vld [vmem:[%s2457_s1] sm:$0xff]   ;;  %s2465_s21 = smov 125   ;;  %v2091_v4 = vmov 0  }
   0xc   : > { %s2464_s26 = sshll.u32 %s2470_s25, 4  ;;  %1908 = vmatprep.mubr.msk.bf16.mxu0 %vm363_vm0, %v2041_v2  ;;  %1916 = vmatprep.mubr.msk.bf16.mxu1 %vm363_vm0, %v2043_v3  ;;  %s2090_s22 = smov 13   ;;  %v286_v5 = vld [vmem:[%s2459_s3 + $0x10] sm:$0xff]  ;;  %v287_v6 = vld [vmem:[%s2459_s3 + $0x18] sm:$0xff]  ;;  %v285_v9 = vld [vmem:[%s2459_s3 + $0x8] sm:$0xff]  ;;  %vm339_vm1 = vcmask 15360  }
   0xd   : > { %s273_s29 = scalar_lea.vmem %s2456_s0, %s2464_s26  ;;  %2038 = vset.pattern.permute.xlu1 %v2091_v4  ;;  %2037 = vset.pattern.permute.xlu0 %v2091_v4  ;;  %v291_v7 = vld [vmem:[%s2460_s4 + $0x18] sm:$0xff]  ;;  %v290_v8 = vld [vmem:[%s2460_s4 + $0x10] sm:$0xff]  ;;  %v284_v10 = vld [vmem:[%s2459_s3] sm:$0xff]  ;;  %vm318_vm2 = vcmask 23552   ;;  %vm492_vm3 = vcmask 7168   ;;  %vm659_vm4 = vcmask 121856  }
   0xe   : > { %v2148_v0 = vld [vmem:[%s273_s29 + $0x8] sm:$0xff]   ;;  %v2150_v1 = vld [vmem:[%s273_s29] sm:$0xff]   ;;  %v2042_v22 = vld [vmem:[%s2457_s1 + $0x18] sm:$0xff]   ;;  %vm750_vm5 = vcmask 113664   ;;  %vm841_vm6 = vcmask 105472   ;;  %s2467_s30 = smov 125  }
   0xf   : > { %333 = vrot.lane.b32.xlu0 %v2148_v0, %s2079_s9  ;;  %331 = vrot.lane.b32.xlu1 %v2150_v1, %s2079_s9  ;;  %v289_v11 = vld [vmem:[%s2460_s4 + $0x8] sm:$0xff]  ;;  %v288_v12 = vld [vmem:[%s2460_s4] sm:$0xff]  ;;  %s2468_s29 = sshll.u32 %s2470_s25, 4  ;;  %vm1661_vm7 = vcmask 125952  }
  0x10   : > { %v2045_v23 = vld [vmem:[%s2457_s1 + $0x20] sm:$0xff]   ;;  %v2044_v30 = vld [vmem:[%s2457_s1 + $0x8] sm:$0xff]   ;;  %v2047_v33 = vld [vmem:[%s2457_s1 + $0x30] sm:$0xff]  }
  0x11   : > { %v2046_v35 = vld [vmem:[%s2457_s1 + $0x28] sm:$0xff]   ;;  %v2049_v38 = vld [vmem:[%s2457_s1 + $0x40] sm:$0xff]   ;;  %v2048_v40 = vld [vmem:[%s2457_s1 + $0x38] sm:$0xff]  }
  0x12   : > { %v2051_v41 = vld [vmem:[%s2457_s1 + $0x50] sm:$0xff]   ;;  %v2050_v45 = vld [vmem:[%s2457_s1 + $0x48] sm:$0xff]   ;;  %v2053_v46 = vld [vmem:[%s2457_s1 + $0x60] sm:$0xff]  }
  0x13   : > { %337 = vrot.lane.b32.xlu0 %v2148_v0, %s2080_s10  ;;  %335 = vrot.lane.b32.xlu1 %v2150_v1, %s2080_s10  ;;  %v2052_v56 = vld [vmem:[%s2457_s1 + $0x58] sm:$0xff]   ;;  %v2054_v60 = vld [vmem:[%s2457_s1 + $0x68] sm:$0xff]  }
  0x17   : > { %312 = vrot.lane.b32.xlu0 %v2148_v0, %s2081_s13  ;;  %316 = vrot.lane.b32.xlu1 %v2148_v0, %s2082_s14 }
  0x1b   : > { %486 = vrot.lane.b32.xlu0 %v2148_v0, %s2083_s15  ;;  %490 = vrot.lane.b32.xlu1 %v2148_v0, %s2084_s16 }
  0x1f   : > { %310 = vrot.lane.b32.xlu0 %v2150_v1, %s2081_s13  ;;  %314 = vrot.lane.b32.xlu1 %v2150_v1, %s2082_s14 }
  0x23   : > { %484 = vrot.lane.b32.xlu0 %v2150_v1, %s2083_s15  ;;  %488 = vrot.lane.b32.xlu1 %v2150_v1, %s2084_s16 }
  0x27   : > { %653 = vrot.lane.b32.xlu0 %v2148_v0, %s2085_s17  ;;  %657 = vrot.lane.b32.xlu1 %v2148_v0, %s2086_s18 }
  0x2b   : > { %651 = vrot.lane.b32.xlu0 %v2150_v1, %s2085_s17  ;;  %655 = vrot.lane.b32.xlu1 %v2150_v1, %s2086_s18 }
  0x2f   : > { %744 = vrot.lane.b32.xlu0 %v2148_v0, %s2087_s19  ;;  %748 = vrot.lane.b32.xlu1 %v2148_v0, %s2088_s20 }
  0x33   : > { %835 = vrot.lane.b32.xlu0 %v2148_v0, %s2465_s21  ;;  %839 = vrot.lane.b32.xlu1 %v2148_v0, %s2090_s22 }
  0x37   : > { %742 = vrot.lane.b32.xlu0 %v2150_v1, %s2087_s19  ;;  %746 = vrot.lane.b32.xlu1 %v2150_v1, %s2088_s20 }
  0x3b   : > { %833 = vrot.lane.b32.xlu0 %v2150_v1, %s2465_s21  ;;  %837 = vrot.lane.b32.xlu1 %v2150_v1, %s2090_s22 }
  0x3f   : > { %936 = vperm.xlu0 %2037, %v286_v5   ;;  %941 = vperm.xlu1 %2038, %v287_v6  }
  0x43   : > { %965 = vperm.xlu0 %2037, %v291_v7   ;;  %960 = vperm.xlu1 %2038, %v290_v8  }
  0x47   : > { %931 = vperm.xlu0 %2037, %v285_v9   ;;  %926 = vperm.xlu1 %2038, %v284_v10  }
  0x4b   : > { %955 = vperm.xlu0 %2037, %v289_v11   ;;  %950 = vperm.xlu1 %2038, %v288_v12  }
  0x81   : > { %v334_v13 = vpop.permute.xlu0 %333  ;;  %v332_v14 = vpop.permute.xlu1 %331 }
  0x85   : > { %v338_v15 = vpop.permute.xlu0 %337  ;;  %v336_v16 = vpop.permute.xlu1 %335 }
  0x86   : > { %v346_v17 = vsel %vm339_vm1, %v334_v13, %v338_v15  ;;  %v342_v18 = vsel %vm339_vm1, %v332_v14, %v336_v16 }
  0x87   : > { %1904 = vmatprep.subr.bf16.mxu0 %v346_v17 }
  0x88   : > { %1905 = vmatpush3.bf16.msra.mxu0 %v346_v17 }
  0x89   : > { %v313_v19 = vpop.permute.xlu0 %312  ;;  %1906 = vmatprep.subr.bf16.mxu0 %v342_v18  ;;  %v317_v20 = vpop.permute.xlu1 %316 }
  0x8a   : > { %v325_v21 = vsel %vm318_vm2, %v313_v19, %v317_v20 }
  0x8b   : > { %1912 = vmatprep.subr.bf16.mxu1 %v325_v21 }
  0x8c   : > { %1907 = vmatpush3.bf16.msra.mxu0 %v342_v18  ;;  %1913 = vmatpush3.bf16.msra.mxu1 %v325_v21 }
  0x8d   : > { %v487_v24 = vpop.permute.xlu0 %486  ;;  %v491_v25 = vpop.permute.xlu1 %490 }
  0x8e   : > { %v499_v26 = vsel %vm492_vm3, %v487_v24, %v491_v25 }
  0x8f   : > { %1920 = vmatprep.subr.bf16.mxu0 %v499_v26  ;;  %1909 = vmatmul.mubr.msk.bf16.vlgmr.msra.gmra.mxu0 %vm363_vm0, %v2042_v22 }
  0x90   : > { %1921 = vmatpush3.bf16.msra.mxu0 %v499_v26  ;;  %1924 = vmatprep.mubr.msk.bf16.mxu0 %vm363_vm0, %v2045_v23 }
  0x91   : > { %v311_v27 = vpop.permute.xlu0 %310  ;;  %v315_v28 = vpop.permute.xlu1 %314 }
  0x92   : > { %v321_v29 = vsel %vm318_vm2, %v311_v27, %v315_v28 }
  0x93   : > { %1914 = vmatprep.subr.bf16.mxu1 %v321_v29 }
  0x94   : > { %1915 = vmatpush3.bf16.msra.mxu1 %v321_v29 }
  0x95   : > { %v485_v31 = vpop.permute.xlu0 %484  ;;  %v489_v32 = vpop.permute.xlu1 %488  ;;  %1928 = vmatprep.subr.bf16.mxu1 %v2148_v0 }
  0x96   : > { %v495_v34 = vsel %vm492_vm3, %v485_v31, %v489_v32 }
  0x97   : > { %1917 = vmatmul.mubr.msk.bf16.vlgmr.msra.gmra.mxu1 %vm363_vm0, %v2044_v30  ;;  %1922 = vmatprep.subr.bf16.mxu0 %v495_v34 }
  0x98   : > { %1923 = vmatpush3.bf16.msra.mxu0 %v495_v34  ;;  %1929 = vmatpush3.bf16.msra.mxu1 %v2148_v0 }
  0x99   : > { %v654_v36 = vpop.permute.xlu0 %653  ;;  %v658_v37 = vpop.permute.xlu1 %657  ;;  %1930 = vmatprep.subr.bf16.mxu1 %v2150_v1  ;;  %1932 = vmatprep.mubr.msk.bf16.mxu1 %vm363_vm0, %v2047_v33 }
  0x9a   : > { %v666_v39 = vsel %vm659_vm4, %v654_v36, %v658_v37 }
  0x9b   : > { %1925 = vmatmul.mubr.msk.bf16.vlgmr.msra.gmra.mxu0 %vm363_vm0, %v2046_v35  ;;  %1936 = vmatprep.subr.bf16.mxu0 %v666_v39 }
  0x9c   : > { %1931 = vmatpush3.bf16.msra.mxu1 %v2150_v1  ;;  %1937 = vmatpush3.bf16.msra.mxu0 %v666_v39 }
  0x9d   : > { %v652_v42 = vpop.permute.xlu0 %651  ;;  %v656_v43 = vpop.permute.xlu1 %655  ;;  %1940 = vmatprep.mubr.msk.bf16.mxu0 %vm363_vm0, %v2049_v38 }
  0x9e   : > { %v662_v44 = vsel %vm659_vm4, %v652_v42, %v656_v43 }
  0x9f   : > { %1933 = vmatmul.mubr.msk.bf16.vlgmr.msra.gmra.mxu1 %vm363_vm0, %v2048_v40  ;;  %1938 = vmatprep.subr.bf16.mxu0 %v662_v44 }
  0xa0   : > { %1939 = vmatpush3.bf16.msra.mxu0 %v662_v44  ;;  %1948 = vmatprep.mubr.msk.bf16.mxu1 %vm363_vm0, %v2051_v41 }
  0xa1   : > { %v745_v47 = vpop.permute.xlu0 %744  ;;  %v749_v48 = vpop.permute.xlu1 %748 }
  0xa2   : > { %v757_v49 = vsel %vm750_vm5, %v745_v47, %v749_v48 }
  0xa3   : > { %1941 = vmatmul.mubr.msk.bf16.vlgmr.msra.gmra.mxu0 %vm363_vm0, %v2050_v45  ;;  %1944 = vmatprep.subr.bf16.mxu1 %v757_v49 }
  0xa4   : > { %1945 = vmatpush3.bf16.msra.mxu1 %v757_v49  ;;  %1956 = vmatprep.mubr.msk.bf16.mxu0 %vm363_vm0, %v2053_v46 }
  0xa5   : > { %v836_v50 = vpop.permute.xlu0 %835  ;;  %v840_v51 = vpop.permute.xlu1 %839 }
  0xa6   : > { %v848_v52 = vsel %vm841_vm6, %v836_v50, %v840_v51 }
  0xa7   : > { %1952 = vmatprep.subr.bf16.mxu0 %v848_v52 }
  0xa8   : > { %1953 = vmatpush3.bf16.msra.mxu0 %v848_v52 }
  0xa9   : > { %v743_v53 = vpop.permute.xlu0 %742  ;;  %v747_v54 = vpop.permute.xlu1 %746 }
  0xaa   : > { %v753_v55 = vsel %vm750_vm5, %v743_v53, %v747_v54 }
  0xab   : > { %1946 = vmatprep.subr.bf16.mxu1 %v753_v55 }
  0xac   : > { %1947 = vmatpush3.bf16.msra.mxu1 %v753_v55 }
  0xad   : > { %v834_v57 = vpop.permute.xlu0 %833  ;;  %v838_v58 = vpop.permute.xlu1 %837 }
  0xae   : > { %v844_v59 = vsel %vm841_vm6, %v834_v57, %v838_v58 }
  0xaf   : > { %1949 = vmatmul.mubr.msk.bf16.vlgmr.msra.gmra.mxu1 %vm363_vm0, %v2052_v56  ;;  %1954 = vmatprep.subr.bf16.mxu0 %v844_v59 }
  0xb0   : > { %1955 = vmatpush3.bf16.msra.mxu0 %v844_v59 }
  0xb3   : > { %1957 = vmatmul.mubr.msk.bf16.vlgmr.msra.gmra.mxu0 %vm363_vm0, %v2054_v60 }
  0xba   : > { %v942_v28 = vpop.permute.xlu1 %941  ;;  %v937_v34 = vpop.permute.xlu0 %936 }
  0xbe   : > { %v961_v40 = vpop.permute.xlu1 %960  ;;  %v966_v45 = vpop.permute.xlu0 %965 }
 0x14f   : > { %v1910_v61 = vpop.f32.mrf.mxu0 }
 0x151   : > { %v404_v62 = vpop.f32.mrf.mxu0 }
 0x153   : > { %v1911_v63 = vpop.f32.mrf.mxu0 }
 0x155   : > { %v407_v3 = vpop.f32.mrf.mxu0 }
 0x157   : > { %v1918_v2 = vpop.f32.mrf.mxu1 }
 0x158   : > { %v478_v14 = vadd.f32 %v1918_v2, %v1910_v61  ;;  %v932_v61 = vpop.permute.xlu0 %931 }
 0x159   : > { %v469_v4 = vpop.f32.mrf.mxu1 }
 0x15a   : > { %v470_v41 = vadd.f32 %v469_v4, %v404_v62 }
 0x15b   : > { %v1919_v5 = vpop.f32.mrf.mxu1  ;;  %v1926_v6 = vpop.f32.mrf.mxu0 }
 0x15c   : > { %v573_v17 = vadd.f32 %v1926_v6, %v478_v14  ;;  %v481_v20 = vadd.f32 %v1919_v5, %v1911_v63  ;;  %v927_v63 = vpop.permute.xlu1 %926  ;;  %v956_v4 = vpop.permute.xlu0 %955  ;;  %v2055_v5 = vld [vmem:[%s2458_s2 + $0x10] sm:$0xff]   ;;  %v292_v14 = vld [vmem:[%s2461_s5] sm:$0xff] }
 0x15d   : > { %v472_v7 = vpop.f32.mrf.mxu1  ;;  %v556_v8 = vpop.f32.mrf.mxu0  ;;  %1964 = vmatprep.mubr.msk.bf16.mxu1 %vm363_vm0, %v2055_v5 }
 0x15e   : > { %v473_v42 = vadd.f32 %v472_v7, %v407_v3  ;;  %v571_v48 = vadd.f32 %v556_v8, %v470_v41 }
 0x15f   : > { %v1927_v9 = vpop.f32.mrf.mxu0  ;;  %v1934_v10 = vpop.f32.mrf.mxu1 }
 0x160   : > { %v649_v21 = vadd.f32 %v1934_v10, %v573_v17  ;;  %v574_v23 = vadd.f32 %v1927_v9, %v481_v20  ;;  %v951_v7 = vpop.permute.xlu1 %950  ;;  %v2057_v9 = vld [vmem:[%s2458_s2] sm:$0xff]   ;;  %v297_v17 = vld [vmem:[%s2462_s6 + $0x8] sm:$0xff]  ;;  %v298_v20 = vld [vmem:[%s2462_s6 + $0x10] sm:$0xff] }
 0x161   : > { %v559_v11 = vpop.f32.mrf.mxu0  ;;  %v632_v12 = vpop.f32.mrf.mxu1  ;;  %1972 = vmatprep.mubr.msk.bf16.mxu0 %vm363_vm0, %v2057_v9 }
 0x162   : > { %v572_v46 = vadd.f32 %v559_v11, %v473_v42  ;;  %v647_v53 = vadd.f32 %v632_v12, %v571_v48  ;;  %v2058_v42 = vld [vmem:[%s2458_s2 + $0x8] sm:$0xff]  }
 0x163   : > { %v1942_v13 = vpop.f32.mrf.mxu0  ;;  %v1935_v15 = vpop.f32.mrf.mxu1 }
 0x164   : > { %v740_v24 = vadd.f32 %v1942_v13, %v649_v21  ;;  %v650_v27 = vadd.f32 %v1935_v15, %v574_v23  ;;  %v293_v13 = vld [vmem:[%s2461_s5 + $0x8] sm:$0xff]  ;;  %v295_v15 = vld [vmem:[%s2461_s5 + $0x18] sm:$0xff] }
 0x165   : > { %v723_v16 = vpop.f32.mrf.mxu0  ;;  %v635_v18 = vpop.f32.mrf.mxu1 }
 0x166   : > { %v648_v49 = vadd.f32 %v635_v18, %v572_v46  ;;  %v738_v57 = vadd.f32 %v723_v16, %v647_v53  ;;  %v294_v16 = vld [vmem:[%s2461_s5 + $0x10] sm:$0xff]  ;;  %v296_v18 = vld [vmem:[%s2462_s6] sm:$0xff] }
 0x167   : > { %v1943_v19 = vpop.f32.mrf.mxu0  ;;  %v2061_v46 = vld [vmem:[%s2458_s2 + $0x30] sm:$0xff]  }
 0x168   : > { %v741_v32 = vadd.f32 %v1943_v19, %v650_v27  ;;  %v299_v19 = vld [vmem:[%s2462_s6 + $0x18] sm:$0xff] }
 0x169   : > { %v726_v25 = vpop.f32.mrf.mxu0 }
 0x16a   : > { %v739_v54 = vadd.f32 %v726_v25, %v648_v49 }
 0x16f   : > { %v1950_v22 = vpop.f32.mrf.mxu1 }
 0x170   : > { %v831_v29 = vadd.f32 %v1950_v22, %v740_v24 }
 0x171   : > { %v814_v26 = vpop.f32.mrf.mxu1 }
 0x172   : > { %v829_v59 = vadd.f32 %v814_v26, %v738_v57 }
 0x173   : > { %v1951_v30 = vpop.f32.mrf.mxu1  ;;  %v1958_v31 = vpop.f32.mrf.mxu0 }
 0x174   : > { %v922_v33 = vadd.f32 %v1958_v31, %v831_v29  ;;  %v832_v36 = vadd.f32 %v1951_v30, %v741_v32 }
 0x175   : > { %v905_v35 = vpop.f32.mrf.mxu0  ;;  %v817_v52 = vpop.f32.mrf.mxu1 }
 0x176   : > { %v946_v37 = vmul.f32 %v937_v34, %v922_v33  ;;  %v830_v58 = vadd.f32 %v817_v52, %v739_v54  ;;  %v920_v62 = vadd.f32 %v905_v35, %v829_v59  ;;  %v2062_v52 = vld [vmem:[%s2458_s2 + $0x38] sm:$0xff]  }
 0x177   : > { %v1959_v38 = vpop.f32.mrf.mxu0 }
 0x178   : > { %v923_v39 = vadd.f32 %v1959_v38, %v832_v36  ;;  %v970_v43 = vadd.f32 %v961_v40, %v946_v37  ;;  %v944_v3 = vmul.f32 %v927_v63, %v920_v62  ;;  %v2056_v36 = vld [vmem:[%s2458_s2 + $0x18] sm:$0xff]   ;;  %v2059_v40 = vld [vmem:[%s2458_s2 + $0x20] sm:$0xff]  }
 0x179   : > { %v908_v56 = vpop.f32.mrf.mxu0  ;;  %v2067_v62 = vld [vmem:[%s2458_s2 + $0x60] sm:$0xff]  }
 0x17a   : > { %v947_v44 = vmul.f32 %v942_v28, %v923_v39  ;;  %v974_v50 = vmax.f32 %v970_v43, 0.0  ;;  %v921_v60 = vadd.f32 %v908_v56, %v830_v58  ;;  %v968_v8 = vadd.f32 %v951_v7, %v944_v3  ;;  %v2065_v56 = vld [vmem:[%s2458_s2 + $0x50] sm:$0xff]   ;;  %v2064_v58 = vld [vmem:[%s2458_s2 + $0x48] sm:$0xff]  }
 0x17c   : > { %v971_v47 = vadd.f32 %v966_v45, %v947_v44  ;;  %v945_v2 = vmul.f32 %v932_v61, %v921_v60  ;;  %v972_v11 = vmax.f32 %v968_v8, 0.0 }
 0x17e   : > { %v975_v51 = vmax.f32 %v971_v47, 0.0  ;;  %v969_v6 = vadd.f32 %v956_v4, %v945_v2  ;;  %v2060_v47 = vld [vmem:[%s2458_s2 + $0x28] sm:$0xff]   ;;  %v2066_v2 = vld [vmem:[%s2458_s2 + $0x58] sm:$0xff]  }
 0x180   : > { %v2296_v55 = vpack.c.bf16 %v975_v51, %v974_v50  ;;  %v973_v10 = vmax.f32 %v969_v6, 0.0  ;;  %v2063_v51 = vld [vmem:[%s2458_s2 + $0x40] sm:$0xff]   ;;  %v2068_v6 = vld [vmem:[%s2458_s2 + $0x68] sm:$0xff]  }
 0x182   : > { %1006 = vrot.lane.b32.xlu0 %v2296_v55, %s2080_s10  ;;  %1002 = vrot.lane.b32.xlu1 %v2296_v55, %s2079_s9  ;;  %v2326_v12 = vpack.c.bf16 %v973_v10, %v972_v11 }
 0x186   : > { %986 = vrot.lane.b32.xlu0 %v2296_v55, %s2082_s14  ;;  %982 = vrot.lane.b32.xlu1 %v2296_v55, %s2081_s13 }
 0x18a   : > { %1157 = vrot.lane.b32.xlu0 %v2296_v55, %s2084_s16  ;;  %1153 = vrot.lane.b32.xlu1 %v2296_v55, %s2083_s15 }
 0x18e   : > { %1321 = vrot.lane.b32.xlu0 %v2296_v55, %s2086_s18  ;;  %1317 = vrot.lane.b32.xlu1 %v2296_v55, %s2085_s17 }
 0x192   : > { %1411 = vrot.lane.b32.xlu0 %v2296_v55, %s2088_s20  ;;  %1407 = vrot.lane.b32.xlu1 %v2296_v55, %s2087_s19 }
 0x196   : > { %1004 = vrot.lane.b32.xlu0 %v2326_v12, %s2080_s10  ;;  %1000 = vrot.lane.b32.xlu1 %v2326_v12, %s2079_s9  ;;  %s278_s10 = scalar_lea.vmem %s2463_s7, %s2468_s29 }
 0x19a   : > { %984 = vrot.lane.b32.xlu0 %v2326_v12, %s2082_s14  ;;  %980 = vrot.lane.b32.xlu1 %v2326_v12, %s2081_s13 }
 0x19e   : > { %1155 = vrot.lane.b32.xlu0 %v2326_v12, %s2084_s16  ;;  %1151 = vrot.lane.b32.xlu1 %v2326_v12, %s2083_s15 }
 0x1a2   : > { %1501 = vrot.lane.b32.xlu0 %v2296_v55, %s2090_s22  ;;  %1497 = vrot.lane.b32.xlu1 %v2296_v55, %s2467_s30 }
 0x1a6   : > { %1319 = vrot.lane.b32.xlu0 %v2326_v12, %s2086_s18  ;;  %1315 = vrot.lane.b32.xlu1 %v2326_v12, %s2085_s17 }
 0x1aa   : > { %1409 = vrot.lane.b32.xlu0 %v2326_v12, %s2088_s20  ;;  %1405 = vrot.lane.b32.xlu1 %v2326_v12, %s2087_s19 }
 0x1ae   : > { %1499 = vrot.lane.b32.xlu0 %v2326_v12, %s2090_s22  ;;  %1495 = vrot.lane.b32.xlu1 %v2326_v12, %s2467_s30 }
 0x1b2   : > { %1592 = vperm.xlu0 %2037, %v293_v13   ;;  %1587 = vperm.xlu1 %2038, %v292_v14  }
 0x1b6   : > { %1602 = vperm.xlu0 %2037, %v295_v15   ;;  %1597 = vperm.xlu1 %2038, %v294_v16  }
 0x1ba   : > { %1616 = vperm.xlu0 %2037, %v297_v17   ;;  %1611 = vperm.xlu1 %2038, %v296_v18  }
 0x1be   : > { %1626 = vperm.xlu0 %2037, %v299_v19   ;;  %1621 = vperm.xlu1 %2038, %v298_v20  }
 0x1f4   : > { %v1007_v21 = vpop.permute.xlu0 %1006  ;;  %v1003_v22 = vpop.permute.xlu1 %1002 }
 0x1f5   : > { %v1014_v23 = vsel %vm339_vm1, %v1003_v22, %v1007_v21 }
 0x1f6   : > { %1960 = vmatprep.subr.bf16.mxu1 %v1014_v23 }
 0x1f7   : > { %1961 = vmatpush3.bf16.msra.mxu1 %v1014_v23 }
 0x1f8   : > { %v987_v24 = vpop.permute.xlu0 %986  ;;  %v983_v25 = vpop.permute.xlu1 %982 }
 0x1f9   : > { %v994_v26 = vsel %vm318_vm2, %v983_v25, %v987_v24 }
 0x1fa   : > { %1968 = vmatprep.subr.bf16.mxu0 %v994_v26 }
 0x1fb   : > { %1969 = vmatpush3.bf16.msra.mxu0 %v994_v26 }
 0x1fc   : > { %v1158_v27 = vpop.permute.xlu0 %1157  ;;  %v1154_v28 = vpop.permute.xlu1 %1153 }
 0x1fd   : > { %v1165_v37 = vsel %vm492_vm3, %v1154_v28, %v1158_v27 }
 0x200   : > { %v1322_v29 = vpop.permute.xlu0 %1321  ;;  %v1318_v30 = vpop.permute.xlu1 %1317 }
 0x201   : > { %v1329_v48 = vsel %vm659_vm4, %v1318_v30, %v1322_v29 }
 0x204   : > { %v1412_v31 = vpop.permute.xlu0 %1411  ;;  %v1408_v32 = vpop.permute.xlu1 %1407 }
 0x205   : > { %v1419_v53 = vsel %vm750_vm5, %v1408_v32, %v1412_v31 }
 0x208   : > { %v1005_v33 = vpop.permute.xlu0 %1004  ;;  %v1001_v34 = vpop.permute.xlu1 %1000 }
 0x209   : > { %v1010_v35 = vsel %vm339_vm1, %v1001_v34, %v1005_v33 }
 0x20a   : > { %1962 = vmatprep.subr.bf16.mxu1 %v1010_v35 }
 0x20b   : > { %1963 = vmatpush3.bf16.msra.mxu1 %v1010_v35 }
 0x20c   : > { %v985_v38 = vpop.permute.xlu0 %984  ;;  %1976 = vmatprep.subr.bf16.mxu1 %v1165_v37  ;;  %v981_v39 = vpop.permute.xlu1 %980 }
 0x20d   : > { %v990_v41 = vsel %vm318_vm2, %v981_v39, %v985_v38 }
 0x20e   : > { %1965 = vmatmul.mubr.msk.bf16.vlgmr.msra.gmra.mxu1 %vm363_vm0, %v2056_v36  ;;  %1970 = vmatprep.subr.bf16.mxu0 %v990_v41 }
 0x20f   : > { %1971 = vmatpush3.bf16.msra.mxu0 %v990_v41  ;;  %1977 = vmatpush3.bf16.msra.mxu1 %v1165_v37 }
 0x210   : > { %v1156_v43 = vpop.permute.xlu0 %1155  ;;  %1984 = vmatprep.subr.bf16.mxu0 %v2296_v55  ;;  %v1152_v44 = vpop.permute.xlu1 %1151  ;;  %1980 = vmatprep.mubr.msk.bf16.mxu1 %vm363_vm0, %v2059_v40 }
 0x211   : > { %v1161_v45 = vsel %vm492_vm3, %v1152_v44, %v1156_v43 }
 0x212   : > { %1973 = vmatmul.mubr.msk.bf16.vlgmr.msra.gmra.mxu0 %vm363_vm0, %v2058_v42  ;;  %1978 = vmatprep.subr.bf16.mxu1 %v1161_v45 }
 0x213   : > { %1979 = vmatpush3.bf16.msra.mxu1 %v1161_v45  ;;  %1985 = vmatpush3.bf16.msra.mxu0 %v2296_v55 }
 0x214   : > { %v1502_v49 = vpop.permute.xlu0 %1501  ;;  %1986 = vmatprep.subr.bf16.mxu0 %v2326_v12  ;;  %1992 = vmatprep.subr.bf16.mxu1 %v1329_v48  ;;  %v1498_v50 = vpop.permute.xlu1 %1497 }
 0x215   : > { %1988 = vmatprep.mubr.msk.bf16.mxu0 %vm363_vm0, %v2061_v46  ;;  %v1509_v59 = vsel %vm841_vm6, %v1498_v50, %v1502_v49 }
 0x216   : > { %1981 = vmatmul.mubr.msk.bf16.vlgmr.msra.gmra.mxu1 %vm363_vm0, %v2060_v47 }
 0x217   : > { %1987 = vmatpush3.bf16.msra.mxu0 %v2326_v12  ;;  %1993 = vmatpush3.bf16.msra.mxu1 %v1329_v48 }
 0x218   : > { %v1320_v54 = vpop.permute.xlu0 %1319  ;;  %2000 = vmatprep.subr.bf16.mxu0 %v1419_v53  ;;  %v1316_v55 = vpop.permute.xlu1 %1315  ;;  %1996 = vmatprep.mubr.msk.bf16.mxu1 %vm363_vm0, %v2063_v51 }
 0x219   : > { %v1325_v57 = vsel %vm659_vm4, %v1316_v55, %v1320_v54  ;;  %v1635_v55 = vunpack.c.l.bf16 %v2148_v0 }
 0x21a   : > { %1989 = vmatmul.mubr.msk.bf16.vlgmr.msra.gmra.mxu0 %vm363_vm0, %v2062_v52  ;;  %1994 = vmatprep.subr.bf16.mxu1 %v1325_v57 }
 0x21b   : > { %1995 = vmatpush3.bf16.msra.mxu1 %v1325_v57  ;;  %2001 = vmatpush3.bf16.msra.mxu0 %v1419_v53 }
 0x21c   : > { %v1410_v60 = vpop.permute.xlu0 %1409  ;;  %2008 = vmatprep.subr.bf16.mxu1 %v1509_v59  ;;  %v1406_v61 = vpop.permute.xlu1 %1405  ;;  %2004 = vmatprep.mubr.msk.bf16.mxu0 %vm363_vm0, %v2065_v56 }
 0x21d   : > { %v1415_v63 = vsel %vm750_vm5, %v1406_v61, %v1410_v60 }
 0x21e   : > { %1997 = vmatmul.mubr.msk.bf16.vlgmr.msra.gmra.mxu1 %vm363_vm0, %v2064_v58  ;;  %2002 = vmatprep.subr.bf16.mxu0 %v1415_v63 }
 0x21f   : > { %2003 = vmatpush3.bf16.msra.mxu0 %v1415_v63  ;;  %2009 = vmatpush3.bf16.msra.mxu1 %v1509_v59  ;;  %v1633_v63 = vunpack.c.l.bf16 %v2150_v1 }
 0x220   : > { %v1500_v3 = vpop.permute.xlu0 %1499  ;;  %v1496_v4 = vpop.permute.xlu1 %1495  ;;  %2012 = vmatprep.mubr.msk.bf16.mxu1 %vm363_vm0, %v2067_v62 }
 0x221   : > { %v1505_v5 = vsel %vm841_vm6, %v1496_v4, %v1500_v3 }
 0x222   : > { %2005 = vmatmul.mubr.msk.bf16.vlgmr.msra.gmra.mxu0 %vm363_vm0, %v2066_v2  ;;  %2010 = vmatprep.subr.bf16.mxu1 %v1505_v5 }
 0x223   : > { %2011 = vmatpush3.bf16.msra.mxu1 %v1505_v5 }
 0x226   : > { %2013 = vmatmul.mubr.msk.bf16.vlgmr.msra.gmra.mxu1 %vm363_vm0, %v2068_v6 }
 0x22d   : > { %v1588_v15 = vpop.permute.xlu1 %1587  ;;  %v1593_v20 = vpop.permute.xlu0 %1592 }
 0x231   : > { %v1598_v23 = vpop.permute.xlu1 %1597  ;;  %v1603_v31 = vpop.permute.xlu0 %1602 }
 0x235   : > { %v1612_v37 = vpop.permute.xlu1 %1611  ;;  %v1617_v50 = vpop.permute.xlu0 %1616 }
 0x239   : > { %v1622_v62 = vpop.permute.xlu1 %1621 }
 0x2ce   : > { %v1966_v7 = vpop.f32.mrf.mxu1 }
 0x2d0   : > { %v1071_v8 = vpop.f32.mrf.mxu1 }
 0x2d2   : > { %v1967_v9 = vpop.f32.mrf.mxu1  ;;  %v1974_v10 = vpop.f32.mrf.mxu0 }
 0x2d3   : > { %v1145_v24 = vadd.f32 %v1974_v10, %v1966_v7  ;;  %v1636_v7 = vunpack.c.h.bf16 %v2148_v0 }
 0x2d4   : > { %v1074_v11 = vpop.f32.mrf.mxu1  ;;  %v1136_v12 = vpop.f32.mrf.mxu0 }
 0x2d5   : > { %v1137_v27 = vadd.f32 %v1136_v12, %v1071_v8 }
 0x2d6   : > { %v1975_v13 = vpop.f32.mrf.mxu0  ;;  %v1982_v14 = vpop.f32.mrf.mxu1 }
 0x2d7   : > { %v1239_v28 = vadd.f32 %v1982_v14, %v1145_v24  ;;  %v1148_v32 = vadd.f32 %v1975_v13, %v1967_v9  ;;  %v1627_v13 = vpop.permute.xlu0 %1626  ;;  %v1634_v14 = vunpack.c.h.bf16 %v2150_v1 }
 0x2d8   : > { %v1139_v16 = vpop.f32.mrf.mxu0  ;;  %v1222_v17 = vpop.f32.mrf.mxu1 }
 0x2d9   : > { %v1237_v33 = vadd.f32 %v1222_v17, %v1137_v27  ;;  %v1140_v38 = vadd.f32 %v1139_v16, %v1074_v11 }
 0x2da   : > { %v1983_v18 = vpop.f32.mrf.mxu1  ;;  %v1990_v19 = vpop.f32.mrf.mxu0 }
 0x2db   : > { %v1313_v34 = vadd.f32 %v1990_v19, %v1239_v28  ;;  %v1240_v39 = vadd.f32 %v1983_v18, %v1148_v32 }
 0x2dc   : > { %v1225_v21 = vpop.f32.mrf.mxu1  ;;  %v1296_v22 = vpop.f32.mrf.mxu0 }
 0x2dd   : > { %v1311_v40 = vadd.f32 %v1296_v22, %v1237_v33  ;;  %v1238_v44 = vadd.f32 %v1225_v21, %v1140_v38 }
 0x2de   : > { %v1991_v25 = vpop.f32.mrf.mxu0  ;;  %v1998_v26 = vpop.f32.mrf.mxu1 }
 0x2df   : > { %v1403_v41 = vadd.f32 %v1998_v26, %v1313_v34  ;;  %v1314_v45 = vadd.f32 %v1991_v25, %v1240_v39 }
 0x2e0   : > { %v1299_v29 = vpop.f32.mrf.mxu0  ;;  %v1386_v30 = vpop.f32.mrf.mxu1 }
 0x2e1   : > { %v1401_v46 = vadd.f32 %v1386_v30, %v1311_v40  ;;  %v1312_v51 = vadd.f32 %v1299_v29, %v1238_v44 }
 0x2e2   : > { %v1999_v35 = vpop.f32.mrf.mxu1  ;;  %v2006_v36 = vpop.f32.mrf.mxu0 }
 0x2e3   : > { %v1493_v47 = vadd.f32 %v2006_v36, %v1403_v41  ;;  %v1404_v52 = vadd.f32 %v1999_v35, %v1314_v45 }
 0x2e4   : > { %v1389_v42 = vpop.f32.mrf.mxu1  ;;  %v1476_v43 = vpop.f32.mrf.mxu0 }
 0x2e5   : > { %v1491_v53 = vadd.f32 %v1476_v43, %v1401_v46  ;;  %v1402_v58 = vadd.f32 %v1389_v42, %v1312_v51 }
 0x2e6   : > { %v2007_v48 = vpop.f32.mrf.mxu0  ;;  %v2014_v49 = vpop.f32.mrf.mxu1 }
 0x2e7   : > { %v1583_v54 = vadd.f32 %v2014_v49, %v1493_v47  ;;  %v1494_v59 = vadd.f32 %v2007_v48, %v1404_v52 }
 0x2e8   : > { %v1479_v56 = vpop.f32.mrf.mxu0  ;;  %v1566_v57 = vpop.f32.mrf.mxu1 }
 0x2e9   : > { %v1607_v60 = vmul.f32 %v1598_v23, %v1583_v54  ;;  %v1581_v61 = vadd.f32 %v1566_v57, %v1491_v53  ;;  %v1492_v4 = vadd.f32 %v1479_v56, %v1402_v58 }
 0x2ea   : > { %v2015_v2 = vpop.f32.mrf.mxu1 }
 0x2eb   : > { %v1631_v3 = vadd.f32 %v1622_v62, %v1607_v60  ;;  %v1605_v5 = vmul.f32 %v1588_v15, %v1581_v61  ;;  %v1584_v6 = vadd.f32 %v2015_v2, %v1494_v59 }
 0x2ec   : > { %v1569_v8 = vpop.f32.mrf.mxu1 }
 0x2ed   : > { %v1639_v9 = vadd.f32 %v1635_v55, %v1631_v3  ;;  %v1629_v10 = vadd.f32 %v1612_v37, %v1605_v5  ;;  %v1608_v11 = vmul.f32 %v1603_v31, %v1584_v6  ;;  %v1582_v12 = vadd.f32 %v1569_v8, %v1492_v4 }
 0x2ef   : > { %v1643_v16 = vmax.f32 %v1639_v9, 0.0  ;;  %v1637_v17 = vadd.f32 %v1633_v63, %v1629_v10  ;;  %v1632_v18 = vadd.f32 %v1627_v13, %v1608_v11  ;;  %v1606_v19 = vmul.f32 %v1593_v20, %v1582_v12 }
 0x2f1   : > { %v1846_v15 = vpack.c.bf16 %v1643_v16, %v1643_v16  ;;  %v1641_v0 = vmax.f32 %v1637_v17, 0.0  ;;  %v1640_v21 = vadd.f32 %v1636_v7, %v1632_v18  ;;  %v1630_v22 = vadd.f32 %v1617_v50, %v1606_v19 }
 0x2f3   : > { %1664 = vst.msk [vmem:[%s278_s10 + $0x8] sm:$0xf] %vm1661_vm7, %v1846_v15  ;;  %v1844_v23 = vpack.c.bf16 %v1641_v0, %v1641_v0  ;;  %v1644_v24 = vmax.f32 %v1640_v21, 0.0  ;;  %v1638_v25 = vadd.f32 %v1634_v14, %v1630_v22 }
 0x2f5   : > { %1662 = vst.msk [vmem:[%s278_s10] sm:$0xf] %vm1661_vm7, %v1844_v23  ;;  %v1847_v1 = vpack.c.bf16 %v1644_v24, %v1644_v24  ;;  %v1642_v26 = vmax.f32 %v1638_v25, 0.0 }
 0x2f7   : > { %1665 = vst.msk [vmem:[%s278_s10 + $0xc] sm:$0xf] %vm1661_vm7, %v1847_v1  ;;  %v1845_v27 = vpack.c.bf16 %v1642_v26, %v1642_v26 }
 0x2f9   : > { %1663 = vst.msk [vmem:[%s278_s10 + $0x4] sm:$0xf] %vm1661_vm7, %v1845_v27 }
 0x2fa PF: > { %s17_s24 = sadd.s32 1, %s2077_s24  }
 0x2fb   : > { %p14_p4 = scmp.ge.s32.totalorder %s17_s24, 4  }
 0x2fd   :  { %16 = sbr.rel (!%p14_p4) target bundleno = 1 (0x1), region = 90 }

// kernel: model_forward.8
= control target key start
LH: loop header
LB: loop body
LE: loop exit
PB: predicated region body
PF: predicated region fallthrough
CT: control target
= control target key end

     0   :  { %s2284_s13 = smov 0   ;;  %s2616_s0 = inlined_call_operand.vmem [shape: bf16[2,16,16], index: 0, kind: input, shape index: {}]   ;;  %s2617_s1 = inlined_call_operand.vmem [shape: bf16[7,32,16], index: 1, kind: input, shape index: {}]   ;;  %s2618_s2 = inlined_call_operand.vmem [shape: bf16[7,32,32], index: 2, kind: input, shape index: {}]   ;;  %s2619_s3 = inlined_call_operand.vmem [shape: bf16[1,32,16], index: 3, kind: input, shape index: {}]   ;;  %s2620_s4 = inlined_call_operand.vmem [shape: f32[32,1], index: 4, kind: input, shape index: {}]   ;;  %s2621_s5 = inlined_call_operand.vmem [shape: f32[32,1], index: 5, kind: input, shape index: {}]   ;;  %s2622_s6 = inlined_call_operand.vmem [shape: f32[32,1], index: 6, kind: input, shape index: {}]   ;;  %s2623_s7 = inlined_call_operand.vmem [shape: f32[32,1], index: 7, kind: input, shape index: {}]   ;;  %s2624_s8 = inlined_call_operand.vmem [shape: f32[32,1], index: 8, kind: input, shape index: {}]   ;;  %s2625_s9 = inlined_call_operand.vmem [shape: f32[32,1], index: 9, kind: input, shape index: {}]   ;;  %s2626_s10 = inlined_call_operand.vmem [shape: bf16[2,32,16], index: 10, kind: output, shape index: {}]  }
   0x1 LB: > { %s1868_s14 = sadd.s32 4294967295, %s2214_s13   ;;  %p1872_p0 = scmp.ge.s32.totalorder %s2214_s13, 1  ;;  %s2214_s13 = sphi %s2284_s13, %s20_s13  }
   0x2   : > { %p312_p1 = scmp.lt.s32.totalorder %s2214_s13, 3 }
   0x4   : > { %p313_p2 = pnand %p1872_p0, %p312_p1 }
   0x5   : > { %p350_p3 = scmp.lt.s32.totalorder (!%p313_p2), %s1868_s14, 1  ;;  %s2216_s23 = smov (!%p313_p2), 115  }
   0x6   : > { %316 = sbr.rel (%p313_p2) target bundleno = 747 (0x2eb), region = 60  ;;  %s2217_s24 = smov (!%p313_p2), 114  }
   0x7   : > { %s2218_s25 = smov (!%p313_p2), 3   ;;  %s2219_s26 = smov (!%p313_p2), 2  }
   0x8   : > { %s2220_s27 = smov (!%p313_p2), 1   ;;  %s2221_s28 = smov (!%p313_p2), 113  }
   0x9   : > { %s2222_s29 = smov (!%p313_p2), 15   ;;  %s2223_s30 = smov (!%p313_p2), 127  }
   0xa   : > { %s2633_s11 = smov (!%p313_p2), 14   ;;  %s2629_s12 = smov (!%p313_p2), 126  }
   0xb   : > { %v2178_v0 = vld [vmem:[%s2617_s1 + $0x10] sm:$0xff]   ;;  %v2179_v1 = vld [vmem:[%s2617_s1] sm:$0xff]   ;;  %s2640_s14 = smov (!%p350_p3, %s1868_s14), 1  ;;  %vm429_vm0 = vcmask 130048   ;;  %s2627_s15 = smov 13   ;;  %v2228_v3 = vmov 0  }
   0xc   : > { %2052 = vmatprep.mubr.msk.bf16.mxu0 %vm429_vm0, %v2178_v0  ;;  %2058 = vmatprep.mubr.msk.bf16.mxu1 %vm429_vm0, %v2179_v1  ;;  %s1992_s19 = sshll.u32 %s2640_s14, 3  ;;  %s2631_s16 = smov 125   ;;  %v366_v4 = vld [vmem:[%s2620_s4 + $0x18] sm:$0xff]  ;;  %v365_v5 = vld [vmem:[%s2620_s4 + $0x10] sm:$0xff]  ;;  %v363_v8 = vld [vmem:[%s2620_s4] sm:$0xff]  ;;  %vm409_vm1 = vcmask 15360  }
   0xd   : > { %s354_s22 = scalar_lea.vmem %s2616_s0, %s1992_s19  ;;  %2176 = vset.pattern.permute.xlu1 %v2228_v3  ;;  %2175 = vset.pattern.permute.xlu0 %v2228_v3  ;;  %v369_v6 = vld [vmem:[%s2621_s5 + $0x10] sm:$0xff]  ;;  %v370_v7 = vld [vmem:[%s2621_s5 + $0x18] sm:$0xff]  ;;  %v364_v9 = vld [vmem:[%s2620_s4 + $0x8] sm:$0xff]  ;;  %vm396_vm2 = vcmask 23552   ;;  %vm554_vm3 = vcmask 7168   ;;  %vm712_vm4 = vcmask 121856  }
   0xe   : > { %v2306_v2 = vld [vmem:[%s354_s22] sm:$0xff]   ;;  %v368_v11 = vld [vmem:[%s2621_s5 + $0x8] sm:$0xff]  ;;  %v2180_v18 = vld [vmem:[%s2617_s1 + $0x18] sm:$0xff]   ;;  %vm795_vm5 = vcmask 113664   ;;  %vm878_vm6 = vcmask 105472   ;;  %vm1064_vm7 = vcmask 261120  }
   0xf   : > { %392 = vrot.lane.b32.xlu1 %v2306_v2, %s2216_s23  ;;  %405 = vrot.lane.b32.xlu0 %v2306_v2, %s2217_s24  ;;  %v367_v10 = vld [vmem:[%s2621_s5] sm:$0xff]  ;;  %v2181_v19 = vld [vmem:[%s2617_s1 + $0x8] sm:$0xff]   ;;  %s2635_s21 = smov 14   ;;  %s2636_s22 = smov 126   ;;  %vm1808_vm8 = vcmask 125952  }
  0x10   : > { %v2182_v22 = vld [vmem:[%s2617_s1 + $0x20] sm:$0xff]   ;;  %v2183_v24 = vld [vmem:[%s2617_s1 + $0x30] sm:$0xff]   ;;  %v2184_v28 = vld [vmem:[%s2617_s1 + $0x28] sm:$0xff]  }
  0x11   : > { %v2185_v29 = vld [vmem:[%s2617_s1 + $0x38] sm:$0xff]   ;;  %v2186_v32 = vld [vmem:[%s2617_s1 + $0x40] sm:$0xff]   ;;  %v2187_v34 = vld [vmem:[%s2617_s1 + $0x50] sm:$0xff]  }
  0x12   : > { %v2188_v38 = vld [vmem:[%s2617_s1 + $0x48] sm:$0xff]   ;;  %v2189_v39 = vld [vmem:[%s2617_s1 + $0x58] sm:$0xff]   ;;  %v2190_v40 = vld [vmem:[%s2617_s1 + $0x60] sm:$0xff]  }
  0x13   : > { %394 = vrot.lane.b32.xlu1 %v2306_v2, %s2218_s25  ;;  %407 = vrot.lane.b32.xlu0 %v2306_v2, %s2219_s26  ;;  %v2191_v41 = vld [vmem:[%s2617_s1 + $0x68] sm:$0xff]  }
  0x17   : > { %552 = vrot.lane.b32.xlu1 %v2306_v2, %s2220_s27  ;;  %550 = vrot.lane.b32.xlu0 %v2306_v2, %s2221_s28 }
  0x1b   : > { %710 = vrot.lane.b32.xlu1 %v2306_v2, %s2222_s29  ;;  %708 = vrot.lane.b32.xlu0 %v2306_v2, %s2223_s30 }
  0x1f   : > { %793 = vrot.lane.b32.xlu1 %v2306_v2, %s2633_s11  ;;  %791 = vrot.lane.b32.xlu0 %v2306_v2, %s2629_s12  ;;  %s1993_s11 = sshll.u32 %s2640_s14, 4 }
  0x23   : > { %876 = vrot.lane.b32.xlu1 %v2306_v2, %s2627_s15  ;;  %874 = vrot.lane.b32.xlu0 %v2306_v2, %s2631_s16  ;;  %s359_s16 = scalar_lea.vmem %s2626_s10, %s1993_s11 }
  0x27   : > { %974 = vperm.xlu1 %2176, %v366_v4   ;;  %969 = vperm.xlu0 %2175, %v365_v5  }
  0x2b   : > { %993 = vperm.xlu1 %2176, %v369_v6   ;;  %998 = vperm.xlu0 %2175, %v370_v7  }
  0x2f   : > { %959 = vperm.xlu1 %2176, %v363_v8   ;;  %964 = vperm.xlu0 %2175, %v364_v9  }
  0x33   : > { %983 = vperm.xlu1 %2176, %v367_v10   ;;  %988 = vperm.xlu0 %2175, %v368_v11  }
  0x81   : > { %v393_v12 = vpop.permute.xlu1 %392  ;;  %v406_v13 = vpop.permute.xlu0 %405 }
  0x85   : > { %v395_v14 = vpop.permute.xlu1 %394  ;;  %v408_v15 = vpop.permute.xlu0 %407 }
  0x86   : > { %v412_v16 = vsel %vm409_vm1, %v406_v13, %v408_v15  ;;  %v399_v17 = vsel %vm396_vm2, %v393_v12, %v395_v14 }
  0x87   : > { %2050 = vmatprep.subr.bf16.mxu0 %v412_v16  ;;  %2056 = vmatprep.subr.bf16.mxu1 %v399_v17 }
  0x88   : > { %2051 = vmatpush3.bf16.msra.mxu0 %v412_v16  ;;  %2057 = vmatpush3.bf16.msra.mxu1 %v399_v17 }
  0x89   : > { %v553_v20 = vpop.permute.xlu1 %552  ;;  %v551_v21 = vpop.permute.xlu0 %550  ;;  %2068 = vmatprep.subr.bf16.mxu1 %v2306_v2 }
  0x8a   : > { %v557_v23 = vsel %vm554_vm3, %v551_v21, %v553_v20 }
  0x8b   : > { %2053 = vmatmul.mubr.msk.bf16.vlgmr.msra.gmra.mxu0 %vm429_vm0, %v2180_v18  ;;  %2059 = vmatmul.mubr.msk.bf16.vlgmr.msra.gmra.mxu1 %vm429_vm0, %v2181_v19 }
  0x8c   : > { %2062 = vmatprep.subr.bf16.mxu0 %v557_v23  ;;  %2069 = vmatpush3.bf16.msra.mxu1 %v2306_v2 }
  0x8d   : > { %2063 = vmatpush3.bf16.msra.mxu0 %v557_v23  ;;  %v711_v25 = vpop.permute.xlu1 %710  ;;  %v709_v26 = vpop.permute.xlu0 %708  ;;  %2064 = vmatprep.mubr.msk.bf16.mxu0 %vm429_vm0, %v2182_v22 }
  0x8e   : > { %2070 = vmatprep.mubr.msk.bf16.mxu1 %vm429_vm0, %v2183_v24  ;;  %v715_v27 = vsel %vm712_vm4, %v709_v26, %v711_v25 }
  0x8f   : > { %2074 = vmatprep.subr.bf16.mxu0 %v715_v27 }
  0x91   : > { %v794_v30 = vpop.permute.xlu1 %793  ;;  %v792_v31 = vpop.permute.xlu0 %791 }
  0x92   : > { %v798_v33 = vsel %vm795_vm5, %v792_v31, %v794_v30 }
  0x93   : > { %2065 = vmatmul.mubr.msk.bf16.vlgmr.msra.gmra.mxu0 %vm429_vm0, %v2184_v28  ;;  %2071 = vmatmul.mubr.msk.bf16.vlgmr.msra.gmra.mxu1 %vm429_vm0, %v2185_v29 }
  0x94   : > { %2075 = vmatpush3.bf16.msra.mxu0 %v715_v27  ;;  %2080 = vmatprep.subr.bf16.mxu1 %v798_v33 }
  0x95   : > { %2081 = vmatpush3.bf16.msra.mxu1 %v798_v33  ;;  %v877_v35 = vpop.permute.xlu1 %876  ;;  %v875_v36 = vpop.permute.xlu0 %874  ;;  %2076 = vmatprep.mubr.msk.bf16.mxu0 %vm429_vm0, %v2186_v32 }
  0x96   : > { %2082 = vmatprep.mubr.msk.bf16.mxu1 %vm429_vm0, %v2187_v34  ;;  %v881_v37 = vsel %vm878_vm6, %v875_v36, %v877_v35 }
  0x97   : > { %2086 = vmatprep.subr.bf16.mxu0 %v881_v37 }
  0x9b   : > { %2077 = vmatmul.mubr.msk.bf16.vlgmr.msra.gmra.mxu0 %vm429_vm0, %v2188_v38  ;;  %2083 = vmatmul.mubr.msk.bf16.vlgmr.msra.gmra.mxu1 %vm429_vm0, %v2189_v39 }
  0x9c   : > { %2087 = vmatpush3.bf16.msra.mxu0 %v881_v37  ;;  %2088 = vmatprep.mubr.msk.bf16.mxu0 %vm429_vm0, %v2190_v40 }
  0xa2   : > { %v975_v11 = vpop.permute.xlu1 %974  ;;  %v970_v15 = vpop.permute.xlu0 %969 }
  0xa3   : > { %2089 = vmatmul.mubr.msk.bf16.vlgmr.msra.gmra.mxu0 %vm429_vm0, %v2191_v41 }
  0xa6   : > { %v994_v25 = vpop.permute.xlu1 %993  ;;  %v999_v30 = vpop.permute.xlu0 %998 }
  0xaa   : > { %v965_v41 = vpop.permute.xlu0 %964 }
 0x14b   : > { %v2054_v42 = vpop.f32.mrf.mxu0  ;;  %v2060_v43 = vpop.f32.mrf.mxu1 }
 0x14c   : > { %v544_v54 = vadd.f32 %v2060_v43, %v2054_v42  ;;  %v960_v43 = vpop.permute.xlu1 %959 }
 0x14d   : > { %v470_v44 = vpop.f32.mrf.mxu0  ;;  %v535_v45 = vpop.f32.mrf.mxu1 }
 0x14e   : > { %v536_v13 = vadd.f32 %v535_v45, %v470_v44 }
 0x14f   : > { %v2055_v46 = vpop.f32.mrf.mxu0  ;;  %v2061_v47 = vpop.f32.mrf.mxu1 }
 0x150   : > { %v547_v60 = vadd.f32 %v2061_v47, %v2055_v46  ;;  %v989_v46 = vpop.permute.xlu0 %988  ;;  %v2192_v47 = vld [vmem:[%s2618_s2 + $0x10] sm:$0xff]  }
 0x151   : > { %v473_v48 = vpop.f32.mrf.mxu0  ;;  %v538_v49 = vpop.f32.mrf.mxu1  ;;  %2096 = vmatprep.mubr.msk.bf16.mxu1 %vm1064_vm7, %v2192_v47  ;;  %v2203_v47 = vld [vmem:[%s2618_s2 + $0x58] sm:$0xff]  }
 0x152   : > { %v539_v8 = vadd.f32 %v538_v49, %v473_v48  ;;  %v984_v49 = vpop.permute.xlu1 %983 }
 0x153   : > { %v2066_v50 = vpop.f32.mrf.mxu0  ;;  %v2072_v51 = vpop.f32.mrf.mxu1 }
 0x154   : > { %v631_v57 = vadd.f32 %v2066_v50, %v544_v54 }
 0x155   : > { %v614_v52 = vpop.f32.mrf.mxu0  ;;  %v689_v53 = vpop.f32.mrf.mxu1 }
 0x156   : > { %v706_v62 = vadd.f32 %v2072_v51, %v631_v57  ;;  %v629_v19 = vadd.f32 %v614_v52, %v536_v13  ;;  %v2194_v51 = vld [vmem:[%s2618_s2] sm:$0xff]   ;;  %v374_v57 = vld [vmem:[%s2622_s6 + $0x18] sm:$0xff] }
 0x157   : > { %v2067_v55 = vpop.f32.mrf.mxu0  ;;  %v2073_v56 = vpop.f32.mrf.mxu1  ;;  %2104 = vmatprep.mubr.msk.bf16.mxu0 %vm1064_vm7, %v2194_v51 }
 0x158   : > { %v632_v63 = vadd.f32 %v2067_v55, %v547_v60  ;;  %v704_v26 = vadd.f32 %v689_v53, %v629_v19  ;;  %v372_v55 = vld [vmem:[%s2622_s6 + $0x8] sm:$0xff]  ;;  %v379_v60 = vld [vmem:[%s2624_s8] sm:$0xff] }
 0x159   : > { %v617_v58 = vpop.f32.mrf.mxu0  ;;  %v692_v59 = vpop.f32.mrf.mxu1 }
 0x15a   : > { %v707_v5 = vadd.f32 %v2073_v56, %v632_v63  ;;  %v630_v14 = vadd.f32 %v617_v58, %v539_v8  ;;  %v371_v56 = vld [vmem:[%s2622_s6] sm:$0xff]  ;;  %v373_v58 = vld [vmem:[%s2622_s6 + $0x10] sm:$0xff]  ;;  %v376_v63 = vld [vmem:[%s2623_s7 + $0x8] sm:$0xff] }
 0x15b   : > { %v2078_v61 = vpop.f32.mrf.mxu0  ;;  %v2084_v0 = vpop.f32.mrf.mxu1 }
 0x15c   : > { %v789_v3 = vadd.f32 %v2078_v61, %v706_v62  ;;  %v705_v23 = vadd.f32 %v692_v59, %v630_v14  ;;  %v380_v59 = vld [vmem:[%s2624_s8 + $0x8] sm:$0xff]  ;;  %v382_v61 = vld [vmem:[%s2624_s8 + $0x18] sm:$0xff]  ;;  %v381_v62 = vld [vmem:[%s2624_s8 + $0x10] sm:$0xff] }
 0x15d   : > { %v772_v1 = vpop.f32.mrf.mxu0  ;;  %v855_v6 = vpop.f32.mrf.mxu1 }
 0x15e   : > { %v872_v9 = vadd.f32 %v2084_v0, %v789_v3  ;;  %v787_v31 = vadd.f32 %v772_v1, %v704_v26  ;;  %v375_v0 = vld [vmem:[%s2623_s7] sm:$0xff]  ;;  %v378_v1 = vld [vmem:[%s2623_s7 + $0x18] sm:$0xff]  ;;  %v377_v3 = vld [vmem:[%s2623_s7 + $0x10] sm:$0xff] }
 0x15f   : > { %v2079_v4 = vpop.f32.mrf.mxu0  ;;  %v2085_v17 = vpop.f32.mrf.mxu1 }
 0x160   : > { %v790_v10 = vadd.f32 %v2079_v4, %v707_v5  ;;  %v870_v38 = vadd.f32 %v855_v6, %v787_v31  ;;  %v384_v4 = vld [vmem:[%s2625_s9 + $0x8] sm:$0xff]  ;;  %v383_v5 = vld [vmem:[%s2625_s9] sm:$0xff]  ;;  %v386_v6 = vld [vmem:[%s2625_s9 + $0x18] sm:$0xff] }
 0x161   : > { %v775_v7 = vpop.f32.mrf.mxu0  ;;  %v858_v33 = vpop.f32.mrf.mxu1 }
 0x162   : > { %v873_v20 = vadd.f32 %v2085_v17, %v790_v10  ;;  %v788_v27 = vadd.f32 %v775_v7, %v705_v23  ;;  %v385_v7 = vld [vmem:[%s2625_s9 + $0x10] sm:$0xff] }
 0x163   : > { %v2090_v12 = vpop.f32.mrf.mxu0 }
 0x164   : > { %v955_v16 = vadd.f32 %v2090_v12, %v872_v9  ;;  %v871_v35 = vadd.f32 %v858_v33, %v788_v27  ;;  %v2195_v27 = vld [vmem:[%s2618_s2 + $0x8] sm:$0xff]  }
 0x165   : > { %v938_v18 = vpop.f32.mrf.mxu0 }
 0x166   : > { %v979_v21 = vmul.f32 %v970_v15, %v955_v16  ;;  %v953_v42 = vadd.f32 %v938_v18, %v870_v38 }
 0x167   : > { %v2091_v22 = vpop.f32.mrf.mxu0 }
 0x168   : > { %v956_v24 = vadd.f32 %v2091_v22, %v873_v20  ;;  %v1003_v28 = vadd.f32 %v994_v25, %v979_v21  ;;  %v977_v45 = vmul.f32 %v960_v43, %v953_v42  ;;  %v2193_v21 = vld [vmem:[%s2618_s2 + $0x18] sm:$0xff]   ;;  %v2196_v25 = vld [vmem:[%s2618_s2 + $0x20] sm:$0xff]  }
 0x169   : > { %v941_v34 = vpop.f32.mrf.mxu0 }
 0x16a   : > { %v980_v29 = vmul.f32 %v975_v11, %v956_v24  ;;  %v1007_v36 = vmax.f32 %v1003_v28, 0.0  ;;  %v954_v40 = vadd.f32 %v941_v34, %v871_v35  ;;  %v1001_v50 = vadd.f32 %v984_v49, %v977_v45  ;;  %v2197_v28 = vld [vmem:[%s2618_s2 + $0x30] sm:$0xff]   ;;  %v2198_v34 = vld [vmem:[%s2618_s2 + $0x28] sm:$0xff]   ;;  %v2199_v35 = vld [vmem:[%s2618_s2 + $0x38] sm:$0xff]  }
 0x16c   : > { %v1004_v32 = vadd.f32 %v999_v30, %v980_v29  ;;  %v978_v44 = vmul.f32 %v965_v41, %v954_v40  ;;  %v1005_v53 = vmax.f32 %v1001_v50, 0.0  ;;  %v2200_v40 = vld [vmem:[%s2618_s2 + $0x40] sm:$0xff]   ;;  %v2201_v41 = vld [vmem:[%s2618_s2 + $0x50] sm:$0xff]  }
 0x16d   : > { %v2204_v50 = vld [vmem:[%s2618_s2 + $0x60] sm:$0xff]  }
 0x16e   : > { %v1008_v37 = vmax.f32 %v1004_v32, 0.0  ;;  %v1002_v48 = vadd.f32 %v989_v46, %v978_v44  ;;  %v2202_v46 = vld [vmem:[%s2618_s2 + $0x48] sm:$0xff]  }
 0x170   : > { %v2412_v39 = vpack.c.bf16 %v1008_v37, %v1007_v36  ;;  %v1006_v52 = vmax.f32 %v1002_v48, 0.0 }
 0x172   : > { %1039 = vrot.lane.b32.xlu0 %v2412_v39, %s2219_s26  ;;  %1035 = vrot.lane.b32.xlu1 %v2412_v39, %s2217_s24  ;;  %v2438_v54 = vpack.c.bf16 %v1006_v52, %v1005_v53  ;;  %v2205_v52 = vld [vmem:[%s2619_s3] sm:$0xff]  }
 0x176   : > { %1019 = vrot.lane.b32.xlu0 %v2412_v39, %s2218_s25  ;;  %1015 = vrot.lane.b32.xlu1 %v2412_v39, %s2216_s23 }
 0x17a   : > { %1191 = vrot.lane.b32.xlu0 %v2412_v39, %s2220_s27  ;;  %1187 = vrot.lane.b32.xlu1 %v2412_v39, %s2221_s28 }
 0x17e   : > { %1355 = vrot.lane.b32.xlu0 %v2412_v39, %s2222_s29  ;;  %1351 = vrot.lane.b32.xlu1 %v2412_v39, %s2223_s30 }
 0x182   : > { %1037 = vrot.lane.b32.xlu0 %v2438_v54, %s2219_s26  ;;  %1033 = vrot.lane.b32.xlu1 %v2438_v54, %s2217_s24  ;;  %s2638_s24 = smov 125  }
 0x186   : > { %1017 = vrot.lane.b32.xlu0 %v2438_v54, %s2218_s25  ;;  %1013 = vrot.lane.b32.xlu1 %v2438_v54, %s2216_s23  ;;  %s2637_s23 = smov 13  }
 0x18a   : > { %1445 = vrot.lane.b32.xlu0 %v2412_v39, %s2635_s21  ;;  %1441 = vrot.lane.b32.xlu1 %v2412_v39, %s2636_s22 }
 0x18e   : > { %1189 = vrot.lane.b32.xlu0 %v2438_v54, %s2220_s27  ;;  %1185 = vrot.lane.b32.xlu1 %v2438_v54, %s2221_s28 }
 0x192   : > { %1353 = vrot.lane.b32.xlu0 %v2438_v54, %s2222_s29  ;;  %1349 = vrot.lane.b32.xlu1 %v2438_v54, %s2223_s30 }
 0x196   : > { %1443 = vrot.lane.b32.xlu0 %v2438_v54, %s2635_s21  ;;  %1439 = vrot.lane.b32.xlu1 %v2438_v54, %s2636_s22 }
 0x19a   : > { %1535 = vrot.lane.b32.xlu0 %v2412_v39, %s2637_s23  ;;  %1531 = vrot.lane.b32.xlu1 %v2412_v39, %s2638_s24 }
 0x19e   : > { %1533 = vrot.lane.b32.xlu0 %v2438_v54, %s2637_s23  ;;  %1529 = vrot.lane.b32.xlu1 %v2438_v54, %s2638_s24 }
 0x1a2   : > { %1626 = vperm.xlu0 %2175, %v372_v55   ;;  %1621 = vperm.xlu1 %2176, %v371_v56   ;;  %v2207_v56 = vld [vmem:[%s2619_s3 + $0x8] sm:$0xff]  }
 0x1a6   : > { %1636 = vperm.xlu0 %2175, %v374_v57   ;;  %1631 = vperm.xlu1 %2176, %v373_v58   ;;  %v2206_v57 = vld [vmem:[%s2618_s2 + $0x68] sm:$0xff]  }
 0x1aa   : > { %1743 = vperm.xlu0 %2175, %v380_v59   ;;  %1738 = vperm.xlu1 %2176, %v379_v60  }
 0x1ae   : > { %1753 = vperm.xlu0 %2175, %v382_v61   ;;  %1748 = vperm.xlu1 %2176, %v381_v62  }
 0x1b2   : > { %1650 = vperm.xlu0 %2175, %v376_v63   ;;  %1645 = vperm.xlu1 %2176, %v375_v0  }
 0x1b6   : > { %1660 = vperm.xlu0 %2175, %v378_v1   ;;  %1655 = vperm.xlu1 %2176, %v377_v3  }
 0x1ba   : > { %1767 = vperm.xlu0 %2175, %v384_v4   ;;  %1762 = vperm.xlu1 %2176, %v383_v5  }
 0x1be   : > { %1777 = vperm.xlu0 %2175, %v386_v6   ;;  %1772 = vperm.xlu1 %2176, %v385_v7  }
 0x1e4   : > { %v1036_v8 = vpop.permute.xlu1 %1035  ;;  %v1040_v9 = vpop.permute.xlu0 %1039 }
 0x1e5   : > { %v1047_v10 = vsel %vm409_vm1, %v1036_v8, %v1040_v9 }
 0x1e6   : > { %2092 = vmatprep.subr.bf16.mxu1 %v1047_v10 }
 0x1e7   : > { %2093 = vmatpush3.bf16.msra.mxu1 %v1047_v10 }
 0x1e8   : > { %v1016_v11 = vpop.permute.xlu1 %1015  ;;  %v1020_v12 = vpop.permute.xlu0 %1019 }
 0x1e9   : > { %v1027_v13 = vsel %vm396_vm2, %v1016_v11, %v1020_v12 }
 0x1ea   : > { %2100 = vmatprep.subr.bf16.mxu0 %v1027_v13 }
 0x1eb   : > { %2101 = vmatpush3.bf16.msra.mxu0 %v1027_v13 }
 0x1ec   : > { %v1188_v14 = vpop.permute.xlu1 %1187  ;;  %v1192_v15 = vpop.permute.xlu0 %1191 }
 0x1ed   : > { %v1199_v22 = vsel %vm554_vm3, %v1188_v14, %v1192_v15 }
 0x1f0   : > { %v1352_v16 = vpop.permute.xlu1 %1351  ;;  %v1356_v17 = vpop.permute.xlu0 %1355 }
 0x1f1   : > { %v1363_v36 = vsel %vm712_vm4, %v1352_v16, %v1356_v17 }
 0x1f4   : > { %v1034_v18 = vpop.permute.xlu1 %1033  ;;  %v1038_v19 = vpop.permute.xlu0 %1037 }
 0x1f5   : > { %v1043_v20 = vsel %vm409_vm1, %v1034_v18, %v1038_v19 }
 0x1f6   : > { %2094 = vmatprep.subr.bf16.mxu1 %v1043_v20 }
 0x1f7   : > { %2095 = vmatpush3.bf16.msra.mxu1 %v1043_v20 }
 0x1f8   : > { %v1014_v23 = vpop.permute.xlu1 %1013  ;;  %2108 = vmatprep.subr.bf16.mxu1 %v1199_v22  ;;  %v1018_v24 = vpop.permute.xlu0 %1017 }
 0x1f9   : > { %v1023_v26 = vsel %vm396_vm2, %v1014_v23, %v1018_v24 }
 0x1fa   : > { %2097 = vmatmul.mubr.msk.bf16.vlgmr.msra.gmra.mxu1 %vm1064_vm7, %v2193_v21  ;;  %2102 = vmatprep.subr.bf16.mxu0 %v1023_v26 }
 0x1fb   : > { %2103 = vmatpush3.bf16.msra.mxu0 %v1023_v26  ;;  %2109 = vmatpush3.bf16.msra.mxu1 %v1199_v22 }
 0x1fc   : > { %v1442_v29 = vpop.permute.xlu1 %1441  ;;  %2116 = vmatprep.subr.bf16.mxu0 %v2412_v39  ;;  %v1446_v30 = vpop.permute.xlu0 %1445  ;;  %2112 = vmatprep.mubr.msk.bf16.mxu1 %vm1064_vm7, %v2196_v25 }
 0x1fd   : > { %v1453_v37 = vsel %vm795_vm5, %v1442_v29, %v1446_v30 }
 0x1fe   : > { %2105 = vmatmul.mubr.msk.bf16.vlgmr.msra.gmra.mxu0 %vm1064_vm7, %v2195_v27 }
 0x1ff   : > { %2117 = vmatpush3.bf16.msra.mxu0 %v2412_v39  ;;  %2120 = vmatprep.mubr.msk.bf16.mxu0 %vm1064_vm7, %v2197_v28 }
 0x200   : > { %v1186_v31 = vpop.permute.xlu1 %1185  ;;  %2118 = vmatprep.subr.bf16.mxu0 %v2438_v54  ;;  %v1190_v32 = vpop.permute.xlu0 %1189 }
 0x201   : > { %v1195_v33 = vsel %vm554_vm3, %v1186_v31, %v1190_v32 }
 0x202   : > { %2110 = vmatprep.subr.bf16.mxu1 %v1195_v33 }
 0x203   : > { %2111 = vmatpush3.bf16.msra.mxu1 %v1195_v33  ;;  %2119 = vmatpush3.bf16.msra.mxu0 %v2438_v54 }
 0x204   : > { %v1350_v38 = vpop.permute.xlu1 %1349  ;;  %2124 = vmatprep.subr.bf16.mxu1 %v1363_v36  ;;  %2132 = vmatprep.subr.bf16.mxu0 %v1453_v37  ;;  %v1354_v39 = vpop.permute.xlu0 %1353 }
 0x205   : > { %v1359_v42 = vsel %vm712_vm4, %v1350_v38, %v1354_v39 }
 0x206   : > { %2113 = vmatmul.mubr.msk.bf16.vlgmr.msra.gmra.mxu1 %vm1064_vm7, %v2198_v34  ;;  %2121 = vmatmul.mubr.msk.bf16.vlgmr.msra.gmra.mxu0 %vm1064_vm7, %v2199_v35 }
 0x207   : > { %2125 = vmatpush3.bf16.msra.mxu1 %v1363_v36  ;;  %2133 = vmatpush3.bf16.msra.mxu0 %v1453_v37 }
 0x208   : > { %v1440_v43 = vpop.permute.xlu1 %1439  ;;  %2126 = vmatprep.subr.bf16.mxu1 %v1359_v42  ;;  %v1444_v44 = vpop.permute.xlu0 %1443  ;;  %2128 = vmatprep.mubr.msk.bf16.mxu1 %vm1064_vm7, %v2200_v40 }
 0x209   : > { %v1449_v45 = vsel %vm795_vm5, %v1440_v43, %v1444_v44  ;;  %2136 = vmatprep.mubr.msk.bf16.mxu0 %vm1064_vm7, %v2201_v41 }
 0x20a   : > { %2134 = vmatprep.subr.bf16.mxu0 %v1449_v45 }
 0x20b   : > { %2127 = vmatpush3.bf16.msra.mxu1 %v1359_v42  ;;  %2135 = vmatpush3.bf16.msra.mxu0 %v1449_v45 }
 0x20c   : > { %v1532_v48 = vpop.permute.xlu1 %1531  ;;  %v1536_v49 = vpop.permute.xlu0 %1535  ;;  %2148 = vmatprep.subr.bf16.mxu0 %v2306_v2 }
 0x20d   : > { %v1543_v51 = vsel %vm878_vm6, %v1532_v48, %v1536_v49 }
 0x20e   : > { %2129 = vmatmul.mubr.msk.bf16.vlgmr.msra.gmra.mxu1 %vm1064_vm7, %v2202_v46  ;;  %2137 = vmatmul.mubr.msk.bf16.vlgmr.msra.gmra.mxu0 %vm1064_vm7, %v2203_v47 }
 0x20f   : > { %2140 = vmatprep.subr.bf16.mxu1 %v1543_v51  ;;  %2149 = vmatpush3.bf16.msra.mxu0 %v2306_v2 }
 0x210   : > { %2141 = vmatpush3.bf16.msra.mxu1 %v1543_v51  ;;  %v1530_v53 = vpop.permute.xlu1 %1529  ;;  %v1534_v54 = vpop.permute.xlu0 %1533  ;;  %2144 = vmatprep.mubr.msk.bf16.mxu1 %vm1064_vm7, %v2204_v50 }
 0x211   : > { %v1539_v55 = vsel %vm878_vm6, %v1530_v53, %v1534_v54  ;;  %2150 = vmatprep.mubr.msk.bf16.mxu0 %vm429_vm0, %v2205_v52 }
 0x212   : > { %2142 = vmatprep.subr.bf16.mxu1 %v1539_v55 }
 0x214   : > { %2143 = vmatpush3.bf16.msra.mxu1 %v1539_v55 }
 0x216   : > { %2151 = vmatmul.mubr.msk.bf16.vlgmr.msra.gmra.mxu0 %vm429_vm0, %v2207_v56 }
 0x217   : > { %2145 = vmatmul.mubr.msk.bf16.vlgmr.msra.gmra.mxu1 %vm1064_vm7, %v2206_v57 }
 0x21d   : > { %v2594_v2 = vpop.permute.xlu1 %1621  ;;  %v2596_v58 = vpop.permute.xlu0 %1626 }
 0x221   : > { %v1632_v59 = vpop.permute.xlu1 %1631  ;;  %v2598_v60 = vpop.permute.xlu0 %1636 }
 0x225   : > { %v1739_v63 = vpop.permute.xlu1 %1738  ;;  %v2600_v1 = vpop.permute.xlu0 %1743 }
 0x229   : > { %v1749_v6 = vpop.permute.xlu1 %1748  ;;  %v1754_v9 = vpop.permute.xlu0 %1753 }
 0x22d   : > { %v1646_v14 = vpop.permute.xlu1 %1645  ;;  %v2602_v18 = vpop.permute.xlu0 %1650 }
 0x231   : > { %v1656_v27 = vpop.permute.xlu1 %1655  ;;  %v1661_v33 = vpop.permute.xlu0 %1660 }
 0x235   : > { %v1763_v43 = vpop.permute.xlu1 %1762  ;;  %v1768_v50 = vpop.permute.xlu0 %1767 }
 0x2ba   : > { %v2098_v61 = vpop.f32.mrf.mxu1 }
 0x2bc   : > { %v1105_v62 = vpop.f32.mrf.mxu1 }
 0x2be   : > { %v2106_v0 = vpop.f32.mrf.mxu0  ;;  %v2099_v3 = vpop.f32.mrf.mxu1 }
 0x2bf   : > { %v1179_v15 = vadd.f32 %v2106_v0, %v2098_v61 }
 0x2c0   : > { %v1170_v4 = vpop.f32.mrf.mxu0  ;;  %v1108_v7 = vpop.f32.mrf.mxu1 }
 0x2c1   : > { %v1171_v19 = vadd.f32 %v1170_v4, %v1105_v62 }
 0x2c2   : > { %v2107_v5 = vpop.f32.mrf.mxu0 }
 0x2c3   : > { %v1182_v23 = vadd.f32 %v2107_v5, %v2099_v3  ;;  %v1773_v3 = vpop.permute.xlu1 %1772 }
 0x2c4   : > { %v1173_v8 = vpop.f32.mrf.mxu0 }
 0x2c5   : > { %v1174_v28 = vadd.f32 %v1173_v8, %v1108_v7 }
 0x2c6   : > { %v2114_v10 = vpop.f32.mrf.mxu1  ;;  %v2122_v11 = vpop.f32.mrf.mxu0 }
 0x2c7   : > { %v1273_v20 = vadd.f32 %v2114_v10, %v1179_v15 }
 0x2c8   : > { %v1256_v12 = vpop.f32.mrf.mxu1  ;;  %v1330_v13 = vpop.f32.mrf.mxu0 }
 0x2c9   : > { %v1271_v24 = vadd.f32 %v1256_v12, %v1171_v19  ;;  %v1347_v29 = vadd.f32 %v2122_v11, %v1273_v20 }
 0x2ca   : > { %v2115_v16 = vpop.f32.mrf.mxu1  ;;  %v2123_v17 = vpop.f32.mrf.mxu0 }
 0x2cb   : > { %v1274_v30 = vadd.f32 %v2115_v16, %v1182_v23  ;;  %v1345_v35 = vadd.f32 %v1330_v13, %v1271_v24 }
 0x2cc   : > { %v1259_v21 = vpop.f32.mrf.mxu1  ;;  %v1333_v22 = vpop.f32.mrf.mxu0 }
 0x2cd   : > { %v1272_v34 = vadd.f32 %v1259_v21, %v1174_v28  ;;  %v1348_v39 = vadd.f32 %v2123_v17, %v1274_v30 }
 0x2ce   : > { %v2130_v25 = vpop.f32.mrf.mxu1  ;;  %v2138_v26 = vpop.f32.mrf.mxu0 }
 0x2cf   : > { %v1437_v36 = vadd.f32 %v2130_v25, %v1347_v29  ;;  %v1346_v44 = vadd.f32 %v1333_v22, %v1272_v34 }
 0x2d0   : > { %v1420_v31 = vpop.f32.mrf.mxu1  ;;  %v1510_v32 = vpop.f32.mrf.mxu0 }
 0x2d1   : > { %v1435_v40 = vadd.f32 %v1420_v31, %v1345_v35  ;;  %v1527_v45 = vadd.f32 %v2138_v26, %v1437_v36 }
 0x2d2   : > { %v2131_v37 = vpop.f32.mrf.mxu1  ;;  %v2139_v38 = vpop.f32.mrf.mxu0 }
 0x2d3   : > { %v1438_v46 = vadd.f32 %v2131_v37, %v1348_v39  ;;  %v1525_v51 = vadd.f32 %v1510_v32, %v1435_v40 }
 0x2d4   : > { %v1423_v41 = vpop.f32.mrf.mxu1  ;;  %v1513_v42 = vpop.f32.mrf.mxu0 }
 0x2d5   : > { %v1436_v48 = vadd.f32 %v1423_v41, %v1346_v44  ;;  %v1528_v57 = vadd.f32 %v2139_v38, %v1438_v46 }
 0x2d6   : > { %v2152_v47 = vpop.f32.mrf.mxu0 }
 0x2d7   : > { %v2146_v49 = vpop.f32.mrf.mxu1  ;;  %v1758_v53 = vmul.f32 %v2152_v47, %v1749_v6  ;;  %v1526_v4 = vadd.f32 %v1513_v42, %v1436_v48 }
 0x2d8   : > { %v1617_v52 = vadd.f32 %v2146_v49, %v1527_v45  ;;  %v1721_v54 = vpop.f32.mrf.mxu0 }
 0x2d9   : > { %v1600_v55 = vpop.f32.mrf.mxu1  ;;  %v1756_v56 = vmul.f32 %v1739_v63, %v1721_v54  ;;  %v1782_v10 = vadd.f32 %v1773_v3, %v1758_v53  ;;  %v1778_v63 = vpop.permute.xlu0 %1777 }
 0x2da   : > { %v1641_v61 = vmul.f32 %v1632_v59, %v1617_v52  ;;  %v1615_v62 = vadd.f32 %v1600_v55, %v1525_v51  ;;  %v2153_v0 = vpop.f32.mrf.mxu0 }
 0x2db   : > { %v2147_v5 = vpop.f32.mrf.mxu1  ;;  %v1759_v7 = vmul.f32 %v2153_v0, %v1754_v9  ;;  %v1780_v15 = vadd.f32 %v1763_v43, %v1756_v56 }
 0x2dc   : > { %v1665_v8 = vadd.f32 %v1656_v27, %v1641_v61  ;;  %v1639_v11 = vmul.f32 %v2594_v2, %v1615_v62  ;;  %v1618_v12 = vadd.f32 %v2147_v5, %v1528_v57  ;;  %v1724_v13 = vpop.f32.mrf.mxu0 }
 0x2dd   : > { %v1603_v6 = vpop.f32.mrf.mxu1  ;;  %v1757_v16 = vmul.f32 %v2600_v1, %v1724_v13  ;;  %v1783_v21 = vadd.f32 %v1778_v63, %v1759_v7 }
 0x2de   : > { %v1786_v59 = vadd.f32 %v1782_v10, %v1665_v8  ;;  %v1663_v17 = vadd.f32 %v1646_v14, %v1639_v11  ;;  %v1642_v19 = vmul.f32 %v2598_v60, %v1618_v12  ;;  %v1616_v20 = vadd.f32 %v1603_v6, %v1526_v4 }
 0x2df   : > { %v1781_v2 = vadd.f32 %v1768_v50, %v1757_v16 }
 0x2e0   : > { %v1790_v22 = vmax.f32 %v1786_v59, 0.0  ;;  %v1784_v9 = vadd.f32 %v1780_v15, %v1663_v17  ;;  %v1666_v23 = vadd.f32 %v1661_v33, %v1642_v19  ;;  %v1640_v24 = vmul.f32 %v2596_v58, %v1616_v20 }
 0x2e2   : > { %v1996_v1 = vpack.c.bf16 %v1790_v22, %v1790_v22  ;;  %v1788_v25 = vmax.f32 %v1784_v9, 0.0  ;;  %v1787_v26 = vadd.f32 %v1783_v21, %v1666_v23  ;;  %v1664_v14 = vadd.f32 %v2602_v18, %v1640_v24 }
 0x2e4   : > { %1811 = vst.msk [vmem:[%s359_s16 + $0x8] sm:$0xf] %vm1808_vm8, %v1996_v1  ;;  %v1994_v60 = vpack.c.bf16 %v1788_v25, %v1788_v25  ;;  %v1791_v27 = vmax.f32 %v1787_v26, 0.0  ;;  %v1785_v28 = vadd.f32 %v1781_v2, %v1664_v14 }
 0x2e6   : > { %1809 = vst.msk [vmem:[%s359_s16] sm:$0xf] %vm1808_vm8, %v1994_v60  ;;  %v1997_v29 = vpack.c.bf16 %v1791_v27, %v1791_v27  ;;  %v1789_v30 = vmax.f32 %v1785_v28, 0.0 }
 0x2e8   : > { %1812 = vst.msk [vmem:[%s359_s16 + $0xc] sm:$0xf] %vm1808_vm8, %v1997_v29  ;;  %v1995_v58 = vpack.c.bf16 %v1789_v30, %v1789_v30 }
 0x2ea   : > { %1810 = vst.msk [vmem:[%s359_s16 + $0x4] sm:$0xf] %vm1808_vm8, %v1995_v58 }
 0x2eb PF: > { %s20_s13 = sadd.s32 1, %s2214_s13  }
 0x2ec   : > { %p17_p4 = scmp.ge.s32.totalorder %s20_s13, 4  }
 0x2ee   :  { %19 = sbr.rel (!%p17_p4) target bundleno = 1 (0x1), region = 102 }

// kernel: model_forward.10
= control target key start
LH: loop header
LB: loop body
LE: loop exit
PB: predicated region body
PF: predicated region fallthrough
CT: control target
= control target key end

     0   :  { %s2436_s17 = smov 0   ;;  %s2794_s0 = inlined_call_operand.vmem [shape: bf16[2,32,8], index: 0, kind: input, shape index: {}]   ;;  %s2795_s1 = inlined_call_operand.vmem [shape: bf16[2,32,8], index: 1, kind: input, shape index: {}]   ;;  %s2796_s2 = inlined_call_operand.vmem [shape: bf16[7,32,32], index: 2, kind: input, shape index: {}]   ;;  %s2797_s3 = inlined_call_operand.vmem [shape: bf16[7,32,32], index: 3, kind: input, shape index: {}]   ;;  %s2798_s4 = inlined_call_operand.vmem [shape: bf16[1,32,32], index: 4, kind: input, shape index: {}]   ;;  %s2799_s5 = inlined_call_operand.vmem [shape: f32[32,1], index: 5, kind: input, shape index: {}]   ;;  %s2800_s6 = inlined_call_operand.vmem [shape: f32[32,1], index: 6, kind: input, shape index: {}]   ;;  %s2801_s7 = inlined_call_operand.vmem [shape: f32[32,1], index: 7, kind: input, shape index: {}]   ;;  %s2802_s8 = inlined_call_operand.vmem [shape: f32[32,1], index: 8, kind: input, shape index: {}]   ;;  %s2803_s9 = inlined_call_operand.vmem [shape: f32[32,1], index: 9, kind: input, shape index: {}]   ;;  %s2804_s10 = inlined_call_operand.vmem [shape: f32[32,1], index: 10, kind: input, shape index: {}]   ;;  %s2805_s11 = inlined_call_operand.vmem [shape: bf16[2,32,8], index: 11, kind: output, shape index: {}]  }
   0x1 LB: > { %s1982_s18 = sadd.s32 4294967295, %s2361_s17   ;;  %p1986_p0 = scmp.ge.s32.totalorder %s2361_s17, 1  ;;  %s2361_s17 = sphi %s2436_s17, %s21_s17  }
   0x2   : > { %p347_p1 = scmp.lt.s32.totalorder %s2361_s17, 3 }
   0x4   : > { %p348_p2 = pnand %p1986_p0, %p347_p1 }
   0x5   : > { %p392_p3 = scmp.lt.s32.totalorder (!%p348_p2), %s1982_s18, 1  ;;  %s2363_s26 = smov (!%p348_p2), 121  }
   0x6   : > { %351 = sbr.rel (%p348_p2) target bundleno = 755 (0x2f3), region = 64  ;;  %s2364_s29 = smov (!%p348_p2), 1  }
   0x7   : > { %s2365_s13 = smov (!%p348_p2), 122   ;;  %s2366_s14 = smov (!%p348_p2), 2  }
   0x8   : > { %s2367_s15 = smov (!%p348_p2), 127   ;;  %s2368_s16 = smov (!%p348_p2), 7  }
   0x9   : > { %s2370_s27 = smov (!%p348_p2), 3   ;;  %s2371_s28 = smov (!%p348_p2), 123  }
   0xa   : > { %s2372_s21 = smov (!%p348_p2), 6  }
   0xb   : > { %s2807_s18 = smov (!%p392_p3, %s1982_s18), 1  ;;  %vm513_vm0 = vcmask 261120   ;;  %v2325_v3 = vld [vmem:[%s2796_s2 + $0x10] sm:$0xff]   ;;  %v2327_v4 = vld [vmem:[%s2796_s2] sm:$0xff]   ;;  %v2369_v6 = vmov 0   ;;  %v419_v8 = vld [vmem:[%s2799_s5 + $0x18] sm:$0xff] }
   0xc   : > { %s2444_s19 = sshll.u32 %s2807_s18, 4  ;;  %2182 = vmatprep.mubr.msk.bf16.mxu0 %vm513_vm0, %v2325_v3  ;;  %2190 = vmatprep.mubr.msk.bf16.mxu1 %vm513_vm0, %v2327_v4  ;;  %v418_v7 = vld [vmem:[%s2799_s5 + $0x10] sm:$0xff]  ;;  %v423_v9 = vld [vmem:[%s2800_s6 + $0x18] sm:$0xff]  ;;  %v417_v11 = vld [vmem:[%s2799_s5 + $0x8] sm:$0xff]  ;;  %vm489_vm1 = vcmask 7168   ;;  %vm458_vm2 = vcmask 15360  }
   0xd   : > { %s396_s22 = scalar_lea.vmem %s2794_s0, %s2444_s19  ;;  %s401_s25 = scalar_lea.vmem %s2795_s1, %s2444_s19  ;;  %2320 = vset.pattern.permute.xlu1 %v2369_v6  ;;  %2319 = vset.pattern.permute.xlu0 %v2369_v6  ;;  %v422_v10 = vld [vmem:[%s2800_s6 + $0x10] sm:$0xff]  ;;  %v416_v12 = vld [vmem:[%s2799_s5] sm:$0xff]  ;;  %v421_v13 = vld [vmem:[%s2800_s6 + $0x8] sm:$0xff]  ;;  %vm884_vm3 = vcmask 56320   ;;  %vm1121_vm4 = vcmask 23552   ;;  %vm1547_vm5 = vcmask 48128  }
   0xe   : > { %v2450_v0 = vld [vmem:[%s396_s22 + $0x8] sm:$0xff]   ;;  %v2452_v1 = vld [vmem:[%s396_s22] sm:$0xff]   ;;  %v2326_v24 = vld [vmem:[%s2796_s2 + $0x18] sm:$0xff]   ;;  %s2373_s22 = smov 126   ;;  %vm1638_vm6 = vcmask 39936   ;;  %s406_s18 = scalar_lea.vmem %s2805_s11, %s2444_s19  ;;  %vm1910_vm7 = vcmask 60416  }
   0xf   : > { %483 = vrot.lane.b32.xlu0 %v2450_v0, %s2363_s26  ;;  %481 = vrot.lane.b32.xlu1 %v2452_v1, %s2363_s26  ;;  %v2462_v2 = vld [vmem:[%s401_s25 + $0x8] sm:$0xff]   ;;  %v2480_v5 = vld [vmem:[%s401_s25] sm:$0xff]  }
  0x10   : > { %v420_v14 = vld [vmem:[%s2800_s6] sm:$0xff]  ;;  %v2328_v32 = vld [vmem:[%s2796_s2 + $0x8] sm:$0xff]   ;;  %v2331_v36 = vld [vmem:[%s2796_s2 + $0x30] sm:$0xff]  }
  0x11   : > { %v2329_v25 = vld [vmem:[%s2796_s2 + $0x20] sm:$0xff]   ;;  %v2330_v37 = vld [vmem:[%s2796_s2 + $0x28] sm:$0xff]   ;;  %v2332_v41 = vld [vmem:[%s2796_s2 + $0x38] sm:$0xff]  }
  0x12   : > { %v2333_v40 = vld [vmem:[%s2796_s2 + $0x40] sm:$0xff]   ;;  %v2335_v45 = vld [vmem:[%s2796_s2 + $0x50] sm:$0xff]   ;;  %v2334_v46 = vld [vmem:[%s2796_s2 + $0x48] sm:$0xff]  }
  0x13   : > { %487 = vrot.lane.b32.xlu0 %v2450_v0, %s2364_s29  ;;  %485 = vrot.lane.b32.xlu1 %v2452_v1, %s2364_s29  ;;  %v2337_v50 = vld [vmem:[%s2796_s2 + $0x60] sm:$0xff]   ;;  %v2336_v52 = vld [vmem:[%s2796_s2 + $0x58] sm:$0xff]  }
  0x14   : > { %v2338_v56 = vld [vmem:[%s2796_s2 + $0x68] sm:$0xff]  }
  0x17   : > { %452 = vrot.lane.b32.xlu0 %v2462_v2, %s2365_s13  ;;  %456 = vrot.lane.b32.xlu1 %v2462_v2, %s2366_s14 }
  0x1b   : > { %636 = vrot.lane.b32.xlu0 %v2462_v2, %s2363_s26  ;;  %640 = vrot.lane.b32.xlu1 %v2462_v2, %s2364_s29 }
  0x1f   : > { %450 = vrot.lane.b32.xlu0 %v2480_v5, %s2365_s13  ;;  %454 = vrot.lane.b32.xlu1 %v2480_v5, %s2366_s14 }
  0x23   : > { %634 = vrot.lane.b32.xlu0 %v2480_v5, %s2363_s26  ;;  %638 = vrot.lane.b32.xlu1 %v2480_v5, %s2364_s29 }
  0x27   : > { %878 = vrot.lane.b32.xlu0 %v2450_v0, %s2367_s15  ;;  %882 = vrot.lane.b32.xlu1 %v2450_v0, %s2368_s16 }
  0x2b   : > { %969 = vrot.lane.b32.xlu0 %v2462_v2, %s2367_s15  ;;  %973 = vrot.lane.b32.xlu1 %v2462_v2, %s2368_s16 }
  0x2f   : > { %876 = vrot.lane.b32.xlu0 %v2452_v1, %s2367_s15  ;;  %880 = vrot.lane.b32.xlu1 %v2452_v1, %s2368_s16 }
  0x33   : > { %967 = vrot.lane.b32.xlu0 %v2480_v5, %s2367_s15  ;;  %971 = vrot.lane.b32.xlu1 %v2480_v5, %s2368_s16 }
  0x37   : > { %1069 = vperm.xlu0 %2319, %v418_v7   ;;  %1074 = vperm.xlu1 %2320, %v419_v8  }
  0x3b   : > { %1098 = vperm.xlu0 %2319, %v423_v9   ;;  %1093 = vperm.xlu1 %2320, %v422_v10  }
  0x3f   : > { %1064 = vperm.xlu0 %2319, %v417_v11   ;;  %1059 = vperm.xlu1 %2320, %v416_v12  }
  0x43   : > { %1088 = vperm.xlu0 %2319, %v421_v13   ;;  %1083 = vperm.xlu1 %2320, %v420_v14  }
  0x81   : > { %v484_v15 = vpop.permute.xlu0 %483  ;;  %v482_v16 = vpop.permute.xlu1 %481 }
  0x85   : > { %v488_v17 = vpop.permute.xlu0 %487  ;;  %v486_v18 = vpop.permute.xlu1 %485 }
  0x86   : > { %v496_v19 = vsel %vm489_vm1, %v484_v15, %v488_v17  ;;  %v492_v20 = vsel %vm489_vm1, %v482_v16, %v486_v18 }
  0x87   : > { %2178 = vmatprep.subr.bf16.mxu0 %v496_v19 }
  0x88   : > { %2179 = vmatpush3.bf16.msra.mxu0 %v496_v19 }
  0x89   : > { %v453_v21 = vpop.permute.xlu0 %452  ;;  %2180 = vmatprep.subr.bf16.mxu0 %v492_v20  ;;  %v457_v22 = vpop.permute.xlu1 %456 }
  0x8a   : > { %v465_v23 = vsel %vm458_vm2, %v453_v21, %v457_v22 }
  0x8b   : > { %2186 = vmatprep.subr.bf16.mxu1 %v465_v23 }
  0x8c   : > { %2181 = vmatpush3.bf16.msra.mxu0 %v492_v20  ;;  %2187 = vmatpush3.bf16.msra.mxu1 %v465_v23 }
  0x8d   : > { %v637_v26 = vpop.permute.xlu0 %636  ;;  %v641_v27 = vpop.permute.xlu1 %640 }
  0x8e   : > { %v648_v28 = vsel %vm489_vm1, %v637_v26, %v641_v27 }
  0x8f   : > { %2183 = vmatmul.mubr.msk.bf16.vlgmr.msra.gmra.mxu0 %vm513_vm0, %v2326_v24  ;;  %2194 = vmatprep.subr.bf16.mxu0 %v648_v28 }
  0x90   : > { %2198 = vmatprep.mubr.msk.bf16.mxu0 %vm513_vm0, %v2329_v25  ;;  %2195 = vmatpush3.bf16.msra.mxu0 %v648_v28 }
  0x91   : > { %v451_v29 = vpop.permute.xlu0 %450  ;;  %v455_v30 = vpop.permute.xlu1 %454 }
  0x92   : > { %v461_v31 = vsel %vm458_vm2, %v451_v29, %v455_v30 }
  0x93   : > { %2188 = vmatprep.subr.bf16.mxu1 %v461_v31 }
  0x94   : > { %2189 = vmatpush3.bf16.msra.mxu1 %v461_v31 }
  0x95   : > { %v635_v33 = vpop.permute.xlu0 %634  ;;  %v639_v34 = vpop.permute.xlu1 %638  ;;  %2202 = vmatprep.subr.bf16.mxu1 %v2450_v0 }
  0x96   : > { %v644_v35 = vsel %vm489_vm1, %v635_v33, %v639_v34 }
  0x97   : > { %2191 = vmatmul.mubr.msk.bf16.vlgmr.msra.gmra.mxu1 %vm513_vm0, %v2328_v32  ;;  %2196 = vmatprep.subr.bf16.mxu0 %v644_v35 }
  0x98   : > { %2197 = vmatpush3.bf16.msra.mxu0 %v644_v35  ;;  %2203 = vmatpush3.bf16.msra.mxu1 %v2450_v0 }
  0x99   : > { %v879_v38 = vpop.permute.xlu0 %878  ;;  %v883_v39 = vpop.permute.xlu1 %882  ;;  %2204 = vmatprep.subr.bf16.mxu1 %v2452_v1  ;;  %2210 = vmatprep.subr.bf16.mxu0 %v2462_v2 }
  0x9a   : > { %2206 = vmatprep.mubr.msk.bf16.mxu1 %vm513_vm0, %v2331_v36  ;;  %v891_v43 = vsel %vm884_vm3, %v879_v38, %v883_v39 }
  0x9b   : > { %2199 = vmatmul.mubr.msk.bf16.vlgmr.msra.gmra.mxu0 %vm513_vm0, %v2330_v37 }
  0x9c   : > { %2205 = vmatpush3.bf16.msra.mxu1 %v2452_v1  ;;  %2211 = vmatpush3.bf16.msra.mxu0 %v2462_v2 }
  0x9d   : > { %v970_v42 = vpop.permute.xlu0 %969  ;;  %2218 = vmatprep.subr.bf16.mxu1 %v891_v43  ;;  %v974_v44 = vpop.permute.xlu1 %973  ;;  %2212 = vmatprep.subr.bf16.mxu0 %v2480_v5 }
  0x9e   : > { %2214 = vmatprep.mubr.msk.bf16.mxu0 %vm513_vm0, %v2333_v40  ;;  %v981_v48 = vsel %vm884_vm3, %v970_v42, %v974_v44 }
  0x9f   : > { %2207 = vmatmul.mubr.msk.bf16.vlgmr.msra.gmra.mxu1 %vm513_vm0, %v2332_v41 }
  0xa0   : > { %2213 = vmatpush3.bf16.msra.mxu0 %v2480_v5  ;;  %2219 = vmatpush3.bf16.msra.mxu1 %v891_v43 }
  0xa1   : > { %v877_v47 = vpop.permute.xlu0 %876  ;;  %2226 = vmatprep.subr.bf16.mxu0 %v981_v48  ;;  %v881_v49 = vpop.permute.xlu1 %880  ;;  %2222 = vmatprep.mubr.msk.bf16.mxu1 %vm513_vm0, %v2335_v45 }
  0xa2   : > { %v887_v51 = vsel %vm884_vm3, %v877_v47, %v881_v49 }
  0xa3   : > { %2215 = vmatmul.mubr.msk.bf16.vlgmr.msra.gmra.mxu0 %vm513_vm0, %v2334_v46  ;;  %2220 = vmatprep.subr.bf16.mxu1 %v887_v51 }
  0xa4   : > { %2221 = vmatpush3.bf16.msra.mxu1 %v887_v51  ;;  %2227 = vmatpush3.bf16.msra.mxu0 %v981_v48 }
  0xa5   : > { %v968_v53 = vpop.permute.xlu0 %967  ;;  %v972_v54 = vpop.permute.xlu1 %971  ;;  %2230 = vmatprep.mubr.msk.bf16.mxu0 %vm513_vm0, %v2337_v50 }
  0xa6   : > { %v977_v55 = vsel %vm884_vm3, %v968_v53, %v972_v54 }
  0xa7   : > { %2223 = vmatmul.mubr.msk.bf16.vlgmr.msra.gmra.mxu1 %vm513_vm0, %v2336_v52  ;;  %2228 = vmatprep.subr.bf16.mxu0 %v977_v55 }
  0xa8   : > { %2229 = vmatpush3.bf16.msra.mxu0 %v977_v55 }
  0xab   : > { %2231 = vmatmul.mubr.msk.bf16.vlgmr.msra.gmra.mxu0 %vm513_vm0, %v2338_v56 }
  0xb2   : > { %v1075_v24 = vpop.permute.xlu1 %1074  ;;  %v1070_v30 = vpop.permute.xlu0 %1069 }
  0xb6   : > { %v1094_v39 = vpop.permute.xlu1 %1093  ;;  %v1099_v44 = vpop.permute.xlu0 %1098 }
 0x14f   : > { %v2184_v57 = vpop.f32.mrf.mxu0 }
 0x151   : > { %v554_v58 = vpop.f32.mrf.mxu0 }
 0x153   : > { %v2185_v59 = vpop.f32.mrf.mxu0 }
 0x155   : > { %v557_v61 = vpop.f32.mrf.mxu0 }
 0x157   : > { %v2192_v60 = vpop.f32.mrf.mxu1 }
 0x158   : > { %v628_v9 = vadd.f32 %v2192_v60, %v2184_v57  ;;  %v1065_v57 = vpop.permute.xlu0 %1064 }
 0x159   : > { %v619_v62 = vpop.f32.mrf.mxu1 }
 0x15a   : > { %v620_v36 = vadd.f32 %v619_v62, %v554_v58 }
 0x15b   : > { %v2193_v63 = vpop.f32.mrf.mxu1  ;;  %v2200_v2 = vpop.f32.mrf.mxu0 }
 0x15c   : > { %v722_v12 = vadd.f32 %v2200_v2, %v628_v9  ;;  %v631_v15 = vadd.f32 %v2193_v63, %v2185_v59  ;;  %v1060_v59 = vpop.permute.xlu1 %1059  ;;  %v1089_v62 = vpop.permute.xlu0 %1088  ;;  %v2339_v63 = vld [vmem:[%s2797_s3 + $0x10] sm:$0xff]   ;;  %v425_v9 = vld [vmem:[%s2801_s7 + $0x8] sm:$0xff] }
 0x15d   : > { %v622_v3 = vpop.f32.mrf.mxu1  ;;  %v705_v4 = vpop.f32.mrf.mxu0  ;;  %2238 = vmatprep.mubr.msk.bf16.mxu1 %vm513_vm0, %v2339_v63  ;;  %v2349_v63 = vld [vmem:[%s2797_s3 + $0x48] sm:$0xff]  }
 0x15e   : > { %v623_v32 = vadd.f32 %v622_v3, %v557_v61  ;;  %v720_v40 = vadd.f32 %v705_v4, %v620_v36 }
 0x15f   : > { %v2201_v5 = vpop.f32.mrf.mxu0  ;;  %v2208_v6 = vpop.f32.mrf.mxu1 }
 0x160   : > { %v798_v16 = vadd.f32 %v2208_v6, %v722_v12  ;;  %v723_v19 = vadd.f32 %v2201_v5, %v631_v15  ;;  %v1084_v3 = vpop.permute.xlu1 %1083  ;;  %v2341_v5 = vld [vmem:[%s2797_s3] sm:$0xff]   ;;  %v426_v12 = vld [vmem:[%s2801_s7 + $0x10] sm:$0xff]  ;;  %v435_v15 = vld [vmem:[%s2803_s9 + $0x18] sm:$0xff] }
 0x161   : > { %v708_v7 = vpop.f32.mrf.mxu0  ;;  %v781_v8 = vpop.f32.mrf.mxu1  ;;  %2246 = vmatprep.mubr.msk.bf16.mxu0 %vm513_vm0, %v2341_v5 }
 0x162   : > { %v721_v37 = vadd.f32 %v708_v7, %v623_v32  ;;  %v796_v46 = vadd.f32 %v781_v8, %v720_v40 }
 0x163   : > { %v2209_v10 = vpop.f32.mrf.mxu1  ;;  %v2216_v11 = vpop.f32.mrf.mxu0 }
 0x164   : > { %v874_v20 = vadd.f32 %v2216_v11, %v798_v16  ;;  %v799_v23 = vadd.f32 %v2209_v10, %v723_v19  ;;  %v424_v10 = vld [vmem:[%s2801_s7] sm:$0xff]  ;;  %v427_v11 = vld [vmem:[%s2801_s7 + $0x18] sm:$0xff]  ;;  %v434_v16 = vld [vmem:[%s2803_s9 + $0x10] sm:$0xff] }
 0x165   : > { %v784_v13 = vpop.f32.mrf.mxu1  ;;  %v857_v14 = vpop.f32.mrf.mxu0  ;;  %v431_v19 = vld [vmem:[%s2802_s8 + $0x18] sm:$0xff] }
 0x166   : > { %v797_v41 = vadd.f32 %v784_v13, %v721_v37  ;;  %v872_v50 = vadd.f32 %v857_v14, %v796_v46  ;;  %v433_v13 = vld [vmem:[%s2803_s9 + $0x8] sm:$0xff]  ;;  %v432_v14 = vld [vmem:[%s2803_s9] sm:$0xff] }
 0x167   : > { %v2217_v17 = vpop.f32.mrf.mxu0  ;;  %v2224_v18 = vpop.f32.mrf.mxu1 }
 0x168   : > { %v965_v25 = vadd.f32 %v2224_v18, %v874_v20  ;;  %v875_v28 = vadd.f32 %v2217_v17, %v799_v23  ;;  %v429_v17 = vld [vmem:[%s2802_s8 + $0x8] sm:$0xff]  ;;  %v428_v18 = vld [vmem:[%s2802_s8] sm:$0xff]  ;;  %v430_v20 = vld [vmem:[%s2802_s8 + $0x10] sm:$0xff] }
 0x169   : > { %v860_v21 = vpop.f32.mrf.mxu0  ;;  %v948_v22 = vpop.f32.mrf.mxu1  ;;  %v439_v23 = vld [vmem:[%s2804_s10 + $0x18] sm:$0xff] }
 0x16a   : > { %v873_v47 = vadd.f32 %v860_v21, %v797_v41  ;;  %v963_v54 = vadd.f32 %v948_v22, %v872_v50  ;;  %v437_v21 = vld [vmem:[%s2804_s10 + $0x8] sm:$0xff]  ;;  %v436_v22 = vld [vmem:[%s2804_s10] sm:$0xff] }
 0x16b   : > { %v2225_v26 = vpop.f32.mrf.mxu1  ;;  %v2232_v27 = vpop.f32.mrf.mxu0 }
 0x16c   : > { %v1055_v29 = vadd.f32 %v2232_v27, %v965_v25  ;;  %v966_v33 = vadd.f32 %v2225_v26, %v875_v28 }
 0x16d   : > { %v1038_v31 = vpop.f32.mrf.mxu0  ;;  %v951_v45 = vpop.f32.mrf.mxu1 }
 0x16e   : > { %v1079_v34 = vmul.f32 %v1070_v30, %v1055_v29  ;;  %v964_v52 = vadd.f32 %v951_v45, %v873_v47  ;;  %v1053_v58 = vadd.f32 %v1038_v31, %v963_v54  ;;  %v2344_v45 = vld [vmem:[%s2797_s3 + $0x30] sm:$0xff]  }
 0x16f   : > { %v2233_v35 = vpop.f32.mrf.mxu0 }
 0x170   : > { %v1056_v38 = vadd.f32 %v2233_v35, %v966_v33  ;;  %v1103_v42 = vadd.f32 %v1094_v39, %v1079_v34  ;;  %v1077_v61 = vmul.f32 %v1060_v59, %v1053_v58  ;;  %v2348_v58 = vld [vmem:[%s2797_s3 + $0x50] sm:$0xff]  }
 0x171   : > { %v1041_v49 = vpop.f32.mrf.mxu0 }
 0x172   : > { %v1080_v43 = vmul.f32 %v1075_v24, %v1056_v38  ;;  %v1107_v51 = vmax.f32 %v1103_v42, 0.0  ;;  %v1054_v56 = vadd.f32 %v1041_v49, %v964_v52  ;;  %v1101_v4 = vadd.f32 %v1084_v3, %v1077_v61  ;;  %v438_v24 = vld [vmem:[%s2804_s10 + $0x10] sm:$0xff]  ;;  %v2340_v38 = vld [vmem:[%s2797_s3 + $0x18] sm:$0xff]   ;;  %v2343_v42 = vld [vmem:[%s2797_s3 + $0x20] sm:$0xff]  }
 0x173   : > { %v2346_v52 = vld [vmem:[%s2797_s3 + $0x38] sm:$0xff]  }
 0x174   : > { %v1104_v48 = vadd.f32 %v1099_v44, %v1080_v43  ;;  %v1078_v60 = vmul.f32 %v1065_v57, %v1054_v56  ;;  %v1105_v7 = vmax.f32 %v1101_v4, 0.0  ;;  %v2342_v44 = vld [vmem:[%s2797_s3 + $0x8] sm:$0xff]   ;;  %v2347_v57 = vld [vmem:[%s2797_s3 + $0x40] sm:$0xff]  }
 0x176   : > { %v1108_v53 = vmax.f32 %v1104_v48, 0.0  ;;  %v1102_v2 = vadd.f32 %v1089_v62, %v1078_v60 }
 0x178   : > { %v2600_v55 = vpack.c.bf16 %v1108_v53, %v1107_v51  ;;  %v1106_v6 = vmax.f32 %v1102_v2, 0.0  ;;  %v2345_v51 = vld [vmem:[%s2797_s3 + $0x28] sm:$0xff]   ;;  %v2350_v2 = vld [vmem:[%s2797_s3 + $0x58] sm:$0xff]  }
 0x17a   : > { %1140 = vrot.lane.b32.xlu0 %v2600_v55, %s2366_s14  ;;  %1136 = vrot.lane.b32.xlu1 %v2600_v55, %s2365_s13  ;;  %v2624_v8 = vpack.c.bf16 %v1106_v6, %v1105_v7  ;;  %v2351_v6 = vld [vmem:[%s2797_s3 + $0x60] sm:$0xff]  }
 0x17b   : > { %v2352_v7 = vld [vmem:[%s2798_s4] sm:$0xff]  }
 0x17e   : > { %1119 = vrot.lane.b32.xlu0 %v2600_v55, %s2370_s27  ;;  %1115 = vrot.lane.b32.xlu1 %v2600_v55, %s2371_s28 }
 0x182   : > { %1291 = vrot.lane.b32.xlu0 %v2600_v55, %s2364_s29  ;;  %1287 = vrot.lane.b32.xlu1 %v2600_v55, %s2363_s26 }
 0x186   : > { %1455 = vrot.lane.b32.xlu0 %v2600_v55, %s2368_s16  ;;  %1451 = vrot.lane.b32.xlu1 %v2600_v55, %s2367_s15 }
 0x18a   : > { %1138 = vrot.lane.b32.xlu0 %v2624_v8, %s2366_s14  ;;  %1134 = vrot.lane.b32.xlu1 %v2624_v8, %s2365_s13  ;;  %s2374_s13 = smov 5   ;;  %s2375_s14 = smov 125  }
 0x18e   : > { %1117 = vrot.lane.b32.xlu0 %v2624_v8, %s2370_s27  ;;  %1113 = vrot.lane.b32.xlu1 %v2624_v8, %s2371_s28 }
 0x192   : > { %1545 = vrot.lane.b32.xlu0 %v2600_v55, %s2372_s21  ;;  %1541 = vrot.lane.b32.xlu1 %v2600_v55, %s2373_s22 }
 0x196   : > { %1289 = vrot.lane.b32.xlu0 %v2624_v8, %s2364_s29  ;;  %1285 = vrot.lane.b32.xlu1 %v2624_v8, %s2363_s26 }
 0x19a   : > { %1453 = vrot.lane.b32.xlu0 %v2624_v8, %s2368_s16  ;;  %1449 = vrot.lane.b32.xlu1 %v2624_v8, %s2367_s15 }
 0x19e   : > { %1543 = vrot.lane.b32.xlu0 %v2624_v8, %s2372_s21  ;;  %1539 = vrot.lane.b32.xlu1 %v2624_v8, %s2373_s22 }
 0x1a2   : > { %1636 = vrot.lane.b32.xlu0 %v2600_v55, %s2374_s13  ;;  %1632 = vrot.lane.b32.xlu1 %v2600_v55, %s2375_s14 }
 0x1a6   : > { %1634 = vrot.lane.b32.xlu0 %v2624_v8, %s2374_s13  ;;  %1630 = vrot.lane.b32.xlu1 %v2624_v8, %s2375_s14 }
 0x1aa   : > { %1728 = vperm.xlu0 %2319, %v425_v9   ;;  %1723 = vperm.xlu1 %2320, %v424_v10  }
 0x1ae   : > { %1738 = vperm.xlu0 %2319, %v427_v11   ;;  %1733 = vperm.xlu1 %2320, %v426_v12   ;;  %v2354_v11 = vld [vmem:[%s2798_s4 + $0x8] sm:$0xff]  }
 0x1b2   : > { %1845 = vperm.xlu0 %2319, %v433_v13   ;;  %1840 = vperm.xlu1 %2320, %v432_v14  }
 0x1b6   : > { %1855 = vperm.xlu0 %2319, %v435_v15   ;;  %1850 = vperm.xlu1 %2320, %v434_v16  }
 0x1ba   : > { %1752 = vperm.xlu0 %2319, %v429_v17   ;;  %1747 = vperm.xlu1 %2320, %v428_v18  }
 0x1be   : > { %1762 = vperm.xlu0 %2319, %v431_v19   ;;  %1757 = vperm.xlu1 %2320, %v430_v20  }
 0x1c2   : > { %1869 = vperm.xlu0 %2319, %v437_v21   ;;  %1864 = vperm.xlu1 %2320, %v436_v22  }
 0x1c6   : > { %1879 = vperm.xlu0 %2319, %v439_v23   ;;  %1874 = vperm.xlu1 %2320, %v438_v24  }
 0x1ec   : > { %v1141_v25 = vpop.permute.xlu0 %1140  ;;  %v1137_v26 = vpop.permute.xlu1 %1136 }
 0x1ed   : > { %v1148_v27 = vsel %vm458_vm2, %v1137_v26, %v1141_v25 }
 0x1ee   : > { %2234 = vmatprep.subr.bf16.mxu1 %v1148_v27 }
 0x1ef   : > { %2235 = vmatpush3.bf16.msra.mxu1 %v1148_v27 }
 0x1f0   : > { %v1120_v28 = vpop.permute.xlu0 %1119  ;;  %v1116_v29 = vpop.permute.xlu1 %1115 }
 0x1f1   : > { %v1128_v30 = vsel %vm1121_vm4, %v1116_v29, %v1120_v28 }
 0x1f2   : > { %2242 = vmatprep.subr.bf16.mxu0 %v1128_v30 }
 0x1f3   : > { %2243 = vmatpush3.bf16.msra.mxu0 %v1128_v30 }
 0x1f4   : > { %v1292_v31 = vpop.permute.xlu0 %1291  ;;  %v1288_v32 = vpop.permute.xlu1 %1287 }
 0x1f5   : > { %v1299_v39 = vsel %vm489_vm1, %v1288_v32, %v1292_v31 }
 0x1f8   : > { %v1456_v33 = vpop.permute.xlu0 %1455  ;;  %v1452_v34 = vpop.permute.xlu1 %1451 }
 0x1f9   : > { %v1463_v53 = vsel %vm884_vm3, %v1452_v34, %v1456_v33 }
 0x1fc   : > { %v1139_v35 = vpop.permute.xlu0 %1138  ;;  %v1135_v36 = vpop.permute.xlu1 %1134 }
 0x1fd   : > { %v1144_v37 = vsel %vm458_vm2, %v1135_v36, %v1139_v35 }
 0x1fe   : > { %2236 = vmatprep.subr.bf16.mxu1 %v1144_v37 }
 0x1ff   : > { %2237 = vmatpush3.bf16.msra.mxu1 %v1144_v37 }
 0x200   : > { %v1118_v40 = vpop.permute.xlu0 %1117  ;;  %2250 = vmatprep.subr.bf16.mxu1 %v1299_v39  ;;  %v1114_v41 = vpop.permute.xlu1 %1113 }
 0x201   : > { %v1124_v43 = vsel %vm1121_vm4, %v1114_v41, %v1118_v40 }
 0x202   : > { %2239 = vmatmul.mubr.msk.bf16.vlgmr.msra.gmra.mxu1 %vm513_vm0, %v2340_v38  ;;  %2244 = vmatprep.subr.bf16.mxu0 %v1124_v43 }
 0x203   : > { %2245 = vmatpush3.bf16.msra.mxu0 %v1124_v43  ;;  %2251 = vmatpush3.bf16.msra.mxu1 %v1299_v39 }
 0x204   : > { %v1546_v46 = vpop.permute.xlu0 %1545  ;;  %2258 = vmatprep.subr.bf16.mxu0 %v2600_v55  ;;  %v1542_v47 = vpop.permute.xlu1 %1541  ;;  %2254 = vmatprep.mubr.msk.bf16.mxu1 %vm513_vm0, %v2343_v42 }
 0x205   : > { %v1554_v54 = vsel %vm1547_vm5, %v1542_v47, %v1546_v46 }
 0x206   : > { %2247 = vmatmul.mubr.msk.bf16.vlgmr.msra.gmra.mxu0 %vm513_vm0, %v2342_v44 }
 0x207   : > { %2259 = vmatpush3.bf16.msra.mxu0 %v2600_v55  ;;  %2262 = vmatprep.mubr.msk.bf16.mxu0 %vm513_vm0, %v2344_v45 }
 0x208   : > { %v1290_v48 = vpop.permute.xlu0 %1289  ;;  %2260 = vmatprep.subr.bf16.mxu0 %v2624_v8  ;;  %v1286_v49 = vpop.permute.xlu1 %1285 }
 0x209   : > { %v1295_v50 = vsel %vm489_vm1, %v1286_v49, %v1290_v48 }
 0x20a   : > { %2252 = vmatprep.subr.bf16.mxu1 %v1295_v50 }
 0x20b   : > { %2253 = vmatpush3.bf16.msra.mxu1 %v1295_v50  ;;  %2261 = vmatpush3.bf16.msra.mxu0 %v2624_v8 }
 0x20c   : > { %v1454_v55 = vpop.permute.xlu0 %1453  ;;  %2266 = vmatprep.subr.bf16.mxu1 %v1463_v53  ;;  %2274 = vmatprep.subr.bf16.mxu0 %v1554_v54  ;;  %v1450_v56 = vpop.permute.xlu1 %1449 }
 0x20d   : > { %v1459_v59 = vsel %vm884_vm3, %v1450_v56, %v1454_v55 }
 0x20e   : > { %2255 = vmatmul.mubr.msk.bf16.vlgmr.msra.gmra.mxu1 %vm513_vm0, %v2345_v51  ;;  %2263 = vmatmul.mubr.msk.bf16.vlgmr.msra.gmra.mxu0 %vm513_vm0, %v2346_v52 }
 0x20f   : > { %2267 = vmatpush3.bf16.msra.mxu1 %v1463_v53  ;;  %2275 = vmatpush3.bf16.msra.mxu0 %v1554_v54 }
 0x210   : > { %v1544_v60 = vpop.permute.xlu0 %1543  ;;  %2268 = vmatprep.subr.bf16.mxu1 %v1459_v59  ;;  %v1540_v61 = vpop.permute.xlu1 %1539  ;;  %2270 = vmatprep.mubr.msk.bf16.mxu1 %vm513_vm0, %v2347_v57 }
 0x211   : > { %v1550_v62 = vsel %vm1547_vm5, %v1540_v61, %v1544_v60  ;;  %2278 = vmatprep.mubr.msk.bf16.mxu0 %vm513_vm0, %v2348_v58 }
 0x212   : > { %2276 = vmatprep.subr.bf16.mxu0 %v1550_v62 }
 0x213   : > { %2269 = vmatpush3.bf16.msra.mxu1 %v1459_v59  ;;  %2277 = vmatpush3.bf16.msra.mxu0 %v1550_v62 }
 0x214   : > { %v1637_v3 = vpop.permute.xlu0 %1636  ;;  %v1633_v4 = vpop.permute.xlu1 %1632  ;;  %2290 = vmatprep.subr.bf16.mxu0 %v2450_v0 }
 0x215   : > { %v1645_v5 = vsel %vm1638_vm6, %v1633_v4, %v1637_v3 }
 0x216   : > { %2271 = vmatmul.mubr.msk.bf16.vlgmr.msra.gmra.mxu1 %vm513_vm0, %v2349_v63  ;;  %2279 = vmatmul.mubr.msk.bf16.vlgmr.msra.gmra.mxu0 %vm513_vm0, %v2350_v2 }
 0x217   : > { %2282 = vmatprep.subr.bf16.mxu1 %v1645_v5  ;;  %2291 = vmatpush3.bf16.msra.mxu0 %v2450_v0  ;;  %v2353_v0 = vld [vmem:[%s2797_s3 + $0x68] sm:$0xff]  }
 0x218   : > { %2283 = vmatpush3.bf16.msra.mxu1 %v1645_v5  ;;  %v1635_v8 = vpop.permute.xlu0 %1634  ;;  %v1631_v9 = vpop.permute.xlu1 %1630  ;;  %2292 = vmatprep.subr.bf16.mxu0 %v2452_v1 }
 0x219   : > { %v1641_v10 = vsel %vm1638_vm6, %v1631_v9, %v1635_v8  ;;  %2286 = vmatprep.mubr.msk.bf16.mxu1 %vm513_vm0, %v2351_v6  ;;  %2294 = vmatprep.mubr.msk.bf16.mxu0 %vm513_vm0, %v2352_v7 }
 0x21a   : > { %2284 = vmatprep.subr.bf16.mxu1 %v1641_v10 }
 0x21b   : > { %2293 = vmatpush3.bf16.msra.mxu0 %v2452_v1 }
 0x21c   : > { %2285 = vmatpush3.bf16.msra.mxu1 %v1641_v10 }
 0x21e   : > { %2295 = vmatmul.mubr.msk.bf16.vlgmr.msra.gmra.mxu0 %vm513_vm0, %v2354_v11 }
 0x21f   : > { %2287 = vmatmul.mubr.msk.bf16.vlgmr.msra.gmra.mxu1 %vm513_vm0, %v2353_v0 }
 0x225   : > { %v2772_v12 = vpop.permute.xlu1 %1723  ;;  %v2774_v13 = vpop.permute.xlu0 %1728 }
 0x229   : > { %v1734_v14 = vpop.permute.xlu1 %1733  ;;  %v2776_v15 = vpop.permute.xlu0 %1738 }
 0x22d   : > { %v1841_v18 = vpop.permute.xlu1 %1840  ;;  %v2778_v19 = vpop.permute.xlu0 %1845 }
 0x231   : > { %v1851_v23 = vpop.permute.xlu1 %1850  ;;  %v1856_v26 = vpop.permute.xlu0 %1855 }
 0x235   : > { %v1748_v31 = vpop.permute.xlu1 %1747  ;;  %v2780_v35 = vpop.permute.xlu0 %1752 }
 0x239   : > { %v1758_v44 = vpop.permute.xlu1 %1757  ;;  %v1763_v50 = vpop.permute.xlu0 %1762 }
 0x23d   : > { %v1865_v60 = vpop.permute.xlu1 %1864  ;;  %v1870_v5 = vpop.permute.xlu0 %1869 }
 0x2c2   : > { %v2240_v16 = vpop.f32.mrf.mxu1 }
 0x2c4   : > { %v1205_v17 = vpop.f32.mrf.mxu1 }
 0x2c6   : > { %v2248_v1 = vpop.f32.mrf.mxu0  ;;  %v2241_v20 = vpop.f32.mrf.mxu1 }
 0x2c7   : > { %v1279_v32 = vadd.f32 %v2248_v1, %v2240_v16 }
 0x2c8   : > { %v1270_v21 = vpop.f32.mrf.mxu0  ;;  %v1208_v24 = vpop.f32.mrf.mxu1 }
 0x2c9   : > { %v1271_v36 = vadd.f32 %v1270_v21, %v1205_v17 }
 0x2ca   : > { %v2249_v22 = vpop.f32.mrf.mxu0 }
 0x2cb   : > { %v1282_v40 = vadd.f32 %v2249_v22, %v2241_v20  ;;  %v1875_v20 = vpop.permute.xlu1 %1874 }
 0x2cc   : > { %v1273_v25 = vpop.f32.mrf.mxu0 }
 0x2cd   : > { %v1274_v45 = vadd.f32 %v1273_v25, %v1208_v24 }
 0x2ce   : > { %v2256_v27 = vpop.f32.mrf.mxu1  ;;  %v2264_v28 = vpop.f32.mrf.mxu0 }
 0x2cf   : > { %v1373_v37 = vadd.f32 %v2256_v27, %v1279_v32 }
 0x2d0   : > { %v1356_v29 = vpop.f32.mrf.mxu1  ;;  %v1430_v30 = vpop.f32.mrf.mxu0 }
 0x2d1   : > { %v1371_v41 = vadd.f32 %v1356_v29, %v1271_v36  ;;  %v1447_v46 = vadd.f32 %v2264_v28, %v1373_v37 }
 0x2d2   : > { %v2257_v33 = vpop.f32.mrf.mxu1  ;;  %v2265_v34 = vpop.f32.mrf.mxu0 }
 0x2d3   : > { %v1374_v47 = vadd.f32 %v2257_v33, %v1282_v40  ;;  %v1445_v52 = vadd.f32 %v1430_v30, %v1371_v41 }
 0x2d4   : > { %v1359_v38 = vpop.f32.mrf.mxu1  ;;  %v1433_v39 = vpop.f32.mrf.mxu0 }
 0x2d5   : > { %v1372_v51 = vadd.f32 %v1359_v38, %v1274_v45  ;;  %v1448_v56 = vadd.f32 %v2265_v34, %v1374_v47 }
 0x2d6   : > { %v2272_v42 = vpop.f32.mrf.mxu1  ;;  %v2280_v43 = vpop.f32.mrf.mxu0 }
 0x2d7   : > { %v1537_v53 = vadd.f32 %v2272_v42, %v1447_v46  ;;  %v1446_v61 = vadd.f32 %v1433_v39, %v1372_v51 }
 0x2d8   : > { %v1520_v48 = vpop.f32.mrf.mxu1  ;;  %v1611_v49 = vpop.f32.mrf.mxu0 }
 0x2d9   : > { %v1535_v57 = vadd.f32 %v1520_v48, %v1445_v52  ;;  %v1628_v62 = vadd.f32 %v2280_v43, %v1537_v53 }
 0x2da   : > { %v2273_v54 = vpop.f32.mrf.mxu1  ;;  %v2281_v55 = vpop.f32.mrf.mxu0 }
 0x2db   : > { %v1538_v63 = vadd.f32 %v2273_v54, %v1448_v56  ;;  %v1626_v6 = vadd.f32 %v1611_v49, %v1535_v57 }
 0x2dc   : > { %v1523_v58 = vpop.f32.mrf.mxu1  ;;  %v1614_v59 = vpop.f32.mrf.mxu0 }
 0x2dd   : > { %v1536_v3 = vadd.f32 %v1523_v58, %v1446_v61  ;;  %v1629_v0 = vadd.f32 %v2281_v55, %v1538_v63 }
 0x2de   : > { %v2296_v2 = vpop.f32.mrf.mxu0 }
 0x2df   : > { %v2288_v4 = vpop.f32.mrf.mxu1  ;;  %v1860_v8 = vmul.f32 %v2296_v2, %v1851_v23  ;;  %v1627_v21 = vadd.f32 %v1614_v59, %v1536_v3 }
 0x2e0   : > { %v1719_v7 = vadd.f32 %v2288_v4, %v1628_v62  ;;  %v1823_v9 = vpop.f32.mrf.mxu0 }
 0x2e1   : > { %v1702_v10 = vpop.f32.mrf.mxu1  ;;  %v1858_v11 = vmul.f32 %v1841_v18, %v1823_v9  ;;  %v1884_v27 = vadd.f32 %v1875_v20, %v1860_v8  ;;  %v1880_v18 = vpop.permute.xlu0 %1879 }
 0x2e2   : > { %v1743_v16 = vmul.f32 %v1734_v14, %v1719_v7  ;;  %v1717_v17 = vadd.f32 %v1702_v10, %v1626_v6  ;;  %v2297_v1 = vpop.f32.mrf.mxu0 }
 0x2e3   : > { %v2289_v22 = vpop.f32.mrf.mxu1  ;;  %v1861_v24 = vmul.f32 %v2297_v1, %v1856_v26  ;;  %v1882_v32 = vadd.f32 %v1865_v60, %v1858_v11 }
 0x2e4   : > { %v1767_v25 = vadd.f32 %v1758_v44, %v1743_v16  ;;  %v1741_v28 = vmul.f32 %v2772_v12, %v1717_v17  ;;  %v1720_v29 = vadd.f32 %v2289_v22, %v1629_v0  ;;  %v1826_v30 = vpop.f32.mrf.mxu0 }
 0x2e5   : > { %v1705_v23 = vpop.f32.mrf.mxu1  ;;  %v1859_v33 = vmul.f32 %v2778_v19, %v1826_v30  ;;  %v1885_v38 = vadd.f32 %v1880_v18, %v1861_v24 }
 0x2e6   : > { %v1888_v34 = vadd.f32 %v1884_v27, %v1767_v25  ;;  %v1765_v14 = vadd.f32 %v1748_v31, %v1741_v28  ;;  %v1744_v36 = vmul.f32 %v2776_v15, %v1720_v29  ;;  %v1718_v37 = vadd.f32 %v1705_v23, %v1627_v21 }
 0x2e7   : > { %v1883_v12 = vadd.f32 %v1870_v5, %v1859_v33 }
 0x2e8   : > { %v1892_v39 = vmax.f32 %v1888_v34, 0.0  ;;  %v1886_v26 = vadd.f32 %v1882_v32, %v1765_v14  ;;  %v1768_v40 = vadd.f32 %v1763_v50, %v1744_v36  ;;  %v1742_v41 = vmul.f32 %v2774_v13, %v1718_v37 }
 0x2ea   : > { %v2116_v42 = vpack.c.bf16 %v1892_v39, %v1892_v39  ;;  %v1890_v19 = vmax.f32 %v1886_v26, 0.0  ;;  %v1889_v43 = vadd.f32 %v1885_v38, %v1768_v40  ;;  %v1766_v31 = vadd.f32 %v2780_v35, %v1742_v41 }
 0x2ec   : > { %1913 = vst.msk [vmem:[%s406_s18 + $0x8] sm:$0xf] %vm1910_vm7, %v2116_v42  ;;  %v2114_v15 = vpack.c.bf16 %v1890_v19, %v1890_v19  ;;  %v1893_v44 = vmax.f32 %v1889_v43, 0.0  ;;  %v1887_v45 = vadd.f32 %v1883_v12, %v1766_v31 }
 0x2ee   : > { %1911 = vst.msk [vmem:[%s406_s18] sm:$0xf] %vm1910_vm7, %v2114_v15  ;;  %v2117_v46 = vpack.c.bf16 %v1893_v44, %v1893_v44  ;;  %v1891_v47 = vmax.f32 %v1887_v45, 0.0 }
 0x2f0   : > { %1914 = vst.msk [vmem:[%s406_s18 + $0xc] sm:$0xf] %vm1910_vm7, %v2117_v46  ;;  %v2115_v13 = vpack.c.bf16 %v1891_v47, %v1891_v47 }
 0x2f2   : > { %1912 = vst.msk [vmem:[%s406_s18 + $0x4] sm:$0xf] %vm1910_vm7, %v2115_v13 }
 0x2f3 PF: > { %s21_s17 = sadd.s32 1, %s2361_s17  }
 0x2f4   : > { %p18_p4 = scmp.ge.s32.totalorder %s21_s17, 4  }
 0x2f6   :  { %20 = sbr.rel (!%p18_p4) target bundleno = 1 (0x1), region = 109 }

// kernel: model_forward.11
= control target key start
LH: loop header
LB: loop body
LE: loop exit
PB: predicated region body
PF: predicated region fallthrough
CT: control target
= control target key end

     0   :  { %s2132_s24 = smov 0   ;;  %s2456_s0 = inlined_call_operand.vmem [shape: bf16[2,32,8], index: 0, kind: input, shape index: {}]   ;;  %s2457_s1 = inlined_call_operand.vmem [shape: bf16[7,32,32], index: 1, kind: input, shape index: {}]   ;;  %s2458_s2 = inlined_call_operand.vmem [shape: bf16[7,32,32], index: 2, kind: input, shape index: {}]   ;;  %s2459_s3 = inlined_call_operand.vmem [shape: f32[32,1], index: 3, kind: input, shape index: {}]   ;;  %s2460_s4 = inlined_call_operand.vmem [shape: f32[32,1], index: 4, kind: input, shape index: {}]   ;;  %s2461_s5 = inlined_call_operand.vmem [shape: f32[32,1], index: 5, kind: input, shape index: {}]   ;;  %s2462_s6 = inlined_call_operand.vmem [shape: f32[32,1], index: 6, kind: input, shape index: {}]   ;;  %s2463_s7 = inlined_call_operand.vmem [shape: bf16[2,32,8], index: 7, kind: output, shape index: {}]  }
   0x1 LB: > { %s1721_s25 = sadd.s32 4294967295, %s2077_s24   ;;  %p1725_p0 = scmp.ge.s32.totalorder %s2077_s24, 1  ;;  %s2077_s24 = sphi %s2132_s24, %s17_s24  }
   0x2   : > { %p237_p1 = scmp.lt.s32.totalorder %s2077_s24, 3 }
   0x4   : > { %p238_p2 = pnand %p1725_p0, %p237_p1 }
   0x5   : > { %p269_p3 = scmp.lt.s32.totalorder (!%p238_p2), %s1721_s25, 1  ;;  %s2079_s9 = smov (!%p238_p2), 122  }
   0x6   : > { %241 = sbr.rel (%p238_p2) target bundleno = 762 (0x2fa), region = 48  ;;  %s2080_s10 = smov (!%p238_p2), 2  }
   0x7   : > { %s2081_s13 = smov (!%p238_p2), 123   ;;  %s2082_s14 = smov (!%p238_p2), 3  }
   0x8   : > { %s2083_s15 = smov (!%p238_p2), 121   ;;  %s2084_s16 = smov (!%p238_p2), 1  }
   0x9   : > { %s2085_s17 = smov (!%p238_p2), 127   ;;  %s2086_s18 = smov (!%p238_p2), 7  }
   0xa   : > { %s2087_s19 = smov (!%p238_p2), 126   ;;  %s2088_s20 = smov (!%p238_p2), 6  }
   0xb   : > { %s2470_s25 = smov (!%p269_p3, %s1721_s25), 1  ;;  %v2041_v2 = vld [vmem:[%s2457_s1 + $0x10] sm:$0xff]   ;;  %vm363_vm0 = vcmask 261120   ;;  %v2043_v3 = vld [vmem:[%s2457_s1] sm:$0xff]   ;;  %s2465_s21 = smov 125   ;;  %v2091_v4 = vmov 0  }
   0xc   : > { %s2464_s26 = sshll.u32 %s2470_s25, 4  ;;  %1908 = vmatprep.mubr.msk.bf16.mxu0 %vm363_vm0, %v2041_v2  ;;  %1916 = vmatprep.mubr.msk.bf16.mxu1 %vm363_vm0, %v2043_v3  ;;  %s2090_s22 = smov 5   ;;  %v286_v5 = vld [vmem:[%s2459_s3 + $0x10] sm:$0xff]  ;;  %v287_v6 = vld [vmem:[%s2459_s3 + $0x18] sm:$0xff]  ;;  %v285_v9 = vld [vmem:[%s2459_s3 + $0x8] sm:$0xff]  ;;  %vm339_vm1 = vcmask 15360  }
   0xd   : > { %s273_s29 = scalar_lea.vmem %s2456_s0, %s2464_s26  ;;  %2038 = vset.pattern.permute.xlu1 %v2091_v4  ;;  %2037 = vset.pattern.permute.xlu0 %v2091_v4  ;;  %v291_v7 = vld [vmem:[%s2460_s4 + $0x18] sm:$0xff]  ;;  %v290_v8 = vld [vmem:[%s2460_s4 + $0x10] sm:$0xff]  ;;  %v284_v10 = vld [vmem:[%s2459_s3] sm:$0xff]  ;;  %vm318_vm2 = vcmask 23552   ;;  %vm492_vm3 = vcmask 7168   ;;  %vm659_vm4 = vcmask 56320  }
   0xe   : > { %v2148_v0 = vld [vmem:[%s273_s29 + $0x8] sm:$0xff]   ;;  %v2150_v1 = vld [vmem:[%s273_s29] sm:$0xff]   ;;  %v2042_v22 = vld [vmem:[%s2457_s1 + $0x18] sm:$0xff]   ;;  %vm750_vm5 = vcmask 48128   ;;  %vm841_vm6 = vcmask 39936   ;;  %s2467_s30 = smov 125  }
   0xf   : > { %333 = vrot.lane.b32.xlu0 %v2148_v0, %s2079_s9  ;;  %331 = vrot.lane.b32.xlu1 %v2150_v1, %s2079_s9  ;;  %v289_v11 = vld [vmem:[%s2460_s4 + $0x8] sm:$0xff]  ;;  %v288_v12 = vld [vmem:[%s2460_s4] sm:$0xff]  ;;  %s2468_s29 = sshll.u32 %s2470_s25, 4  ;;  %vm1661_vm7 = vcmask 60416  }
  0x10   : > { %v2045_v23 = vld [vmem:[%s2457_s1 + $0x20] sm:$0xff]   ;;  %v2044_v30 = vld [vmem:[%s2457_s1 + $0x8] sm:$0xff]   ;;  %v2047_v33 = vld [vmem:[%s2457_s1 + $0x30] sm:$0xff]  }
  0x11   : > { %v2046_v35 = vld [vmem:[%s2457_s1 + $0x28] sm:$0xff]   ;;  %v2049_v38 = vld [vmem:[%s2457_s1 + $0x40] sm:$0xff]   ;;  %v2048_v40 = vld [vmem:[%s2457_s1 + $0x38] sm:$0xff]  }
  0x12   : > { %v2051_v41 = vld [vmem:[%s2457_s1 + $0x50] sm:$0xff]   ;;  %v2050_v45 = vld [vmem:[%s2457_s1 + $0x48] sm:$0xff]   ;;  %v2053_v46 = vld [vmem:[%s2457_s1 + $0x60] sm:$0xff]  }
  0x13   : > { %337 = vrot.lane.b32.xlu0 %v2148_v0, %s2080_s10  ;;  %335 = vrot.lane.b32.xlu1 %v2150_v1, %s2080_s10  ;;  %v2052_v56 = vld [vmem:[%s2457_s1 + $0x58] sm:$0xff]   ;;  %v2054_v60 = vld [vmem:[%s2457_s1 + $0x68] sm:$0xff]  }
  0x17   : > { %312 = vrot.lane.b32.xlu0 %v2148_v0, %s2081_s13  ;;  %316 = vrot.lane.b32.xlu1 %v2148_v0, %s2082_s14 }
  0x1b   : > { %486 = vrot.lane.b32.xlu0 %v2148_v0, %s2083_s15  ;;  %490 = vrot.lane.b32.xlu1 %v2148_v0, %s2084_s16 }
  0x1f   : > { %310 = vrot.lane.b32.xlu0 %v2150_v1, %s2081_s13  ;;  %314 = vrot.lane.b32.xlu1 %v2150_v1, %s2082_s14 }
  0x23   : > { %484 = vrot.lane.b32.xlu0 %v2150_v1, %s2083_s15  ;;  %488 = vrot.lane.b32.xlu1 %v2150_v1, %s2084_s16 }
  0x27   : > { %653 = vrot.lane.b32.xlu0 %v2148_v0, %s2085_s17  ;;  %657 = vrot.lane.b32.xlu1 %v2148_v0, %s2086_s18 }
  0x2b   : > { %651 = vrot.lane.b32.xlu0 %v2150_v1, %s2085_s17  ;;  %655 = vrot.lane.b32.xlu1 %v2150_v1, %s2086_s18 }
  0x2f   : > { %744 = vrot.lane.b32.xlu0 %v2148_v0, %s2087_s19  ;;  %748 = vrot.lane.b32.xlu1 %v2148_v0, %s2088_s20 }
  0x33   : > { %835 = vrot.lane.b32.xlu0 %v2148_v0, %s2465_s21  ;;  %839 = vrot.lane.b32.xlu1 %v2148_v0, %s2090_s22 }
  0x37   : > { %742 = vrot.lane.b32.xlu0 %v2150_v1, %s2087_s19  ;;  %746 = vrot.lane.b32.xlu1 %v2150_v1, %s2088_s20 }
  0x3b   : > { %833 = vrot.lane.b32.xlu0 %v2150_v1, %s2465_s21  ;;  %837 = vrot.lane.b32.xlu1 %v2150_v1, %s2090_s22 }
  0x3f   : > { %936 = vperm.xlu0 %2037, %v286_v5   ;;  %941 = vperm.xlu1 %2038, %v287_v6  }
  0x43   : > { %965 = vperm.xlu0 %2037, %v291_v7   ;;  %960 = vperm.xlu1 %2038, %v290_v8  }
  0x47   : > { %931 = vperm.xlu0 %2037, %v285_v9   ;;  %926 = vperm.xlu1 %2038, %v284_v10  }
  0x4b   : > { %955 = vperm.xlu0 %2037, %v289_v11   ;;  %950 = vperm.xlu1 %2038, %v288_v12  }
  0x81   : > { %v334_v13 = vpop.permute.xlu0 %333  ;;  %v332_v14 = vpop.permute.xlu1 %331 }
  0x85   : > { %v338_v15 = vpop.permute.xlu0 %337  ;;  %v336_v16 = vpop.permute.xlu1 %335 }
  0x86   : > { %v346_v17 = vsel %vm339_vm1, %v334_v13, %v338_v15  ;;  %v342_v18 = vsel %vm339_vm1, %v332_v14, %v336_v16 }
  0x87   : > { %1904 = vmatprep.subr.bf16.mxu0 %v346_v17 }
  0x88   : > { %1905 = vmatpush3.bf16.msra.mxu0 %v346_v17 }
  0x89   : > { %v313_v19 = vpop.permute.xlu0 %312  ;;  %1906 = vmatprep.subr.bf16.mxu0 %v342_v18  ;;  %v317_v20 = vpop.permute.xlu1 %316 }
  0x8a   : > { %v325_v21 = vsel %vm318_vm2, %v313_v19, %v317_v20 }
  0x8b   : > { %1912 = vmatprep.subr.bf16.mxu1 %v325_v21 }
  0x8c   : > { %1907 = vmatpush3.bf16.msra.mxu0 %v342_v18  ;;  %1913 = vmatpush3.bf16.msra.mxu1 %v325_v21 }
  0x8d   : > { %v487_v24 = vpop.permute.xlu0 %486  ;;  %v491_v25 = vpop.permute.xlu1 %490 }
  0x8e   : > { %v499_v26 = vsel %vm492_vm3, %v487_v24, %v491_v25 }
  0x8f   : > { %1920 = vmatprep.subr.bf16.mxu0 %v499_v26  ;;  %1909 = vmatmul.mubr.msk.bf16.vlgmr.msra.gmra.mxu0 %vm363_vm0, %v2042_v22 }
  0x90   : > { %1921 = vmatpush3.bf16.msra.mxu0 %v499_v26  ;;  %1924 = vmatprep.mubr.msk.bf16.mxu0 %vm363_vm0, %v2045_v23 }
  0x91   : > { %v311_v27 = vpop.permute.xlu0 %310  ;;  %v315_v28 = vpop.permute.xlu1 %314 }
  0x92   : > { %v321_v29 = vsel %vm318_vm2, %v311_v27, %v315_v28 }
  0x93   : > { %1914 = vmatprep.subr.bf16.mxu1 %v321_v29 }
  0x94   : > { %1915 = vmatpush3.bf16.msra.mxu1 %v321_v29 }
  0x95   : > { %v485_v31 = vpop.permute.xlu0 %484  ;;  %v489_v32 = vpop.permute.xlu1 %488  ;;  %1928 = vmatprep.subr.bf16.mxu1 %v2148_v0 }
  0x96   : > { %v495_v34 = vsel %vm492_vm3, %v485_v31, %v489_v32 }
  0x97   : > { %1917 = vmatmul.mubr.msk.bf16.vlgmr.msra.gmra.mxu1 %vm363_vm0, %v2044_v30  ;;  %1922 = vmatprep.subr.bf16.mxu0 %v495_v34 }
  0x98   : > { %1923 = vmatpush3.bf16.msra.mxu0 %v495_v34  ;;  %1929 = vmatpush3.bf16.msra.mxu1 %v2148_v0 }
  0x99   : > { %v654_v36 = vpop.permute.xlu0 %653  ;;  %v658_v37 = vpop.permute.xlu1 %657  ;;  %1930 = vmatprep.subr.bf16.mxu1 %v2150_v1  ;;  %1932 = vmatprep.mubr.msk.bf16.mxu1 %vm363_vm0, %v2047_v33 }
  0x9a   : > { %v666_v39 = vsel %vm659_vm4, %v654_v36, %v658_v37 }
  0x9b   : > { %1925 = vmatmul.mubr.msk.bf16.vlgmr.msra.gmra.mxu0 %vm363_vm0, %v2046_v35  ;;  %1936 = vmatprep.subr.bf16.mxu0 %v666_v39 }
  0x9c   : > { %1931 = vmatpush3.bf16.msra.mxu1 %v2150_v1  ;;  %1937 = vmatpush3.bf16.msra.mxu0 %v666_v39 }
  0x9d   : > { %v652_v42 = vpop.permute.xlu0 %651  ;;  %v656_v43 = vpop.permute.xlu1 %655  ;;  %1940 = vmatprep.mubr.msk.bf16.mxu0 %vm363_vm0, %v2049_v38 }
  0x9e   : > { %v662_v44 = vsel %vm659_vm4, %v652_v42, %v656_v43 }
  0x9f   : > { %1933 = vmatmul.mubr.msk.bf16.vlgmr.msra.gmra.mxu1 %vm363_vm0, %v2048_v40  ;;  %1938 = vmatprep.subr.bf16.mxu0 %v662_v44 }
  0xa0   : > { %1939 = vmatpush3.bf16.msra.mxu0 %v662_v44  ;;  %1948 = vmatprep.mubr.msk.bf16.mxu1 %vm363_vm0, %v2051_v41 }
  0xa1   : > { %v745_v47 = vpop.permute.xlu0 %744  ;;  %v749_v48 = vpop.permute.xlu1 %748 }
  0xa2   : > { %v757_v49 = vsel %vm750_vm5, %v745_v47, %v749_v48 }
  0xa3   : > { %1941 = vmatmul.mubr.msk.bf16.vlgmr.msra.gmra.mxu0 %vm363_vm0, %v2050_v45  ;;  %1944 = vmatprep.subr.bf16.mxu1 %v757_v49 }
  0xa4   : > { %1945 = vmatpush3.bf16.msra.mxu1 %v757_v49  ;;  %1956 = vmatprep.mubr.msk.bf16.mxu0 %vm363_vm0, %v2053_v46 }
  0xa5   : > { %v836_v50 = vpop.permute.xlu0 %835  ;;  %v840_v51 = vpop.permute.xlu1 %839 }
  0xa6   : > { %v848_v52 = vsel %vm841_vm6, %v836_v50, %v840_v51 }
  0xa7   : > { %1952 = vmatprep.subr.bf16.mxu0 %v848_v52 }
  0xa8   : > { %1953 = vmatpush3.bf16.msra.mxu0 %v848_v52 }
  0xa9   : > { %v743_v53 = vpop.permute.xlu0 %742  ;;  %v747_v54 = vpop.permute.xlu1 %746 }
  0xaa   : > { %v753_v55 = vsel %vm750_vm5, %v743_v53, %v747_v54 }
  0xab   : > { %1946 = vmatprep.subr.bf16.mxu1 %v753_v55 }
  0xac   : > { %1947 = vmatpush3.bf16.msra.mxu1 %v753_v55 }
  0xad   : > { %v834_v57 = vpop.permute.xlu0 %833  ;;  %v838_v58 = vpop.permute.xlu1 %837 }
  0xae   : > { %v844_v59 = vsel %vm841_vm6, %v834_v57, %v838_v58 }
  0xaf   : > { %1949 = vmatmul.mubr.msk.bf16.vlgmr.msra.gmra.mxu1 %vm363_vm0, %v2052_v56  ;;  %1954 = vmatprep.subr.bf16.mxu0 %v844_v59 }
  0xb0   : > { %1955 = vmatpush3.bf16.msra.mxu0 %v844_v59 }
  0xb3   : > { %1957 = vmatmul.mubr.msk.bf16.vlgmr.msra.gmra.mxu0 %vm363_vm0, %v2054_v60 }
  0xba   : > { %v942_v28 = vpop.permute.xlu1 %941  ;;  %v937_v34 = vpop.permute.xlu0 %936 }
  0xbe   : > { %v961_v40 = vpop.permute.xlu1 %960  ;;  %v966_v45 = vpop.permute.xlu0 %965 }
 0x14f   : > { %v1910_v61 = vpop.f32.mrf.mxu0 }
 0x151   : > { %v404_v62 = vpop.f32.mrf.mxu0 }
 0x153   : > { %v1911_v63 = vpop.f32.mrf.mxu0 }
 0x155   : > { %v407_v3 = vpop.f32.mrf.mxu0 }
 0x157   : > { %v1918_v2 = vpop.f32.mrf.mxu1 }
 0x158   : > { %v478_v14 = vadd.f32 %v1918_v2, %v1910_v61  ;;  %v932_v61 = vpop.permute.xlu0 %931 }
 0x159   : > { %v469_v4 = vpop.f32.mrf.mxu1 }
 0x15a   : > { %v470_v41 = vadd.f32 %v469_v4, %v404_v62 }
 0x15b   : > { %v1919_v5 = vpop.f32.mrf.mxu1  ;;  %v1926_v6 = vpop.f32.mrf.mxu0 }
 0x15c   : > { %v573_v17 = vadd.f32 %v1926_v6, %v478_v14  ;;  %v481_v20 = vadd.f32 %v1919_v5, %v1911_v63  ;;  %v927_v63 = vpop.permute.xlu1 %926  ;;  %v956_v4 = vpop.permute.xlu0 %955  ;;  %v2055_v5 = vld [vmem:[%s2458_s2 + $0x10] sm:$0xff]   ;;  %v292_v14 = vld [vmem:[%s2461_s5] sm:$0xff] }
 0x15d   : > { %v472_v7 = vpop.f32.mrf.mxu1  ;;  %v556_v8 = vpop.f32.mrf.mxu0  ;;  %1964 = vmatprep.mubr.msk.bf16.mxu1 %vm363_vm0, %v2055_v5 }
 0x15e   : > { %v473_v42 = vadd.f32 %v472_v7, %v407_v3  ;;  %v571_v48 = vadd.f32 %v556_v8, %v470_v41 }
 0x15f   : > { %v1927_v9 = vpop.f32.mrf.mxu0  ;;  %v1934_v10 = vpop.f32.mrf.mxu1 }
 0x160   : > { %v649_v21 = vadd.f32 %v1934_v10, %v573_v17  ;;  %v574_v23 = vadd.f32 %v1927_v9, %v481_v20  ;;  %v951_v7 = vpop.permute.xlu1 %950  ;;  %v2057_v9 = vld [vmem:[%s2458_s2] sm:$0xff]   ;;  %v297_v17 = vld [vmem:[%s2462_s6 + $0x8] sm:$0xff]  ;;  %v298_v20 = vld [vmem:[%s2462_s6 + $0x10] sm:$0xff] }
 0x161   : > { %v559_v11 = vpop.f32.mrf.mxu0  ;;  %v632_v12 = vpop.f32.mrf.mxu1  ;;  %1972 = vmatprep.mubr.msk.bf16.mxu0 %vm363_vm0, %v2057_v9 }
 0x162   : > { %v572_v46 = vadd.f32 %v559_v11, %v473_v42  ;;  %v647_v53 = vadd.f32 %v632_v12, %v571_v48  ;;  %v2058_v42 = vld [vmem:[%s2458_s2 + $0x8] sm:$0xff]  }
 0x163   : > { %v1942_v13 = vpop.f32.mrf.mxu0  ;;  %v1935_v15 = vpop.f32.mrf.mxu1 }
 0x164   : > { %v740_v24 = vadd.f32 %v1942_v13, %v649_v21  ;;  %v650_v27 = vadd.f32 %v1935_v15, %v574_v23  ;;  %v293_v13 = vld [vmem:[%s2461_s5 + $0x8] sm:$0xff]  ;;  %v295_v15 = vld [vmem:[%s2461_s5 + $0x18] sm:$0xff] }
 0x165   : > { %v723_v16 = vpop.f32.mrf.mxu0  ;;  %v635_v18 = vpop.f32.mrf.mxu1 }
 0x166   : > { %v648_v49 = vadd.f32 %v635_v18, %v572_v46  ;;  %v738_v57 = vadd.f32 %v723_v16, %v647_v53  ;;  %v294_v16 = vld [vmem:[%s2461_s5 + $0x10] sm:$0xff]  ;;  %v296_v18 = vld [vmem:[%s2462_s6] sm:$0xff] }
 0x167   : > { %v1943_v19 = vpop.f32.mrf.mxu0  ;;  %v2061_v46 = vld [vmem:[%s2458_s2 + $0x30] sm:$0xff]  }
 0x168   : > { %v741_v32 = vadd.f32 %v1943_v19, %v650_v27  ;;  %v299_v19 = vld [vmem:[%s2462_s6 + $0x18] sm:$0xff] }
 0x169   : > { %v726_v25 = vpop.f32.mrf.mxu0 }
 0x16a   : > { %v739_v54 = vadd.f32 %v726_v25, %v648_v49 }
 0x16f   : > { %v1950_v22 = vpop.f32.mrf.mxu1 }
 0x170   : > { %v831_v29 = vadd.f32 %v1950_v22, %v740_v24 }
 0x171   : > { %v814_v26 = vpop.f32.mrf.mxu1 }
 0x172   : > { %v829_v59 = vadd.f32 %v814_v26, %v738_v57 }
 0x173   : > { %v1951_v30 = vpop.f32.mrf.mxu1  ;;  %v1958_v31 = vpop.f32.mrf.mxu0 }
 0x174   : > { %v922_v33 = vadd.f32 %v1958_v31, %v831_v29  ;;  %v832_v36 = vadd.f32 %v1951_v30, %v741_v32 }
 0x175   : > { %v905_v35 = vpop.f32.mrf.mxu0  ;;  %v817_v52 = vpop.f32.mrf.mxu1 }
 0x176   : > { %v946_v37 = vmul.f32 %v937_v34, %v922_v33  ;;  %v830_v58 = vadd.f32 %v817_v52, %v739_v54  ;;  %v920_v62 = vadd.f32 %v905_v35, %v829_v59  ;;  %v2062_v52 = vld [vmem:[%s2458_s2 + $0x38] sm:$0xff]  }
 0x177   : > { %v1959_v38 = vpop.f32.mrf.mxu0 }
 0x178   : > { %v923_v39 = vadd.f32 %v1959_v38, %v832_v36  ;;  %v970_v43 = vadd.f32 %v961_v40, %v946_v37  ;;  %v944_v3 = vmul.f32 %v927_v63, %v920_v62  ;;  %v2056_v36 = vld [vmem:[%s2458_s2 + $0x18] sm:$0xff]   ;;  %v2059_v40 = vld [vmem:[%s2458_s2 + $0x20] sm:$0xff]  }
 0x179   : > { %v908_v56 = vpop.f32.mrf.mxu0  ;;  %v2067_v62 = vld [vmem:[%s2458_s2 + $0x60] sm:$0xff]  }
 0x17a   : > { %v947_v44 = vmul.f32 %v942_v28, %v923_v39  ;;  %v974_v50 = vmax.f32 %v970_v43, 0.0  ;;  %v921_v60 = vadd.f32 %v908_v56, %v830_v58  ;;  %v968_v8 = vadd.f32 %v951_v7, %v944_v3  ;;  %v2065_v56 = vld [vmem:[%s2458_s2 + $0x50] sm:$0xff]   ;;  %v2064_v58 = vld [vmem:[%s2458_s2 + $0x48] sm:$0xff]  }
 0x17c   : > { %v971_v47 = vadd.f32 %v966_v45, %v947_v44  ;;  %v945_v2 = vmul.f32 %v932_v61, %v921_v60  ;;  %v972_v11 = vmax.f32 %v968_v8, 0.0 }
 0x17e   : > { %v975_v51 = vmax.f32 %v971_v47, 0.0  ;;  %v969_v6 = vadd.f32 %v956_v4, %v945_v2  ;;  %v2060_v47 = vld [vmem:[%s2458_s2 + $0x28] sm:$0xff]   ;;  %v2066_v2 = vld [vmem:[%s2458_s2 + $0x58] sm:$0xff]  }
 0x180   : > { %v2296_v55 = vpack.c.bf16 %v975_v51, %v974_v50  ;;  %v973_v10 = vmax.f32 %v969_v6, 0.0  ;;  %v2063_v51 = vld [vmem:[%s2458_s2 + $0x40] sm:$0xff]   ;;  %v2068_v6 = vld [vmem:[%s2458_s2 + $0x68] sm:$0xff]  }
 0x182   : > { %1006 = vrot.lane.b32.xlu0 %v2296_v55, %s2080_s10  ;;  %1002 = vrot.lane.b32.xlu1 %v2296_v55, %s2079_s9  ;;  %v2326_v12 = vpack.c.bf16 %v973_v10, %v972_v11 }
 0x186   : > { %986 = vrot.lane.b32.xlu0 %v2296_v55, %s2082_s14  ;;  %982 = vrot.lane.b32.xlu1 %v2296_v55, %s2081_s13 }
 0x18a   : > { %1157 = vrot.lane.b32.xlu0 %v2296_v55, %s2084_s16  ;;  %1153 = vrot.lane.b32.xlu1 %v2296_v55, %s2083_s15 }
 0x18e   : > { %1321 = vrot.lane.b32.xlu0 %v2296_v55, %s2086_s18  ;;  %1317 = vrot.lane.b32.xlu1 %v2296_v55, %s2085_s17 }
 0x192   : > { %1411 = vrot.lane.b32.xlu0 %v2296_v55, %s2088_s20  ;;  %1407 = vrot.lane.b32.xlu1 %v2296_v55, %s2087_s19 }
 0x196   : > { %1004 = vrot.lane.b32.xlu0 %v2326_v12, %s2080_s10  ;;  %1000 = vrot.lane.b32.xlu1 %v2326_v12, %s2079_s9  ;;  %s278_s10 = scalar_lea.vmem %s2463_s7, %s2468_s29 }
 0x19a   : > { %984 = vrot.lane.b32.xlu0 %v2326_v12, %s2082_s14  ;;  %980 = vrot.lane.b32.xlu1 %v2326_v12, %s2081_s13 }
 0x19e   : > { %1155 = vrot.lane.b32.xlu0 %v2326_v12, %s2084_s16  ;;  %1151 = vrot.lane.b32.xlu1 %v2326_v12, %s2083_s15 }
 0x1a2   : > { %1501 = vrot.lane.b32.xlu0 %v2296_v55, %s2090_s22  ;;  %1497 = vrot.lane.b32.xlu1 %v2296_v55, %s2467_s30 }
 0x1a6   : > { %1319 = vrot.lane.b32.xlu0 %v2326_v12, %s2086_s18  ;;  %1315 = vrot.lane.b32.xlu1 %v2326_v12, %s2085_s17 }
 0x1aa   : > { %1409 = vrot.lane.b32.xlu0 %v2326_v12, %s2088_s20  ;;  %1405 = vrot.lane.b32.xlu1 %v2326_v12, %s2087_s19 }
 0x1ae   : > { %1499 = vrot.lane.b32.xlu0 %v2326_v12, %s2090_s22  ;;  %1495 = vrot.lane.b32.xlu1 %v2326_v12, %s2467_s30 }
 0x1b2   : > { %1592 = vperm.xlu0 %2037, %v293_v13   ;;  %1587 = vperm.xlu1 %2038, %v292_v14  }
 0x1b6   : > { %1602 = vperm.xlu0 %2037, %v295_v15   ;;  %1597 = vperm.xlu1 %2038, %v294_v16  }
 0x1ba   : > { %1616 = vperm.xlu0 %2037, %v297_v17   ;;  %1611 = vperm.xlu1 %2038, %v296_v18  }
 0x1be   : > { %1626 = vperm.xlu0 %2037, %v299_v19   ;;  %1621 = vperm.xlu1 %2038, %v298_v20  }
 0x1f4   : > { %v1007_v21 = vpop.permute.xlu0 %1006  ;;  %v1003_v22 = vpop.permute.xlu1 %1002 }
 0x1f5   : > { %v1014_v23 = vsel %vm339_vm1, %v1003_v22, %v1007_v21 }
 0x1f6   : > { %1960 = vmatprep.subr.bf16.mxu1 %v1014_v23 }
 0x1f7   : > { %1961 = vmatpush3.bf16.msra.mxu1 %v1014_v23 }
 0x1f8   : > { %v987_v24 = vpop.permute.xlu0 %986  ;;  %v983_v25 = vpop.permute.xlu1 %982 }
 0x1f9   : > { %v994_v26 = vsel %vm318_vm2, %v983_v25, %v987_v24 }
 0x1fa   : > { %1968 = vmatprep.subr.bf16.mxu0 %v994_v26 }
 0x1fb   : > { %1969 = vmatpush3.bf16.msra.mxu0 %v994_v26 }
 0x1fc   : > { %v1158_v27 = vpop.permute.xlu0 %1157  ;;  %v1154_v28 = vpop.permute.xlu1 %1153 }
 0x1fd   : > { %v1165_v37 = vsel %vm492_vm3, %v1154_v28, %v1158_v27 }
 0x200   : > { %v1322_v29 = vpop.permute.xlu0 %1321  ;;  %v1318_v30 = vpop.permute.xlu1 %1317 }
 0x201   : > { %v1329_v48 = vsel %vm659_vm4, %v1318_v30, %v1322_v29 }
 0x204   : > { %v1412_v31 = vpop.permute.xlu0 %1411  ;;  %v1408_v32 = vpop.permute.xlu1 %1407 }
 0x205   : > { %v1419_v53 = vsel %vm750_vm5, %v1408_v32, %v1412_v31 }
 0x208   : > { %v1005_v33 = vpop.permute.xlu0 %1004  ;;  %v1001_v34 = vpop.permute.xlu1 %1000 }
 0x209   : > { %v1010_v35 = vsel %vm339_vm1, %v1001_v34, %v1005_v33 }
 0x20a   : > { %1962 = vmatprep.subr.bf16.mxu1 %v1010_v35 }
 0x20b   : > { %1963 = vmatpush3.bf16.msra.mxu1 %v1010_v35 }
 0x20c   : > { %v985_v38 = vpop.permute.xlu0 %984  ;;  %1976 = vmatprep.subr.bf16.mxu1 %v1165_v37  ;;  %v981_v39 = vpop.permute.xlu1 %980 }
 0x20d   : > { %v990_v41 = vsel %vm318_vm2, %v981_v39, %v985_v38 }
 0x20e   : > { %1965 = vmatmul.mubr.msk.bf16.vlgmr.msra.gmra.mxu1 %vm363_vm0, %v2056_v36  ;;  %1970 = vmatprep.subr.bf16.mxu0 %v990_v41 }
 0x20f   : > { %1971 = vmatpush3.bf16.msra.mxu0 %v990_v41  ;;  %1977 = vmatpush3.bf16.msra.mxu1 %v1165_v37 }
 0x210   : > { %v1156_v43 = vpop.permute.xlu0 %1155  ;;  %1984 = vmatprep.subr.bf16.mxu0 %v2296_v55  ;;  %v1152_v44 = vpop.permute.xlu1 %1151  ;;  %1980 = vmatprep.mubr.msk.bf16.mxu1 %vm363_vm0, %v2059_v40 }
 0x211   : > { %v1161_v45 = vsel %vm492_vm3, %v1152_v44, %v1156_v43 }
 0x212   : > { %1973 = vmatmul.mubr.msk.bf16.vlgmr.msra.gmra.mxu0 %vm363_vm0, %v2058_v42  ;;  %1978 = vmatprep.subr.bf16.mxu1 %v1161_v45 }
 0x213   : > { %1979 = vmatpush3.bf16.msra.mxu1 %v1161_v45  ;;  %1985 = vmatpush3.bf16.msra.mxu0 %v2296_v55 }
 0x214   : > { %v1502_v49 = vpop.permute.xlu0 %1501  ;;  %1986 = vmatprep.subr.bf16.mxu0 %v2326_v12  ;;  %1992 = vmatprep.subr.bf16.mxu1 %v1329_v48  ;;  %v1498_v50 = vpop.permute.xlu1 %1497 }
 0x215   : > { %1988 = vmatprep.mubr.msk.bf16.mxu0 %vm363_vm0, %v2061_v46  ;;  %v1509_v59 = vsel %vm841_vm6, %v1498_v50, %v1502_v49 }
 0x216   : > { %1981 = vmatmul.mubr.msk.bf16.vlgmr.msra.gmra.mxu1 %vm363_vm0, %v2060_v47 }
 0x217   : > { %1987 = vmatpush3.bf16.msra.mxu0 %v2326_v12  ;;  %1993 = vmatpush3.bf16.msra.mxu1 %v1329_v48 }
 0x218   : > { %v1320_v54 = vpop.permute.xlu0 %1319  ;;  %2000 = vmatprep.subr.bf16.mxu0 %v1419_v53  ;;  %v1316_v55 = vpop.permute.xlu1 %1315  ;;  %1996 = vmatprep.mubr.msk.bf16.mxu1 %vm363_vm0, %v2063_v51 }
 0x219   : > { %v1325_v57 = vsel %vm659_vm4, %v1316_v55, %v1320_v54  ;;  %v1635_v55 = vunpack.c.l.bf16 %v2148_v0 }
 0x21a   : > { %1989 = vmatmul.mubr.msk.bf16.vlgmr.msra.gmra.mxu0 %vm363_vm0, %v2062_v52  ;;  %1994 = vmatprep.subr.bf16.mxu1 %v1325_v57 }
 0x21b   : > { %1995 = vmatpush3.bf16.msra.mxu1 %v1325_v57  ;;  %2001 = vmatpush3.bf16.msra.mxu0 %v1419_v53 }
 0x21c   : > { %v1410_v60 = vpop.permute.xlu0 %1409  ;;  %2008 = vmatprep.subr.bf16.mxu1 %v1509_v59  ;;  %v1406_v61 = vpop.permute.xlu1 %1405  ;;  %2004 = vmatprep.mubr.msk.bf16.mxu0 %vm363_vm0, %v2065_v56 }
 0x21d   : > { %v1415_v63 = vsel %vm750_vm5, %v1406_v61, %v1410_v60 }
 0x21e   : > { %1997 = vmatmul.mubr.msk.bf16.vlgmr.msra.gmra.mxu1 %vm363_vm0, %v2064_v58  ;;  %2002 = vmatprep.subr.bf16.mxu0 %v1415_v63 }
 0x21f   : > { %2003 = vmatpush3.bf16.msra.mxu0 %v1415_v63  ;;  %2009 = vmatpush3.bf16.msra.mxu1 %v1509_v59  ;;  %v1633_v63 = vunpack.c.l.bf16 %v2150_v1 }
 0x220   : > { %v1500_v3 = vpop.permute.xlu0 %1499  ;;  %v1496_v4 = vpop.permute.xlu1 %1495  ;;  %2012 = vmatprep.mubr.msk.bf16.mxu1 %vm363_vm0, %v2067_v62 }
 0x221   : > { %v1505_v5 = vsel %vm841_vm6, %v1496_v4, %v1500_v3 }
 0x222   : > { %2005 = vmatmul.mubr.msk.bf16.vlgmr.msra.gmra.mxu0 %vm363_vm0, %v2066_v2  ;;  %2010 = vmatprep.subr.bf16.mxu1 %v1505_v5 }
 0x223   : > { %2011 = vmatpush3.bf16.msra.mxu1 %v1505_v5 }
 0x226   : > { %2013 = vmatmul.mubr.msk.bf16.vlgmr.msra.gmra.mxu1 %vm363_vm0, %v2068_v6 }
 0x22d   : > { %v1588_v15 = vpop.permute.xlu1 %1587  ;;  %v1593_v20 = vpop.permute.xlu0 %1592 }
 0x231   : > { %v1598_v23 = vpop.permute.xlu1 %1597  ;;  %v1603_v31 = vpop.permute.xlu0 %1602 }
 0x235   : > { %v1612_v37 = vpop.permute.xlu1 %1611  ;;  %v1617_v50 = vpop.permute.xlu0 %1616 }
 0x239   : > { %v1622_v62 = vpop.permute.xlu1 %1621 }
 0x2ce   : > { %v1966_v7 = vpop.f32.mrf.mxu1 }
 0x2d0   : > { %v1071_v8 = vpop.f32.mrf.mxu1 }
 0x2d2   : > { %v1967_v9 = vpop.f32.mrf.mxu1  ;;  %v1974_v10 = vpop.f32.mrf.mxu0 }
 0x2d3   : > { %v1145_v24 = vadd.f32 %v1974_v10, %v1966_v7  ;;  %v1636_v7 = vunpack.c.h.bf16 %v2148_v0 }
 0x2d4   : > { %v1074_v11 = vpop.f32.mrf.mxu1  ;;  %v1136_v12 = vpop.f32.mrf.mxu0 }
 0x2d5   : > { %v1137_v27 = vadd.f32 %v1136_v12, %v1071_v8 }
 0x2d6   : > { %v1975_v13 = vpop.f32.mrf.mxu0  ;;  %v1982_v14 = vpop.f32.mrf.mxu1 }
 0x2d7   : > { %v1239_v28 = vadd.f32 %v1982_v14, %v1145_v24  ;;  %v1148_v32 = vadd.f32 %v1975_v13, %v1967_v9  ;;  %v1627_v13 = vpop.permute.xlu0 %1626  ;;  %v1634_v14 = vunpack.c.h.bf16 %v2150_v1 }
 0x2d8   : > { %v1139_v16 = vpop.f32.mrf.mxu0  ;;  %v1222_v17 = vpop.f32.mrf.mxu1 }
 0x2d9   : > { %v1237_v33 = vadd.f32 %v1222_v17, %v1137_v27  ;;  %v1140_v38 = vadd.f32 %v1139_v16, %v1074_v11 }
 0x2da   : > { %v1983_v18 = vpop.f32.mrf.mxu1  ;;  %v1990_v19 = vpop.f32.mrf.mxu0 }
 0x2db   : > { %v1313_v34 = vadd.f32 %v1990_v19, %v1239_v28  ;;  %v1240_v39 = vadd.f32 %v1983_v18, %v1148_v32 }
 0x2dc   : > { %v1225_v21 = vpop.f32.mrf.mxu1  ;;  %v1296_v22 = vpop.f32.mrf.mxu0 }
 0x2dd   : > { %v1311_v40 = vadd.f32 %v1296_v22, %v1237_v33  ;;  %v1238_v44 = vadd.f32 %v1225_v21, %v1140_v38 }
 0x2de   : > { %v1991_v25 = vpop.f32.mrf.mxu0  ;;  %v1998_v26 = vpop.f32.mrf.mxu1 }
 0x2df   : > { %v1403_v41 = vadd.f32 %v1998_v26, %v1313_v34  ;;  %v1314_v45 = vadd.f32 %v1991_v25, %v1240_v39 }
 0x2e0   : > { %v1299_v29 = vpop.f32.mrf.mxu0  ;;  %v1386_v30 = vpop.f32.mrf.mxu1 }
 0x2e1   : > { %v1401_v46 = vadd.f32 %v1386_v30, %v1311_v40  ;;  %v1312_v51 = vadd.f32 %v1299_v29, %v1238_v44 }
 0x2e2   : > { %v1999_v35 = vpop.f32.mrf.mxu1  ;;  %v2006_v36 = vpop.f32.mrf.mxu0 }
 0x2e3   : > { %v1493_v47 = vadd.f32 %v2006_v36, %v1403_v41  ;;  %v1404_v52 = vadd.f32 %v1999_v35, %v1314_v45 }
 0x2e4   : > { %v1389_v42 = vpop.f32.mrf.mxu1  ;;  %v1476_v43 = vpop.f32.mrf.mxu0 }
 0x2e5   : > { %v1491_v53 = vadd.f32 %v1476_v43, %v1401_v46  ;;  %v1402_v58 = vadd.f32 %v1389_v42, %v1312_v51 }
 0x2e6   : > { %v2007_v48 = vpop.f32.mrf.mxu0  ;;  %v2014_v49 = vpop.f32.mrf.mxu1 }
 0x2e7   : > { %v1583_v54 = vadd.f32 %v2014_v49, %v1493_v47  ;;  %v1494_v59 = vadd.f32 %v2007_v48, %v1404_v52 }
 0x2e8   : > { %v1479_v56 = vpop.f32.mrf.mxu0  ;;  %v1566_v57 = vpop.f32.mrf.mxu1 }
 0x2e9   : > { %v1607_v60 = vmul.f32 %v1598_v23, %v1583_v54  ;;  %v1581_v61 = vadd.f32 %v1566_v57, %v1491_v53  ;;  %v1492_v4 = vadd.f32 %v1479_v56, %v1402_v58 }
 0x2ea   : > { %v2015_v2 = vpop.f32.mrf.mxu1 }
 0x2eb   : > { %v1631_v3 = vadd.f32 %v1622_v62, %v1607_v60  ;;  %v1605_v5 = vmul.f32 %v1588_v15, %v1581_v61  ;;  %v1584_v6 = vadd.f32 %v2015_v2, %v1494_v59 }
 0x2ec   : > { %v1569_v8 = vpop.f32.mrf.mxu1 }
 0x2ed   : > { %v1639_v9 = vadd.f32 %v1635_v55, %v1631_v3  ;;  %v1629_v10 = vadd.f32 %v1612_v37, %v1605_v5  ;;  %v1608_v11 = vmul.f32 %v1603_v31, %v1584_v6  ;;  %v1582_v12 = vadd.f32 %v1569_v8, %v1492_v4 }
 0x2ef   : > { %v1643_v16 = vmax.f32 %v1639_v9, 0.0  ;;  %v1637_v17 = vadd.f32 %v1633_v63, %v1629_v10  ;;  %v1632_v18 = vadd.f32 %v1627_v13, %v1608_v11  ;;  %v1606_v19 = vmul.f32 %v1593_v20, %v1582_v12 }
 0x2f1   : > { %v1846_v15 = vpack.c.bf16 %v1643_v16, %v1643_v16  ;;  %v1641_v0 = vmax.f32 %v1637_v17, 0.0  ;;  %v1640_v21 = vadd.f32 %v1636_v7, %v1632_v18  ;;  %v1630_v22 = vadd.f32 %v1617_v50, %v1606_v19 }
 0x2f3   : > { %1664 = vst.msk [vmem:[%s278_s10 + $0x8] sm:$0xf] %vm1661_vm7, %v1846_v15  ;;  %v1844_v23 = vpack.c.bf16 %v1641_v0, %v1641_v0  ;;  %v1644_v24 = vmax.f32 %v1640_v21, 0.0  ;;  %v1638_v25 = vadd.f32 %v1634_v14, %v1630_v22 }
 0x2f5   : > { %1662 = vst.msk [vmem:[%s278_s10] sm:$0xf] %vm1661_vm7, %v1844_v23  ;;  %v1847_v1 = vpack.c.bf16 %v1644_v24, %v1644_v24  ;;  %v1642_v26 = vmax.f32 %v1638_v25, 0.0 }
 0x2f7   : > { %1665 = vst.msk [vmem:[%s278_s10 + $0xc] sm:$0xf] %vm1661_vm7, %v1847_v1  ;;  %v1845_v27 = vpack.c.bf16 %v1642_v26, %v1642_v26 }
 0x2f9   : > { %1663 = vst.msk [vmem:[%s278_s10 + $0x4] sm:$0xf] %vm1661_vm7, %v1845_v27 }
 0x2fa PF: > { %s17_s24 = sadd.s32 1, %s2077_s24  }
 0x2fb   : > { %p14_p4 = scmp.ge.s32.totalorder %s17_s24, 4  }
 0x2fd   :  { %16 = sbr.rel (!%p14_p4) target bundleno = 1 (0x1), region = 90 }

// kernel: model_forward.13
= control target key start
LH: loop header
LB: loop body
LE: loop exit
PB: predicated region body
PF: predicated region fallthrough
CT: control target
= control target key end

     0   :  { %s2021_s24 = smov 0   ;;  %s2285_s0 = inlined_call_operand.vmem [shape: bf16[2,32,4], index: 0, kind: input, shape index: {}]   ;;  %s2286_s1 = inlined_call_operand.vmem [shape: bf16[7,32,32], index: 1, kind: input, shape index: {}]   ;;  %s2287_s2 = inlined_call_operand.vmem [shape: bf16[7,32,32], index: 2, kind: input, shape index: {}]   ;;  %s2288_s3 = inlined_call_operand.vmem [shape: f32[32,1], index: 3, kind: input, shape index: {}]   ;;  %s2289_s4 = inlined_call_operand.vmem [shape: f32[32,1], index: 4, kind: input, shape index: {}]   ;;  %s2290_s5 = inlined_call_operand.vmem [shape: f32[32,1], index: 5, kind: input, shape index: {}]   ;;  %s2291_s6 = inlined_call_operand.vmem [shape: f32[32,1], index: 6, kind: input, shape index: {}]   ;;  %s2292_s7 = inlined_call_operand.vmem [shape: bf16[2,32,4], index: 7, kind: output, shape index: {}]  }
   0x1 LB: > { %s1622_s25 = sadd.s32 4294967295, %s1972_s24   ;;  %p1626_p0 = scmp.ge.s32.totalorder %s1972_s24, 1  ;;  %s1972_s24 = sphi %s2021_s24, %s17_s24  }
   0x2   : > { %p237_p1 = scmp.lt.s32.totalorder %s1972_s24, 3 }
   0x4   : > { %p238_p2 = pnand %p1626_p0, %p237_p1 }
   0x5   : > { %p269_p3 = scmp.lt.s32.totalorder (!%p238_p2), %s1622_s25, 1  ;;  %s1974_s9 = smov (!%p238_p2), 126  }
   0x6   : > { %241 = sbr.rel (%p238_p2) target bundleno = 746 (0x2ea), region = 48  ;;  %s1975_s10 = smov (!%p238_p2), 2  }
   0x7   : > { %s1976_s13 = smov (!%p238_p2), 127   ;;  %s1977_s14 = smov (!%p238_p2), 3  }
   0x8   : > { %s1978_s15 = smov (!%p238_p2), 125   ;;  %s1979_s16 = smov (!%p238_p2), 1  }
   0xb   : > { %s2294_s25 = smov (!%p269_p3, %s1622_s25), 1  ;;  %v1936_v2 = vld [vmem:[%s2286_s1 + $0x10] sm:$0xff]   ;;  %vm363_vm0 = vcmask 261120   ;;  %v1938_v3 = vld [vmem:[%s2286_s1] sm:$0xff]   ;;  %v287_v5 = vld [vmem:[%s2288_s3 + $0x18] sm:$0xff]  ;;  %v1980_v6 = vmov 0  }
   0xc   : > { %s1743_s26 = sshll.u32 %s2294_s25, 4  ;;  %1809 = vmatprep.mubr.msk.bf16.mxu0 %vm363_vm0, %v1936_v2  ;;  %1817 = vmatprep.mubr.msk.bf16.mxu1 %vm363_vm0, %v1938_v3  ;;  %v286_v4 = vld [vmem:[%s2288_s3 + $0x10] sm:$0xff]  ;;  %v291_v7 = vld [vmem:[%s2289_s4 + $0x18] sm:$0xff]  ;;  %v285_v9 = vld [vmem:[%s2288_s3 + $0x8] sm:$0xff]  ;;  %vm339_vm1 = vcmask 15360   ;;  %vm318_vm2 = vcmask 23552  }
   0xd   : > { %s273_s29 = scalar_lea.vmem %s2285_s0, %s1743_s26  ;;  %1933 = vset.pattern.permute.xlu1 %v1980_v6  ;;  %1932 = vset.pattern.permute.xlu0 %v1980_v6  ;;  %v290_v8 = vld [vmem:[%s2289_s4 + $0x10] sm:$0xff]  ;;  %v284_v10 = vld [vmem:[%s2288_s3] sm:$0xff]  ;;  %v289_v11 = vld [vmem:[%s2289_s4 + $0x8] sm:$0xff]  ;;  %vm492_vm3 = vcmask 7168   ;;  %vm1562_vm4 = vcmask 27648  }
   0xe   : > { %v2037_v0 = vld [vmem:[%s273_s29 + $0x8] sm:$0xff]   ;;  %v2039_v1 = vld [vmem:[%s273_s29] sm:$0xff]   ;;  %v1937_v22 = vld [vmem:[%s2286_s1 + $0x18] sm:$0xff]  }
   0xf   : > { %333 = vrot.lane.b32.xlu0 %v2037_v0, %s1974_s9  ;;  %331 = vrot.lane.b32.xlu1 %v2039_v1, %s1974_s9  ;;  %v288_v12 = vld [vmem:[%s2289_s4] sm:$0xff]  ;;  %v1939_v30 = vld [vmem:[%s2286_s1 + $0x8] sm:$0xff]  }
  0x10   : > { %v1940_v23 = vld [vmem:[%s2286_s1 + $0x20] sm:$0xff]   ;;  %v1942_v34 = vld [vmem:[%s2286_s1 + $0x30] sm:$0xff]   ;;  %v1941_v35 = vld [vmem:[%s2286_s1 + $0x28] sm:$0xff]  }
  0x11   : > { %v1944_v36 = vld [vmem:[%s2286_s1 + $0x40] sm:$0xff]   ;;  %v1943_v37 = vld [vmem:[%s2286_s1 + $0x38] sm:$0xff]   ;;  %v1946_v38 = vld [vmem:[%s2286_s1 + $0x50] sm:$0xff]  }
  0x12   : > { %v1945_v39 = vld [vmem:[%s2286_s1 + $0x48] sm:$0xff]   ;;  %v1948_v40 = vld [vmem:[%s2286_s1 + $0x60] sm:$0xff]   ;;  %v1947_v41 = vld [vmem:[%s2286_s1 + $0x58] sm:$0xff]  }
  0x13   : > { %337 = vrot.lane.b32.xlu0 %v2037_v0, %s1975_s10  ;;  %335 = vrot.lane.b32.xlu1 %v2039_v1, %s1975_s10  ;;  %v1949_v42 = vld [vmem:[%s2286_s1 + $0x68] sm:$0xff]  }
  0x17   : > { %312 = vrot.lane.b32.xlu0 %v2037_v0, %s1976_s13  ;;  %316 = vrot.lane.b32.xlu1 %v2037_v0, %s1977_s14 }
  0x1b   : > { %486 = vrot.lane.b32.xlu0 %v2037_v0, %s1978_s15  ;;  %490 = vrot.lane.b32.xlu1 %v2037_v0, %s1979_s16 }
  0x1f   : > { %310 = vrot.lane.b32.xlu0 %v2039_v1, %s1976_s13  ;;  %314 = vrot.lane.b32.xlu1 %v2039_v1, %s1977_s14 }
  0x23   : > { %484 = vrot.lane.b32.xlu0 %v2039_v1, %s1978_s15  ;;  %488 = vrot.lane.b32.xlu1 %v2039_v1, %s1979_s16 }
  0x27   : > { %885 = vperm.xlu0 %1932, %v286_v4   ;;  %890 = vperm.xlu1 %1933, %v287_v5  }
  0x2b   : > { %914 = vperm.xlu0 %1932, %v291_v7   ;;  %909 = vperm.xlu1 %1933, %v290_v8  }
  0x2f   : > { %880 = vperm.xlu0 %1932, %v285_v9   ;;  %875 = vperm.xlu1 %1933, %v284_v10  }
  0x33   : > { %904 = vperm.xlu0 %1932, %v289_v11   ;;  %899 = vperm.xlu1 %1933, %v288_v12  }
  0x81   : > { %v334_v13 = vpop.permute.xlu0 %333  ;;  %v332_v14 = vpop.permute.xlu1 %331 }
  0x85   : > { %v338_v15 = vpop.permute.xlu0 %337  ;;  %v336_v16 = vpop.permute.xlu1 %335 }
  0x86   : > { %v346_v17 = vsel %vm339_vm1, %v334_v13, %v338_v15  ;;  %v342_v18 = vsel %vm339_vm1, %v332_v14, %v336_v16 }
  0x87   : > { %1805 = vmatprep.subr.bf16.mxu0 %v346_v17 }
  0x88   : > { %1806 = vmatpush3.bf16.msra.mxu0 %v346_v17 }
  0x89   : > { %v313_v19 = vpop.permute.xlu0 %312  ;;  %1807 = vmatprep.subr.bf16.mxu0 %v342_v18  ;;  %v317_v20 = vpop.permute.xlu1 %316 }
  0x8a   : > { %v325_v21 = vsel %vm318_vm2, %v313_v19, %v317_v20 }
  0x8b   : > { %1813 = vmatprep.subr.bf16.mxu1 %v325_v21 }
  0x8c   : > { %1808 = vmatpush3.bf16.msra.mxu0 %v342_v18  ;;  %1814 = vmatpush3.bf16.msra.mxu1 %v325_v21 }
  0x8d   : > { %v487_v24 = vpop.permute.xlu0 %486  ;;  %v491_v25 = vpop.permute.xlu1 %490 }
  0x8e   : > { %v499_v26 = vsel %vm492_vm3, %v487_v24, %v491_v25 }
  0x8f   : > { %1810 = vmatmul.mubr.msk.bf16.vlgmr.msra.gmra.mxu0 %vm363_vm0, %v1937_v22  ;;  %1821 = vmatprep.subr.bf16.mxu0 %v499_v26 }
  0x90   : > { %1822 = vmatpush3.bf16.msra.mxu0 %v499_v26  ;;  %1825 = vmatprep.mubr.msk.bf16.mxu0 %vm363_vm0, %v1940_v23 }
  0x91   : > { %v311_v27 = vpop.permute.xlu0 %310  ;;  %v315_v28 = vpop.permute.xlu1 %314 }
  0x92   : > { %v321_v29 = vsel %vm318_vm2, %v311_v27, %v315_v28 }
  0x93   : > { %1815 = vmatprep.subr.bf16.mxu1 %v321_v29 }
  0x94   : > { %1816 = vmatpush3.bf16.msra.mxu1 %v321_v29 }
  0x95   : > { %v485_v31 = vpop.permute.xlu0 %484  ;;  %v489_v32 = vpop.permute.xlu1 %488  ;;  %1829 = vmatprep.subr.bf16.mxu1 %v2037_v0 }
  0x96   : > { %v495_v33 = vsel %vm492_vm3, %v485_v31, %v489_v32 }
  0x97   : > { %1818 = vmatmul.mubr.msk.bf16.vlgmr.msra.gmra.mxu1 %vm363_vm0, %v1939_v30  ;;  %1823 = vmatprep.subr.bf16.mxu0 %v495_v33 }
  0x98   : > { %1824 = vmatpush3.bf16.msra.mxu0 %v495_v33  ;;  %1830 = vmatpush3.bf16.msra.mxu1 %v2037_v0 }
  0x99   : > { %1837 = vmatprep.subr.bf16.mxu0 %v325_v21  ;;  %1831 = vmatprep.subr.bf16.mxu1 %v2039_v1 }
  0x9a   : > { %1833 = vmatprep.mubr.msk.bf16.mxu1 %vm363_vm0, %v1942_v34 }
  0x9b   : > { %1826 = vmatmul.mubr.msk.bf16.vlgmr.msra.gmra.mxu0 %vm363_vm0, %v1941_v35 }
  0x9c   : > { %1832 = vmatpush3.bf16.msra.mxu1 %v2039_v1  ;;  %1838 = vmatpush3.bf16.msra.mxu0 %v325_v21 }
  0x9d   : > { %1839 = vmatprep.subr.bf16.mxu0 %v321_v29  ;;  %1845 = vmatprep.subr.bf16.mxu1 %v346_v17 }
  0x9e   : > { %1841 = vmatprep.mubr.msk.bf16.mxu0 %vm363_vm0, %v1944_v36 }
  0x9f   : > { %1834 = vmatmul.mubr.msk.bf16.vlgmr.msra.gmra.mxu1 %vm363_vm0, %v1943_v37 }
  0xa0   : > { %1840 = vmatpush3.bf16.msra.mxu0 %v321_v29  ;;  %1846 = vmatpush3.bf16.msra.mxu1 %v346_v17 }
  0xa1   : > { %1847 = vmatprep.subr.bf16.mxu1 %v342_v18  ;;  %1853 = vmatprep.subr.bf16.mxu0 %v499_v26 }
  0xa2   : > { %1849 = vmatprep.mubr.msk.bf16.mxu1 %vm363_vm0, %v1946_v38  ;;  %v886_v6 = vpop.permute.xlu0 %885  ;;  %v891_v12 = vpop.permute.xlu1 %890 }
  0xa3   : > { %1842 = vmatmul.mubr.msk.bf16.vlgmr.msra.gmra.mxu0 %vm363_vm0, %v1945_v39 }
  0xa4   : > { %1848 = vmatpush3.bf16.msra.mxu1 %v342_v18  ;;  %1854 = vmatpush3.bf16.msra.mxu0 %v499_v26 }
  0xa5   : > { %1855 = vmatprep.subr.bf16.mxu0 %v495_v33  ;;  %1857 = vmatprep.mubr.msk.bf16.mxu0 %vm363_vm0, %v1948_v40 }
  0xa6   : > { %v915_v23 = vpop.permute.xlu0 %914  ;;  %v910_v31 = vpop.permute.xlu1 %909 }
  0xa7   : > { %1850 = vmatmul.mubr.msk.bf16.vlgmr.msra.gmra.mxu1 %vm363_vm0, %v1947_v41 }
  0xa8   : > { %1856 = vmatpush3.bf16.msra.mxu0 %v495_v33 }
  0xaa   : > { %v881_v40 = vpop.permute.xlu0 %880 }
  0xab   : > { %1858 = vmatmul.mubr.msk.bf16.vlgmr.msra.gmra.mxu0 %vm363_vm0, %v1949_v42 }
 0x14f   : > { %v1811_v43 = vpop.f32.mrf.mxu0 }
 0x151   : > { %v404_v44 = vpop.f32.mrf.mxu0 }
 0x153   : > { %v1812_v45 = vpop.f32.mrf.mxu0 }
 0x155   : > { %v407_v47 = vpop.f32.mrf.mxu0 }
 0x157   : > { %v1819_v46 = vpop.f32.mrf.mxu1 }
 0x158   : > { %v478_v57 = vadd.f32 %v1819_v46, %v1811_v43 }
 0x159   : > { %v469_v48 = vpop.f32.mrf.mxu1 }
 0x15a   : > { %v470_v16 = vadd.f32 %v469_v48, %v404_v44  ;;  %v876_v44 = vpop.permute.xlu1 %875  ;;  %v905_v48 = vpop.permute.xlu0 %904 }
 0x15b   : > { %v1820_v49 = vpop.f32.mrf.mxu1  ;;  %v1827_v50 = vpop.f32.mrf.mxu0 }
 0x15c   : > { %v573_v60 = vadd.f32 %v1827_v50, %v478_v57  ;;  %v481_v63 = vadd.f32 %v1820_v49, %v1812_v45  ;;  %v1950_v49 = vld [vmem:[%s2287_s2 + $0x10] sm:$0xff]   ;;  %v293_v57 = vld [vmem:[%s2290_s5 + $0x8] sm:$0xff] }
 0x15d   : > { %v472_v51 = vpop.f32.mrf.mxu1  ;;  %v556_v52 = vpop.f32.mrf.mxu0  ;;  %1865 = vmatprep.mubr.msk.bf16.mxu1 %vm363_vm0, %v1950_v49 }
 0x15e   : > { %v473_v10 = vadd.f32 %v472_v51, %v407_v47  ;;  %v571_v21 = vadd.f32 %v556_v52, %v470_v16  ;;  %v900_v51 = vpop.permute.xlu1 %899 }
 0x15f   : > { %v1828_v53 = vpop.f32.mrf.mxu0  ;;  %v1835_v54 = vpop.f32.mrf.mxu1 }
 0x160   : > { %v649_v2 = vadd.f32 %v1835_v54, %v573_v60  ;;  %v574_v5 = vadd.f32 %v1828_v53, %v481_v63  ;;  %v1952_v53 = vld [vmem:[%s2287_s2] sm:$0xff]   ;;  %v294_v60 = vld [vmem:[%s2290_s5 + $0x10] sm:$0xff]  ;;  %v299_v63 = vld [vmem:[%s2291_s6 + $0x18] sm:$0xff] }
 0x161   : > { %v559_v55 = vpop.f32.mrf.mxu0  ;;  %v632_v56 = vpop.f32.mrf.mxu1  ;;  %1873 = vmatprep.mubr.msk.bf16.mxu0 %vm363_vm0, %v1952_v53 }
 0x162   : > { %v572_v17 = vadd.f32 %v559_v55, %v473_v10  ;;  %v647_v28 = vadd.f32 %v632_v56, %v571_v21 }
 0x163   : > { %v1836_v58 = vpop.f32.mrf.mxu1  ;;  %v1843_v59 = vpop.f32.mrf.mxu0 }
 0x164   : > { %v723_v7 = vadd.f32 %v1843_v59, %v649_v2  ;;  %v650_v11 = vadd.f32 %v1836_v58, %v574_v5  ;;  %v292_v58 = vld [vmem:[%s2290_s5] sm:$0xff]  ;;  %v295_v59 = vld [vmem:[%s2290_s5 + $0x18] sm:$0xff]  ;;  %v298_v2 = vld [vmem:[%s2291_s6 + $0x10] sm:$0xff] }
 0x165   : > { %v635_v61 = vpop.f32.mrf.mxu1  ;;  %v706_v62 = vpop.f32.mrf.mxu0 }
 0x166   : > { %v648_v22 = vadd.f32 %v635_v61, %v572_v17  ;;  %v721_v33 = vadd.f32 %v706_v62, %v647_v28  ;;  %v297_v61 = vld [vmem:[%s2291_s6 + $0x8] sm:$0xff]  ;;  %v296_v62 = vld [vmem:[%s2291_s6] sm:$0xff]  ;;  %v1960_v28 = vld [vmem:[%s2287_s2 + $0x50] sm:$0xff]  }
 0x167   : > { %v1844_v3 = vpop.f32.mrf.mxu0  ;;  %v1851_v4 = vpop.f32.mrf.mxu1 }
 0x168   : > { %v797_v13 = vadd.f32 %v1851_v4, %v723_v7  ;;  %v724_v18 = vadd.f32 %v1844_v3, %v650_v11 }
 0x169   : > { %v709_v8 = vpop.f32.mrf.mxu0  ;;  %v780_v9 = vpop.f32.mrf.mxu1 }
 0x16a   : > { %v722_v29 = vadd.f32 %v709_v8, %v648_v22  ;;  %v795_v37 = vadd.f32 %v780_v9, %v721_v33 }
 0x16b   : > { %v1852_v14 = vpop.f32.mrf.mxu1  ;;  %v1859_v15 = vpop.f32.mrf.mxu0 }
 0x16c   : > { %v871_v19 = vadd.f32 %v1859_v15, %v797_v13  ;;  %v798_v24 = vadd.f32 %v1852_v14, %v724_v18  ;;  %v1951_v14 = vld [vmem:[%s2287_s2 + $0x18] sm:$0xff]   ;;  %v1954_v18 = vld [vmem:[%s2287_s2 + $0x20] sm:$0xff]  }
 0x16d   : > { %v854_v20 = vpop.f32.mrf.mxu0  ;;  %v783_v26 = vpop.f32.mrf.mxu1 }
 0x16e   : > { %v895_v25 = vmul.f32 %v886_v6, %v871_v19  ;;  %v796_v35 = vadd.f32 %v783_v26, %v722_v29  ;;  %v869_v42 = vadd.f32 %v854_v20, %v795_v37  ;;  %v1953_v20 = vld [vmem:[%s2287_s2 + $0x8] sm:$0xff]   ;;  %v1958_v26 = vld [vmem:[%s2287_s2 + $0x40] sm:$0xff]  }
 0x16f   : > { %v1860_v27 = vpop.f32.mrf.mxu0  ;;  %v1959_v29 = vld [vmem:[%s2287_s2 + $0x48] sm:$0xff]  }
 0x170   : > { %v872_v30 = vadd.f32 %v1860_v27, %v798_v24  ;;  %v919_v34 = vadd.f32 %v910_v31, %v895_v25  ;;  %v893_v47 = vmul.f32 %v876_v44, %v869_v42  ;;  %v1956_v24 = vld [vmem:[%s2287_s2 + $0x30] sm:$0xff]   ;;  %v1955_v25 = vld [vmem:[%s2287_s2 + $0x28] sm:$0xff]   ;;  %v1957_v27 = vld [vmem:[%s2287_s2 + $0x38] sm:$0xff]  }
 0x171   : > { %v857_v32 = vpop.f32.mrf.mxu0  ;;  %v1961_v31 = vld [vmem:[%s2287_s2 + $0x58] sm:$0xff]  }
 0x172   : > { %v896_v36 = vmul.f32 %v891_v12, %v872_v30  ;;  %v870_v39 = vadd.f32 %v857_v32, %v796_v35  ;;  %v923_v41 = vmax.f32 %v919_v34, 0.0  ;;  %v917_v52 = vadd.f32 %v900_v51, %v893_v47  ;;  %v1962_v30 = vld [vmem:[%s2287_s2 + $0x60] sm:$0xff]   ;;  %v1963_v32 = vld [vmem:[%s2287_s2 + $0x68] sm:$0xff]  }
 0x174   : > { %v920_v38 = vadd.f32 %v915_v23, %v896_v36  ;;  %v894_v46 = vmul.f32 %v881_v40, %v870_v39  ;;  %v921_v55 = vmax.f32 %v917_v52, 0.0 }
 0x176   : > { %v924_v43 = vmax.f32 %v920_v38, 0.0  ;;  %v918_v50 = vadd.f32 %v905_v48, %v894_v46 }
 0x178   : > { %v2155_v45 = vpack.c.bf16 %v924_v43, %v923_v41  ;;  %v922_v54 = vmax.f32 %v918_v50, 0.0 }
 0x17a   : > { %955 = vrot.lane.b32.xlu0 %v2155_v45, %s1975_s10  ;;  %951 = vrot.lane.b32.xlu1 %v2155_v45, %s1974_s9  ;;  %v2177_v56 = vpack.c.bf16 %v922_v54, %v921_v55 }
 0x17e   : > { %935 = vrot.lane.b32.xlu0 %v2155_v45, %s1977_s14  ;;  %931 = vrot.lane.b32.xlu1 %v2155_v45, %s1976_s13 }
 0x182   : > { %1106 = vrot.lane.b32.xlu0 %v2155_v45, %s1979_s16  ;;  %1102 = vrot.lane.b32.xlu1 %v2155_v45, %s1978_s15 }
 0x186   : > { %953 = vrot.lane.b32.xlu0 %v2177_v56, %s1975_s10  ;;  %949 = vrot.lane.b32.xlu1 %v2177_v56, %s1974_s9  ;;  %s278_s10 = scalar_lea.vmem %s2292_s7, %s1743_s26 }
 0x18a   : > { %933 = vrot.lane.b32.xlu0 %v2177_v56, %s1977_s14  ;;  %929 = vrot.lane.b32.xlu1 %v2177_v56, %s1976_s13 }
 0x18e   : > { %1104 = vrot.lane.b32.xlu0 %v2177_v56, %s1979_s16  ;;  %1100 = vrot.lane.b32.xlu1 %v2177_v56, %s1978_s15 }
 0x192   : > { %1493 = vperm.xlu0 %1932, %v293_v57   ;;  %1488 = vperm.xlu1 %1933, %v292_v58  }
 0x196   : > { %1503 = vperm.xlu0 %1932, %v295_v59   ;;  %1498 = vperm.xlu1 %1933, %v294_v60  }
 0x19a   : > { %1517 = vperm.xlu0 %1932, %v297_v61   ;;  %1512 = vperm.xlu1 %1933, %v296_v62  }
 0x19e   : > { %1527 = vperm.xlu0 %1932, %v299_v63   ;;  %1522 = vperm.xlu1 %1933, %v298_v2  }
 0x1ec   : > { %v956_v3 = vpop.permute.xlu0 %955  ;;  %v952_v4 = vpop.permute.xlu1 %951 }
 0x1ed   : > { %v963_v5 = vsel %vm339_vm1, %v952_v4, %v956_v3 }
 0x1ee   : > { %1861 = vmatprep.subr.bf16.mxu1 %v963_v5 }
 0x1ef   : > { %1862 = vmatpush3.bf16.msra.mxu1 %v963_v5 }
 0x1f0   : > { %v936_v6 = vpop.permute.xlu0 %935  ;;  %v932_v7 = vpop.permute.xlu1 %931 }
 0x1f1   : > { %v943_v8 = vsel %vm318_vm2, %v932_v7, %v936_v6 }
 0x1f2   : > { %1869 = vmatprep.subr.bf16.mxu0 %v943_v8 }
 0x1f3   : > { %1870 = vmatpush3.bf16.msra.mxu0 %v943_v8 }
 0x1f4   : > { %v1107_v9 = vpop.permute.xlu0 %1106  ;;  %v1103_v10 = vpop.permute.xlu1 %1102 }
 0x1f5   : > { %v1114_v15 = vsel %vm492_vm3, %v1103_v10, %v1107_v9 }
 0x1f8   : > { %v954_v11 = vpop.permute.xlu0 %953  ;;  %v950_v12 = vpop.permute.xlu1 %949 }
 0x1f9   : > { %v959_v13 = vsel %vm339_vm1, %v950_v12, %v954_v11 }
 0x1fa   : > { %1863 = vmatprep.subr.bf16.mxu1 %v959_v13 }
 0x1fb   : > { %1864 = vmatpush3.bf16.msra.mxu1 %v959_v13 }
 0x1fc   : > { %v934_v16 = vpop.permute.xlu0 %933  ;;  %1877 = vmatprep.subr.bf16.mxu1 %v1114_v15  ;;  %v930_v17 = vpop.permute.xlu1 %929 }
 0x1fd   : > { %v939_v19 = vsel %vm318_vm2, %v930_v17, %v934_v16 }
 0x1fe   : > { %1866 = vmatmul.mubr.msk.bf16.vlgmr.msra.gmra.mxu1 %vm363_vm0, %v1951_v14  ;;  %1871 = vmatprep.subr.bf16.mxu0 %v939_v19 }
 0x1ff   : > { %1872 = vmatpush3.bf16.msra.mxu0 %v939_v19  ;;  %1878 = vmatpush3.bf16.msra.mxu1 %v1114_v15 }
 0x200   : > { %v1105_v21 = vpop.permute.xlu0 %1104  ;;  %1885 = vmatprep.subr.bf16.mxu0 %v2155_v45  ;;  %v1101_v22 = vpop.permute.xlu1 %1100  ;;  %1881 = vmatprep.mubr.msk.bf16.mxu1 %vm363_vm0, %v1954_v18 }
 0x201   : > { %v1110_v23 = vsel %vm492_vm3, %v1101_v22, %v1105_v21 }
 0x202   : > { %1874 = vmatmul.mubr.msk.bf16.vlgmr.msra.gmra.mxu0 %vm363_vm0, %v1953_v20  ;;  %1879 = vmatprep.subr.bf16.mxu1 %v1110_v23 }
 0x203   : > { %1880 = vmatpush3.bf16.msra.mxu1 %v1110_v23  ;;  %1886 = vmatpush3.bf16.msra.mxu0 %v2155_v45 }
 0x204   : > { %1887 = vmatprep.subr.bf16.mxu0 %v2177_v56  ;;  %1893 = vmatprep.subr.bf16.mxu1 %v943_v8 }
 0x205   : > { %1889 = vmatprep.mubr.msk.bf16.mxu0 %vm363_vm0, %v1956_v24 }
 0x206   : > { %1882 = vmatmul.mubr.msk.bf16.vlgmr.msra.gmra.mxu1 %vm363_vm0, %v1955_v25 }
 0x207   : > { %1888 = vmatpush3.bf16.msra.mxu0 %v2177_v56  ;;  %1894 = vmatpush3.bf16.msra.mxu1 %v943_v8 }
 0x208   : > { %1895 = vmatprep.subr.bf16.mxu1 %v939_v19  ;;  %1901 = vmatprep.subr.bf16.mxu0 %v963_v5 }
 0x209   : > { %1897 = vmatprep.mubr.msk.bf16.mxu1 %vm363_vm0, %v1958_v26 }
 0x20a   : > { %1890 = vmatmul.mubr.msk.bf16.vlgmr.msra.gmra.mxu0 %vm363_vm0, %v1957_v27  ;;  %v1534_v27 = vunpack.c.l.bf16 %v2039_v1 }
 0x20b   : > { %1896 = vmatpush3.bf16.msra.mxu1 %v939_v19  ;;  %1902 = vmatpush3.bf16.msra.mxu0 %v963_v5  ;;  %v1536_v19 = vunpack.c.l.bf16 %v2037_v0 }
 0x20c   : > { %1903 = vmatprep.subr.bf16.mxu0 %v959_v13  ;;  %1909 = vmatprep.subr.bf16.mxu1 %v1114_v15 }
 0x20d   : > { %1905 = vmatprep.mubr.msk.bf16.mxu0 %vm363_vm0, %v1960_v28  ;;  %v1489_v41 = vpop.permute.xlu1 %1488  ;;  %v1494_v46 = vpop.permute.xlu0 %1493 }
 0x20e   : > { %1898 = vmatmul.mubr.msk.bf16.vlgmr.msra.gmra.mxu1 %vm363_vm0, %v1959_v29 }
 0x20f   : > { %1904 = vmatpush3.bf16.msra.mxu0 %v959_v13  ;;  %1910 = vmatpush3.bf16.msra.mxu1 %v1114_v15 }
 0x210   : > { %1911 = vmatprep.subr.bf16.mxu1 %v1110_v23  ;;  %1913 = vmatprep.mubr.msk.bf16.mxu1 %vm363_vm0, %v1962_v30 }
 0x211   : > { %v1499_v49 = vpop.permute.xlu1 %1498  ;;  %v1504_v57 = vpop.permute.xlu0 %1503 }
 0x212   : > { %1906 = vmatmul.mubr.msk.bf16.vlgmr.msra.gmra.mxu0 %vm363_vm0, %v1961_v31 }
 0x213   : > { %1912 = vmatpush3.bf16.msra.mxu1 %v1110_v23 }
 0x215   : > { %v1513_v63 = vpop.permute.xlu1 %1512  ;;  %v1518_v14 = vpop.permute.xlu0 %1517 }
 0x216   : > { %1914 = vmatmul.mubr.msk.bf16.vlgmr.msra.gmra.mxu1 %vm363_vm0, %v1963_v32 }
 0x219   : > { %v1523_v26 = vpop.permute.xlu1 %1522 }
 0x2be   : > { %v1867_v33 = vpop.f32.mrf.mxu1 }
 0x2c0   : > { %v1020_v34 = vpop.f32.mrf.mxu1 }
 0x2c2   : > { %v1868_v35 = vpop.f32.mrf.mxu1  ;;  %v1875_v36 = vpop.f32.mrf.mxu0 }
 0x2c3   : > { %v1094_v50 = vadd.f32 %v1875_v36, %v1867_v33  ;;  %v1537_v33 = vunpack.c.h.bf16 %v2037_v0 }
 0x2c4   : > { %v1023_v37 = vpop.f32.mrf.mxu1  ;;  %v1085_v38 = vpop.f32.mrf.mxu0 }
 0x2c5   : > { %v1086_v53 = vadd.f32 %v1085_v38, %v1020_v34 }
 0x2c6   : > { %v1876_v39 = vpop.f32.mrf.mxu0  ;;  %v1883_v40 = vpop.f32.mrf.mxu1 }
 0x2c7   : > { %v1188_v54 = vadd.f32 %v1883_v40, %v1094_v50  ;;  %v1097_v58 = vadd.f32 %v1876_v39, %v1868_v35  ;;  %v1528_v39 = vpop.permute.xlu0 %1527  ;;  %v1535_v40 = vunpack.c.h.bf16 %v2039_v1 }
 0x2c8   : > { %v1088_v42 = vpop.f32.mrf.mxu0  ;;  %v1171_v43 = vpop.f32.mrf.mxu1 }
 0x2c9   : > { %v1186_v59 = vadd.f32 %v1171_v43, %v1086_v53  ;;  %v1089_v2 = vadd.f32 %v1088_v42, %v1023_v37 }
 0x2ca   : > { %v1884_v44 = vpop.f32.mrf.mxu1  ;;  %v1891_v45 = vpop.f32.mrf.mxu0 }
 0x2cb   : > { %v1262_v60 = vadd.f32 %v1891_v45, %v1188_v54  ;;  %v1189_v3 = vadd.f32 %v1884_v44, %v1097_v58 }
 0x2cc   : > { %v1174_v47 = vpop.f32.mrf.mxu1  ;;  %v1245_v48 = vpop.f32.mrf.mxu0 }
 0x2cd   : > { %v1260_v4 = vadd.f32 %v1245_v48, %v1186_v59  ;;  %v1187_v8 = vadd.f32 %v1174_v47, %v1089_v2 }
 0x2ce   : > { %v1892_v51 = vpop.f32.mrf.mxu0  ;;  %v1899_v52 = vpop.f32.mrf.mxu1 }
 0x2cf   : > { %v1336_v5 = vadd.f32 %v1899_v52, %v1262_v60  ;;  %v1263_v9 = vadd.f32 %v1892_v51, %v1189_v3 }
 0x2d0   : > { %v1248_v55 = vpop.f32.mrf.mxu0  ;;  %v1319_v56 = vpop.f32.mrf.mxu1 }
 0x2d1   : > { %v1334_v10 = vadd.f32 %v1319_v56, %v1260_v4  ;;  %v1261_v15 = vadd.f32 %v1248_v55, %v1187_v8 }
 0x2d2   : > { %v1900_v61 = vpop.f32.mrf.mxu1  ;;  %v1907_v62 = vpop.f32.mrf.mxu0 }
 0x2d3   : > { %v1410_v11 = vadd.f32 %v1907_v62, %v1336_v5  ;;  %v1337_v16 = vadd.f32 %v1900_v61, %v1263_v9 }
 0x2d4   : > { %v1322_v6 = vpop.f32.mrf.mxu1  ;;  %v1393_v7 = vpop.f32.mrf.mxu0 }
 0x2d5   : > { %v1408_v17 = vadd.f32 %v1393_v7, %v1334_v10  ;;  %v1335_v22 = vadd.f32 %v1322_v6, %v1261_v15 }
 0x2d6   : > { %v1908_v12 = vpop.f32.mrf.mxu0  ;;  %v1915_v13 = vpop.f32.mrf.mxu1 }
 0x2d7   : > { %v1484_v18 = vadd.f32 %v1915_v13, %v1410_v11  ;;  %v1411_v23 = vadd.f32 %v1908_v12, %v1337_v16 }
 0x2d8   : > { %v1396_v20 = vpop.f32.mrf.mxu0  ;;  %v1467_v21 = vpop.f32.mrf.mxu1 }
 0x2d9   : > { %v1508_v24 = vmul.f32 %v1499_v49, %v1484_v18  ;;  %v1482_v25 = vadd.f32 %v1467_v21, %v1408_v17  ;;  %v1409_v30 = vadd.f32 %v1396_v20, %v1335_v22 }
 0x2da   : > { %v1916_v28 = vpop.f32.mrf.mxu1 }
 0x2db   : > { %v1532_v29 = vadd.f32 %v1523_v26, %v1508_v24  ;;  %v1506_v31 = vmul.f32 %v1489_v41, %v1482_v25  ;;  %v1485_v32 = vadd.f32 %v1916_v28, %v1411_v23 }
 0x2dc   : > { %v1470_v34 = vpop.f32.mrf.mxu1 }
 0x2dd   : > { %v1540_v35 = vadd.f32 %v1536_v19, %v1532_v29  ;;  %v1530_v36 = vadd.f32 %v1513_v63, %v1506_v31  ;;  %v1509_v37 = vmul.f32 %v1504_v57, %v1485_v32  ;;  %v1483_v38 = vadd.f32 %v1470_v34, %v1409_v30 }
 0x2df   : > { %v1544_v42 = vmax.f32 %v1540_v35, 0.0  ;;  %v1538_v43 = vadd.f32 %v1534_v27, %v1530_v36  ;;  %v1533_v44 = vadd.f32 %v1528_v39, %v1509_v37  ;;  %v1507_v45 = vmul.f32 %v1494_v46, %v1483_v38 }
 0x2e1   : > { %v1747_v41 = vpack.c.bf16 %v1544_v42, %v1544_v42  ;;  %v1542_v0 = vmax.f32 %v1538_v43, 0.0  ;;  %v1541_v47 = vadd.f32 %v1537_v33, %v1533_v44  ;;  %v1531_v48 = vadd.f32 %v1518_v14, %v1507_v45 }
 0x2e3   : > { %1565 = vst.msk [vmem:[%s278_s10 + $0x8] sm:$0xf] %vm1562_vm4, %v1747_v41  ;;  %v1745_v49 = vpack.c.bf16 %v1542_v0, %v1542_v0  ;;  %v1545_v50 = vmax.f32 %v1541_v47, 0.0  ;;  %v1539_v51 = vadd.f32 %v1535_v40, %v1531_v48 }
 0x2e5   : > { %1563 = vst.msk [vmem:[%s278_s10] sm:$0xf] %vm1562_vm4, %v1745_v49  ;;  %v1748_v1 = vpack.c.bf16 %v1545_v50, %v1545_v50  ;;  %v1543_v52 = vmax.f32 %v1539_v51, 0.0 }
 0x2e7   : > { %1566 = vst.msk [vmem:[%s278_s10 + $0xc] sm:$0xf] %vm1562_vm4, %v1748_v1  ;;  %v1746_v53 = vpack.c.bf16 %v1543_v52, %v1543_v52 }
 0x2e9   : > { %1564 = vst.msk [vmem:[%s278_s10 + $0x4] sm:$0xf] %vm1562_vm4, %v1746_v53 }
 0x2ea PF: > { %s17_s24 = sadd.s32 1, %s1972_s24  }
 0x2eb   : > { %p14_p4 = scmp.ge.s32.totalorder %s17_s24, 4  }
 0x2ed   :  { %16 = sbr.rel (!%p14_p4) target bundleno = 1 (0x1), region = 90 }

// kernel: model_forward.12
= control target key start
LH: loop header
LB: loop body
LE: loop exit
PB: predicated region body
PF: predicated region fallthrough
CT: control target
= control target key end

     0   :  { %s2373_s17 = smov 0   ;;  %s2713_s0 = inlined_call_operand.vmem [shape: bf16[2,32,4], index: 0, kind: input, shape index: {}]   ;;  %s2714_s1 = inlined_call_operand.vmem [shape: bf16[2,32,4], index: 1, kind: input, shape index: {}]   ;;  %s2715_s2 = inlined_call_operand.vmem [shape: bf16[7,32,32], index: 2, kind: input, shape index: {}]   ;;  %s2716_s3 = inlined_call_operand.vmem [shape: bf16[7,32,32], index: 3, kind: input, shape index: {}]   ;;  %s2717_s4 = inlined_call_operand.vmem [shape: bf16[1,32,32], index: 4, kind: input, shape index: {}]   ;;  %s2718_s5 = inlined_call_operand.vmem [shape: f32[32,1], index: 5, kind: input, shape index: {}]   ;;  %s2719_s6 = inlined_call_operand.vmem [shape: f32[32,1], index: 6, kind: input, shape index: {}]   ;;  %s2720_s7 = inlined_call_operand.vmem [shape: f32[32,1], index: 7, kind: input, shape index: {}]   ;;  %s2721_s8 = inlined_call_operand.vmem [shape: f32[32,1], index: 8, kind: input, shape index: {}]   ;;  %s2722_s9 = inlined_call_operand.vmem [shape: f32[32,1], index: 9, kind: input, shape index: {}]   ;;  %s2723_s10 = inlined_call_operand.vmem [shape: f32[32,1], index: 10, kind: input, shape index: {}]   ;;  %s2724_s11 = inlined_call_operand.vmem [shape: bf16[2,32,4], index: 11, kind: output, shape index: {}]  }
   0x1 LB: > { %s1931_s18 = sadd.s32 4294967295, %s2304_s17   ;;  %p1935_p0 = scmp.ge.s32.totalorder %s2304_s17, 1  ;;  %s2304_s17 = sphi %s2373_s17, %s21_s17  }
   0x2   : > { %p347_p1 = scmp.lt.s32.totalorder %s2304_s17, 3 }
   0x4   : > { %p348_p2 = pnand %p1935_p0, %p347_p1 }
   0x5   : > { %p392_p3 = scmp.lt.s32.totalorder (!%p348_p2), %s1931_s18, 1  ;;  %s2306_s26 = smov (!%p348_p2), 125  }
   0x6   : > { %351 = sbr.rel (%p348_p2) target bundleno = 746 (0x2ea), region = 64  ;;  %s2307_s29 = smov (!%p348_p2), 1  }
   0x7   : > { %s2308_s13 = smov (!%p348_p2), 126   ;;  %s2309_s14 = smov (!%p348_p2), 2  }
   0x8   : > { %s2310_s15 = smov (!%p348_p2), 127   ;;  %s2311_s16 = smov (!%p348_p2), 3  }
   0xb   : > { %s2726_s18 = smov (!%p392_p3, %s1931_s18), 1  ;;  %vm513_vm0 = vcmask 261120   ;;  %v2268_v3 = vld [vmem:[%s2715_s2 + $0x10] sm:$0xff]   ;;  %v2270_v4 = vld [vmem:[%s2715_s2] sm:$0xff]   ;;  %v2312_v6 = vmov 0   ;;  %v419_v8 = vld [vmem:[%s2718_s5 + $0x18] sm:$0xff] }
   0xc   : > { %s2381_s19 = sshll.u32 %s2726_s18, 4  ;;  %2131 = vmatprep.mubr.msk.bf16.mxu0 %vm513_vm0, %v2268_v3  ;;  %2139 = vmatprep.mubr.msk.bf16.mxu1 %vm513_vm0, %v2270_v4  ;;  %v418_v7 = vld [vmem:[%s2718_s5 + $0x10] sm:$0xff]  ;;  %v423_v9 = vld [vmem:[%s2719_s6 + $0x18] sm:$0xff]  ;;  %v417_v11 = vld [vmem:[%s2718_s5 + $0x8] sm:$0xff]  ;;  %vm489_vm1 = vcmask 7168   ;;  %vm458_vm2 = vcmask 15360  }
   0xd   : > { %s396_s22 = scalar_lea.vmem %s2713_s0, %s2381_s19  ;;  %s401_s25 = scalar_lea.vmem %s2714_s1, %s2381_s19  ;;  %2263 = vset.pattern.permute.xlu1 %v2312_v6  ;;  %2262 = vset.pattern.permute.xlu0 %v2312_v6  ;;  %v422_v10 = vld [vmem:[%s2719_s6 + $0x10] sm:$0xff]  ;;  %v416_v12 = vld [vmem:[%s2718_s5] sm:$0xff]  ;;  %v421_v13 = vld [vmem:[%s2719_s6 + $0x8] sm:$0xff]  ;;  %vm884_vm3 = vcmask 23552   ;;  %vm1859_vm4 = vcmask 27648  }
   0xe   : > { %v2387_v0 = vld [vmem:[%s396_s22 + $0x8] sm:$0xff]   ;;  %v2389_v1 = vld [vmem:[%s396_s22] sm:$0xff]   ;;  %v2269_v24 = vld [vmem:[%s2715_s2 + $0x18] sm:$0xff]   ;;  %s406_s24 = scalar_lea.vmem %s2724_s11, %s2381_s19 }
   0xf   : > { %483 = vrot.lane.b32.xlu0 %v2387_v0, %s2306_s26  ;;  %481 = vrot.lane.b32.xlu1 %v2389_v1, %s2306_s26  ;;  %v2399_v2 = vld [vmem:[%s401_s25 + $0x8] sm:$0xff]   ;;  %v2417_v5 = vld [vmem:[%s401_s25] sm:$0xff]  }
  0x10   : > { %v420_v14 = vld [vmem:[%s2719_s6] sm:$0xff]  ;;  %v2271_v32 = vld [vmem:[%s2715_s2 + $0x8] sm:$0xff]   ;;  %v2274_v36 = vld [vmem:[%s2715_s2 + $0x30] sm:$0xff]  }
  0x11   : > { %v2272_v25 = vld [vmem:[%s2715_s2 + $0x20] sm:$0xff]   ;;  %v2273_v37 = vld [vmem:[%s2715_s2 + $0x28] sm:$0xff]   ;;  %v2275_v41 = vld [vmem:[%s2715_s2 + $0x38] sm:$0xff]  }
  0x12   : > { %v2276_v40 = vld [vmem:[%s2715_s2 + $0x40] sm:$0xff]   ;;  %v2278_v45 = vld [vmem:[%s2715_s2 + $0x50] sm:$0xff]   ;;  %v2277_v46 = vld [vmem:[%s2715_s2 + $0x48] sm:$0xff]  }
  0x13   : > { %487 = vrot.lane.b32.xlu0 %v2387_v0, %s2307_s29  ;;  %485 = vrot.lane.b32.xlu1 %v2389_v1, %s2307_s29  ;;  %v2280_v50 = vld [vmem:[%s2715_s2 + $0x60] sm:$0xff]   ;;  %v2279_v52 = vld [vmem:[%s2715_s2 + $0x58] sm:$0xff]  }
  0x14   : > { %v2281_v56 = vld [vmem:[%s2715_s2 + $0x68] sm:$0xff]  }
  0x17   : > { %452 = vrot.lane.b32.xlu0 %v2399_v2, %s2308_s13  ;;  %456 = vrot.lane.b32.xlu1 %v2399_v2, %s2309_s14 }
  0x1b   : > { %636 = vrot.lane.b32.xlu0 %v2399_v2, %s2306_s26  ;;  %640 = vrot.lane.b32.xlu1 %v2399_v2, %s2307_s29 }
  0x1f   : > { %450 = vrot.lane.b32.xlu0 %v2417_v5, %s2308_s13  ;;  %454 = vrot.lane.b32.xlu1 %v2417_v5, %s2309_s14 }
  0x23   : > { %634 = vrot.lane.b32.xlu0 %v2417_v5, %s2306_s26  ;;  %638 = vrot.lane.b32.xlu1 %v2417_v5, %s2307_s29 }
  0x27   : > { %878 = vrot.lane.b32.xlu0 %v2387_v0, %s2310_s15  ;;  %882 = vrot.lane.b32.xlu1 %v2387_v0, %s2311_s16 }
  0x2b   : > { %969 = vrot.lane.b32.xlu0 %v2399_v2, %s2310_s15  ;;  %973 = vrot.lane.b32.xlu1 %v2399_v2, %s2311_s16 }
  0x2f   : > { %876 = vrot.lane.b32.xlu0 %v2389_v1, %s2310_s15  ;;  %880 = vrot.lane.b32.xlu1 %v2389_v1, %s2311_s16 }
  0x33   : > { %967 = vrot.lane.b32.xlu0 %v2417_v5, %s2310_s15  ;;  %971 = vrot.lane.b32.xlu1 %v2417_v5, %s2311_s16 }
  0x37   : > { %1069 = vperm.xlu0 %2262, %v418_v7   ;;  %1074 = vperm.xlu1 %2263, %v419_v8  }
  0x3b   : > { %1098 = vperm.xlu0 %2262, %v423_v9   ;;  %1093 = vperm.xlu1 %2263, %v422_v10  }
  0x3f   : > { %1064 = vperm.xlu0 %2262, %v417_v11   ;;  %1059 = vperm.xlu1 %2263, %v416_v12  }
  0x43   : > { %1088 = vperm.xlu0 %2262, %v421_v13   ;;  %1083 = vperm.xlu1 %2263, %v420_v14  }
  0x81   : > { %v484_v15 = vpop.permute.xlu0 %483  ;;  %v482_v16 = vpop.permute.xlu1 %481 }
  0x85   : > { %v488_v17 = vpop.permute.xlu0 %487  ;;  %v486_v18 = vpop.permute.xlu1 %485 }
  0x86   : > { %v496_v19 = vsel %vm489_vm1, %v484_v15, %v488_v17  ;;  %v492_v20 = vsel %vm489_vm1, %v482_v16, %v486_v18 }
  0x87   : > { %2127 = vmatprep.subr.bf16.mxu0 %v496_v19 }
  0x88   : > { %2128 = vmatpush3.bf16.msra.mxu0 %v496_v19 }
  0x89   : > { %v453_v21 = vpop.permute.xlu0 %452  ;;  %2129 = vmatprep.subr.bf16.mxu0 %v492_v20  ;;  %v457_v22 = vpop.permute.xlu1 %456 }
  0x8a   : > { %v465_v23 = vsel %vm458_vm2, %v453_v21, %v457_v22 }
  0x8b   : > { %2135 = vmatprep.subr.bf16.mxu1 %v465_v23 }
  0x8c   : > { %2130 = vmatpush3.bf16.msra.mxu0 %v492_v20  ;;  %2136 = vmatpush3.bf16.msra.mxu1 %v465_v23 }
  0x8d   : > { %v637_v26 = vpop.permute.xlu0 %636  ;;  %v641_v27 = vpop.permute.xlu1 %640 }
  0x8e   : > { %v648_v28 = vsel %vm489_vm1, %v637_v26, %v641_v27 }
  0x8f   : > { %2132 = vmatmul.mubr.msk.bf16.vlgmr.msra.gmra.mxu0 %vm513_vm0, %v2269_v24  ;;  %2143 = vmatprep.subr.bf16.mxu0 %v648_v28 }
  0x90   : > { %2147 = vmatprep.mubr.msk.bf16.mxu0 %vm513_vm0, %v2272_v25  ;;  %2144 = vmatpush3.bf16.msra.mxu0 %v648_v28 }
  0x91   : > { %v451_v29 = vpop.permute.xlu0 %450  ;;  %v455_v30 = vpop.permute.xlu1 %454 }
  0x92   : > { %v461_v31 = vsel %vm458_vm2, %v451_v29, %v455_v30 }
  0x93   : > { %2137 = vmatprep.subr.bf16.mxu1 %v461_v31 }
  0x94   : > { %2138 = vmatpush3.bf16.msra.mxu1 %v461_v31 }
  0x95   : > { %v635_v33 = vpop.permute.xlu0 %634  ;;  %v639_v34 = vpop.permute.xlu1 %638  ;;  %2151 = vmatprep.subr.bf16.mxu1 %v2387_v0 }
  0x96   : > { %v644_v35 = vsel %vm489_vm1, %v635_v33, %v639_v34 }
  0x97   : > { %2140 = vmatmul.mubr.msk.bf16.vlgmr.msra.gmra.mxu1 %vm513_vm0, %v2271_v32  ;;  %2145 = vmatprep.subr.bf16.mxu0 %v644_v35 }
  0x98   : > { %2146 = vmatpush3.bf16.msra.mxu0 %v644_v35  ;;  %2152 = vmatpush3.bf16.msra.mxu1 %v2387_v0 }
  0x99   : > { %v879_v38 = vpop.permute.xlu0 %878  ;;  %v883_v39 = vpop.permute.xlu1 %882  ;;  %2153 = vmatprep.subr.bf16.mxu1 %v2389_v1  ;;  %2159 = vmatprep.subr.bf16.mxu0 %v2399_v2 }
  0x9a   : > { %2155 = vmatprep.mubr.msk.bf16.mxu1 %vm513_vm0, %v2274_v36  ;;  %v891_v43 = vsel %vm884_vm3, %v879_v38, %v883_v39 }
  0x9b   : > { %2148 = vmatmul.mubr.msk.bf16.vlgmr.msra.gmra.mxu0 %vm513_vm0, %v2273_v37 }
  0x9c   : > { %2154 = vmatpush3.bf16.msra.mxu1 %v2389_v1  ;;  %2160 = vmatpush3.bf16.msra.mxu0 %v2399_v2 }
  0x9d   : > { %v970_v42 = vpop.permute.xlu0 %969  ;;  %2167 = vmatprep.subr.bf16.mxu1 %v891_v43  ;;  %v974_v44 = vpop.permute.xlu1 %973  ;;  %2161 = vmatprep.subr.bf16.mxu0 %v2417_v5 }
  0x9e   : > { %2163 = vmatprep.mubr.msk.bf16.mxu0 %vm513_vm0, %v2276_v40  ;;  %v981_v48 = vsel %vm884_vm3, %v970_v42, %v974_v44 }
  0x9f   : > { %2156 = vmatmul.mubr.msk.bf16.vlgmr.msra.gmra.mxu1 %vm513_vm0, %v2275_v41 }
  0xa0   : > { %2162 = vmatpush3.bf16.msra.mxu0 %v2417_v5  ;;  %2168 = vmatpush3.bf16.msra.mxu1 %v891_v43 }
  0xa1   : > { %v877_v47 = vpop.permute.xlu0 %876  ;;  %2175 = vmatprep.subr.bf16.mxu0 %v981_v48  ;;  %v881_v49 = vpop.permute.xlu1 %880  ;;  %2171 = vmatprep.mubr.msk.bf16.mxu1 %vm513_vm0, %v2278_v45 }
  0xa2   : > { %v887_v51 = vsel %vm884_vm3, %v877_v47, %v881_v49 }
  0xa3   : > { %2164 = vmatmul.mubr.msk.bf16.vlgmr.msra.gmra.mxu0 %vm513_vm0, %v2277_v46  ;;  %2169 = vmatprep.subr.bf16.mxu1 %v887_v51 }
  0xa4   : > { %2170 = vmatpush3.bf16.msra.mxu1 %v887_v51  ;;  %2176 = vmatpush3.bf16.msra.mxu0 %v981_v48 }
  0xa5   : > { %v968_v53 = vpop.permute.xlu0 %967  ;;  %v972_v54 = vpop.permute.xlu1 %971  ;;  %2179 = vmatprep.mubr.msk.bf16.mxu0 %vm513_vm0, %v2280_v50 }
  0xa6   : > { %v977_v55 = vsel %vm884_vm3, %v968_v53, %v972_v54 }
  0xa7   : > { %2172 = vmatmul.mubr.msk.bf16.vlgmr.msra.gmra.mxu1 %vm513_vm0, %v2279_v52  ;;  %2177 = vmatprep.subr.bf16.mxu0 %v977_v55 }
  0xa8   : > { %2178 = vmatpush3.bf16.msra.mxu0 %v977_v55 }
  0xab   : > { %2180 = vmatmul.mubr.msk.bf16.vlgmr.msra.gmra.mxu0 %vm513_vm0, %v2281_v56 }
  0xb2   : > { %v1070_v13 = vpop.permute.xlu0 %1069  ;;  %v1075_v18 = vpop.permute.xlu1 %1074 }
  0xb6   : > { %v1099_v30 = vpop.permute.xlu0 %1098  ;;  %v1094_v37 = vpop.permute.xlu1 %1093 }
  0xba   : > { %v1065_v49 = vpop.permute.xlu0 %1064  ;;  %v1060_v55 = vpop.permute.xlu1 %1059 }
 0x14f   : > { %v2133_v57 = vpop.f32.mrf.mxu0 }
 0x151   : > { %v554_v58 = vpop.f32.mrf.mxu0 }
 0x153   : > { %v2134_v59 = vpop.f32.mrf.mxu0 }
 0x155   : > { %v557_v61 = vpop.f32.mrf.mxu0 }
 0x157   : > { %v2141_v60 = vpop.f32.mrf.mxu1 }
 0x158   : > { %v628_v9 = vadd.f32 %v2141_v60, %v2133_v57 }
 0x159   : > { %v619_v62 = vpop.f32.mrf.mxu1 }
 0x15a   : > { %v620_v21 = vadd.f32 %v619_v62, %v554_v58  ;;  %v2282_v62 = vld [vmem:[%s2716_s3 + $0x10] sm:$0xff]  }
 0x15b   : > { %v2142_v63 = vpop.f32.mrf.mxu1  ;;  %v2149_v2 = vpop.f32.mrf.mxu0  ;;  %2187 = vmatprep.mubr.msk.bf16.mxu1 %vm513_vm0, %v2282_v62 }
 0x15c   : > { %v722_v12 = vadd.f32 %v2149_v2, %v628_v9  ;;  %v631_v16 = vadd.f32 %v2142_v63, %v2134_v59  ;;  %v425_v9 = vld [vmem:[%s2720_s7 + $0x8] sm:$0xff] }
 0x15d   : > { %v622_v3 = vpop.f32.mrf.mxu1  ;;  %v705_v4 = vpop.f32.mrf.mxu0 }
 0x15e   : > { %v623_v22 = vadd.f32 %v622_v3, %v557_v61  ;;  %v720_v27 = vadd.f32 %v705_v4, %v620_v21  ;;  %v1089_v61 = vpop.permute.xlu0 %1088  ;;  %v1084_v3 = vpop.permute.xlu1 %1083  ;;  %v437_v21 = vld [vmem:[%s2723_s10 + $0x8] sm:$0xff] }
 0x15f   : > { %v2150_v5 = vpop.f32.mrf.mxu0  ;;  %v2157_v6 = vpop.f32.mrf.mxu1 }
 0x160   : > { %v798_v17 = vadd.f32 %v2157_v6, %v722_v12  ;;  %v723_v23 = vadd.f32 %v2150_v5, %v631_v16  ;;  %v2284_v5 = vld [vmem:[%s2716_s3] sm:$0xff]   ;;  %v426_v12 = vld [vmem:[%s2720_s7 + $0x10] sm:$0xff] }
 0x161   : > { %v708_v7 = vpop.f32.mrf.mxu0  ;;  %v781_v8 = vpop.f32.mrf.mxu1  ;;  %2195 = vmatprep.mubr.msk.bf16.mxu0 %vm513_vm0, %v2284_v5  ;;  %v434_v16 = vld [vmem:[%s2722_s9 + $0x10] sm:$0xff] }
 0x162   : > { %v721_v28 = vadd.f32 %v708_v7, %v623_v22  ;;  %v796_v34 = vadd.f32 %v781_v8, %v720_v27  ;;  %v436_v22 = vld [vmem:[%s2723_s10] sm:$0xff] }
 0x163   : > { %v2158_v10 = vpop.f32.mrf.mxu1  ;;  %v2165_v11 = vpop.f32.mrf.mxu0 }
 0x164   : > { %v874_v24 = vadd.f32 %v2165_v11, %v798_v17  ;;  %v799_v29 = vadd.f32 %v2158_v10, %v723_v23  ;;  %v424_v10 = vld [vmem:[%s2720_s7] sm:$0xff]  ;;  %v427_v11 = vld [vmem:[%s2720_s7 + $0x18] sm:$0xff]  ;;  %v429_v17 = vld [vmem:[%s2721_s8 + $0x8] sm:$0xff] }
 0x165   : > { %v784_v14 = vpop.f32.mrf.mxu1  ;;  %v857_v15 = vpop.f32.mrf.mxu0  ;;  %v439_v23 = vld [vmem:[%s2723_s10 + $0x18] sm:$0xff] }
 0x166   : > { %v797_v35 = vadd.f32 %v784_v14, %v721_v28  ;;  %v872_v41 = vadd.f32 %v857_v15, %v796_v34  ;;  %v432_v14 = vld [vmem:[%s2722_s9] sm:$0xff]  ;;  %v435_v15 = vld [vmem:[%s2722_s9 + $0x18] sm:$0xff] }
 0x167   : > { %v2166_v19 = vpop.f32.mrf.mxu0  ;;  %v2173_v20 = vpop.f32.mrf.mxu1  ;;  %v2283_v34 = vld [vmem:[%s2716_s3 + $0x18] sm:$0xff]  }
 0x168   : > { %v965_v31 = vadd.f32 %v2173_v20, %v874_v24  ;;  %v875_v36 = vadd.f32 %v2166_v19, %v799_v29  ;;  %v431_v19 = vld [vmem:[%s2721_s8 + $0x18] sm:$0xff]  ;;  %v430_v20 = vld [vmem:[%s2721_s8 + $0x10] sm:$0xff] }
 0x169   : > { %v860_v25 = vpop.f32.mrf.mxu0  ;;  %v948_v26 = vpop.f32.mrf.mxu1  ;;  %v438_v24 = vld [vmem:[%s2723_s10 + $0x10] sm:$0xff] }
 0x16a   : > { %v873_v42 = vadd.f32 %v860_v25, %v797_v35  ;;  %v963_v46 = vadd.f32 %v948_v26, %v872_v41  ;;  %v2286_v35 = vld [vmem:[%s2716_s3 + $0x20] sm:$0xff]  }
 0x16b   : > { %v2174_v32 = vpop.f32.mrf.mxu1  ;;  %v2181_v33 = vpop.f32.mrf.mxu0 }
 0x16c   : > { %v1055_v38 = vadd.f32 %v2181_v33, %v965_v31  ;;  %v966_v43 = vadd.f32 %v2174_v32, %v875_v36 }
 0x16d   : > { %v951_v39 = vpop.f32.mrf.mxu1  ;;  %v1038_v40 = vpop.f32.mrf.mxu0 }
 0x16e   : > { %v1079_v44 = vmul.f32 %v1070_v13, %v1055_v38  ;;  %v964_v47 = vadd.f32 %v951_v39, %v873_v42  ;;  %v1053_v52 = vadd.f32 %v1038_v40, %v963_v46  ;;  %v433_v13 = vld [vmem:[%s2722_s9 + $0x8] sm:$0xff]  ;;  %v2287_v42 = vld [vmem:[%s2716_s3 + $0x30] sm:$0xff]  }
 0x16f   : > { %v2182_v45 = vpop.f32.mrf.mxu0  ;;  %v2285_v39 = vld [vmem:[%s2716_s3 + $0x8] sm:$0xff]  }
 0x170   : > { %v1056_v48 = vadd.f32 %v2182_v45, %v966_v43  ;;  %v1103_v51 = vadd.f32 %v1094_v37, %v1079_v44  ;;  %v1077_v60 = vmul.f32 %v1060_v55, %v1053_v52  ;;  %v2293_v52 = vld [vmem:[%s2716_s3 + $0x58] sm:$0xff]   ;;  %v2296_v55 = vld [vmem:[%s2716_s3 + $0x68] sm:$0xff]  }
 0x171   : > { %v1041_v50 = vpop.f32.mrf.mxu0 }
 0x172   : > { %v1080_v53 = vmul.f32 %v1075_v18, %v1056_v48  ;;  %v1054_v54 = vadd.f32 %v1041_v50, %v964_v47  ;;  %v1107_v58 = vmax.f32 %v1103_v51, 0.0  ;;  %v1101_v4 = vadd.f32 %v1084_v3, %v1077_v60  ;;  %v428_v18 = vld [vmem:[%s2721_s8] sm:$0xff]  ;;  %v2288_v47 = vld [vmem:[%s2716_s3 + $0x28] sm:$0xff]   ;;  %v2289_v48 = vld [vmem:[%s2716_s3 + $0x38] sm:$0xff]  }
 0x173   : > { %v2291_v50 = vld [vmem:[%s2716_s3 + $0x50] sm:$0xff]   ;;  %v2292_v51 = vld [vmem:[%s2716_s3 + $0x48] sm:$0xff]  }
 0x174   : > { %v1104_v56 = vadd.f32 %v1099_v30, %v1080_v53  ;;  %v1078_v57 = vmul.f32 %v1065_v49, %v1054_v54  ;;  %v1105_v7 = vmax.f32 %v1101_v4, 0.0  ;;  %v2290_v49 = vld [vmem:[%s2716_s3 + $0x40] sm:$0xff]  }
 0x175   : > { %v2294_v53 = vld [vmem:[%s2716_s3 + $0x60] sm:$0xff]  }
 0x176   : > { %v1108_v59 = vmax.f32 %v1104_v56, 0.0  ;;  %v1102_v2 = vadd.f32 %v1089_v61, %v1078_v57  ;;  %v2295_v54 = vld [vmem:[%s2717_s4] sm:$0xff]   ;;  %v2297_v56 = vld [vmem:[%s2717_s4 + $0x8] sm:$0xff]  }
 0x178   : > { %v2540_v63 = vpack.c.bf16 %v1108_v59, %v1107_v58  ;;  %v1106_v6 = vmax.f32 %v1102_v2, 0.0 }
 0x17a   : > { %1139 = vrot.lane.b32.xlu0 %v2540_v63, %s2309_s14  ;;  %1135 = vrot.lane.b32.xlu1 %v2540_v63, %s2308_s13  ;;  %v2555_v8 = vpack.c.bf16 %v1106_v6, %v1105_v7 }
 0x17e   : > { %1119 = vrot.lane.b32.xlu0 %v2540_v63, %s2311_s16  ;;  %1115 = vrot.lane.b32.xlu1 %v2540_v63, %s2310_s15 }
 0x182   : > { %1137 = vrot.lane.b32.xlu0 %v2555_v8, %s2309_s14  ;;  %1133 = vrot.lane.b32.xlu1 %v2555_v8, %s2308_s13 }
 0x186   : > { %1117 = vrot.lane.b32.xlu0 %v2555_v8, %s2311_s16  ;;  %1113 = vrot.lane.b32.xlu1 %v2555_v8, %s2310_s15 }
 0x18a   : > { %1290 = vrot.lane.b32.xlu0 %v2540_v63, %s2307_s29  ;;  %1286 = vrot.lane.b32.xlu1 %v2540_v63, %s2306_s26 }
 0x18e   : > { %1288 = vrot.lane.b32.xlu0 %v2555_v8, %s2307_s29  ;;  %1284 = vrot.lane.b32.xlu1 %v2555_v8, %s2306_s26 }
 0x192   : > { %1677 = vperm.xlu0 %2262, %v425_v9   ;;  %1672 = vperm.xlu1 %2263, %v424_v10  }
 0x196   : > { %1687 = vperm.xlu0 %2262, %v427_v11   ;;  %1682 = vperm.xlu1 %2263, %v426_v12  }
 0x19a   : > { %1794 = vperm.xlu0 %2262, %v433_v13   ;;  %1789 = vperm.xlu1 %2263, %v432_v14  }
 0x19e   : > { %1804 = vperm.xlu0 %2262, %v435_v15   ;;  %1799 = vperm.xlu1 %2263, %v434_v16  }
 0x1a2   : > { %1701 = vperm.xlu0 %2262, %v429_v17   ;;  %1696 = vperm.xlu1 %2263, %v428_v18  }
 0x1a6   : > { %1711 = vperm.xlu0 %2262, %v431_v19   ;;  %1706 = vperm.xlu1 %2263, %v430_v20  }
 0x1aa   : > { %1818 = vperm.xlu0 %2262, %v437_v21   ;;  %1813 = vperm.xlu1 %2263, %v436_v22  }
 0x1ae   : > { %1828 = vperm.xlu0 %2262, %v439_v23   ;;  %1823 = vperm.xlu1 %2263, %v438_v24  }
 0x1ec   : > { %v1140_v25 = vpop.permute.xlu0 %1139  ;;  %v1136_v26 = vpop.permute.xlu1 %1135 }
 0x1ed   : > { %v1147_v27 = vsel %vm458_vm2, %v1136_v26, %v1140_v25 }
 0x1ee   : > { %2183 = vmatprep.subr.bf16.mxu1 %v1147_v27 }
 0x1ef   : > { %2184 = vmatpush3.bf16.msra.mxu1 %v1147_v27 }
 0x1f0   : > { %v1120_v28 = vpop.permute.xlu0 %1119  ;;  %v1116_v29 = vpop.permute.xlu1 %1115 }
 0x1f1   : > { %v1127_v30 = vsel %vm884_vm3, %v1116_v29, %v1120_v28 }
 0x1f2   : > { %2191 = vmatprep.subr.bf16.mxu0 %v1127_v30 }
 0x1f3   : > { %2192 = vmatpush3.bf16.msra.mxu0 %v1127_v30 }
 0x1f4   : > { %v1138_v31 = vpop.permute.xlu0 %1137  ;;  %v1134_v32 = vpop.permute.xlu1 %1133 }
 0x1f5   : > { %v1143_v33 = vsel %vm458_vm2, %v1134_v32, %v1138_v31 }
 0x1f6   : > { %2185 = vmatprep.subr.bf16.mxu1 %v1143_v33 }
 0x1f7   : > { %2186 = vmatpush3.bf16.msra.mxu1 %v1143_v33 }
 0x1f8   : > { %v1118_v36 = vpop.permute.xlu0 %1117  ;;  %v1114_v37 = vpop.permute.xlu1 %1113 }
 0x1f9   : > { %v1123_v38 = vsel %vm884_vm3, %v1114_v37, %v1118_v36 }
 0x1fa   : > { %2188 = vmatmul.mubr.msk.bf16.vlgmr.msra.gmra.mxu1 %vm513_vm0, %v2283_v34  ;;  %2193 = vmatprep.subr.bf16.mxu0 %v1123_v38 }
 0x1fb   : > { %2194 = vmatpush3.bf16.msra.mxu0 %v1123_v38  ;;  %2203 = vmatprep.mubr.msk.bf16.mxu1 %vm513_vm0, %v2286_v35 }
 0x1fc   : > { %v1291_v40 = vpop.permute.xlu0 %1290  ;;  %2207 = vmatprep.subr.bf16.mxu0 %v2540_v63  ;;  %v1287_v41 = vpop.permute.xlu1 %1286 }
 0x1fd   : > { %v1298_v43 = vsel %vm489_vm1, %v1287_v41, %v1291_v40 }
 0x1fe   : > { %2196 = vmatmul.mubr.msk.bf16.vlgmr.msra.gmra.mxu0 %vm513_vm0, %v2285_v39  ;;  %2199 = vmatprep.subr.bf16.mxu1 %v1298_v43 }
 0x1ff   : > { %2200 = vmatpush3.bf16.msra.mxu1 %v1298_v43  ;;  %2208 = vmatpush3.bf16.msra.mxu0 %v2540_v63 }
 0x200   : > { %v1289_v44 = vpop.permute.xlu0 %1288  ;;  %2209 = vmatprep.subr.bf16.mxu0 %v2555_v8  ;;  %v1285_v45 = vpop.permute.xlu1 %1284  ;;  %2211 = vmatprep.mubr.msk.bf16.mxu0 %vm513_vm0, %v2287_v42 }
 0x201   : > { %v1294_v46 = vsel %vm489_vm1, %v1285_v45, %v1289_v44 }
 0x202   : > { %2201 = vmatprep.subr.bf16.mxu1 %v1294_v46 }
 0x203   : > { %2202 = vmatpush3.bf16.msra.mxu1 %v1294_v46  ;;  %2210 = vmatpush3.bf16.msra.mxu0 %v2555_v8 }
 0x204   : > { %2215 = vmatprep.subr.bf16.mxu1 %v1127_v30  ;;  %2223 = vmatprep.subr.bf16.mxu0 %v1147_v27 }
 0x206   : > { %2204 = vmatmul.mubr.msk.bf16.vlgmr.msra.gmra.mxu1 %vm513_vm0, %v2288_v47  ;;  %2212 = vmatmul.mubr.msk.bf16.vlgmr.msra.gmra.mxu0 %vm513_vm0, %v2289_v48 }
 0x207   : > { %2216 = vmatpush3.bf16.msra.mxu1 %v1127_v30  ;;  %2224 = vmatpush3.bf16.msra.mxu0 %v1147_v27 }
 0x208   : > { %2217 = vmatprep.subr.bf16.mxu1 %v1123_v38  ;;  %2225 = vmatprep.subr.bf16.mxu0 %v1143_v33 }
 0x209   : > { %2219 = vmatprep.mubr.msk.bf16.mxu1 %vm513_vm0, %v2290_v49  ;;  %2227 = vmatprep.mubr.msk.bf16.mxu0 %vm513_vm0, %v2291_v50 }
 0x20b   : > { %2218 = vmatpush3.bf16.msra.mxu1 %v1123_v38  ;;  %2226 = vmatpush3.bf16.msra.mxu0 %v1143_v33 }
 0x20c   : > { %2231 = vmatprep.subr.bf16.mxu1 %v1298_v43  ;;  %2239 = vmatprep.subr.bf16.mxu0 %v2387_v0 }
 0x20d   : > { %v2693_v57 = vpop.permute.xlu0 %1677 }
 0x20e   : > { %2220 = vmatmul.mubr.msk.bf16.vlgmr.msra.gmra.mxu1 %vm513_vm0, %v2292_v51  ;;  %2228 = vmatmul.mubr.msk.bf16.vlgmr.msra.gmra.mxu0 %vm513_vm0, %v2293_v52 }
 0x20f   : > { %2232 = vmatpush3.bf16.msra.mxu1 %v1298_v43  ;;  %2240 = vmatpush3.bf16.msra.mxu0 %v2387_v0  ;;  %v2691_v0 = vpop.permute.xlu1 %1672 }
 0x210   : > { %2233 = vmatprep.subr.bf16.mxu1 %v1294_v46  ;;  %2241 = vmatprep.subr.bf16.mxu0 %v2389_v1 }
 0x211   : > { %2235 = vmatprep.mubr.msk.bf16.mxu1 %vm513_vm0, %v2294_v53  ;;  %2243 = vmatprep.mubr.msk.bf16.mxu0 %vm513_vm0, %v2295_v54  ;;  %v2695_v59 = vpop.permute.xlu0 %1687 }
 0x213   : > { %2234 = vmatpush3.bf16.msra.mxu1 %v1294_v46  ;;  %2242 = vmatpush3.bf16.msra.mxu0 %v2389_v1  ;;  %v1683_v58 = vpop.permute.xlu1 %1682 }
 0x215   : > { %v2697_v2 = vpop.permute.xlu0 %1794 }
 0x216   : > { %2236 = vmatmul.mubr.msk.bf16.vlgmr.msra.gmra.mxu1 %vm513_vm0, %v2296_v55  ;;  %2244 = vmatmul.mubr.msk.bf16.vlgmr.msra.gmra.mxu0 %vm513_vm0, %v2297_v56 }
 0x217   : > { %v1790_v61 = vpop.permute.xlu1 %1789 }
 0x219   : > { %v1805_v8 = vpop.permute.xlu0 %1804 }
 0x21b   : > { %v1800_v1 = vpop.permute.xlu1 %1799 }
 0x21d   : > { %v2699_v17 = vpop.permute.xlu0 %1701 }
 0x21f   : > { %v1697_v11 = vpop.permute.xlu1 %1696 }
 0x221   : > { %v1712_v33 = vpop.permute.xlu0 %1711 }
 0x223   : > { %v1707_v22 = vpop.permute.xlu1 %1706 }
 0x225   : > { %v1819_v49 = vpop.permute.xlu0 %1818 }
 0x227   : > { %v1814_v38 = vpop.permute.xlu1 %1813 }
 0x22b   : > { %v1824_v55 = vpop.permute.xlu1 %1823 }
 0x2ba   : > { %v2189_v60 = vpop.f32.mrf.mxu1 }
 0x2bc   : > { %v1204_v62 = vpop.f32.mrf.mxu1 }
 0x2be   : > { %v2197_v63 = vpop.f32.mrf.mxu0  ;;  %v2190_v3 = vpop.f32.mrf.mxu1 }
 0x2bf   : > { %v1278_v14 = vadd.f32 %v2197_v63, %v2189_v60 }
 0x2c0   : > { %v1269_v4 = vpop.f32.mrf.mxu0  ;;  %v1207_v6 = vpop.f32.mrf.mxu1 }
 0x2c1   : > { %v1270_v18 = vadd.f32 %v1269_v4, %v1204_v62 }
 0x2c2   : > { %v2198_v5 = vpop.f32.mrf.mxu0 }
 0x2c3   : > { %v1281_v23 = vadd.f32 %v2198_v5, %v2190_v3 }
 0x2c4   : > { %v1272_v7 = vpop.f32.mrf.mxu0 }
 0x2c5   : > { %v1273_v25 = vadd.f32 %v1272_v7, %v1207_v6 }
 0x2c6   : > { %v2205_v9 = vpop.f32.mrf.mxu1  ;;  %v2213_v10 = vpop.f32.mrf.mxu0 }
 0x2c7   : > { %v1372_v19 = vadd.f32 %v2205_v9, %v1278_v14 }
 0x2c8   : > { %v1355_v12 = vpop.f32.mrf.mxu1  ;;  %v1429_v13 = vpop.f32.mrf.mxu0 }
 0x2c9   : > { %v1370_v24 = vadd.f32 %v1355_v12, %v1270_v18  ;;  %v1446_v28 = vadd.f32 %v2213_v10, %v1372_v19 }
 0x2ca   : > { %v2206_v15 = vpop.f32.mrf.mxu1  ;;  %v2214_v16 = vpop.f32.mrf.mxu0 }
 0x2cb   : > { %v1373_v29 = vadd.f32 %v2206_v15, %v1281_v23  ;;  %v1444_v34 = vadd.f32 %v1429_v13, %v1370_v24  ;;  %v1829_v15 = vpop.permute.xlu0 %1828 }
 0x2cc   : > { %v1358_v20 = vpop.f32.mrf.mxu1  ;;  %v1432_v21 = vpop.f32.mrf.mxu0 }
 0x2cd   : > { %v1371_v30 = vadd.f32 %v1358_v20, %v1273_v25  ;;  %v1447_v39 = vadd.f32 %v2214_v16, %v1373_v29 }
 0x2ce   : > { %v2221_v26 = vpop.f32.mrf.mxu1  ;;  %v2229_v27 = vpop.f32.mrf.mxu0 }
 0x2cf   : > { %v1520_v35 = vadd.f32 %v2221_v26, %v1446_v28  ;;  %v1445_v41 = vadd.f32 %v1432_v21, %v1371_v30 }
 0x2d0   : > { %v1503_v31 = vpop.f32.mrf.mxu1  ;;  %v1577_v32 = vpop.f32.mrf.mxu0 }
 0x2d1   : > { %v1518_v40 = vadd.f32 %v1503_v31, %v1444_v34  ;;  %v1594_v44 = vadd.f32 %v2229_v27, %v1520_v35 }
 0x2d2   : > { %v2222_v36 = vpop.f32.mrf.mxu1  ;;  %v2230_v37 = vpop.f32.mrf.mxu0 }
 0x2d3   : > { %v1521_v45 = vadd.f32 %v2222_v36, %v1447_v39  ;;  %v1592_v50 = vadd.f32 %v1577_v32, %v1518_v40 }
 0x2d4   : > { %v1506_v42 = vpop.f32.mrf.mxu1  ;;  %v1580_v43 = vpop.f32.mrf.mxu0 }
 0x2d5   : > { %v1519_v46 = vadd.f32 %v1506_v42, %v1445_v41  ;;  %v1595_v56 = vadd.f32 %v2230_v37, %v1521_v45 }
 0x2d6   : > { %v2237_v47 = vpop.f32.mrf.mxu1  ;;  %v2245_v48 = vpop.f32.mrf.mxu0 }
 0x2d7   : > { %v1668_v51 = vadd.f32 %v2237_v47, %v1594_v44  ;;  %v1809_v52 = vmul.f32 %v2245_v48, %v1800_v1  ;;  %v1593_v3 = vadd.f32 %v1580_v43, %v1519_v46 }
 0x2d8   : > { %v1651_v53 = vpop.f32.mrf.mxu1  ;;  %v1772_v54 = vpop.f32.mrf.mxu0 }
 0x2d9   : > { %v1692_v60 = vmul.f32 %v1683_v58, %v1668_v51  ;;  %v1666_v62 = vadd.f32 %v1651_v53, %v1592_v50  ;;  %v1807_v63 = vmul.f32 %v1790_v61, %v1772_v54  ;;  %v1833_v7 = vadd.f32 %v1824_v55, %v1809_v52 }
 0x2da   : > { %v2238_v4 = vpop.f32.mrf.mxu1  ;;  %v2246_v5 = vpop.f32.mrf.mxu0 }
 0x2db   : > { %v1716_v6 = vadd.f32 %v1707_v22, %v1692_v60  ;;  %v1690_v9 = vmul.f32 %v2691_v0, %v1666_v62  ;;  %v1669_v10 = vadd.f32 %v2238_v4, %v1595_v56  ;;  %v1831_v12 = vadd.f32 %v1814_v38, %v1807_v63 }
 0x2dc   : > { %v1810_v13 = vmul.f32 %v2246_v5, %v1805_v8  ;;  %v1654_v14 = vpop.f32.mrf.mxu1  ;;  %v1775_v1 = vpop.f32.mrf.mxu0 }
 0x2dd   : > { %v1837_v16 = vadd.f32 %v1833_v7, %v1716_v6  ;;  %v1714_v18 = vadd.f32 %v1697_v11, %v1690_v9  ;;  %v1693_v58 = vmul.f32 %v2695_v59, %v1669_v10  ;;  %v1667_v19 = vadd.f32 %v1654_v14, %v1593_v3 }
 0x2de   : > { %v1834_v61 = vadd.f32 %v1829_v15, %v1810_v13  ;;  %v1808_v20 = vmul.f32 %v2697_v2, %v1775_v1 }
 0x2df   : > { %v1841_v21 = vmax.f32 %v1837_v16, 0.0  ;;  %v1835_v22 = vadd.f32 %v1831_v12, %v1714_v18  ;;  %v1717_v23 = vadd.f32 %v1712_v33, %v1693_v58  ;;  %v1691_v0 = vmul.f32 %v2693_v57, %v1667_v19 }
 0x2e0   : > { %v1832_v8 = vadd.f32 %v1819_v49, %v1808_v20 }
 0x2e1   : > { %v2065_v24 = vpack.c.bf16 %v1841_v21, %v1841_v21  ;;  %v1839_v25 = vmax.f32 %v1835_v22, 0.0  ;;  %v1838_v11 = vadd.f32 %v1834_v61, %v1717_v23  ;;  %v1715_v59 = vadd.f32 %v2699_v17, %v1691_v0 }
 0x2e3   : > { %1862 = vst.msk [vmem:[%s406_s24 + $0x8] sm:$0xf] %vm1859_vm4, %v2065_v24  ;;  %v2063_v26 = vpack.c.bf16 %v1839_v25, %v1839_v25  ;;  %v1842_v27 = vmax.f32 %v1838_v11, 0.0  ;;  %v1836_v2 = vadd.f32 %v1832_v8, %v1715_v59 }
 0x2e5   : > { %1860 = vst.msk [vmem:[%s406_s24] sm:$0xf] %vm1859_vm4, %v2063_v26  ;;  %v2066_v28 = vpack.c.bf16 %v1842_v27, %v1842_v27  ;;  %v1840_v29 = vmax.f32 %v1836_v2, 0.0 }
 0x2e7   : > { %1863 = vst.msk [vmem:[%s406_s24 + $0xc] sm:$0xf] %vm1859_vm4, %v2066_v28  ;;  %v2064_v57 = vpack.c.bf16 %v1840_v29, %v1840_v29 }
 0x2e9   : > { %1861 = vst.msk [vmem:[%s406_s24 + $0x4] sm:$0xf] %vm1859_vm4, %v2064_v57 }
 0x2ea PF: > { %s21_s17 = sadd.s32 1, %s2304_s17  }
 0x2eb   : > { %p18_p4 = scmp.ge.s32.totalorder %s21_s17, 4  }
 0x2ed   :  { %20 = sbr.rel (!%p18_p4) target bundleno = 1 (0x1), region = 109 }

</bundles_post_ra>
